<compile_context>
chip_gen: v7x
topology: tpu7x:2x2x1
jax: 0.10.0
libtpu: 0.0.40
codegen_flags: <defaults>
</compile_context>

<pallas_src>
import jax
import jax.numpy as jnp
import numpy as np
from jax import lax
from jax.experimental import pallas as pl
from jax.experimental.pallas import tpu as pltpu

OUT_CHANNELS = 32
CPAD = 128   # per-part, per-tap lane slot width -> every patch store is 128-lane aligned


def _round_up(a, m):
    return (a + m - 1) // m * m


def _upsample_matrix(H, W, prev_stride, prev_rows):
    """0/1 matrix R (H*W, prev_rows): (R @ prev)[y*W+x] = prev[(y//2)*prev_stride + x//2]."""
    r = np.arange(H * W)
    src = (r // W // 2) * prev_stride + (r % W) // 2
    m = (src[:, None] == np.arange(prev_rows)[None, :]).astype(np.float32)
    return jnp.asarray(m, dtype=jnp.bfloat16)


# ----------------------------- fused Pallas kernel -----------------------------

def _build_fused_kernel(stage_meta, n_ext, n_rep, n_out):
    """One kernel body that runs every conv stage of the network for one image."""
    n_stages = len(stage_meta)

    def kernel(*refs):
        p = 0
        x_ref = refs[p]; p += 1
        ext_refs = refs[p:p + n_ext]; p += n_ext
        rep_refs = refs[p:p + n_rep]; p += n_rep
        w_refs = refs[p:p + n_stages]; p += n_stages
        b_ref = refs[p]; p += 1
        out_refs = refs[p:p + n_out]; p += n_out
        scratch = refs[p:]

        # activation carried across stages entirely inside VMEM (SSA values / scratch)
        prev_val = x_ref[0]            # (h0*w0, 32) bf16 flat activation
        prev_yref = None               # f32 padded-layout conv output (for pooling)
        prev_Wp = None

        si = 0
        for s, st in enumerate(stage_meta):
            H, W, Wp, M = st["H"], st["W"], st["Wp"], st["M"]
            n_parts = st["n_parts"]
            slabs = [scratch[si + k] for k in range(n_parts)]
            si += n_parts
            patch = scratch[si]; si += 1            # (M, n_parts*9*128) bf16
            yref = None
            if st["pool"]:
                yref = scratch[si]; si += 1         # (M, 32) f32 staging for max-pool

            # -- 1. zero the zero-padded spatial slabs (pad rows/cols must read 0) --
            for sl in slabs:
                sl[...] = jnp.zeros_like(sl)

            # -- 2a. part 0 (the carried activation) -> slab 0 ----------------------
            if st["mode"] == "up":
                # nearest-2x upsample: ONE 0/1 replication matmul for the whole part
                part0 = jnp.dot(rep_refs[st["rep"]][...], prev_val,
                                preferred_element_type=jnp.float32)     # (H*W, 32) f32
                for y in range(H):
                    slabs[0][pl.ds((y + 1) * Wp + 1, W), :OUT_CHANNELS] = (
                        part0[y * W:(y + 1) * W, :])
            else:
                # 2x2/stride-2 max-pool of the previous stage's f32 output:
                # strided reads + VPU max (no MXU, no bf16 rounding)
                for i in range(H):
                    b0 = 2 * i * prev_Wp
                    b1 = b0 + prev_Wp
                    q00 = prev_yref[pl.ds(b0, W, stride=2), :]
                    q01 = prev_yref[pl.ds(b0 + 1, W, stride=2), :]
                    q10 = prev_yref[pl.ds(b1, W, stride=2), :]
                    q11 = prev_yref[pl.ds(b1 + 1, W, stride=2), :]
                    pooled = jnp.maximum(jnp.maximum(q00, q01),
                                         jnp.maximum(q10, q11))          # (W, 32) f32
                    slabs[0][pl.ds((i + 1) * Wp + 1, W), :OUT_CHANNELS] = pooled

            # -- 2b. external skip/peak features (pre-concatenated) -> slab 1 -------
            if st["ext"] is not None:
                eref = ext_refs[st["ext"]]
                ec = st["ext_ch"]
                for y in range(H):
                    slabs[1][pl.ds((y + 1) * Wp + 1, W), :ec] = (
                        eref[0, y, :, :].astype(jnp.float32))

            # -- 3. stack the 9 taps of every part into 128-aligned K slots ---------
            for pi in range(n_parts):
                for t in range(9):
                    ty, tx = t // 3, t % 3
                    col = (pi * 9 + t) * CPAD
                    patch[:, col:col + CPAD] = (
                        slabs[pi][pl.ds(ty * Wp + tx, M), :].astype(jnp.bfloat16))

            # -- 4. the whole concat + 3x3 conv as ONE bf16 matmul, f32 accumulate --
            acc = jnp.dot(patch[...], w_refs[s][...],
                          preferred_element_type=jnp.float32)            # (M, 32)
            yv = jnp.maximum(acc + b_ref[s:s + 1, :], 0.0)

            # -- 5. HBM outputs: 8-aligned row slices of the padded-layout result ---
            if st["out"] is not None:
                oref = out_refs[st["out"]]
                for y in range(H):
                    oref[0, y, :, :] = yv[y * Wp:y * Wp + W, :]

            # -- 6. carry the activation to the next stage (VMEM only) --------------
            if st["pool"]:
                yref[...] = yv
                prev_yref, prev_Wp = yref, Wp
            prev_val = yv.astype(jnp.bfloat16)

    return kernel


# --------------------------------- model wrapper ---------------------------------

def spikenet_forward_pallas(params, x_nchw, previous_skips, previous_peaks,
                            global_depth, previous_peak_height):
    local_height = len(params["decoder"])
    depth_offset = global_depth - local_height
    to_nhwc = lambda t: jnp.transpose(t, (0, 2, 3, 1))   # NCHW<->NHWC only at boundary
    to_nchw = lambda t: jnp.transpose(t, (0, 3, 1, 2))

    B, _, h0, w0 = x_nchw.shape
    x_flat = to_nhwc(x_nchw).reshape(B, h0 * w0, OUT_CHANNELS).astype(jnp.bfloat16)

    ext_inputs, rep_mats, w_stacks, biases = [], [], [], []
    stage_meta, scratch_shapes = [], []
    out_shapes, out_specs, out_tags = [], [], []

    def add_output(Hs, Ws, tag):
        idx = len(out_shapes)
        out_shapes.append(jax.ShapeDtypeStruct((B, Hs, Ws, OUT_CHANNELS), jnp.float32))
        out_specs.append(pl.BlockSpec((1, Hs, Ws, OUT_CHANNELS), lambda b: (b, 0, 0, 0)))
        out_tags.append(tag)
        return idx

    def add_stage(Hs, Ws, mode, ext_idx, ext_ch, rep_idx, wq, bq, pool, out_idx):
        Wp = _round_up(Ws + 2, 8)              # sublane-aligned padded row stride
        L = (Hs + 2) * Wp + 8                  # flattened padded slab length
        M = Hs * Wp                            # matmul rows (includes discarded pads)
        n_parts = 1 + (1 if ext_idx is not None else 0)
        part_ch = [OUT_CHANNELS] + ([ext_ch] if ext_idx is not None else [])
        ctot = sum(part_ch)
        assert wq.shape == (9, ctot, OUT_CHANNELS), (wq.shape, ctot)
        # 128-lane-padded, part- and tap-stacked weight:
        #   row (p*9 + t)*CPAD + c  <->  wq[t, part_offset_p + c, :]
        wpad = jnp.zeros((n_parts, 9, CPAD, OUT_CHANNELS), jnp.float32)
        off = 0
        for p_i, pc in enumerate(part_ch):
            wpad = wpad.at[p_i, :, :pc, :].set(wq[:, off:off + pc, :].astype(jnp.float32))
            off += pc
        w_stacks.append(wpad.reshape(n_parts * 9 * CPAD, OUT_CHANNELS).astype(jnp.bfloat16))
        biases.append(bq.astype(jnp.float32))
        stage_meta.append(dict(H=Hs, W=Ws, Wp=Wp, M=M, n_parts=n_parts, mode=mode,
                               ext=ext_idx, ext_ch=ext_ch, rep=rep_idx,
                               pool=pool, out=out_idx))
        for _ in range(n_parts):
            scratch_shapes.append(pltpu.VMEM((L, CPAD), jnp.float32))
        scratch_shapes.append(pltpu.VMEM((M, n_parts * 9 * CPAD), jnp.bfloat16))
        if pool:
            scratch_shapes.append(pltpu.VMEM((M, OUT_CHANNELS), jnp.float32))

    # -------- decoder path: upsample + cat(skips/peaks) + conv -------------------
    Hc, Wc = h0, w0
    prev_rows, prev_stride = h0 * w0, w0
    for i, dp in enumerate(params["decoder"]):
        current_depth = global_depth - 1 - i
        feats = [to_nhwc(t) for t in previous_skips[str(current_depth)]]
        if local_height > previous_peak_height and i < local_height - 1:
            feats += [to_nhwc(t) for t in previous_peaks[str(current_depth)]]
        Hc, Wc = 2 * Hc, 2 * Wc
        if feats:
            ext = (feats[0] if len(feats) == 1
                   else jnp.concatenate(feats, axis=-1)).astype(jnp.bfloat16)
            ext_idx, ext_ch = len(ext_inputs), ext.shape[-1]
            ext_inputs.append(ext)
        else:
            ext_idx, ext_ch = None, 0
        rep_idx = len(rep_mats)
        rep_mats.append(_upsample_matrix(Hc, Wc, prev_stride, prev_rows))
        is_last = (i == local_height - 1)      # pooled by the down_only encoder[0]
        out_idx = add_output(Hc, Wc, ("peak", str(depth_offset + 0))) if is_last else None
        add_stage(Hc, Wc, "up", ext_idx, ext_ch, rep_idx, dp["w"], dp["b"],
                  pool=is_last, out_idx=out_idx)
        prev_rows, prev_stride = stage_meta[-1]["M"], stage_meta[-1]["Wp"]

    # -------- encoder path (encoder[0] is down_only and handled above) -----------
    for i, ep in enumerate(params["encoder"]):
        if ep is None:
            continue
        Hc, Wc = Hc // 2, Wc // 2
        out_idx = add_output(Hc, Wc, ("skip", str(depth_offset + i)))
        add_stage(Hc, Wc, "pool", None, 0, None, ep["w"], ep["b"],
                  pool=True, out_idx=out_idx)

    # -------- bottleneck ----------------------------------------------------------
    Hc, Wc = Hc // 2, Wc // 2
    out_idx = add_output(Hc, Wc, ("final", None))
    add_stage(Hc, Wc, "pool", None, 0, None, params["bottleneck"]["w"],
              params["bottleneck"]["b"], pool=False, out_idx=out_idx)

    bias_arr = jnp.stack(biases, axis=0)                        # (n_stages, 32) f32

    in_specs = ([pl.BlockSpec((1, h0 * w0, OUT_CHANNELS), lambda b: (b, 0, 0))]
                + [pl.BlockSpec((1,) + e.shape[1:], lambda b: (b, 0, 0, 0))
                   for e in ext_inputs]
                + [pl.BlockSpec(r.shape, lambda b: (0, 0)) for r in rep_mats]
                + [pl.BlockSpec(ws.shape, lambda b: (0, 0)) for ws in w_stacks]
                + [pl.BlockSpec(bias_arr.shape, lambda b: (0, 0))])

    kernel = _build_fused_kernel(stage_meta, len(ext_inputs), len(rep_mats),
                                 len(out_shapes))

    outs = pl.pallas_call(
        kernel,
        grid=(B,),
        out_shape=tuple(out_shapes),
        in_specs=in_specs,
        out_specs=tuple(out_specs),
        scratch_shapes=scratch_shapes,
        compiler_params=pltpu.CompilerParams(dimension_semantics=("parallel",)),
    )(x_flat, *ext_inputs, *rep_mats, *w_stacks, bias_arr)

    final, new_skips, next_peaks = None, {}, {}
    for (kind, key), o in zip(out_tags, outs):
        if kind == "peak":
            next_peaks[key] = [to_nchw(o)]
        elif kind == "skip":
            new_skips[key] = [to_nchw(o)]
        else:
            final = to_nchw(o)
    return final, new_skips, next_peaks


# ------------------------- pure-JAX reference ops --------------------------

def conv3x3_relu_ref(x, w, b):
    cin, cout = w.shape[1], w.shape[2]
    w4 = w.reshape(3, 3, cin, cout).astype(jnp.bfloat16)
    y = lax.conv_general_dilated(
        x.astype(jnp.bfloat16), w4, (1, 1), "SAME",
        dimension_numbers=("NHWC", "HWIO", "NHWC"),
        preferred_element_type=jnp.float32)
    return jnp.maximum(y + b, 0.0)


def maxpool2x2_ref(x):
    return lax.reduce_window(x, -jnp.inf, lax.max, (1, 2, 2, 1), (1, 2, 2, 1), "VALID")


def upsample2x_nearest_ref(x):
    return jnp.repeat(jnp.repeat(x, 2, axis=1), 2, axis=2)


# ----------------------------- SpikeNet model ------------------------------

def init_spikenet_params(key, in_decoder_channels):
    def conv_init(k, cin, cout):
        kw, kb = jax.random.split(k)
        return {"w": 0.1 * jax.random.normal(kw, (9, cin, cout), jnp.float32),
                "b": 0.1 * jax.random.normal(kb, (cout,), jnp.float32)}

    local_height = len(in_decoder_channels)
    keys = jax.random.split(key, 2 * local_height + 1)
    params = {"decoder": [], "encoder": [], "bottleneck": None}
    ki = 0
    for c in in_decoder_channels:                      # DecoderBlock.block(c + 32, 32)
        params["decoder"].append(conv_init(keys[ki], c + OUT_CHANNELS, OUT_CHANNELS))
        ki += 1
    for i in range(local_height):                      # EncoderBlock i (i==0 is down_only)
        params["encoder"].append(None if i == 0
                                 else conv_init(keys[ki], OUT_CHANNELS, OUT_CHANNELS))
        ki += 1
    params["bottleneck"] = conv_init(keys[ki], OUT_CHANNELS, OUT_CHANNELS)
    return params


def spikenet_forward_ref(params, x_nchw, previous_skips, previous_peaks,
                         global_depth, previous_peak_height):
    local_height = len(params["decoder"])
    depth_offset = global_depth - local_height
    to_nhwc = lambda t: jnp.transpose(t, (0, 2, 3, 1))
    to_nchw = lambda t: jnp.transpose(t, (0, 3, 1, 2))

    x = to_nhwc(x_nchw)
    for i, dp in enumerate(params["decoder"]):
        current_depth = global_depth - 1 - i
        feats = [to_nhwc(t) for t in previous_skips[str(current_depth)]]
        if local_height > previous_peak_height and i < local_height - 1:
            feats += [to_nhwc(t) for t in previous_peaks[str(current_depth)]]
        prev_features = jnp.concatenate(feats, axis=-1)
        x = upsample2x_nearest_ref(x)
        x = jnp.concatenate([x, prev_features], axis=-1)
        x = conv3x3_relu_ref(x, dp["w"], dp["b"])

    new_skips, next_peaks = {}, {}
    for i, ep in enumerate(params["encoder"]):
        if ep is None:
            skip = x
            next_peaks[str(depth_offset + i)] = [to_nchw(skip)]
        else:
            skip = conv3x3_relu_ref(x, ep["w"], ep["b"])
            new_skips[str(depth_offset + i)] = [to_nchw(skip)]
        x = maxpool2x2_ref(skip)

    bp = params["bottleneck"]
    x = conv3x3_relu_ref(x, bp["w"], bp["b"])
    return to_nchw(x), new_skips, next_peaks


# ----------------------------------- main -----------------------------------

if __name__ == "__main__":
    # Module config: local_height = 2, global_depth = 2, previous_peak_height = 1
    in_decoder_channels = [16, 16]
    global_depth = 2
    previous_peak_height = 1

    key = jax.random.PRNGKey(0)
    kp, k1, k2, k3, k4 = jax.random.split(key, 5)
    params = init_spikenet_params(kp, in_decoder_channels)

    B = 2
    # x enters the first decoder with out_channels=32, spatial 4x4 (NCHW, PyTorch conv.)
    x = jax.random.normal(k1, (B, 32, 4, 4), jnp.float32)
    previous_skips = {
        "1": [jax.random.normal(k2, (B, 8, 8, 8), jnp.float32)],      # depth 1, 8x8 spatial
        "0": [jax.random.normal(k3, (B, 16, 16, 16), jnp.float32)],   # depth 0, 16x16 spatial
    }
    previous_peaks = {
        "1": [jax.random.normal(k4, (B, 8, 8, 8), jnp.float32)],
    }

    out, new_skips, next_peaks = spikenet_forward_pallas(
        params, x, previous_skips, previous_peaks,
        global_depth, previous_peak_height)
    jax.block_until_ready(out)

    # pure-JAX reference check (same bf16-operand / f32-accumulate numerics)
    out_r, new_skips_r, next_peaks_r = spikenet_forward_ref(
        params, x, previous_skips, previous_peaks,
        global_depth, previous_peak_height)

    assert out.shape == (B, 32, 4, 4)
    assert new_skips["1"][0].shape == (B, 32, 8, 8)
    assert next_peaks["0"][0].shape == (B, 32, 16, 16)
    for a, b in [(out, out_r),
                 (new_skips["1"][0], new_skips_r["1"][0]),
                 (next_peaks["0"][0], next_peaks_r["0"][0])]:
        assert jnp.allclose(a, b, atol=1e-2, rtol=1e-2), "mismatch vs reference"

    print("KERNEL_OK")
</pallas_src>

<mosaic_0001>
module attributes {stable_mosaic.version = 11 : i64} {
  func.func @kernel(%arg0: i32, %arg1: memref<1x16x32xbf16, #tpu.memory_space<vmem>>, %arg2: memref<1x8x8x16xbf16, #tpu.memory_space<vmem>>, %arg3: memref<1x16x16x16xbf16, #tpu.memory_space<vmem>>, %arg4: memref<64x16xbf16, #tpu.memory_space<vmem>>, %arg5: memref<256x128xbf16, #tpu.memory_space<vmem>>, %arg6: memref<2304x32xbf16, #tpu.memory_space<vmem>>, %arg7: memref<2304x32xbf16, #tpu.memory_space<vmem>>, %arg8: memref<1152x32xbf16, #tpu.memory_space<vmem>>, %arg9: memref<1152x32xbf16, #tpu.memory_space<vmem>>, %arg10: memref<4x32xf32, #tpu.memory_space<vmem>>, %arg11: memref<1x16x16x32xf32, #tpu.memory_space<vmem>>, %arg12: memref<1x8x8x32xf32, #tpu.memory_space<vmem>>, %arg13: memref<1x4x4x32xf32, #tpu.memory_space<vmem>>, %arg14: memref<168x128xf32, #tpu.memory_space<vmem>>, %arg15: memref<168x128xf32, #tpu.memory_space<vmem>>, %arg16: memref<128x2304xbf16, #tpu.memory_space<vmem>>, %arg17: memref<440x128xf32, #tpu.memory_space<vmem>>, %arg18: memref<440x128xf32, #tpu.memory_space<vmem>>, %arg19: memref<384x2304xbf16, #tpu.memory_space<vmem>>, %arg20: memref<384x32xf32, #tpu.memory_space<vmem>>, %arg21: memref<168x128xf32, #tpu.memory_space<vmem>>, %arg22: memref<128x1152xbf16, #tpu.memory_space<vmem>>, %arg23: memref<128x32xf32, #tpu.memory_space<vmem>>, %arg24: memref<56x128xf32, #tpu.memory_space<vmem>>, %arg25: memref<32x1152xbf16, #tpu.memory_space<vmem>>) attributes {dimension_semantics = [#tpu.dimension_semantics<parallel>], iteration_bounds = array<i64: 2>, scalar_prefetch = 0 : i64, scratch_operands = 12 : i64, tpu.core_type = #tpu.core_type<tc>, window_params = [{transform_indices = @transform_0, window_bounds = array<i64: 1, 16, 32>}, {transform_indices = @transform_1, window_bounds = array<i64: 1, 8, 8, 16>}, {transform_indices = @transform_2, window_bounds = array<i64: 1, 16, 16, 16>}, {pipeline_mode = #tpu.pipeline_mode<synchronous>, transform_indices = @transform_3, window_bounds = array<i64: 64, 16>}, {pipeline_mode = #tpu.pipeline_mode<synchronous>, transform_indices = @transform_4, window_bounds = array<i64: 256, 128>}, {pipeline_mode = #tpu.pipeline_mode<synchronous>, transform_indices = @transform_5, window_bounds = array<i64: 2304, 32>}, {pipeline_mode = #tpu.pipeline_mode<synchronous>, transform_indices = @transform_6, window_bounds = array<i64: 2304, 32>}, {pipeline_mode = #tpu.pipeline_mode<synchronous>, transform_indices = @transform_7, window_bounds = array<i64: 1152, 32>}, {pipeline_mode = #tpu.pipeline_mode<synchronous>, transform_indices = @transform_8, window_bounds = array<i64: 1152, 32>}, {pipeline_mode = #tpu.pipeline_mode<synchronous>, transform_indices = @transform_9, window_bounds = array<i64: 4, 32>}, {transform_indices = @transform_10, window_bounds = array<i64: 1, 16, 16, 32>}, {transform_indices = @transform_11, window_bounds = array<i64: 1, 8, 8, 32>}, {transform_indices = @transform_12, window_bounds = array<i64: 1, 4, 4, 32>}]} {
    %c0 = arith.constant 0 : index
    %c0_0 = arith.constant 0 : index
    %c0_1 = arith.constant 0 : index
    %0 = vector.load %arg1[%c0, %c0_0, %c0_1] : memref<1x16x32xbf16, #tpu.memory_space<vmem>>, vector<1x16x32xbf16>
    %1 = vector.shape_cast %0 : vector<1x16x32xbf16> to vector<16x32xbf16>
    %cst = arith.constant 0.000000e+00 : f32
    %2 = vector.broadcast %cst : f32 to vector<168x128xf32>
    %c0_2 = arith.constant 0 : index
    %c0_3 = arith.constant 0 : index
    %3 = vector.load %arg14[%c0_2, %c0_3] : memref<168x128xf32, #tpu.memory_space<vmem>>, vector<168x128xf32>
    tpu.vector_store %arg14[%c0_2, %c0_3], %2 {strides = array<i32>} : memref<168x128xf32, #tpu.memory_space<vmem>>, vector<168x128xf32>,
    %cst_4 = arith.constant 0.000000e+00 : f32
    %4 = vector.broadcast %cst_4 : f32 to vector<168x128xf32>
    %c0_5 = arith.constant 0 : index
    %c0_6 = arith.constant 0 : index
    %5 = vector.load %arg15[%c0_5, %c0_6] : memref<168x128xf32, #tpu.memory_space<vmem>>, vector<168x128xf32>
    tpu.vector_store %arg15[%c0_5, %c0_6], %4 {strides = array<i32>} : memref<168x128xf32, #tpu.memory_space<vmem>>, vector<168x128xf32>,
    %c0_7 = arith.constant 0 : index
    %c0_8 = arith.constant 0 : index
    %6 = vector.load %arg4[%c0_7, %c0_8] : memref<64x16xbf16, #tpu.memory_space<vmem>>, vector<64x16xbf16>
    %cst_9 = arith.constant dense<0.000000e+00> : vector<64x32xf32>
    %7 = tpu.matmul %6, %1, %cst_9 {dimension_numbers = #tpu.dot_dimension_numbers<[1], [0], [0], [1], [0, 0, 1, 1], [], []>} : vector<64x16xbf16>, vector<16x32xbf16>, vector<64x32xf32> -> vector<64x32xf32>
    %8 = vector.extract_strided_slice %7 {offsets = [0, 0], sizes = [8, 32], strides = [1, 1]} : vector<64x32xf32> to vector<8x32xf32>
    %c17 = arith.constant 17 : index
    %c0_10 = arith.constant 0 : index
    %9 = vector.load %arg14[%c17, %c0_10] : memref<168x128xf32, #tpu.memory_space<vmem>>, vector<8x32xf32>
    tpu.vector_store %arg14[%c17, %c0_10], %8 {strides = array<i32>} : memref<168x128xf32, #tpu.memory_space<vmem>>, vector<8x32xf32>,
    %10 = vector.extract_strided_slice %7 {offsets = [8, 0], sizes = [8, 32], strides = [1, 1]} : vector<64x32xf32> to vector<8x32xf32>
    %c33 = arith.constant 33 : index
    %c0_11 = arith.constant 0 : index
    %11 = vector.load %arg14[%c33, %c0_11] : memref<168x128xf32, #tpu.memory_space<vmem>>, vector<8x32xf32>
    tpu.vector_store %arg14[%c33, %c0_11], %10 {strides = array<i32>} : memref<168x128xf32, #tpu.memory_space<vmem>>, vector<8x32xf32>,
    %12 = vector.extract_strided_slice %7 {offsets = [16, 0], sizes = [8, 32], strides = [1, 1]} : vector<64x32xf32> to vector<8x32xf32>
    %c49 = arith.constant 49 : index
    %c0_12 = arith.constant 0 : index
    %13 = vector.load %arg14[%c49, %c0_12] : memref<168x128xf32, #tpu.memory_space<vmem>>, vector<8x32xf32>
    tpu.vector_store %arg14[%c49, %c0_12], %12 {strides = array<i32>} : memref<168x128xf32, #tpu.memory_space<vmem>>, vector<8x32xf32>,
    %14 = vector.extract_strided_slice %7 {offsets = [24, 0], sizes = [8, 32], strides = [1, 1]} : vector<64x32xf32> to vector<8x32xf32>
    %c65 = arith.constant 65 : index
    %c0_13 = arith.constant 0 : index
    %15 = vector.load %arg14[%c65, %c0_13] : memref<168x128xf32, #tpu.memory_space<vmem>>, vector<8x32xf32>
    tpu.vector_store %arg14[%c65, %c0_13], %14 {strides = array<i32>} : memref<168x128xf32, #tpu.memory_space<vmem>>, vector<8x32xf32>,
    %16 = vector.extract_strided_slice %7 {offsets = [32, 0], sizes = [8, 32], strides = [1, 1]} : vector<64x32xf32> to vector<8x32xf32>
    %c81 = arith.constant 81 : index
    %c0_14 = arith.constant 0 : index
    %17 = vector.load %arg14[%c81, %c0_14] : memref<168x128xf32, #tpu.memory_space<vmem>>, vector<8x32xf32>
    tpu.vector_store %arg14[%c81, %c0_14], %16 {strides = array<i32>} : memref<168x128xf32, #tpu.memory_space<vmem>>, vector<8x32xf32>,
    %18 = vector.extract_strided_slice %7 {offsets = [40, 0], sizes = [8, 32], strides = [1, 1]} : vector<64x32xf32> to vector<8x32xf32>
    %c97 = arith.constant 97 : index
    %c0_15 = arith.constant 0 : index
    %19 = vector.load %arg14[%c97, %c0_15] : memref<168x128xf32, #tpu.memory_space<vmem>>, vector<8x32xf32>
    tpu.vector_store %arg14[%c97, %c0_15], %18 {strides = array<i32>} : memref<168x128xf32, #tpu.memory_space<vmem>>, vector<8x32xf32>,
    %20 = vector.extract_strided_slice %7 {offsets = [48, 0], sizes = [8, 32], strides = [1, 1]} : vector<64x32xf32> to vector<8x32xf32>
    %c113 = arith.constant 113 : index
    %c0_16 = arith.constant 0 : index
    %21 = vector.load %arg14[%c113, %c0_16] : memref<168x128xf32, #tpu.memory_space<vmem>>, vector<8x32xf32>
    tpu.vector_store %arg14[%c113, %c0_16], %20 {strides = array<i32>} : memref<168x128xf32, #tpu.memory_space<vmem>>, vector<8x32xf32>,
    %22 = vector.extract_strided_slice %7 {offsets = [56, 0], sizes = [8, 32], strides = [1, 1]} : vector<64x32xf32> to vector<8x32xf32>
    %c129 = arith.constant 129 : index
    %c0_17 = arith.constant 0 : index
    %23 = vector.load %arg14[%c129, %c0_17] : memref<168x128xf32, #tpu.memory_space<vmem>>, vector<8x32xf32>
    tpu.vector_store %arg14[%c129, %c0_17], %22 {strides = array<i32>} : memref<168x128xf32, #tpu.memory_space<vmem>>, vector<8x32xf32>,
    %c0_18 = arith.constant 0 : index
    %c0_19 = arith.constant 0 : index
    %c0_20 = arith.constant 0 : index
    %c0_21 = arith.constant 0 : index
    %24 = vector.load %arg2[%c0_18, %c0_19, %c0_20, %c0_21] : memref<1x8x8x16xbf16, #tpu.memory_space<vmem>>, vector<1x1x8x16xbf16>
    %25 = vector.shape_cast %24 : vector<1x1x8x16xbf16> to vector<8x16xbf16>
    %26 = arith.extf %25 : vector<8x16xbf16> to vector<8x16xf32>
    %c17_22 = arith.constant 17 : index
    %c0_23 = arith.constant 0 : index
    %27 = vector.load %arg15[%c17_22, %c0_23] : memref<168x128xf32, #tpu.memory_space<vmem>>, vector<8x16xf32>
    tpu.vector_store %arg15[%c17_22, %c0_23], %26 {strides = array<i32>} : memref<168x128xf32, #tpu.memory_space<vmem>>, vector<8x16xf32>,
    %c0_24 = arith.constant 0 : index
    %c1 = arith.constant 1 : index
    %c0_25 = arith.constant 0 : index
    %c0_26 = arith.constant 0 : index
    %28 = vector.load %arg2[%c0_24, %c1, %c0_25, %c0_26] : memref<1x8x8x16xbf16, #tpu.memory_space<vmem>>, vector<1x1x8x16xbf16>
    %29 = vector.shape_cast %28 : vector<1x1x8x16xbf16> to vector<8x16xbf16>
    %30 = arith.extf %29 : vector<8x16xbf16> to vector<8x16xf32>
    %c33_27 = arith.constant 33 : index
    %c0_28 = arith.constant 0 : index
    %31 = vector.load %arg15[%c33_27, %c0_28] : memref<168x128xf32, #tpu.memory_space<vmem>>, vector<8x16xf32>
    tpu.vector_store %arg15[%c33_27, %c0_28], %30 {strides = array<i32>} : memref<168x128xf32, #tpu.memory_space<vmem>>, vector<8x16xf32>,
    %c0_29 = arith.constant 0 : index
    %c2 = arith.constant 2 : index
    %c0_30 = arith.constant 0 : index
    %c0_31 = arith.constant 0 : index
    %32 = vector.load %arg2[%c0_29, %c2, %c0_30, %c0_31] : memref<1x8x8x16xbf16, #tpu.memory_space<vmem>>, vector<1x1x8x16xbf16>
    %33 = vector.shape_cast %32 : vector<1x1x8x16xbf16> to vector<8x16xbf16>
    %34 = arith.extf %33 : vector<8x16xbf16> to vector<8x16xf32>
    %c49_32 = arith.constant 49 : index
    %c0_33 = arith.constant 0 : index
    %35 = vector.load %arg15[%c49_32, %c0_33] : memref<168x128xf32, #tpu.memory_space<vmem>>, vector<8x16xf32>
    tpu.vector_store %arg15[%c49_32, %c0_33], %34 {strides = array<i32>} : memref<168x128xf32, #tpu.memory_space<vmem>>, vector<8x16xf32>,
    %c0_34 = arith.constant 0 : index
    %c3 = arith.constant 3 : index
    %c0_35 = arith.constant 0 : index
    %c0_36 = arith.constant 0 : index
    %36 = vector.load %arg2[%c0_34, %c3, %c0_35, %c0_36] : memref<1x8x8x16xbf16, #tpu.memory_space<vmem>>, vector<1x1x8x16xbf16>
    %37 = vector.shape_cast %36 : vector<1x1x8x16xbf16> to vector<8x16xbf16>
    %38 = arith.extf %37 : vector<8x16xbf16> to vector<8x16xf32>
    %c65_37 = arith.constant 65 : index
    %c0_38 = arith.constant 0 : index
    %39 = vector.load %arg15[%c65_37, %c0_38] : memref<168x128xf32, #tpu.memory_space<vmem>>, vector<8x16xf32>
    tpu.vector_store %arg15[%c65_37, %c0_38], %38 {strides = array<i32>} : memref<168x128xf32, #tpu.memory_space<vmem>>, vector<8x16xf32>,
    %c0_39 = arith.constant 0 : index
    %c4 = arith.constant 4 : index
    %c0_40 = arith.constant 0 : index
    %c0_41 = arith.constant 0 : index
    %40 = vector.load %arg2[%c0_39, %c4, %c0_40, %c0_41] : memref<1x8x8x16xbf16, #tpu.memory_space<vmem>>, vector<1x1x8x16xbf16>
    %41 = vector.shape_cast %40 : vector<1x1x8x16xbf16> to vector<8x16xbf16>
    %42 = arith.extf %41 : vector<8x16xbf16> to vector<8x16xf32>
    %c81_42 = arith.constant 81 : index
    %c0_43 = arith.constant 0 : index
    %43 = vector.load %arg15[%c81_42, %c0_43] : memref<168x128xf32, #tpu.memory_space<vmem>>, vector<8x16xf32>
    tpu.vector_store %arg15[%c81_42, %c0_43], %42 {strides = array<i32>} : memref<168x128xf32, #tpu.memory_space<vmem>>, vector<8x16xf32>,
    %c0_44 = arith.constant 0 : index
    %c5 = arith.constant 5 : index
    %c0_45 = arith.constant 0 : index
    %c0_46 = arith.constant 0 : index
    %44 = vector.load %arg2[%c0_44, %c5, %c0_45, %c0_46] : memref<1x8x8x16xbf16, #tpu.memory_space<vmem>>, vector<1x1x8x16xbf16>
    %45 = vector.shape_cast %44 : vector<1x1x8x16xbf16> to vector<8x16xbf16>
    %46 = arith.extf %45 : vector<8x16xbf16> to vector<8x16xf32>
    %c97_47 = arith.constant 97 : index
    %c0_48 = arith.constant 0 : index
    %47 = vector.load %arg15[%c97_47, %c0_48] : memref<168x128xf32, #tpu.memory_space<vmem>>, vector<8x16xf32>
    tpu.vector_store %arg15[%c97_47, %c0_48], %46 {strides = array<i32>} : memref<168x128xf32, #tpu.memory_space<vmem>>, vector<8x16xf32>,
    %c0_49 = arith.constant 0 : index
    %c6 = arith.constant 6 : index
    %c0_50 = arith.constant 0 : index
    %c0_51 = arith.constant 0 : index
    %48 = vector.load %arg2[%c0_49, %c6, %c0_50, %c0_51] : memref<1x8x8x16xbf16, #tpu.memory_space<vmem>>, vector<1x1x8x16xbf16>
    %49 = vector.shape_cast %48 : vector<1x1x8x16xbf16> to vector<8x16xbf16>
    %50 = arith.extf %49 : vector<8x16xbf16> to vector<8x16xf32>
    %c113_52 = arith.constant 113 : index
    %c0_53 = arith.constant 0 : index
    %51 = vector.load %arg15[%c113_52, %c0_53] : memref<168x128xf32, #tpu.memory_space<vmem>>, vector<8x16xf32>
    tpu.vector_store %arg15[%c113_52, %c0_53], %50 {strides = array<i32>} : memref<168x128xf32, #tpu.memory_space<vmem>>, vector<8x16xf32>,
    %c0_54 = arith.constant 0 : index
    %c7 = arith.constant 7 : index
    %c0_55 = arith.constant 0 : index
    %c0_56 = arith.constant 0 : index
    %52 = vector.load %arg2[%c0_54, %c7, %c0_55, %c0_56] : memref<1x8x8x16xbf16, #tpu.memory_space<vmem>>, vector<1x1x8x16xbf16>
    %53 = vector.shape_cast %52 : vector<1x1x8x16xbf16> to vector<8x16xbf16>
    %54 = arith.extf %53 : vector<8x16xbf16> to vector<8x16xf32>
    %c129_57 = arith.constant 129 : index
    %c0_58 = arith.constant 0 : index
    %55 = vector.load %arg15[%c129_57, %c0_58] : memref<168x128xf32, #tpu.memory_space<vmem>>, vector<8x16xf32>
    tpu.vector_store %arg15[%c129_57, %c0_58], %54 {strides = array<i32>} : memref<168x128xf32, #tpu.memory_space<vmem>>, vector<8x16xf32>,
    %c0_59 = arith.constant 0 : index
    %c0_60 = arith.constant 0 : index
    %56 = vector.load %arg14[%c0_59, %c0_60] : memref<168x128xf32, #tpu.memory_space<vmem>>, vector<128x128xf32>
    %57 = arith.truncf %56 : vector<128x128xf32> to vector<128x128xbf16>
    %c0_61 = arith.constant 0 : index
    %c0_62 = arith.constant 0 : index
    %58 = vector.load %arg16[%c0_61, %c0_62] : memref<128x2304xbf16, #tpu.memory_space<vmem>>, vector<128x128xbf16>
    tpu.vector_store %arg16[%c0_61, %c0_62], %57 {strides = array<i32>} : memref<128x2304xbf16, #tpu.memory_space<vmem>>, vector<128x128xbf16>,
    %c1_63 = arith.constant 1 : index
    %c0_64 = arith.constant 0 : index
    %59 = vector.load %arg14[%c1_63, %c0_64] : memref<168x128xf32, #tpu.memory_space<vmem>>, vector<128x128xf32>
    %60 = arith.truncf %59 : vector<128x128xf32> to vector<128x128xbf16>
    %c0_65 = arith.constant 0 : index
    %c128 = arith.constant 128 : index
    %61 = vector.load %arg16[%c0_65, %c128] : memref<128x2304xbf16, #tpu.memory_space<vmem>>, vector<128x128xbf16>
    tpu.vector_store %arg16[%c0_65, %c128], %60 {strides = array<i32>} : memref<128x2304xbf16, #tpu.memory_space<vmem>>, vector<128x128xbf16>,
    %c2_66 = arith.constant 2 : index
    %c0_67 = arith.constant 0 : index
    %62 = vector.load %arg14[%c2_66, %c0_67] : memref<168x128xf32, #tpu.memory_space<vmem>>, vector<128x128xf32>
    %63 = arith.truncf %62 : vector<128x128xf32> to vector<128x128xbf16>
    %c0_68 = arith.constant 0 : index
    %c256 = arith.constant 256 : index
    %64 = vector.load %arg16[%c0_68, %c256] : memref<128x2304xbf16, #tpu.memory_space<vmem>>, vector<128x128xbf16>
    tpu.vector_store %arg16[%c0_68, %c256], %63 {strides = array<i32>} : memref<128x2304xbf16, #tpu.memory_space<vmem>>, vector<128x128xbf16>,
    %c16 = arith.constant 16 : index
    %c0_69 = arith.constant 0 : index
    %65 = vector.load %arg14[%c16, %c0_69] : memref<168x128xf32, #tpu.memory_space<vmem>>, vector<128x128xf32>
    %66 = arith.truncf %65 : vector<128x128xf32> to vector<128x128xbf16>
    %c0_70 = arith.constant 0 : index
    %c384 = arith.constant 384 : index
    %67 = vector.load %arg16[%c0_70, %c384] : memref<128x2304xbf16, #tpu.memory_space<vmem>>, vector<128x128xbf16>
    tpu.vector_store %arg16[%c0_70, %c384], %66 {strides = array<i32>} : memref<128x2304xbf16, #tpu.memory_space<vmem>>, vector<128x128xbf16>,
    %c17_71 = arith.constant 17 : index
    %c0_72 = arith.constant 0 : index
    %68 = vector.load %arg14[%c17_71, %c0_72] : memref<168x128xf32, #tpu.memory_space<vmem>>, vector<128x128xf32>
    %69 = arith.truncf %68 : vector<128x128xf32> to vector<128x128xbf16>
    %c0_73 = arith.constant 0 : index
    %c512 = arith.constant 512 : index
    %70 = vector.load %arg16[%c0_73, %c512] : memref<128x2304xbf16, #tpu.memory_space<vmem>>, vector<128x128xbf16>
    tpu.vector_store %arg16[%c0_73, %c512], %69 {strides = array<i32>} : memref<128x2304xbf16, #tpu.memory_space<vmem>>, vector<128x128xbf16>,
    %c18 = arith.constant 18 : index
    %c0_74 = arith.constant 0 : index
    %71 = vector.load %arg14[%c18, %c0_74] : memref<168x128xf32, #tpu.memory_space<vmem>>, vector<128x128xf32>
    %72 = arith.truncf %71 : vector<128x128xf32> to vector<128x128xbf16>
    %c0_75 = arith.constant 0 : index
    %c640 = arith.constant 640 : index
    %73 = vector.load %arg16[%c0_75, %c640] : memref<128x2304xbf16, #tpu.memory_space<vmem>>, vector<128x128xbf16>
    tpu.vector_store %arg16[%c0_75, %c640], %72 {strides = array<i32>} : memref<128x2304xbf16, #tpu.memory_space<vmem>>, vector<128x128xbf16>,
    %c32 = arith.constant 32 : index
    %c0_76 = arith.constant 0 : index
    %74 = vector.load %arg14[%c32, %c0_76] : memref<168x128xf32, #tpu.memory_space<vmem>>, vector<128x128xf32>
    %75 = arith.truncf %74 : vector<128x128xf32> to vector<128x128xbf16>
    %c0_77 = arith.constant 0 : index
    %c768 = arith.constant 768 : index
    %76 = vector.load %arg16[%c0_77, %c768] : memref<128x2304xbf16, #tpu.memory_space<vmem>>, vector<128x128xbf16>
    tpu.vector_store %arg16[%c0_77, %c768], %75 {strides = array<i32>} : memref<128x2304xbf16, #tpu.memory_space<vmem>>, vector<128x128xbf16>,
    %c33_78 = arith.constant 33 : index
    %c0_79 = arith.constant 0 : index
    %77 = vector.load %arg14[%c33_78, %c0_79] : memref<168x128xf32, #tpu.memory_space<vmem>>, vector<128x128xf32>
    %78 = arith.truncf %77 : vector<128x128xf32> to vector<128x128xbf16>
    %c0_80 = arith.constant 0 : index
    %c896 = arith.constant 896 : index
    %79 = vector.load %arg16[%c0_80, %c896] : memref<128x2304xbf16, #tpu.memory_space<vmem>>, vector<128x128xbf16>
    tpu.vector_store %arg16[%c0_80, %c896], %78 {strides = array<i32>} : memref<128x2304xbf16, #tpu.memory_space<vmem>>, vector<128x128xbf16>,
    %c34 = arith.constant 34 : index
    %c0_81 = arith.constant 0 : index
    %80 = vector.load %arg14[%c34, %c0_81] : memref<168x128xf32, #tpu.memory_space<vmem>>, vector<128x128xf32>
    %81 = arith.truncf %80 : vector<128x128xf32> to vector<128x128xbf16>
    %c0_82 = arith.constant 0 : index
    %c1024 = arith.constant 1024 : index
    %82 = vector.load %arg16[%c0_82, %c1024] : memref<128x2304xbf16, #tpu.memory_space<vmem>>, vector<128x128xbf16>
    tpu.vector_store %arg16[%c0_82, %c1024], %81 {strides = array<i32>} : memref<128x2304xbf16, #tpu.memory_space<vmem>>, vector<128x128xbf16>,
    %c0_83 = arith.constant 0 : index
    %c0_84 = arith.constant 0 : index
    %83 = vector.load %arg15[%c0_83, %c0_84] : memref<168x128xf32, #tpu.memory_space<vmem>>, vector<128x128xf32>
    %84 = arith.truncf %83 : vector<128x128xf32> to vector<128x128xbf16>
    %c0_85 = arith.constant 0 : index
    %c1152 = arith.constant 1152 : index
    %85 = vector.load %arg16[%c0_85, %c1152] : memref<128x2304xbf16, #tpu.memory_space<vmem>>, vector<128x128xbf16>
    tpu.vector_store %arg16[%c0_85, %c1152], %84 {strides = array<i32>} : memref<128x2304xbf16, #tpu.memory_space<vmem>>, vector<128x128xbf16>,
    %c1_86 = arith.constant 1 : index
    %c0_87 = arith.constant 0 : index
    %86 = vector.load %arg15[%c1_86, %c0_87] : memref<168x128xf32, #tpu.memory_space<vmem>>, vector<128x128xf32>
    %87 = arith.truncf %86 : vector<128x128xf32> to vector<128x128xbf16>
    %c0_88 = arith.constant 0 : index
    %c1280 = arith.constant 1280 : index
    %88 = vector.load %arg16[%c0_88, %c1280] : memref<128x2304xbf16, #tpu.memory_space<vmem>>, vector<128x128xbf16>
    tpu.vector_store %arg16[%c0_88, %c1280], %87 {strides = array<i32>} : memref<128x2304xbf16, #tpu.memory_space<vmem>>, vector<128x128xbf16>,
    %c2_89 = arith.constant 2 : index
    %c0_90 = arith.constant 0 : index
    %89 = vector.load %arg15[%c2_89, %c0_90] : memref<168x128xf32, #tpu.memory_space<vmem>>, vector<128x128xf32>
    %90 = arith.truncf %89 : vector<128x128xf32> to vector<128x128xbf16>
    %c0_91 = arith.constant 0 : index
    %c1408 = arith.constant 1408 : index
    %91 = vector.load %arg16[%c0_91, %c1408] : memref<128x2304xbf16, #tpu.memory_space<vmem>>, vector<128x128xbf16>
    tpu.vector_store %arg16[%c0_91, %c1408], %90 {strides = array<i32>} : memref<128x2304xbf16, #tpu.memory_space<vmem>>, vector<128x128xbf16>,
    %c16_92 = arith.constant 16 : index
    %c0_93 = arith.constant 0 : index
    %92 = vector.load %arg15[%c16_92, %c0_93] : memref<168x128xf32, #tpu.memory_space<vmem>>, vector<128x128xf32>
    %93 = arith.truncf %92 : vector<128x128xf32> to vector<128x128xbf16>
    %c0_94 = arith.constant 0 : index
    %c1536 = arith.constant 1536 : index
    %94 = vector.load %arg16[%c0_94, %c1536] : memref<128x2304xbf16, #tpu.memory_space<vmem>>, vector<128x128xbf16>
    tpu.vector_store %arg16[%c0_94, %c1536], %93 {strides = array<i32>} : memref<128x2304xbf16, #tpu.memory_space<vmem>>, vector<128x128xbf16>,
    %c17_95 = arith.constant 17 : index
    %c0_96 = arith.constant 0 : index
    %95 = vector.load %arg15[%c17_95, %c0_96] : memref<168x128xf32, #tpu.memory_space<vmem>>, vector<128x128xf32>
    %96 = arith.truncf %95 : vector<128x128xf32> to vector<128x128xbf16>
    %c0_97 = arith.constant 0 : index
    %c1664 = arith.constant 1664 : index
    %97 = vector.load %arg16[%c0_97, %c1664] : memref<128x2304xbf16, #tpu.memory_space<vmem>>, vector<128x128xbf16>
    tpu.vector_store %arg16[%c0_97, %c1664], %96 {strides = array<i32>} : memref<128x2304xbf16, #tpu.memory_space<vmem>>, vector<128x128xbf16>,
    %c18_98 = arith.constant 18 : index
    %c0_99 = arith.constant 0 : index
    %98 = vector.load %arg15[%c18_98, %c0_99] : memref<168x128xf32, #tpu.memory_space<vmem>>, vector<128x128xf32>
    %99 = arith.truncf %98 : vector<128x128xf32> to vector<128x128xbf16>
    %c0_100 = arith.constant 0 : index
    %c1792 = arith.constant 1792 : index
    %100 = vector.load %arg16[%c0_100, %c1792] : memref<128x2304xbf16, #tpu.memory_space<vmem>>, vector<128x128xbf16>
    tpu.vector_store %arg16[%c0_100, %c1792], %99 {strides = array<i32>} : memref<128x2304xbf16, #tpu.memory_space<vmem>>, vector<128x128xbf16>,
    %c32_101 = arith.constant 32 : index
    %c0_102 = arith.constant 0 : index
    %101 = vector.load %arg15[%c32_101, %c0_102] : memref<168x128xf32, #tpu.memory_space<vmem>>, vector<128x128xf32>
    %102 = arith.truncf %101 : vector<128x128xf32> to vector<128x128xbf16>
    %c0_103 = arith.constant 0 : index
    %c1920 = arith.constant 1920 : index
    %103 = vector.load %arg16[%c0_103, %c1920] : memref<128x2304xbf16, #tpu.memory_space<vmem>>, vector<128x128xbf16>
    tpu.vector_store %arg16[%c0_103, %c1920], %102 {strides = array<i32>} : memref<128x2304xbf16, #tpu.memory_space<vmem>>, vector<128x128xbf16>,
    %c33_104 = arith.constant 33 : index
    %c0_105 = arith.constant 0 : index
    %104 = vector.load %arg15[%c33_104, %c0_105] : memref<168x128xf32, #tpu.memory_space<vmem>>, vector<128x128xf32>
    %105 = arith.truncf %104 : vector<128x128xf32> to vector<128x128xbf16>
    %c0_106 = arith.constant 0 : index
    %c2048 = arith.constant 2048 : index
    %106 = vector.load %arg16[%c0_106, %c2048] : memref<128x2304xbf16, #tpu.memory_space<vmem>>, vector<128x128xbf16>
    tpu.vector_store %arg16[%c0_106, %c2048], %105 {strides = array<i32>} : memref<128x2304xbf16, #tpu.memory_space<vmem>>, vector<128x128xbf16>,
    %c34_107 = arith.constant 34 : index
    %c0_108 = arith.constant 0 : index
    %107 = vector.load %arg15[%c34_107, %c0_108] : memref<168x128xf32, #tpu.memory_space<vmem>>, vector<128x128xf32>
    %108 = arith.truncf %107 : vector<128x128xf32> to vector<128x128xbf16>
    %c0_109 = arith.constant 0 : index
    %c2176 = arith.constant 2176 : index
    %109 = vector.load %arg16[%c0_109, %c2176] : memref<128x2304xbf16, #tpu.memory_space<vmem>>, vector<128x128xbf16>
    tpu.vector_store %arg16[%c0_109, %c2176], %108 {strides = array<i32>} : memref<128x2304xbf16, #tpu.memory_space<vmem>>, vector<128x128xbf16>,
    %c0_110 = arith.constant 0 : index
    %c0_111 = arith.constant 0 : index
    %110 = vector.load %arg16[%c0_110, %c0_111] : memref<128x2304xbf16, #tpu.memory_space<vmem>>, vector<128x2304xbf16>
    %c0_112 = arith.constant 0 : index
    %c0_113 = arith.constant 0 : index
    %111 = vector.load %arg6[%c0_112, %c0_113] : memref<2304x32xbf16, #tpu.memory_space<vmem>>, vector<2304x32xbf16>
    %cst_114 = arith.constant dense<0.000000e+00> : vector<128x32xf32>
    %112 = tpu.matmul %110, %111, %cst_114 {dimension_numbers = #tpu.dot_dimension_numbers<[1], [0], [0], [1], [0, 0, 1, 1], [], []>} : vector<128x2304xbf16>, vector<2304x32xbf16>, vector<128x32xf32> -> vector<128x32xf32>
    %c0_115 = arith.constant 0 : index
    %c0_116 = arith.constant 0 : index
    %113 = vector.load %arg10[%c0_115, %c0_116] : memref<4x32xf32, #tpu.memory_space<vmem>>, vector<1x32xf32>
    %114 = vector.broadcast %113 : vector<1x32xf32> to vector<128x32xf32>
    %115 = arith.addf %112, %114 : vector<128x32xf32>
    %cst_117 = arith.constant 0.000000e+00 : f32
    %116 = vector.broadcast %cst_117 : f32 to vector<128x32xf32>
    %117 = arith.maximumf %115, %116 : vector<128x32xf32>
    %118 = arith.truncf %117 : vector<128x32xf32> to vector<128x32xbf16>
    %cst_118 = arith.constant 0.000000e+00 : f32
    %119 = vector.broadcast %cst_118 : f32 to vector<440x128xf32>
    %c0_119 = arith.constant 0 : index
    %c0_120 = arith.constant 0 : index
    %120 = vector.load %arg17[%c0_119, %c0_120] : memref<440x128xf32, #tpu.memory_space<vmem>>, vector<440x128xf32>
    tpu.vector_store %arg17[%c0_119, %c0_120], %119 {strides = array<i32>} : memref<440x128xf32, #tpu.memory_space<vmem>>, vector<440x128xf32>,
    %cst_121 = arith.constant 0.000000e+00 : f32
    %121 = vector.broadcast %cst_121 : f32 to vector<440x128xf32>
    %c0_122 = arith.constant 0 : index
    %c0_123 = arith.constant 0 : index
    %122 = vector.load %arg18[%c0_122, %c0_123] : memref<440x128xf32, #tpu.memory_space<vmem>>, vector<440x128xf32>
    tpu.vector_store %arg18[%c0_122, %c0_123], %121 {strides = array<i32>} : memref<440x128xf32, #tpu.memory_space<vmem>>, vector<440x128xf32>,
    %c0_124 = arith.constant 0 : index
    %c0_125 = arith.constant 0 : index
    %123 = vector.load %arg5[%c0_124, %c0_125] : memref<256x128xbf16, #tpu.memory_space<vmem>>, vector<256x128xbf16>
    %cst_126 = arith.constant dense<0.000000e+00> : vector<256x32xf32>
    %124 = tpu.matmul %123, %118, %cst_126 {dimension_numbers = #tpu.dot_dimension_numbers<[1], [0], [0], [1], [0, 0, 1, 1], [], []>} : vector<256x128xbf16>, vector<128x32xbf16>, vector<256x32xf32> -> vector<256x32xf32>
    %125 = vector.extract_strided_slice %124 {offsets = [0, 0], sizes = [16, 32], strides = [1, 1]} : vector<256x32xf32> to vector<16x32xf32>
    %c25 = arith.constant 25 : index
    %c0_127 = arith.constant 0 : index
    %126 = vector.load %arg17[%c25, %c0_127] : memref<440x128xf32, #tpu.memory_space<vmem>>, vector<16x32xf32>
    tpu.vector_store %arg17[%c25, %c0_127], %125 {strides = array<i32>} : memref<440x128xf32, #tpu.memory_space<vmem>>, vector<16x32xf32>,
    %127 = vector.extract_strided_slice %124 {offsets = [16, 0], sizes = [16, 32], strides = [1, 1]} : vector<256x32xf32> to vector<16x32xf32>
    %c49_128 = arith.constant 49 : index
    %c0_129 = arith.constant 0 : index
    %128 = vector.load %arg17[%c49_128, %c0_129] : memref<440x128xf32, #tpu.memory_space<vmem>>, vector<16x32xf32>
    tpu.vector_store %arg17[%c49_128, %c0_129], %127 {strides = array<i32>} : memref<440x128xf32, #tpu.memory_space<vmem>>, vector<16x32xf32>,
    %129 = vector.extract_strided_slice %124 {offsets = [32, 0], sizes = [16, 32], strides = [1, 1]} : vector<256x32xf32> to vector<16x32xf32>
    %c73 = arith.constant 73 : index
    %c0_130 = arith.constant 0 : index
    %130 = vector.load %arg17[%c73, %c0_130] : memref<440x128xf32, #tpu.memory_space<vmem>>, vector<16x32xf32>
    tpu.vector_store %arg17[%c73, %c0_130], %129 {strides = array<i32>} : memref<440x128xf32, #tpu.memory_space<vmem>>, vector<16x32xf32>,
    %131 = vector.extract_strided_slice %124 {offsets = [48, 0], sizes = [16, 32], strides = [1, 1]} : vector<256x32xf32> to vector<16x32xf32>
    %c97_131 = arith.constant 97 : index
    %c0_132 = arith.constant 0 : index
    %132 = vector.load %arg17[%c97_131, %c0_132] : memref<440x128xf32, #tpu.memory_space<vmem>>, vector<16x32xf32>
    tpu.vector_store %arg17[%c97_131, %c0_132], %131 {strides = array<i32>} : memref<440x128xf32, #tpu.memory_space<vmem>>, vector<16x32xf32>,
    %133 = vector.extract_strided_slice %124 {offsets = [64, 0], sizes = [16, 32], strides = [1, 1]} : vector<256x32xf32> to vector<16x32xf32>
    %c121 = arith.constant 121 : index
    %c0_133 = arith.constant 0 : index
    %134 = vector.load %arg17[%c121, %c0_133] : memref<440x128xf32, #tpu.memory_space<vmem>>, vector<16x32xf32>
    tpu.vector_store %arg17[%c121, %c0_133], %133 {strides = array<i32>} : memref<440x128xf32, #tpu.memory_space<vmem>>, vector<16x32xf32>,
    %135 = vector.extract_strided_slice %124 {offsets = [80, 0], sizes = [16, 32], strides = [1, 1]} : vector<256x32xf32> to vector<16x32xf32>
    %c145 = arith.constant 145 : index
    %c0_134 = arith.constant 0 : index
    %136 = vector.load %arg17[%c145, %c0_134] : memref<440x128xf32, #tpu.memory_space<vmem>>, vector<16x32xf32>
    tpu.vector_store %arg17[%c145, %c0_134], %135 {strides = array<i32>} : memref<440x128xf32, #tpu.memory_space<vmem>>, vector<16x32xf32>,
    %137 = vector.extract_strided_slice %124 {offsets = [96, 0], sizes = [16, 32], strides = [1, 1]} : vector<256x32xf32> to vector<16x32xf32>
    %c169 = arith.constant 169 : index
    %c0_135 = arith.constant 0 : index
    %138 = vector.load %arg17[%c169, %c0_135] : memref<440x128xf32, #tpu.memory_space<vmem>>, vector<16x32xf32>
    tpu.vector_store %arg17[%c169, %c0_135], %137 {strides = array<i32>} : memref<440x128xf32, #tpu.memory_space<vmem>>, vector<16x32xf32>,
    %139 = vector.extract_strided_slice %124 {offsets = [112, 0], sizes = [16, 32], strides = [1, 1]} : vector<256x32xf32> to vector<16x32xf32>
    %c193 = arith.constant 193 : index
    %c0_136 = arith.constant 0 : index
    %140 = vector.load %arg17[%c193, %c0_136] : memref<440x128xf32, #tpu.memory_space<vmem>>, vector<16x32xf32>
    tpu.vector_store %arg17[%c193, %c0_136], %139 {strides = array<i32>} : memref<440x128xf32, #tpu.memory_space<vmem>>, vector<16x32xf32>,
    %141 = vector.extract_strided_slice %124 {offsets = [128, 0], sizes = [16, 32], strides = [1, 1]} : vector<256x32xf32> to vector<16x32xf32>
    %c217 = arith.constant 217 : index
    %c0_137 = arith.constant 0 : index
    %142 = vector.load %arg17[%c217, %c0_137] : memref<440x128xf32, #tpu.memory_space<vmem>>, vector<16x32xf32>
    tpu.vector_store %arg17[%c217, %c0_137], %141 {strides = array<i32>} : memref<440x128xf32, #tpu.memory_space<vmem>>, vector<16x32xf32>,
    %143 = vector.extract_strided_slice %124 {offsets = [144, 0], sizes = [16, 32], strides = [1, 1]} : vector<256x32xf32> to vector<16x32xf32>
    %c241 = arith.constant 241 : index
    %c0_138 = arith.constant 0 : index
    %144 = vector.load %arg17[%c241, %c0_138] : memref<440x128xf32, #tpu.memory_space<vmem>>, vector<16x32xf32>
    tpu.vector_store %arg17[%c241, %c0_138], %143 {strides = array<i32>} : memref<440x128xf32, #tpu.memory_space<vmem>>, vector<16x32xf32>,
    %145 = vector.extract_strided_slice %124 {offsets = [160, 0], sizes = [16, 32], strides = [1, 1]} : vector<256x32xf32> to vector<16x32xf32>
    %c265 = arith.constant 265 : index
    %c0_139 = arith.constant 0 : index
    %146 = vector.load %arg17[%c265, %c0_139] : memref<440x128xf32, #tpu.memory_space<vmem>>, vector<16x32xf32>
    tpu.vector_store %arg17[%c265, %c0_139], %145 {strides = array<i32>} : memref<440x128xf32, #tpu.memory_space<vmem>>, vector<16x32xf32>,
    %147 = vector.extract_strided_slice %124 {offsets = [176, 0], sizes = [16, 32], strides = [1, 1]} : vector<256x32xf32> to vector<16x32xf32>
    %c289 = arith.constant 289 : index
    %c0_140 = arith.constant 0 : index
    %148 = vector.load %arg17[%c289, %c0_140] : memref<440x128xf32, #tpu.memory_space<vmem>>, vector<16x32xf32>
    tpu.vector_store %arg17[%c289, %c0_140], %147 {strides = array<i32>} : memref<440x128xf32, #tpu.memory_space<vmem>>, vector<16x32xf32>,
    %149 = vector.extract_strided_slice %124 {offsets = [192, 0], sizes = [16, 32], strides = [1, 1]} : vector<256x32xf32> to vector<16x32xf32>
    %c313 = arith.constant 313 : index
    %c0_141 = arith.constant 0 : index
    %150 = vector.load %arg17[%c313, %c0_141] : memref<440x128xf32, #tpu.memory_space<vmem>>, vector<16x32xf32>
    tpu.vector_store %arg17[%c313, %c0_141], %149 {strides = array<i32>} : memref<440x128xf32, #tpu.memory_space<vmem>>, vector<16x32xf32>,
    %151 = vector.extract_strided_slice %124 {offsets = [208, 0], sizes = [16, 32], strides = [1, 1]} : vector<256x32xf32> to vector<16x32xf32>
    %c337 = arith.constant 337 : index
    %c0_142 = arith.constant 0 : index
    %152 = vector.load %arg17[%c337, %c0_142] : memref<440x128xf32, #tpu.memory_space<vmem>>, vector<16x32xf32>
    tpu.vector_store %arg17[%c337, %c0_142], %151 {strides = array<i32>} : memref<440x128xf32, #tpu.memory_space<vmem>>, vector<16x32xf32>,
    %153 = vector.extract_strided_slice %124 {offsets = [224, 0], sizes = [16, 32], strides = [1, 1]} : vector<256x32xf32> to vector<16x32xf32>
    %c361 = arith.constant 361 : index
    %c0_143 = arith.constant 0 : index
    %154 = vector.load %arg17[%c361, %c0_143] : memref<440x128xf32, #tpu.memory_space<vmem>>, vector<16x32xf32>
    tpu.vector_store %arg17[%c361, %c0_143], %153 {strides = array<i32>} : memref<440x128xf32, #tpu.memory_space<vmem>>, vector<16x32xf32>,
    %155 = vector.extract_strided_slice %124 {offsets = [240, 0], sizes = [16, 32], strides = [1, 1]} : vector<256x32xf32> to vector<16x32xf32>
    %c385 = arith.constant 385 : index
    %c0_144 = arith.constant 0 : index
    %156 = vector.load %arg17[%c385, %c0_144] : memref<440x128xf32, #tpu.memory_space<vmem>>, vector<16x32xf32>
    tpu.vector_store %arg17[%c385, %c0_144], %155 {strides = array<i32>} : memref<440x128xf32, #tpu.memory_space<vmem>>, vector<16x32xf32>,
    %c0_145 = arith.constant 0 : index
    %c0_146 = arith.constant 0 : index
    %c0_147 = arith.constant 0 : index
    %c0_148 = arith.constant 0 : index
    %157 = vector.load %arg3[%c0_145, %c0_146, %c0_147, %c0_148] : memref<1x16x16x16xbf16, #tpu.memory_space<vmem>>, vector<1x1x16x16xbf16>
    %158 = vector.shape_cast %157 : vector<1x1x16x16xbf16> to vector<16x16xbf16>
    %159 = arith.extf %158 : vector<16x16xbf16> to vector<16x16xf32>
    %c25_149 = arith.constant 25 : index
    %c0_150 = arith.constant 0 : index
    %160 = vector.load %arg18[%c25_149, %c0_150] : memref<440x128xf32, #tpu.memory_space<vmem>>, vector<16x16xf32>
    tpu.vector_store %arg18[%c25_149, %c0_150], %159 {strides = array<i32>} : memref<440x128xf32, #tpu.memory_space<vmem>>, vector<16x16xf32>,
    %c0_151 = arith.constant 0 : index
    %c1_152 = arith.constant 1 : index
    %c0_153 = arith.constant 0 : index
    %c0_154 = arith.constant 0 : index
    %161 = vector.load %arg3[%c0_151, %c1_152, %c0_153, %c0_154] : memref<1x16x16x16xbf16, #tpu.memory_space<vmem>>, vector<1x1x16x16xbf16>
    %162 = vector.shape_cast %161 : vector<1x1x16x16xbf16> to vector<16x16xbf16>
    %163 = arith.extf %162 : vector<16x16xbf16> to vector<16x16xf32>
    %c49_155 = arith.constant 49 : index
    %c0_156 = arith.constant 0 : index
    %164 = vector.load %arg18[%c49_155, %c0_156] : memref<440x128xf32, #tpu.memory_space<vmem>>, vector<16x16xf32>
    tpu.vector_store %arg18[%c49_155, %c0_156], %163 {strides = array<i32>} : memref<440x128xf32, #tpu.memory_space<vmem>>, vector<16x16xf32>,
    %c0_157 = arith.constant 0 : index
    %c2_158 = arith.constant 2 : index
    %c0_159 = arith.constant 0 : index
    %c0_160 = arith.constant 0 : index
    %165 = vector.load %arg3[%c0_157, %c2_158, %c0_159, %c0_160] : memref<1x16x16x16xbf16, #tpu.memory_space<vmem>>, vector<1x1x16x16xbf16>
    %166 = vector.shape_cast %165 : vector<1x1x16x16xbf16> to vector<16x16xbf16>
    %167 = arith.extf %166 : vector<16x16xbf16> to vector<16x16xf32>
    %c73_161 = arith.constant 73 : index
    %c0_162 = arith.constant 0 : index
    %168 = vector.load %arg18[%c73_161, %c0_162] : memref<440x128xf32, #tpu.memory_space<vmem>>, vector<16x16xf32>
    tpu.vector_store %arg18[%c73_161, %c0_162], %167 {strides = array<i32>} : memref<440x128xf32, #tpu.memory_space<vmem>>, vector<16x16xf32>,
    %c0_163 = arith.constant 0 : index
    %c3_164 = arith.constant 3 : index
    %c0_165 = arith.constant 0 : index
    %c0_166 = arith.constant 0 : index
    %169 = vector.load %arg3[%c0_163, %c3_164, %c0_165, %c0_166] : memref<1x16x16x16xbf16, #tpu.memory_space<vmem>>, vector<1x1x16x16xbf16>
    %170 = vector.shape_cast %169 : vector<1x1x16x16xbf16> to vector<16x16xbf16>
    %171 = arith.extf %170 : vector<16x16xbf16> to vector<16x16xf32>
    %c97_167 = arith.constant 97 : index
    %c0_168 = arith.constant 0 : index
    %172 = vector.load %arg18[%c97_167, %c0_168] : memref<440x128xf32, #tpu.memory_space<vmem>>, vector<16x16xf32>
    tpu.vector_store %arg18[%c97_167, %c0_168], %171 {strides = array<i32>} : memref<440x128xf32, #tpu.memory_space<vmem>>, vector<16x16xf32>,
    %c0_169 = arith.constant 0 : index
    %c4_170 = arith.constant 4 : index
    %c0_171 = arith.constant 0 : index
    %c0_172 = arith.constant 0 : index
    %173 = vector.load %arg3[%c0_169, %c4_170, %c0_171, %c0_172] : memref<1x16x16x16xbf16, #tpu.memory_space<vmem>>, vector<1x1x16x16xbf16>
    %174 = vector.shape_cast %173 : vector<1x1x16x16xbf16> to vector<16x16xbf16>
    %175 = arith.extf %174 : vector<16x16xbf16> to vector<16x16xf32>
    %c121_173 = arith.constant 121 : index
    %c0_174 = arith.constant 0 : index
    %176 = vector.load %arg18[%c121_173, %c0_174] : memref<440x128xf32, #tpu.memory_space<vmem>>, vector<16x16xf32>
    tpu.vector_store %arg18[%c121_173, %c0_174], %175 {strides = array<i32>} : memref<440x128xf32, #tpu.memory_space<vmem>>, vector<16x16xf32>,
    %c0_175 = arith.constant 0 : index
    %c5_176 = arith.constant 5 : index
    %c0_177 = arith.constant 0 : index
    %c0_178 = arith.constant 0 : index
    %177 = vector.load %arg3[%c0_175, %c5_176, %c0_177, %c0_178] : memref<1x16x16x16xbf16, #tpu.memory_space<vmem>>, vector<1x1x16x16xbf16>
    %178 = vector.shape_cast %177 : vector<1x1x16x16xbf16> to vector<16x16xbf16>
    %179 = arith.extf %178 : vector<16x16xbf16> to vector<16x16xf32>
    %c145_179 = arith.constant 145 : index
    %c0_180 = arith.constant 0 : index
    %180 = vector.load %arg18[%c145_179, %c0_180] : memref<440x128xf32, #tpu.memory_space<vmem>>, vector<16x16xf32>
    tpu.vector_store %arg18[%c145_179, %c0_180], %179 {strides = array<i32>} : memref<440x128xf32, #tpu.memory_space<vmem>>, vector<16x16xf32>,
    %c0_181 = arith.constant 0 : index
    %c6_182 = arith.constant 6 : index
    %c0_183 = arith.constant 0 : index
    %c0_184 = arith.constant 0 : index
    %181 = vector.load %arg3[%c0_181, %c6_182, %c0_183, %c0_184] : memref<1x16x16x16xbf16, #tpu.memory_space<vmem>>, vector<1x1x16x16xbf16>
    %182 = vector.shape_cast %181 : vector<1x1x16x16xbf16> to vector<16x16xbf16>
    %183 = arith.extf %182 : vector<16x16xbf16> to vector<16x16xf32>
    %c169_185 = arith.constant 169 : index
    %c0_186 = arith.constant 0 : index
    %184 = vector.load %arg18[%c169_185, %c0_186] : memref<440x128xf32, #tpu.memory_space<vmem>>, vector<16x16xf32>
    tpu.vector_store %arg18[%c169_185, %c0_186], %183 {strides = array<i32>} : memref<440x128xf32, #tpu.memory_space<vmem>>, vector<16x16xf32>,
    %c0_187 = arith.constant 0 : index
    %c7_188 = arith.constant 7 : index
    %c0_189 = arith.constant 0 : index
    %c0_190 = arith.constant 0 : index
    %185 = vector.load %arg3[%c0_187, %c7_188, %c0_189, %c0_190] : memref<1x16x16x16xbf16, #tpu.memory_space<vmem>>, vector<1x1x16x16xbf16>
    %186 = vector.shape_cast %185 : vector<1x1x16x16xbf16> to vector<16x16xbf16>
    %187 = arith.extf %186 : vector<16x16xbf16> to vector<16x16xf32>
    %c193_191 = arith.constant 193 : index
    %c0_192 = arith.constant 0 : index
    %188 = vector.load %arg18[%c193_191, %c0_192] : memref<440x128xf32, #tpu.memory_space<vmem>>, vector<16x16xf32>
    tpu.vector_store %arg18[%c193_191, %c0_192], %187 {strides = array<i32>} : memref<440x128xf32, #tpu.memory_space<vmem>>, vector<16x16xf32>,
    %c0_193 = arith.constant 0 : index
    %c8 = arith.constant 8 : index
    %c0_194 = arith.constant 0 : index
    %c0_195 = arith.constant 0 : index
    %189 = vector.load %arg3[%c0_193, %c8, %c0_194, %c0_195] : memref<1x16x16x16xbf16, #tpu.memory_space<vmem>>, vector<1x1x16x16xbf16>
    %190 = vector.shape_cast %189 : vector<1x1x16x16xbf16> to vector<16x16xbf16>
    %191 = arith.extf %190 : vector<16x16xbf16> to vector<16x16xf32>
    %c217_196 = arith.constant 217 : index
    %c0_197 = arith.constant 0 : index
    %192 = vector.load %arg18[%c217_196, %c0_197] : memref<440x128xf32, #tpu.memory_space<vmem>>, vector<16x16xf32>
    tpu.vector_store %arg18[%c217_196, %c0_197], %191 {strides = array<i32>} : memref<440x128xf32, #tpu.memory_space<vmem>>, vector<16x16xf32>,
    %c0_198 = arith.constant 0 : index
    %c9 = arith.constant 9 : index
    %c0_199 = arith.constant 0 : index
    %c0_200 = arith.constant 0 : index
    %193 = vector.load %arg3[%c0_198, %c9, %c0_199, %c0_200] : memref<1x16x16x16xbf16, #tpu.memory_space<vmem>>, vector<1x1x16x16xbf16>
    %194 = vector.shape_cast %193 : vector<1x1x16x16xbf16> to vector<16x16xbf16>
    %195 = arith.extf %194 : vector<16x16xbf16> to vector<16x16xf32>
    %c241_201 = arith.constant 241 : index
    %c0_202 = arith.constant 0 : index
    %196 = vector.load %arg18[%c241_201, %c0_202] : memref<440x128xf32, #tpu.memory_space<vmem>>, vector<16x16xf32>
    tpu.vector_store %arg18[%c241_201, %c0_202], %195 {strides = array<i32>} : memref<440x128xf32, #tpu.memory_space<vmem>>, vector<16x16xf32>,
    %c0_203 = arith.constant 0 : index
    %c10 = arith.constant 10 : index
    %c0_204 = arith.constant 0 : index
    %c0_205 = arith.constant 0 : index
    %197 = vector.load %arg3[%c0_203, %c10, %c0_204, %c0_205] : memref<1x16x16x16xbf16, #tpu.memory_space<vmem>>, vector<1x1x16x16xbf16>
    %198 = vector.shape_cast %197 : vector<1x1x16x16xbf16> to vector<16x16xbf16>
    %199 = arith.extf %198 : vector<16x16xbf16> to vector<16x16xf32>
    %c265_206 = arith.constant 265 : index
    %c0_207 = arith.constant 0 : index
    %200 = vector.load %arg18[%c265_206, %c0_207] : memref<440x128xf32, #tpu.memory_space<vmem>>, vector<16x16xf32>
    tpu.vector_store %arg18[%c265_206, %c0_207], %199 {strides = array<i32>} : memref<440x128xf32, #tpu.memory_space<vmem>>, vector<16x16xf32>,
    %c0_208 = arith.constant 0 : index
    %c11 = arith.constant 11 : index
    %c0_209 = arith.constant 0 : index
    %c0_210 = arith.constant 0 : index
    %201 = vector.load %arg3[%c0_208, %c11, %c0_209, %c0_210] : memref<1x16x16x16xbf16, #tpu.memory_space<vmem>>, vector<1x1x16x16xbf16>
    %202 = vector.shape_cast %201 : vector<1x1x16x16xbf16> to vector<16x16xbf16>
    %203 = arith.extf %202 : vector<16x16xbf16> to vector<16x16xf32>
    %c289_211 = arith.constant 289 : index
    %c0_212 = arith.constant 0 : index
    %204 = vector.load %arg18[%c289_211, %c0_212] : memref<440x128xf32, #tpu.memory_space<vmem>>, vector<16x16xf32>
    tpu.vector_store %arg18[%c289_211, %c0_212], %203 {strides = array<i32>} : memref<440x128xf32, #tpu.memory_space<vmem>>, vector<16x16xf32>,
    %c0_213 = arith.constant 0 : index
    %c12 = arith.constant 12 : index
    %c0_214 = arith.constant 0 : index
    %c0_215 = arith.constant 0 : index
    %205 = vector.load %arg3[%c0_213, %c12, %c0_214, %c0_215] : memref<1x16x16x16xbf16, #tpu.memory_space<vmem>>, vector<1x1x16x16xbf16>
    %206 = vector.shape_cast %205 : vector<1x1x16x16xbf16> to vector<16x16xbf16>
    %207 = arith.extf %206 : vector<16x16xbf16> to vector<16x16xf32>
    %c313_216 = arith.constant 313 : index
    %c0_217 = arith.constant 0 : index
    %208 = vector.load %arg18[%c313_216, %c0_217] : memref<440x128xf32, #tpu.memory_space<vmem>>, vector<16x16xf32>
    tpu.vector_store %arg18[%c313_216, %c0_217], %207 {strides = array<i32>} : memref<440x128xf32, #tpu.memory_space<vmem>>, vector<16x16xf32>,
    %c0_218 = arith.constant 0 : index
    %c13 = arith.constant 13 : index
    %c0_219 = arith.constant 0 : index
    %c0_220 = arith.constant 0 : index
    %209 = vector.load %arg3[%c0_218, %c13, %c0_219, %c0_220] : memref<1x16x16x16xbf16, #tpu.memory_space<vmem>>, vector<1x1x16x16xbf16>
    %210 = vector.shape_cast %209 : vector<1x1x16x16xbf16> to vector<16x16xbf16>
    %211 = arith.extf %210 : vector<16x16xbf16> to vector<16x16xf32>
    %c337_221 = arith.constant 337 : index
    %c0_222 = arith.constant 0 : index
    %212 = vector.load %arg18[%c337_221, %c0_222] : memref<440x128xf32, #tpu.memory_space<vmem>>, vector<16x16xf32>
    tpu.vector_store %arg18[%c337_221, %c0_222], %211 {strides = array<i32>} : memref<440x128xf32, #tpu.memory_space<vmem>>, vector<16x16xf32>,
    %c0_223 = arith.constant 0 : index
    %c14 = arith.constant 14 : index
    %c0_224 = arith.constant 0 : index
    %c0_225 = arith.constant 0 : index
    %213 = vector.load %arg3[%c0_223, %c14, %c0_224, %c0_225] : memref<1x16x16x16xbf16, #tpu.memory_space<vmem>>, vector<1x1x16x16xbf16>
    %214 = vector.shape_cast %213 : vector<1x1x16x16xbf16> to vector<16x16xbf16>
    %215 = arith.extf %214 : vector<16x16xbf16> to vector<16x16xf32>
    %c361_226 = arith.constant 361 : index
    %c0_227 = arith.constant 0 : index
    %216 = vector.load %arg18[%c361_226, %c0_227] : memref<440x128xf32, #tpu.memory_space<vmem>>, vector<16x16xf32>
    tpu.vector_store %arg18[%c361_226, %c0_227], %215 {strides = array<i32>} : memref<440x128xf32, #tpu.memory_space<vmem>>, vector<16x16xf32>,
    %c0_228 = arith.constant 0 : index
    %c15 = arith.constant 15 : index
    %c0_229 = arith.constant 0 : index
    %c0_230 = arith.constant 0 : index
    %217 = vector.load %arg3[%c0_228, %c15, %c0_229, %c0_230] : memref<1x16x16x16xbf16, #tpu.memory_space<vmem>>, vector<1x1x16x16xbf16>
    %218 = vector.shape_cast %217 : vector<1x1x16x16xbf16> to vector<16x16xbf16>
    %219 = arith.extf %218 : vector<16x16xbf16> to vector<16x16xf32>
    %c385_231 = arith.constant 385 : index
    %c0_232 = arith.constant 0 : index
    %220 = vector.load %arg18[%c385_231, %c0_232] : memref<440x128xf32, #tpu.memory_space<vmem>>, vector<16x16xf32>
    tpu.vector_store %arg18[%c385_231, %c0_232], %219 {strides = array<i32>} : memref<440x128xf32, #tpu.memory_space<vmem>>, vector<16x16xf32>,
    %c0_233 = arith.constant 0 : index
    %c0_234 = arith.constant 0 : index
    %221 = vector.load %arg17[%c0_233, %c0_234] : memref<440x128xf32, #tpu.memory_space<vmem>>, vector<384x128xf32>
    %222 = arith.truncf %221 : vector<384x128xf32> to vector<384x128xbf16>
    %c0_235 = arith.constant 0 : index
    %c0_236 = arith.constant 0 : index
    %223 = vector.load %arg19[%c0_235, %c0_236] : memref<384x2304xbf16, #tpu.memory_space<vmem>>, vector<384x128xbf16>
    tpu.vector_store %arg19[%c0_235, %c0_236], %222 {strides = array<i32>} : memref<384x2304xbf16, #tpu.memory_space<vmem>>, vector<384x128xbf16>,
    %c1_237 = arith.constant 1 : index
    %c0_238 = arith.constant 0 : index
    %224 = vector.load %arg17[%c1_237, %c0_238] : memref<440x128xf32, #tpu.memory_space<vmem>>, vector<384x128xf32>
    %225 = arith.truncf %224 : vector<384x128xf32> to vector<384x128xbf16>
    %c0_239 = arith.constant 0 : index
    %c128_240 = arith.constant 128 : index
    %226 = vector.load %arg19[%c0_239, %c128_240] : memref<384x2304xbf16, #tpu.memory_space<vmem>>, vector<384x128xbf16>
    tpu.vector_store %arg19[%c0_239, %c128_240], %225 {strides = array<i32>} : memref<384x2304xbf16, #tpu.memory_space<vmem>>, vector<384x128xbf16>,
    %c2_241 = arith.constant 2 : index
    %c0_242 = arith.constant 0 : index
    %227 = vector.load %arg17[%c2_241, %c0_242] : memref<440x128xf32, #tpu.memory_space<vmem>>, vector<384x128xf32>
    %228 = arith.truncf %227 : vector<384x128xf32> to vector<384x128xbf16>
    %c0_243 = arith.constant 0 : index
    %c256_244 = arith.constant 256 : index
    %229 = vector.load %arg19[%c0_243, %c256_244] : memref<384x2304xbf16, #tpu.memory_space<vmem>>, vector<384x128xbf16>
    tpu.vector_store %arg19[%c0_243, %c256_244], %228 {strides = array<i32>} : memref<384x2304xbf16, #tpu.memory_space<vmem>>, vector<384x128xbf16>,
    %c24 = arith.constant 24 : index
    %c0_245 = arith.constant 0 : index
    %230 = vector.load %arg17[%c24, %c0_245] : memref<440x128xf32, #tpu.memory_space<vmem>>, vector<384x128xf32>
    %231 = arith.truncf %230 : vector<384x128xf32> to vector<384x128xbf16>
    %c0_246 = arith.constant 0 : index
    %c384_247 = arith.constant 384 : index
    %232 = vector.load %arg19[%c0_246, %c384_247] : memref<384x2304xbf16, #tpu.memory_space<vmem>>, vector<384x128xbf16>
    tpu.vector_store %arg19[%c0_246, %c384_247], %231 {strides = array<i32>} : memref<384x2304xbf16, #tpu.memory_space<vmem>>, vector<384x128xbf16>,
    %c25_248 = arith.constant 25 : index
    %c0_249 = arith.constant 0 : index
    %233 = vector.load %arg17[%c25_248, %c0_249] : memref<440x128xf32, #tpu.memory_space<vmem>>, vector<384x128xf32>
    %234 = arith.truncf %233 : vector<384x128xf32> to vector<384x128xbf16>
    %c0_250 = arith.constant 0 : index
    %c512_251 = arith.constant 512 : index
    %235 = vector.load %arg19[%c0_250, %c512_251] : memref<384x2304xbf16, #tpu.memory_space<vmem>>, vector<384x128xbf16>
    tpu.vector_store %arg19[%c0_250, %c512_251], %234 {strides = array<i32>} : memref<384x2304xbf16, #tpu.memory_space<vmem>>, vector<384x128xbf16>,
    %c26 = arith.constant 26 : index
    %c0_252 = arith.constant 0 : index
    %236 = vector.load %arg17[%c26, %c0_252] : memref<440x128xf32, #tpu.memory_space<vmem>>, vector<384x128xf32>
    %237 = arith.truncf %236 : vector<384x128xf32> to vector<384x128xbf16>
    %c0_253 = arith.constant 0 : index
    %c640_254 = arith.constant 640 : index
    %238 = vector.load %arg19[%c0_253, %c640_254] : memref<384x2304xbf16, #tpu.memory_space<vmem>>, vector<384x128xbf16>
    tpu.vector_store %arg19[%c0_253, %c640_254], %237 {strides = array<i32>} : memref<384x2304xbf16, #tpu.memory_space<vmem>>, vector<384x128xbf16>,
    %c48 = arith.constant 48 : index
    %c0_255 = arith.constant 0 : index
    %239 = vector.load %arg17[%c48, %c0_255] : memref<440x128xf32, #tpu.memory_space<vmem>>, vector<384x128xf32>
    %240 = arith.truncf %239 : vector<384x128xf32> to vector<384x128xbf16>
    %c0_256 = arith.constant 0 : index
    %c768_257 = arith.constant 768 : index
    %241 = vector.load %arg19[%c0_256, %c768_257] : memref<384x2304xbf16, #tpu.memory_space<vmem>>, vector<384x128xbf16>
    tpu.vector_store %arg19[%c0_256, %c768_257], %240 {strides = array<i32>} : memref<384x2304xbf16, #tpu.memory_space<vmem>>, vector<384x128xbf16>,
    %c49_258 = arith.constant 49 : index
    %c0_259 = arith.constant 0 : index
    %242 = vector.load %arg17[%c49_258, %c0_259] : memref<440x128xf32, #tpu.memory_space<vmem>>, vector<384x128xf32>
    %243 = arith.truncf %242 : vector<384x128xf32> to vector<384x128xbf16>
    %c0_260 = arith.constant 0 : index
    %c896_261 = arith.constant 896 : index
    %244 = vector.load %arg19[%c0_260, %c896_261] : memref<384x2304xbf16, #tpu.memory_space<vmem>>, vector<384x128xbf16>
    tpu.vector_store %arg19[%c0_260, %c896_261], %243 {strides = array<i32>} : memref<384x2304xbf16, #tpu.memory_space<vmem>>, vector<384x128xbf16>,
    %c50 = arith.constant 50 : index
    %c0_262 = arith.constant 0 : index
    %245 = vector.load %arg17[%c50, %c0_262] : memref<440x128xf32, #tpu.memory_space<vmem>>, vector<384x128xf32>
    %246 = arith.truncf %245 : vector<384x128xf32> to vector<384x128xbf16>
    %c0_263 = arith.constant 0 : index
    %c1024_264 = arith.constant 1024 : index
    %247 = vector.load %arg19[%c0_263, %c1024_264] : memref<384x2304xbf16, #tpu.memory_space<vmem>>, vector<384x128xbf16>
    tpu.vector_store %arg19[%c0_263, %c1024_264], %246 {strides = array<i32>} : memref<384x2304xbf16, #tpu.memory_space<vmem>>, vector<384x128xbf16>,
    %c0_265 = arith.constant 0 : index
    %c0_266 = arith.constant 0 : index
    %248 = vector.load %arg18[%c0_265, %c0_266] : memref<440x128xf32, #tpu.memory_space<vmem>>, vector<384x128xf32>
    %249 = arith.truncf %248 : vector<384x128xf32> to vector<384x128xbf16>
    %c0_267 = arith.constant 0 : index
    %c1152_268 = arith.constant 1152 : index
    %250 = vector.load %arg19[%c0_267, %c1152_268] : memref<384x2304xbf16, #tpu.memory_space<vmem>>, vector<384x128xbf16>
    tpu.vector_store %arg19[%c0_267, %c1152_268], %249 {strides = array<i32>} : memref<384x2304xbf16, #tpu.memory_space<vmem>>, vector<384x128xbf16>,
    %c1_269 = arith.constant 1 : index
    %c0_270 = arith.constant 0 : index
    %251 = vector.load %arg18[%c1_269, %c0_270] : memref<440x128xf32, #tpu.memory_space<vmem>>, vector<384x128xf32>
    %252 = arith.truncf %251 : vector<384x128xf32> to vector<384x128xbf16>
    %c0_271 = arith.constant 0 : index
    %c1280_272 = arith.constant 1280 : index
    %253 = vector.load %arg19[%c0_271, %c1280_272] : memref<384x2304xbf16, #tpu.memory_space<vmem>>, vector<384x128xbf16>
    tpu.vector_store %arg19[%c0_271, %c1280_272], %252 {strides = array<i32>} : memref<384x2304xbf16, #tpu.memory_space<vmem>>, vector<384x128xbf16>,
    %c2_273 = arith.constant 2 : index
    %c0_274 = arith.constant 0 : index
    %254 = vector.load %arg18[%c2_273, %c0_274] : memref<440x128xf32, #tpu.memory_space<vmem>>, vector<384x128xf32>
    %255 = arith.truncf %254 : vector<384x128xf32> to vector<384x128xbf16>
    %c0_275 = arith.constant 0 : index
    %c1408_276 = arith.constant 1408 : index
    %256 = vector.load %arg19[%c0_275, %c1408_276] : memref<384x2304xbf16, #tpu.memory_space<vmem>>, vector<384x128xbf16>
    tpu.vector_store %arg19[%c0_275, %c1408_276], %255 {strides = array<i32>} : memref<384x2304xbf16, #tpu.memory_space<vmem>>, vector<384x128xbf16>,
    %c24_277 = arith.constant 24 : index
    %c0_278 = arith.constant 0 : index
    %257 = vector.load %arg18[%c24_277, %c0_278] : memref<440x128xf32, #tpu.memory_space<vmem>>, vector<384x128xf32>
    %258 = arith.truncf %257 : vector<384x128xf32> to vector<384x128xbf16>
    %c0_279 = arith.constant 0 : index
    %c1536_280 = arith.constant 1536 : index
    %259 = vector.load %arg19[%c0_279, %c1536_280] : memref<384x2304xbf16, #tpu.memory_space<vmem>>, vector<384x128xbf16>
    tpu.vector_store %arg19[%c0_279, %c1536_280], %258 {strides = array<i32>} : memref<384x2304xbf16, #tpu.memory_space<vmem>>, vector<384x128xbf16>,
    %c25_281 = arith.constant 25 : index
    %c0_282 = arith.constant 0 : index
    %260 = vector.load %arg18[%c25_281, %c0_282] : memref<440x128xf32, #tpu.memory_space<vmem>>, vector<384x128xf32>
    %261 = arith.truncf %260 : vector<384x128xf32> to vector<384x128xbf16>
    %c0_283 = arith.constant 0 : index
    %c1664_284 = arith.constant 1664 : index
    %262 = vector.load %arg19[%c0_283, %c1664_284] : memref<384x2304xbf16, #tpu.memory_space<vmem>>, vector<384x128xbf16>
    tpu.vector_store %arg19[%c0_283, %c1664_284], %261 {strides = array<i32>} : memref<384x2304xbf16, #tpu.memory_space<vmem>>, vector<384x128xbf16>,
    %c26_285 = arith.constant 26 : index
    %c0_286 = arith.constant 0 : index
    %263 = vector.load %arg18[%c26_285, %c0_286] : memref<440x128xf32, #tpu.memory_space<vmem>>, vector<384x128xf32>
    %264 = arith.truncf %263 : vector<384x128xf32> to vector<384x128xbf16>
    %c0_287 = arith.constant 0 : index
    %c1792_288 = arith.constant 1792 : index
    %265 = vector.load %arg19[%c0_287, %c1792_288] : memref<384x2304xbf16, #tpu.memory_space<vmem>>, vector<384x128xbf16>
    tpu.vector_store %arg19[%c0_287, %c1792_288], %264 {strides = array<i32>} : memref<384x2304xbf16, #tpu.memory_space<vmem>>, vector<384x128xbf16>,
    %c48_289 = arith.constant 48 : index
    %c0_290 = arith.constant 0 : index
    %266 = vector.load %arg18[%c48_289, %c0_290] : memref<440x128xf32, #tpu.memory_space<vmem>>, vector<384x128xf32>
    %267 = arith.truncf %266 : vector<384x128xf32> to vector<384x128xbf16>
    %c0_291 = arith.constant 0 : index
    %c1920_292 = arith.constant 1920 : index
    %268 = vector.load %arg19[%c0_291, %c1920_292] : memref<384x2304xbf16, #tpu.memory_space<vmem>>, vector<384x128xbf16>
    tpu.vector_store %arg19[%c0_291, %c1920_292], %267 {strides = array<i32>} : memref<384x2304xbf16, #tpu.memory_space<vmem>>, vector<384x128xbf16>,
    %c49_293 = arith.constant 49 : index
    %c0_294 = arith.constant 0 : index
    %269 = vector.load %arg18[%c49_293, %c0_294] : memref<440x128xf32, #tpu.memory_space<vmem>>, vector<384x128xf32>
    %270 = arith.truncf %269 : vector<384x128xf32> to vector<384x128xbf16>
    %c0_295 = arith.constant 0 : index
    %c2048_296 = arith.constant 2048 : index
    %271 = vector.load %arg19[%c0_295, %c2048_296] : memref<384x2304xbf16, #tpu.memory_space<vmem>>, vector<384x128xbf16>
    tpu.vector_store %arg19[%c0_295, %c2048_296], %270 {strides = array<i32>} : memref<384x2304xbf16, #tpu.memory_space<vmem>>, vector<384x128xbf16>,
    %c50_297 = arith.constant 50 : index
    %c0_298 = arith.constant 0 : index
    %272 = vector.load %arg18[%c50_297, %c0_298] : memref<440x128xf32, #tpu.memory_space<vmem>>, vector<384x128xf32>
    %273 = arith.truncf %272 : vector<384x128xf32> to vector<384x128xbf16>
    %c0_299 = arith.constant 0 : index
    %c2176_300 = arith.constant 2176 : index
    %274 = vector.load %arg19[%c0_299, %c2176_300] : memref<384x2304xbf16, #tpu.memory_space<vmem>>, vector<384x128xbf16>
    tpu.vector_store %arg19[%c0_299, %c2176_300], %273 {strides = array<i32>} : memref<384x2304xbf16, #tpu.memory_space<vmem>>, vector<384x128xbf16>,
    %c0_301 = arith.constant 0 : index
    %c0_302 = arith.constant 0 : index
    %275 = vector.load %arg19[%c0_301, %c0_302] : memref<384x2304xbf16, #tpu.memory_space<vmem>>, vector<384x2304xbf16>
    %c0_303 = arith.constant 0 : index
    %c0_304 = arith.constant 0 : index
    %276 = vector.load %arg7[%c0_303, %c0_304] : memref<2304x32xbf16, #tpu.memory_space<vmem>>, vector<2304x32xbf16>
    %cst_305 = arith.constant dense<0.000000e+00> : vector<384x32xf32>
    %277 = tpu.matmul %275, %276, %cst_305 {dimension_numbers = #tpu.dot_dimension_numbers<[1], [0], [0], [1], [0, 0, 1, 1], [], []>} : vector<384x2304xbf16>, vector<2304x32xbf16>, vector<384x32xf32> -> vector<384x32xf32>
    %c1_306 = arith.constant 1 : index
    %c0_307 = arith.constant 0 : index
    %278 = vector.load %arg10[%c1_306, %c0_307] : memref<4x32xf32, #tpu.memory_space<vmem>>, vector<1x32xf32>
    %279 = vector.broadcast %278 : vector<1x32xf32> to vector<384x32xf32>
    %280 = arith.addf %277, %279 : vector<384x32xf32>
    %cst_308 = arith.constant 0.000000e+00 : f32
    %281 = vector.broadcast %cst_308 : f32 to vector<384x32xf32>
    %282 = arith.maximumf %280, %281 : vector<384x32xf32>
    %283 = vector.extract_strided_slice %282 {offsets = [0, 0], sizes = [16, 32], strides = [1, 1]} : vector<384x32xf32> to vector<16x32xf32>
    %c0_309 = arith.constant 0 : index
    %c0_310 = arith.constant 0 : index
    %c0_311 = arith.constant 0 : index
    %c0_312 = arith.constant 0 : index
    %284 = vector.load %arg11[%c0_309, %c0_310, %c0_311, %c0_312] : memref<1x16x16x32xf32, #tpu.memory_space<vmem>>, vector<1x1x16x32xf32>
    %285 = vector.shape_cast %284 : vector<1x1x16x32xf32> to vector<16x32xf32>
    %286 = vector.shape_cast %283 : vector<16x32xf32> to vector<1x1x16x32xf32>
    tpu.vector_store %arg11[%c0_309, %c0_310, %c0_311, %c0_312], %286 {strides = array<i32>} : memref<1x16x16x32xf32, #tpu.memory_space<vmem>>, vector<1x1x16x32xf32>,
    %287 = vector.extract_strided_slice %282 {offsets = [24, 0], sizes = [16, 32], strides = [1, 1]} : vector<384x32xf32> to vector<16x32xf32>
    %c0_313 = arith.constant 0 : index
    %c1_314 = arith.constant 1 : index
    %c0_315 = arith.constant 0 : index
    %c0_316 = arith.constant 0 : index
    %288 = vector.load %arg11[%c0_313, %c1_314, %c0_315, %c0_316] : memref<1x16x16x32xf32, #tpu.memory_space<vmem>>, vector<1x1x16x32xf32>
    %289 = vector.shape_cast %288 : vector<1x1x16x32xf32> to vector<16x32xf32>
    %290 = vector.shape_cast %287 : vector<16x32xf32> to vector<1x1x16x32xf32>
    tpu.vector_store %arg11[%c0_313, %c1_314, %c0_315, %c0_316], %290 {strides = array<i32>} : memref<1x16x16x32xf32, #tpu.memory_space<vmem>>, vector<1x1x16x32xf32>,
    %291 = vector.extract_strided_slice %282 {offsets = [48, 0], sizes = [16, 32], strides = [1, 1]} : vector<384x32xf32> to vector<16x32xf32>
    %c0_317 = arith.constant 0 : index
    %c2_318 = arith.constant 2 : index
    %c0_319 = arith.constant 0 : index
    %c0_320 = arith.constant 0 : index
    %292 = vector.load %arg11[%c0_317, %c2_318, %c0_319, %c0_320] : memref<1x16x16x32xf32, #tpu.memory_space<vmem>>, vector<1x1x16x32xf32>
    %293 = vector.shape_cast %292 : vector<1x1x16x32xf32> to vector<16x32xf32>
    %294 = vector.shape_cast %291 : vector<16x32xf32> to vector<1x1x16x32xf32>
    tpu.vector_store %arg11[%c0_317, %c2_318, %c0_319, %c0_320], %294 {strides = array<i32>} : memref<1x16x16x32xf32, #tpu.memory_space<vmem>>, vector<1x1x16x32xf32>,
    %295 = vector.extract_strided_slice %282 {offsets = [72, 0], sizes = [16, 32], strides = [1, 1]} : vector<384x32xf32> to vector<16x32xf32>
    %c0_321 = arith.constant 0 : index
    %c3_322 = arith.constant 3 : index
    %c0_323 = arith.constant 0 : index
    %c0_324 = arith.constant 0 : index
    %296 = vector.load %arg11[%c0_321, %c3_322, %c0_323, %c0_324] : memref<1x16x16x32xf32, #tpu.memory_space<vmem>>, vector<1x1x16x32xf32>
    %297 = vector.shape_cast %296 : vector<1x1x16x32xf32> to vector<16x32xf32>
    %298 = vector.shape_cast %295 : vector<16x32xf32> to vector<1x1x16x32xf32>
    tpu.vector_store %arg11[%c0_321, %c3_322, %c0_323, %c0_324], %298 {strides = array<i32>} : memref<1x16x16x32xf32, #tpu.memory_space<vmem>>, vector<1x1x16x32xf32>,
    %299 = vector.extract_strided_slice %282 {offsets = [96, 0], sizes = [16, 32], strides = [1, 1]} : vector<384x32xf32> to vector<16x32xf32>
    %c0_325 = arith.constant 0 : index
    %c4_326 = arith.constant 4 : index
    %c0_327 = arith.constant 0 : index
    %c0_328 = arith.constant 0 : index
    %300 = vector.load %arg11[%c0_325, %c4_326, %c0_327, %c0_328] : memref<1x16x16x32xf32, #tpu.memory_space<vmem>>, vector<1x1x16x32xf32>
    %301 = vector.shape_cast %300 : vector<1x1x16x32xf32> to vector<16x32xf32>
    %302 = vector.shape_cast %299 : vector<16x32xf32> to vector<1x1x16x32xf32>
    tpu.vector_store %arg11[%c0_325, %c4_326, %c0_327, %c0_328], %302 {strides = array<i32>} : memref<1x16x16x32xf32, #tpu.memory_space<vmem>>, vector<1x1x16x32xf32>,
    %303 = vector.extract_strided_slice %282 {offsets = [120, 0], sizes = [16, 32], strides = [1, 1]} : vector<384x32xf32> to vector<16x32xf32>
    %c0_329 = arith.constant 0 : index
    %c5_330 = arith.constant 5 : index
    %c0_331 = arith.constant 0 : index
    %c0_332 = arith.constant 0 : index
    %304 = vector.load %arg11[%c0_329, %c5_330, %c0_331, %c0_332] : memref<1x16x16x32xf32, #tpu.memory_space<vmem>>, vector<1x1x16x32xf32>
    %305 = vector.shape_cast %304 : vector<1x1x16x32xf32> to vector<16x32xf32>
    %306 = vector.shape_cast %303 : vector<16x32xf32> to vector<1x1x16x32xf32>
    tpu.vector_store %arg11[%c0_329, %c5_330, %c0_331, %c0_332], %306 {strides = array<i32>} : memref<1x16x16x32xf32, #tpu.memory_space<vmem>>, vector<1x1x16x32xf32>,
    %307 = vector.extract_strided_slice %282 {offsets = [144, 0], sizes = [16, 32], strides = [1, 1]} : vector<384x32xf32> to vector<16x32xf32>
    %c0_333 = arith.constant 0 : index
    %c6_334 = arith.constant 6 : index
    %c0_335 = arith.constant 0 : index
    %c0_336 = arith.constant 0 : index
    %308 = vector.load %arg11[%c0_333, %c6_334, %c0_335, %c0_336] : memref<1x16x16x32xf32, #tpu.memory_space<vmem>>, vector<1x1x16x32xf32>
    %309 = vector.shape_cast %308 : vector<1x1x16x32xf32> to vector<16x32xf32>
    %310 = vector.shape_cast %307 : vector<16x32xf32> to vector<1x1x16x32xf32>
    tpu.vector_store %arg11[%c0_333, %c6_334, %c0_335, %c0_336], %310 {strides = array<i32>} : memref<1x16x16x32xf32, #tpu.memory_space<vmem>>, vector<1x1x16x32xf32>,
    %311 = vector.extract_strided_slice %282 {offsets = [168, 0], sizes = [16, 32], strides = [1, 1]} : vector<384x32xf32> to vector<16x32xf32>
    %c0_337 = arith.constant 0 : index
    %c7_338 = arith.constant 7 : index
    %c0_339 = arith.constant 0 : index
    %c0_340 = arith.constant 0 : index
    %312 = vector.load %arg11[%c0_337, %c7_338, %c0_339, %c0_340] : memref<1x16x16x32xf32, #tpu.memory_space<vmem>>, vector<1x1x16x32xf32>
    %313 = vector.shape_cast %312 : vector<1x1x16x32xf32> to vector<16x32xf32>
    %314 = vector.shape_cast %311 : vector<16x32xf32> to vector<1x1x16x32xf32>
    tpu.vector_store %arg11[%c0_337, %c7_338, %c0_339, %c0_340], %314 {strides = array<i32>} : memref<1x16x16x32xf32, #tpu.memory_space<vmem>>, vector<1x1x16x32xf32>,
    %315 = vector.extract_strided_slice %282 {offsets = [192, 0], sizes = [16, 32], strides = [1, 1]} : vector<384x32xf32> to vector<16x32xf32>
    %c0_341 = arith.constant 0 : index
    %c8_342 = arith.constant 8 : index
    %c0_343 = arith.constant 0 : index
    %c0_344 = arith.constant 0 : index
    %316 = vector.load %arg11[%c0_341, %c8_342, %c0_343, %c0_344] : memref<1x16x16x32xf32, #tpu.memory_space<vmem>>, vector<1x1x16x32xf32>
    %317 = vector.shape_cast %316 : vector<1x1x16x32xf32> to vector<16x32xf32>
    %318 = vector.shape_cast %315 : vector<16x32xf32> to vector<1x1x16x32xf32>
    tpu.vector_store %arg11[%c0_341, %c8_342, %c0_343, %c0_344], %318 {strides = array<i32>} : memref<1x16x16x32xf32, #tpu.memory_space<vmem>>, vector<1x1x16x32xf32>,
    %319 = vector.extract_strided_slice %282 {offsets = [216, 0], sizes = [16, 32], strides = [1, 1]} : vector<384x32xf32> to vector<16x32xf32>
    %c0_345 = arith.constant 0 : index
    %c9_346 = arith.constant 9 : index
    %c0_347 = arith.constant 0 : index
    %c0_348 = arith.constant 0 : index
    %320 = vector.load %arg11[%c0_345, %c9_346, %c0_347, %c0_348] : memref<1x16x16x32xf32, #tpu.memory_space<vmem>>, vector<1x1x16x32xf32>
    %321 = vector.shape_cast %320 : vector<1x1x16x32xf32> to vector<16x32xf32>
    %322 = vector.shape_cast %319 : vector<16x32xf32> to vector<1x1x16x32xf32>
    tpu.vector_store %arg11[%c0_345, %c9_346, %c0_347, %c0_348], %322 {strides = array<i32>} : memref<1x16x16x32xf32, #tpu.memory_space<vmem>>, vector<1x1x16x32xf32>,
    %323 = vector.extract_strided_slice %282 {offsets = [240, 0], sizes = [16, 32], strides = [1, 1]} : vector<384x32xf32> to vector<16x32xf32>
    %c0_349 = arith.constant 0 : index
    %c10_350 = arith.constant 10 : index
    %c0_351 = arith.constant 0 : index
    %c0_352 = arith.constant 0 : index
    %324 = vector.load %arg11[%c0_349, %c10_350, %c0_351, %c0_352] : memref<1x16x16x32xf32, #tpu.memory_space<vmem>>, vector<1x1x16x32xf32>
    %325 = vector.shape_cast %324 : vector<1x1x16x32xf32> to vector<16x32xf32>
    %326 = vector.shape_cast %323 : vector<16x32xf32> to vector<1x1x16x32xf32>
    tpu.vector_store %arg11[%c0_349, %c10_350, %c0_351, %c0_352], %326 {strides = array<i32>} : memref<1x16x16x32xf32, #tpu.memory_space<vmem>>, vector<1x1x16x32xf32>,
    %327 = vector.extract_strided_slice %282 {offsets = [264, 0], sizes = [16, 32], strides = [1, 1]} : vector<384x32xf32> to vector<16x32xf32>
    %c0_353 = arith.constant 0 : index
    %c11_354 = arith.constant 11 : index
    %c0_355 = arith.constant 0 : index
    %c0_356 = arith.constant 0 : index
    %328 = vector.load %arg11[%c0_353, %c11_354, %c0_355, %c0_356] : memref<1x16x16x32xf32, #tpu.memory_space<vmem>>, vector<1x1x16x32xf32>
    %329 = vector.shape_cast %328 : vector<1x1x16x32xf32> to vector<16x32xf32>
    %330 = vector.shape_cast %327 : vector<16x32xf32> to vector<1x1x16x32xf32>
    tpu.vector_store %arg11[%c0_353, %c11_354, %c0_355, %c0_356], %330 {strides = array<i32>} : memref<1x16x16x32xf32, #tpu.memory_space<vmem>>, vector<1x1x16x32xf32>,
    %331 = vector.extract_strided_slice %282 {offsets = [288, 0], sizes = [16, 32], strides = [1, 1]} : vector<384x32xf32> to vector<16x32xf32>
    %c0_357 = arith.constant 0 : index
    %c12_358 = arith.constant 12 : index
    %c0_359 = arith.constant 0 : index
    %c0_360 = arith.constant 0 : index
    %332 = vector.load %arg11[%c0_357, %c12_358, %c0_359, %c0_360] : memref<1x16x16x32xf32, #tpu.memory_space<vmem>>, vector<1x1x16x32xf32>
    %333 = vector.shape_cast %332 : vector<1x1x16x32xf32> to vector<16x32xf32>
    %334 = vector.shape_cast %331 : vector<16x32xf32> to vector<1x1x16x32xf32>
    tpu.vector_store %arg11[%c0_357, %c12_358, %c0_359, %c0_360], %334 {strides = array<i32>} : memref<1x16x16x32xf32, #tpu.memory_space<vmem>>, vector<1x1x16x32xf32>,
    %335 = vector.extract_strided_slice %282 {offsets = [312, 0], sizes = [16, 32], strides = [1, 1]} : vector<384x32xf32> to vector<16x32xf32>
    %c0_361 = arith.constant 0 : index
    %c13_362 = arith.constant 13 : index
    %c0_363 = arith.constant 0 : index
    %c0_364 = arith.constant 0 : index
    %336 = vector.load %arg11[%c0_361, %c13_362, %c0_363, %c0_364] : memref<1x16x16x32xf32, #tpu.memory_space<vmem>>, vector<1x1x16x32xf32>
    %337 = vector.shape_cast %336 : vector<1x1x16x32xf32> to vector<16x32xf32>
    %338 = vector.shape_cast %335 : vector<16x32xf32> to vector<1x1x16x32xf32>
    tpu.vector_store %arg11[%c0_361, %c13_362, %c0_363, %c0_364], %338 {strides = array<i32>} : memref<1x16x16x32xf32, #tpu.memory_space<vmem>>, vector<1x1x16x32xf32>,
    %339 = vector.extract_strided_slice %282 {offsets = [336, 0], sizes = [16, 32], strides = [1, 1]} : vector<384x32xf32> to vector<16x32xf32>
    %c0_365 = arith.constant 0 : index
    %c14_366 = arith.constant 14 : index
    %c0_367 = arith.constant 0 : index
    %c0_368 = arith.constant 0 : index
    %340 = vector.load %arg11[%c0_365, %c14_366, %c0_367, %c0_368] : memref<1x16x16x32xf32, #tpu.memory_space<vmem>>, vector<1x1x16x32xf32>
    %341 = vector.shape_cast %340 : vector<1x1x16x32xf32> to vector<16x32xf32>
    %342 = vector.shape_cast %339 : vector<16x32xf32> to vector<1x1x16x32xf32>
    tpu.vector_store %arg11[%c0_365, %c14_366, %c0_367, %c0_368], %342 {strides = array<i32>} : memref<1x16x16x32xf32, #tpu.memory_space<vmem>>, vector<1x1x16x32xf32>,
    %343 = vector.extract_strided_slice %282 {offsets = [360, 0], sizes = [16, 32], strides = [1, 1]} : vector<384x32xf32> to vector<16x32xf32>
    %c0_369 = arith.constant 0 : index
    %c15_370 = arith.constant 15 : index
    %c0_371 = arith.constant 0 : index
    %c0_372 = arith.constant 0 : index
    %344 = vector.load %arg11[%c0_369, %c15_370, %c0_371, %c0_372] : memref<1x16x16x32xf32, #tpu.memory_space<vmem>>, vector<1x1x16x32xf32>
    %345 = vector.shape_cast %344 : vector<1x1x16x32xf32> to vector<16x32xf32>
    %346 = vector.shape_cast %343 : vector<16x32xf32> to vector<1x1x16x32xf32>
    tpu.vector_store %arg11[%c0_369, %c15_370, %c0_371, %c0_372], %346 {strides = array<i32>} : memref<1x16x16x32xf32, #tpu.memory_space<vmem>>, vector<1x1x16x32xf32>,
    %c0_373 = arith.constant 0 : index
    %c0_374 = arith.constant 0 : index
    %347 = vector.load %arg20[%c0_373, %c0_374] : memref<384x32xf32, #tpu.memory_space<vmem>>, vector<384x32xf32>
    tpu.vector_store %arg20[%c0_373, %c0_374], %282 {strides = array<i32>} : memref<384x32xf32, #tpu.memory_space<vmem>>, vector<384x32xf32>,
    %cst_375 = arith.constant 0.000000e+00 : f32
    %348 = vector.broadcast %cst_375 : f32 to vector<168x128xf32>
    %c0_376 = arith.constant 0 : index
    %c0_377 = arith.constant 0 : index
    %349 = vector.load %arg21[%c0_376, %c0_377] : memref<168x128xf32, #tpu.memory_space<vmem>>, vector<168x128xf32>
    tpu.vector_store %arg21[%c0_376, %c0_377], %348 {strides = array<i32>} : memref<168x128xf32, #tpu.memory_space<vmem>>, vector<168x128xf32>,
    %c0_378 = arith.constant 0 : index
    %c0_379 = arith.constant 0 : index
    %350 = tpu.strided_load %arg20[%c0_378, %c0_379] {strides = array<i32: 2, 1>} : memref<384x32xf32, #tpu.memory_space<vmem>>, vector<8x32xf32>
    %c1_380 = arith.constant 1 : index
    %c0_381 = arith.constant 0 : index
    %351 = tpu.strided_load %arg20[%c1_380, %c0_381] {strides = array<i32: 2, 1>} : memref<384x32xf32, #tpu.memory_space<vmem>>, vector<8x32xf32>
    %c24_382 = arith.constant 24 : index
    %c0_383 = arith.constant 0 : index
    %352 = tpu.strided_load %arg20[%c24_382, %c0_383] {strides = array<i32: 2, 1>} : memref<384x32xf32, #tpu.memory_space<vmem>>, vector<8x32xf32>
    %c25_384 = arith.constant 25 : index
    %c0_385 = arith.constant 0 : index
    %353 = tpu.strided_load %arg20[%c25_384, %c0_385] {strides = array<i32: 2, 1>} : memref<384x32xf32, #tpu.memory_space<vmem>>, vector<8x32xf32>
    %354 = arith.maximumf %350, %351 : vector<8x32xf32>
    %355 = arith.maximumf %352, %353 : vector<8x32xf32>
    %356 = arith.maximumf %354, %355 : vector<8x32xf32>
    %c17_386 = arith.constant 17 : index
    %c0_387 = arith.constant 0 : index
    %357 = vector.load %arg21[%c17_386, %c0_387] : memref<168x128xf32, #tpu.memory_space<vmem>>, vector<8x32xf32>
    tpu.vector_store %arg21[%c17_386, %c0_387], %356 {strides = array<i32>} : memref<168x128xf32, #tpu.memory_space<vmem>>, vector<8x32xf32>,
    %c48_388 = arith.constant 48 : index
    %c0_389 = arith.constant 0 : index
    %358 = tpu.strided_load %arg20[%c48_388, %c0_389] {strides = array<i32: 2, 1>} : memref<384x32xf32, #tpu.memory_space<vmem>>, vector<8x32xf32>
    %c49_390 = arith.constant 49 : index
    %c0_391 = arith.constant 0 : index
    %359 = tpu.strided_load %arg20[%c49_390, %c0_391] {strides = array<i32: 2, 1>} : memref<384x32xf32, #tpu.memory_space<vmem>>, vector<8x32xf32>
    %c72 = arith.constant 72 : index
    %c0_392 = arith.constant 0 : index
    %360 = tpu.strided_load %arg20[%c72, %c0_392] {strides = array<i32: 2, 1>} : memref<384x32xf32, #tpu.memory_space<vmem>>, vector<8x32xf32>
    %c73_393 = arith.constant 73 : index
    %c0_394 = arith.constant 0 : index
    %361 = tpu.strided_load %arg20[%c73_393, %c0_394] {strides = array<i32: 2, 1>} : memref<384x32xf32, #tpu.memory_space<vmem>>, vector<8x32xf32>
    %362 = arith.maximumf %358, %359 : vector<8x32xf32>
    %363 = arith.maximumf %360, %361 : vector<8x32xf32>
    %364 = arith.maximumf %362, %363 : vector<8x32xf32>
    %c33_395 = arith.constant 33 : index
    %c0_396 = arith.constant 0 : index
    %365 = vector.load %arg21[%c33_395, %c0_396] : memref<168x128xf32, #tpu.memory_space<vmem>>, vector<8x32xf32>
    tpu.vector_store %arg21[%c33_395, %c0_396], %364 {strides = array<i32>} : memref<168x128xf32, #tpu.memory_space<vmem>>, vector<8x32xf32>,
    %c96 = arith.constant 96 : index
    %c0_397 = arith.constant 0 : index
    %366 = tpu.strided_load %arg20[%c96, %c0_397] {strides = array<i32: 2, 1>} : memref<384x32xf32, #tpu.memory_space<vmem>>, vector<8x32xf32>
    %c97_398 = arith.constant 97 : index
    %c0_399 = arith.constant 0 : index
    %367 = tpu.strided_load %arg20[%c97_398, %c0_399] {strides = array<i32: 2, 1>} : memref<384x32xf32, #tpu.memory_space<vmem>>, vector<8x32xf32>
    %c120 = arith.constant 120 : index
    %c0_400 = arith.constant 0 : index
    %368 = tpu.strided_load %arg20[%c120, %c0_400] {strides = array<i32: 2, 1>} : memref<384x32xf32, #tpu.memory_space<vmem>>, vector<8x32xf32>
    %c121_401 = arith.constant 121 : index
    %c0_402 = arith.constant 0 : index
    %369 = tpu.strided_load %arg20[%c121_401, %c0_402] {strides = array<i32: 2, 1>} : memref<384x32xf32, #tpu.memory_space<vmem>>, vector<8x32xf32>
    %370 = arith.maximumf %366, %367 : vector<8x32xf32>
    %371 = arith.maximumf %368, %369 : vector<8x32xf32>
    %372 = arith.maximumf %370, %371 : vector<8x32xf32>
    %c49_403 = arith.constant 49 : index
    %c0_404 = arith.constant 0 : index
    %373 = vector.load %arg21[%c49_403, %c0_404] : memref<168x128xf32, #tpu.memory_space<vmem>>, vector<8x32xf32>
    tpu.vector_store %arg21[%c49_403, %c0_404], %372 {strides = array<i32>} : memref<168x128xf32, #tpu.memory_space<vmem>>, vector<8x32xf32>,
    %c144 = arith.constant 144 : index
    %c0_405 = arith.constant 0 : index
    %374 = tpu.strided_load %arg20[%c144, %c0_405] {strides = array<i32: 2, 1>} : memref<384x32xf32, #tpu.memory_space<vmem>>, vector<8x32xf32>
    %c145_406 = arith.constant 145 : index
    %c0_407 = arith.constant 0 : index
    %375 = tpu.strided_load %arg20[%c145_406, %c0_407] {strides = array<i32: 2, 1>} : memref<384x32xf32, #tpu.memory_space<vmem>>, vector<8x32xf32>
    %c168 = arith.constant 168 : index
    %c0_408 = arith.constant 0 : index
    %376 = tpu.strided_load %arg20[%c168, %c0_408] {strides = array<i32: 2, 1>} : memref<384x32xf32, #tpu.memory_space<vmem>>, vector<8x32xf32>
    %c169_409 = arith.constant 169 : index
    %c0_410 = arith.constant 0 : index
    %377 = tpu.strided_load %arg20[%c169_409, %c0_410] {strides = array<i32: 2, 1>} : memref<384x32xf32, #tpu.memory_space<vmem>>, vector<8x32xf32>
    %378 = arith.maximumf %374, %375 : vector<8x32xf32>
    %379 = arith.maximumf %376, %377 : vector<8x32xf32>
    %380 = arith.maximumf %378, %379 : vector<8x32xf32>
    %c65_411 = arith.constant 65 : index
    %c0_412 = arith.constant 0 : index
    %381 = vector.load %arg21[%c65_411, %c0_412] : memref<168x128xf32, #tpu.memory_space<vmem>>, vector<8x32xf32>
    tpu.vector_store %arg21[%c65_411, %c0_412], %380 {strides = array<i32>} : memref<168x128xf32, #tpu.memory_space<vmem>>, vector<8x32xf32>,
    %c192 = arith.constant 192 : index
    %c0_413 = arith.constant 0 : index
    %382 = tpu.strided_load %arg20[%c192, %c0_413] {strides = array<i32: 2, 1>} : memref<384x32xf32, #tpu.memory_space<vmem>>, vector<8x32xf32>
    %c193_414 = arith.constant 193 : index
    %c0_415 = arith.constant 0 : index
    %383 = tpu.strided_load %arg20[%c193_414, %c0_415] {strides = array<i32: 2, 1>} : memref<384x32xf32, #tpu.memory_space<vmem>>, vector<8x32xf32>
    %c216 = arith.constant 216 : index
    %c0_416 = arith.constant 0 : index
    %384 = tpu.strided_load %arg20[%c216, %c0_416] {strides = array<i32: 2, 1>} : memref<384x32xf32, #tpu.memory_space<vmem>>, vector<8x32xf32>
    %c217_417 = arith.constant 217 : index
    %c0_418 = arith.constant 0 : index
    %385 = tpu.strided_load %arg20[%c217_417, %c0_418] {strides = array<i32: 2, 1>} : memref<384x32xf32, #tpu.memory_space<vmem>>, vector<8x32xf32>
    %386 = arith.maximumf %382, %383 : vector<8x32xf32>
    %387 = arith.maximumf %384, %385 : vector<8x32xf32>
    %388 = arith.maximumf %386, %387 : vector<8x32xf32>
    %c81_419 = arith.constant 81 : index
    %c0_420 = arith.constant 0 : index
    %389 = vector.load %arg21[%c81_419, %c0_420] : memref<168x128xf32, #tpu.memory_space<vmem>>, vector<8x32xf32>
    tpu.vector_store %arg21[%c81_419, %c0_420], %388 {strides = array<i32>} : memref<168x128xf32, #tpu.memory_space<vmem>>, vector<8x32xf32>,
    %c240 = arith.constant 240 : index
    %c0_421 = arith.constant 0 : index
    %390 = tpu.strided_load %arg20[%c240, %c0_421] {strides = array<i32: 2, 1>} : memref<384x32xf32, #tpu.memory_space<vmem>>, vector<8x32xf32>
    %c241_422 = arith.constant 241 : index
    %c0_423 = arith.constant 0 : index
    %391 = tpu.strided_load %arg20[%c241_422, %c0_423] {strides = array<i32: 2, 1>} : memref<384x32xf32, #tpu.memory_space<vmem>>, vector<8x32xf32>
    %c264 = arith.constant 264 : index
    %c0_424 = arith.constant 0 : index
    %392 = tpu.strided_load %arg20[%c264, %c0_424] {strides = array<i32: 2, 1>} : memref<384x32xf32, #tpu.memory_space<vmem>>, vector<8x32xf32>
    %c265_425 = arith.constant 265 : index
    %c0_426 = arith.constant 0 : index
    %393 = tpu.strided_load %arg20[%c265_425, %c0_426] {strides = array<i32: 2, 1>} : memref<384x32xf32, #tpu.memory_space<vmem>>, vector<8x32xf32>
    %394 = arith.maximumf %390, %391 : vector<8x32xf32>
    %395 = arith.maximumf %392, %393 : vector<8x32xf32>
    %396 = arith.maximumf %394, %395 : vector<8x32xf32>
    %c97_427 = arith.constant 97 : index
    %c0_428 = arith.constant 0 : index
    %397 = vector.load %arg21[%c97_427, %c0_428] : memref<168x128xf32, #tpu.memory_space<vmem>>, vector<8x32xf32>
    tpu.vector_store %arg21[%c97_427, %c0_428], %396 {strides = array<i32>} : memref<168x128xf32, #tpu.memory_space<vmem>>, vector<8x32xf32>,
    %c288 = arith.constant 288 : index
    %c0_429 = arith.constant 0 : index
    %398 = tpu.strided_load %arg20[%c288, %c0_429] {strides = array<i32: 2, 1>} : memref<384x32xf32, #tpu.memory_space<vmem>>, vector<8x32xf32>
    %c289_430 = arith.constant 289 : index
    %c0_431 = arith.constant 0 : index
    %399 = tpu.strided_load %arg20[%c289_430, %c0_431] {strides = array<i32: 2, 1>} : memref<384x32xf32, #tpu.memory_space<vmem>>, vector<8x32xf32>
    %c312 = arith.constant 312 : index
    %c0_432 = arith.constant 0 : index
    %400 = tpu.strided_load %arg20[%c312, %c0_432] {strides = array<i32: 2, 1>} : memref<384x32xf32, #tpu.memory_space<vmem>>, vector<8x32xf32>
    %c313_433 = arith.constant 313 : index
    %c0_434 = arith.constant 0 : index
    %401 = tpu.strided_load %arg20[%c313_433, %c0_434] {strides = array<i32: 2, 1>} : memref<384x32xf32, #tpu.memory_space<vmem>>, vector<8x32xf32>
    %402 = arith.maximumf %398, %399 : vector<8x32xf32>
    %403 = arith.maximumf %400, %401 : vector<8x32xf32>
    %404 = arith.maximumf %402, %403 : vector<8x32xf32>
    %c113_435 = arith.constant 113 : index
    %c0_436 = arith.constant 0 : index
    %405 = vector.load %arg21[%c113_435, %c0_436] : memref<168x128xf32, #tpu.memory_space<vmem>>, vector<8x32xf32>
    tpu.vector_store %arg21[%c113_435, %c0_436], %404 {strides = array<i32>} : memref<168x128xf32, #tpu.memory_space<vmem>>, vector<8x32xf32>,
    %c336 = arith.constant 336 : index
    %c0_437 = arith.constant 0 : index
    %406 = tpu.strided_load %arg20[%c336, %c0_437] {strides = array<i32: 2, 1>} : memref<384x32xf32, #tpu.memory_space<vmem>>, vector<8x32xf32>
    %c337_438 = arith.constant 337 : index
    %c0_439 = arith.constant 0 : index
    %407 = tpu.strided_load %arg20[%c337_438, %c0_439] {strides = array<i32: 2, 1>} : memref<384x32xf32, #tpu.memory_space<vmem>>, vector<8x32xf32>
    %c360 = arith.constant 360 : index
    %c0_440 = arith.constant 0 : index
    %408 = tpu.strided_load %arg20[%c360, %c0_440] {strides = array<i32: 2, 1>} : memref<384x32xf32, #tpu.memory_space<vmem>>, vector<8x32xf32>
    %c361_441 = arith.constant 361 : index
    %c0_442 = arith.constant 0 : index
    %409 = tpu.strided_load %arg20[%c361_441, %c0_442] {strides = array<i32: 2, 1>} : memref<384x32xf32, #tpu.memory_space<vmem>>, vector<8x32xf32>
    %410 = arith.maximumf %406, %407 : vector<8x32xf32>
    %411 = arith.maximumf %408, %409 : vector<8x32xf32>
    %412 = arith.maximumf %410, %411 : vector<8x32xf32>
    %c129_443 = arith.constant 129 : index
    %c0_444 = arith.constant 0 : index
    %413 = vector.load %arg21[%c129_443, %c0_444] : memref<168x128xf32, #tpu.memory_space<vmem>>, vector<8x32xf32>
    tpu.vector_store %arg21[%c129_443, %c0_444], %412 {strides = array<i32>} : memref<168x128xf32, #tpu.memory_space<vmem>>, vector<8x32xf32>,
    %c0_445 = arith.constant 0 : index
    %c0_446 = arith.constant 0 : index
    %414 = vector.load %arg21[%c0_445, %c0_446] : memref<168x128xf32, #tpu.memory_space<vmem>>, vector<128x128xf32>
    %415 = arith.truncf %414 : vector<128x128xf32> to vector<128x128xbf16>
    %c0_447 = arith.constant 0 : index
    %c0_448 = arith.constant 0 : index
    %416 = vector.load %arg22[%c0_447, %c0_448] : memref<128x1152xbf16, #tpu.memory_space<vmem>>, vector<128x128xbf16>
    tpu.vector_store %arg22[%c0_447, %c0_448], %415 {strides = array<i32>} : memref<128x1152xbf16, #tpu.memory_space<vmem>>, vector<128x128xbf16>,
    %c1_449 = arith.constant 1 : index
    %c0_450 = arith.constant 0 : index
    %417 = vector.load %arg21[%c1_449, %c0_450] : memref<168x128xf32, #tpu.memory_space<vmem>>, vector<128x128xf32>
    %418 = arith.truncf %417 : vector<128x128xf32> to vector<128x128xbf16>
    %c0_451 = arith.constant 0 : index
    %c128_452 = arith.constant 128 : index
    %419 = vector.load %arg22[%c0_451, %c128_452] : memref<128x1152xbf16, #tpu.memory_space<vmem>>, vector<128x128xbf16>
    tpu.vector_store %arg22[%c0_451, %c128_452], %418 {strides = array<i32>} : memref<128x1152xbf16, #tpu.memory_space<vmem>>, vector<128x128xbf16>,
    %c2_453 = arith.constant 2 : index
    %c0_454 = arith.constant 0 : index
    %420 = vector.load %arg21[%c2_453, %c0_454] : memref<168x128xf32, #tpu.memory_space<vmem>>, vector<128x128xf32>
    %421 = arith.truncf %420 : vector<128x128xf32> to vector<128x128xbf16>
    %c0_455 = arith.constant 0 : index
    %c256_456 = arith.constant 256 : index
    %422 = vector.load %arg22[%c0_455, %c256_456] : memref<128x1152xbf16, #tpu.memory_space<vmem>>, vector<128x128xbf16>
    tpu.vector_store %arg22[%c0_455, %c256_456], %421 {strides = array<i32>} : memref<128x1152xbf16, #tpu.memory_space<vmem>>, vector<128x128xbf16>,
    %c16_457 = arith.constant 16 : index
    %c0_458 = arith.constant 0 : index
    %423 = vector.load %arg21[%c16_457, %c0_458] : memref<168x128xf32, #tpu.memory_space<vmem>>, vector<128x128xf32>
    %424 = arith.truncf %423 : vector<128x128xf32> to vector<128x128xbf16>
    %c0_459 = arith.constant 0 : index
    %c384_460 = arith.constant 384 : index
    %425 = vector.load %arg22[%c0_459, %c384_460] : memref<128x1152xbf16, #tpu.memory_space<vmem>>, vector<128x128xbf16>
    tpu.vector_store %arg22[%c0_459, %c384_460], %424 {strides = array<i32>} : memref<128x1152xbf16, #tpu.memory_space<vmem>>, vector<128x128xbf16>,
    %c17_461 = arith.constant 17 : index
    %c0_462 = arith.constant 0 : index
    %426 = vector.load %arg21[%c17_461, %c0_462] : memref<168x128xf32, #tpu.memory_space<vmem>>, vector<128x128xf32>
    %427 = arith.truncf %426 : vector<128x128xf32> to vector<128x128xbf16>
    %c0_463 = arith.constant 0 : index
    %c512_464 = arith.constant 512 : index
    %428 = vector.load %arg22[%c0_463, %c512_464] : memref<128x1152xbf16, #tpu.memory_space<vmem>>, vector<128x128xbf16>
    tpu.vector_store %arg22[%c0_463, %c512_464], %427 {strides = array<i32>} : memref<128x1152xbf16, #tpu.memory_space<vmem>>, vector<128x128xbf16>,
    %c18_465 = arith.constant 18 : index
    %c0_466 = arith.constant 0 : index
    %429 = vector.load %arg21[%c18_465, %c0_466] : memref<168x128xf32, #tpu.memory_space<vmem>>, vector<128x128xf32>
    %430 = arith.truncf %429 : vector<128x128xf32> to vector<128x128xbf16>
    %c0_467 = arith.constant 0 : index
    %c640_468 = arith.constant 640 : index
    %431 = vector.load %arg22[%c0_467, %c640_468] : memref<128x1152xbf16, #tpu.memory_space<vmem>>, vector<128x128xbf16>
    tpu.vector_store %arg22[%c0_467, %c640_468], %430 {strides = array<i32>} : memref<128x1152xbf16, #tpu.memory_space<vmem>>, vector<128x128xbf16>,
    %c32_469 = arith.constant 32 : index
    %c0_470 = arith.constant 0 : index
    %432 = vector.load %arg21[%c32_469, %c0_470] : memref<168x128xf32, #tpu.memory_space<vmem>>, vector<128x128xf32>
    %433 = arith.truncf %432 : vector<128x128xf32> to vector<128x128xbf16>
    %c0_471 = arith.constant 0 : index
    %c768_472 = arith.constant 768 : index
    %434 = vector.load %arg22[%c0_471, %c768_472] : memref<128x1152xbf16, #tpu.memory_space<vmem>>, vector<128x128xbf16>
    tpu.vector_store %arg22[%c0_471, %c768_472], %433 {strides = array<i32>} : memref<128x1152xbf16, #tpu.memory_space<vmem>>, vector<128x128xbf16>,
    %c33_473 = arith.constant 33 : index
    %c0_474 = arith.constant 0 : index
    %435 = vector.load %arg21[%c33_473, %c0_474] : memref<168x128xf32, #tpu.memory_space<vmem>>, vector<128x128xf32>
    %436 = arith.truncf %435 : vector<128x128xf32> to vector<128x128xbf16>
    %c0_475 = arith.constant 0 : index
    %c896_476 = arith.constant 896 : index
    %437 = vector.load %arg22[%c0_475, %c896_476] : memref<128x1152xbf16, #tpu.memory_space<vmem>>, vector<128x128xbf16>
    tpu.vector_store %arg22[%c0_475, %c896_476], %436 {strides = array<i32>} : memref<128x1152xbf16, #tpu.memory_space<vmem>>, vector<128x128xbf16>,
    %c34_477 = arith.constant 34 : index
    %c0_478 = arith.constant 0 : index
    %438 = vector.load %arg21[%c34_477, %c0_478] : memref<168x128xf32, #tpu.memory_space<vmem>>, vector<128x128xf32>
    %439 = arith.truncf %438 : vector<128x128xf32> to vector<128x128xbf16>
    %c0_479 = arith.constant 0 : index
    %c1024_480 = arith.constant 1024 : index
    %440 = vector.load %arg22[%c0_479, %c1024_480] : memref<128x1152xbf16, #tpu.memory_space<vmem>>, vector<128x128xbf16>
    tpu.vector_store %arg22[%c0_479, %c1024_480], %439 {strides = array<i32>} : memref<128x1152xbf16, #tpu.memory_space<vmem>>, vector<128x128xbf16>,
    %c0_481 = arith.constant 0 : index
    %c0_482 = arith.constant 0 : index
    %441 = vector.load %arg22[%c0_481, %c0_482] : memref<128x1152xbf16, #tpu.memory_space<vmem>>, vector<128x1152xbf16>
    %c0_483 = arith.constant 0 : index
    %c0_484 = arith.constant 0 : index
    %442 = vector.load %arg8[%c0_483, %c0_484] : memref<1152x32xbf16, #tpu.memory_space<vmem>>, vector<1152x32xbf16>
    %cst_485 = arith.constant dense<0.000000e+00> : vector<128x32xf32>
    %443 = tpu.matmul %441, %442, %cst_485 {dimension_numbers = #tpu.dot_dimension_numbers<[1], [0], [0], [1], [0, 0, 1, 1], [], []>} : vector<128x1152xbf16>, vector<1152x32xbf16>, vector<128x32xf32> -> vector<128x32xf32>
    %c2_486 = arith.constant 2 : index
    %c0_487 = arith.constant 0 : index
    %444 = vector.load %arg10[%c2_486, %c0_487] : memref<4x32xf32, #tpu.memory_space<vmem>>, vector<1x32xf32>
    %445 = vector.broadcast %444 : vector<1x32xf32> to vector<128x32xf32>
    %446 = arith.addf %443, %445 : vector<128x32xf32>
    %cst_488 = arith.constant 0.000000e+00 : f32
    %447 = vector.broadcast %cst_488 : f32 to vector<128x32xf32>
    %448 = arith.maximumf %446, %447 : vector<128x32xf32>
    %449 = vector.extract_strided_slice %448 {offsets = [0, 0], sizes = [8, 32], strides = [1, 1]} : vector<128x32xf32> to vector<8x32xf32>
    %c0_489 = arith.constant 0 : index
    %c0_490 = arith.constant 0 : index
    %c0_491 = arith.constant 0 : index
    %c0_492 = arith.constant 0 : index
    %450 = vector.load %arg12[%c0_489, %c0_490, %c0_491, %c0_492] : memref<1x8x8x32xf32, #tpu.memory_space<vmem>>, vector<1x1x8x32xf32>
    %451 = vector.shape_cast %450 : vector<1x1x8x32xf32> to vector<8x32xf32>
    %452 = vector.shape_cast %449 : vector<8x32xf32> to vector<1x1x8x32xf32>
    tpu.vector_store %arg12[%c0_489, %c0_490, %c0_491, %c0_492], %452 {strides = array<i32>} : memref<1x8x8x32xf32, #tpu.memory_space<vmem>>, vector<1x1x8x32xf32>,
    %453 = vector.extract_strided_slice %448 {offsets = [16, 0], sizes = [8, 32], strides = [1, 1]} : vector<128x32xf32> to vector<8x32xf32>
    %c0_493 = arith.constant 0 : index
    %c1_494 = arith.constant 1 : index
    %c0_495 = arith.constant 0 : index
    %c0_496 = arith.constant 0 : index
    %454 = vector.load %arg12[%c0_493, %c1_494, %c0_495, %c0_496] : memref<1x8x8x32xf32, #tpu.memory_space<vmem>>, vector<1x1x8x32xf32>
    %455 = vector.shape_cast %454 : vector<1x1x8x32xf32> to vector<8x32xf32>
    %456 = vector.shape_cast %453 : vector<8x32xf32> to vector<1x1x8x32xf32>
    tpu.vector_store %arg12[%c0_493, %c1_494, %c0_495, %c0_496], %456 {strides = array<i32>} : memref<1x8x8x32xf32, #tpu.memory_space<vmem>>, vector<1x1x8x32xf32>,
    %457 = vector.extract_strided_slice %448 {offsets = [32, 0], sizes = [8, 32], strides = [1, 1]} : vector<128x32xf32> to vector<8x32xf32>
    %c0_497 = arith.constant 0 : index
    %c2_498 = arith.constant 2 : index
    %c0_499 = arith.constant 0 : index
    %c0_500 = arith.constant 0 : index
    %458 = vector.load %arg12[%c0_497, %c2_498, %c0_499, %c0_500] : memref<1x8x8x32xf32, #tpu.memory_space<vmem>>, vector<1x1x8x32xf32>
    %459 = vector.shape_cast %458 : vector<1x1x8x32xf32> to vector<8x32xf32>
    %460 = vector.shape_cast %457 : vector<8x32xf32> to vector<1x1x8x32xf32>
    tpu.vector_store %arg12[%c0_497, %c2_498, %c0_499, %c0_500], %460 {strides = array<i32>} : memref<1x8x8x32xf32, #tpu.memory_space<vmem>>, vector<1x1x8x32xf32>,
    %461 = vector.extract_strided_slice %448 {offsets = [48, 0], sizes = [8, 32], strides = [1, 1]} : vector<128x32xf32> to vector<8x32xf32>
    %c0_501 = arith.constant 0 : index
    %c3_502 = arith.constant 3 : index
    %c0_503 = arith.constant 0 : index
    %c0_504 = arith.constant 0 : index
    %462 = vector.load %arg12[%c0_501, %c3_502, %c0_503, %c0_504] : memref<1x8x8x32xf32, #tpu.memory_space<vmem>>, vector<1x1x8x32xf32>
    %463 = vector.shape_cast %462 : vector<1x1x8x32xf32> to vector<8x32xf32>
    %464 = vector.shape_cast %461 : vector<8x32xf32> to vector<1x1x8x32xf32>
    tpu.vector_store %arg12[%c0_501, %c3_502, %c0_503, %c0_504], %464 {strides = array<i32>} : memref<1x8x8x32xf32, #tpu.memory_space<vmem>>, vector<1x1x8x32xf32>,
    %465 = vector.extract_strided_slice %448 {offsets = [64, 0], sizes = [8, 32], strides = [1, 1]} : vector<128x32xf32> to vector<8x32xf32>
    %c0_505 = arith.constant 0 : index
    %c4_506 = arith.constant 4 : index
    %c0_507 = arith.constant 0 : index
    %c0_508 = arith.constant 0 : index
    %466 = vector.load %arg12[%c0_505, %c4_506, %c0_507, %c0_508] : memref<1x8x8x32xf32, #tpu.memory_space<vmem>>, vector<1x1x8x32xf32>
    %467 = vector.shape_cast %466 : vector<1x1x8x32xf32> to vector<8x32xf32>
    %468 = vector.shape_cast %465 : vector<8x32xf32> to vector<1x1x8x32xf32>
    tpu.vector_store %arg12[%c0_505, %c4_506, %c0_507, %c0_508], %468 {strides = array<i32>} : memref<1x8x8x32xf32, #tpu.memory_space<vmem>>, vector<1x1x8x32xf32>,
    %469 = vector.extract_strided_slice %448 {offsets = [80, 0], sizes = [8, 32], strides = [1, 1]} : vector<128x32xf32> to vector<8x32xf32>
    %c0_509 = arith.constant 0 : index
    %c5_510 = arith.constant 5 : index
    %c0_511 = arith.constant 0 : index
    %c0_512 = arith.constant 0 : index
    %470 = vector.load %arg12[%c0_509, %c5_510, %c0_511, %c0_512] : memref<1x8x8x32xf32, #tpu.memory_space<vmem>>, vector<1x1x8x32xf32>
    %471 = vector.shape_cast %470 : vector<1x1x8x32xf32> to vector<8x32xf32>
    %472 = vector.shape_cast %469 : vector<8x32xf32> to vector<1x1x8x32xf32>
    tpu.vector_store %arg12[%c0_509, %c5_510, %c0_511, %c0_512], %472 {strides = array<i32>} : memref<1x8x8x32xf32, #tpu.memory_space<vmem>>, vector<1x1x8x32xf32>,
    %473 = vector.extract_strided_slice %448 {offsets = [96, 0], sizes = [8, 32], strides = [1, 1]} : vector<128x32xf32> to vector<8x32xf32>
    %c0_513 = arith.constant 0 : index
    %c6_514 = arith.constant 6 : index
    %c0_515 = arith.constant 0 : index
    %c0_516 = arith.constant 0 : index
    %474 = vector.load %arg12[%c0_513, %c6_514, %c0_515, %c0_516] : memref<1x8x8x32xf32, #tpu.memory_space<vmem>>, vector<1x1x8x32xf32>
    %475 = vector.shape_cast %474 : vector<1x1x8x32xf32> to vector<8x32xf32>
    %476 = vector.shape_cast %473 : vector<8x32xf32> to vector<1x1x8x32xf32>
    tpu.vector_store %arg12[%c0_513, %c6_514, %c0_515, %c0_516], %476 {strides = array<i32>} : memref<1x8x8x32xf32, #tpu.memory_space<vmem>>, vector<1x1x8x32xf32>,
    %477 = vector.extract_strided_slice %448 {offsets = [112, 0], sizes = [8, 32], strides = [1, 1]} : vector<128x32xf32> to vector<8x32xf32>
    %c0_517 = arith.constant 0 : index
    %c7_518 = arith.constant 7 : index
    %c0_519 = arith.constant 0 : index
    %c0_520 = arith.constant 0 : index
    %478 = vector.load %arg12[%c0_517, %c7_518, %c0_519, %c0_520] : memref<1x8x8x32xf32, #tpu.memory_space<vmem>>, vector<1x1x8x32xf32>
    %479 = vector.shape_cast %478 : vector<1x1x8x32xf32> to vector<8x32xf32>
    %480 = vector.shape_cast %477 : vector<8x32xf32> to vector<1x1x8x32xf32>
    tpu.vector_store %arg12[%c0_517, %c7_518, %c0_519, %c0_520], %480 {strides = array<i32>} : memref<1x8x8x32xf32, #tpu.memory_space<vmem>>, vector<1x1x8x32xf32>,
    %c0_521 = arith.constant 0 : index
    %c0_522 = arith.constant 0 : index
    %481 = vector.load %arg23[%c0_521, %c0_522] : memref<128x32xf32, #tpu.memory_space<vmem>>, vector<128x32xf32>
    tpu.vector_store %arg23[%c0_521, %c0_522], %448 {strides = array<i32>} : memref<128x32xf32, #tpu.memory_space<vmem>>, vector<128x32xf32>,
    %cst_523 = arith.constant 0.000000e+00 : f32
    %482 = vector.broadcast %cst_523 : f32 to vector<56x128xf32>
    %c0_524 = arith.constant 0 : index
    %c0_525 = arith.constant 0 : index
    %483 = vector.load %arg24[%c0_524, %c0_525] : memref<56x128xf32, #tpu.memory_space<vmem>>, vector<56x128xf32>
    tpu.vector_store %arg24[%c0_524, %c0_525], %482 {strides = array<i32>} : memref<56x128xf32, #tpu.memory_space<vmem>>, vector<56x128xf32>,
    %c0_526 = arith.constant 0 : index
    %c0_527 = arith.constant 0 : index
    %484 = tpu.strided_load %arg23[%c0_526, %c0_527] {strides = array<i32: 2, 1>} : memref<128x32xf32, #tpu.memory_space<vmem>>, vector<4x32xf32>
    %c1_528 = arith.constant 1 : index
    %c0_529 = arith.constant 0 : index
    %485 = tpu.strided_load %arg23[%c1_528, %c0_529] {strides = array<i32: 2, 1>} : memref<128x32xf32, #tpu.memory_space<vmem>>, vector<4x32xf32>
    %c16_530 = arith.constant 16 : index
    %c0_531 = arith.constant 0 : index
    %486 = tpu.strided_load %arg23[%c16_530, %c0_531] {strides = array<i32: 2, 1>} : memref<128x32xf32, #tpu.memory_space<vmem>>, vector<4x32xf32>
    %c17_532 = arith.constant 17 : index
    %c0_533 = arith.constant 0 : index
    %487 = tpu.strided_load %arg23[%c17_532, %c0_533] {strides = array<i32: 2, 1>} : memref<128x32xf32, #tpu.memory_space<vmem>>, vector<4x32xf32>
    %488 = arith.maximumf %484, %485 : vector<4x32xf32>
    %489 = arith.maximumf %486, %487 : vector<4x32xf32>
    %490 = arith.maximumf %488, %489 : vector<4x32xf32>
    %c9_534 = arith.constant 9 : index
    %c0_535 = arith.constant 0 : index
    %491 = vector.load %arg24[%c9_534, %c0_535] : memref<56x128xf32, #tpu.memory_space<vmem>>, vector<4x32xf32>
    tpu.vector_store %arg24[%c9_534, %c0_535], %490 {strides = array<i32>} : memref<56x128xf32, #tpu.memory_space<vmem>>, vector<4x32xf32>,
    %c32_536 = arith.constant 32 : index
    %c0_537 = arith.constant 0 : index
    %492 = tpu.strided_load %arg23[%c32_536, %c0_537] {strides = array<i32: 2, 1>} : memref<128x32xf32, #tpu.memory_space<vmem>>, vector<4x32xf32>
    %c33_538 = arith.constant 33 : index
    %c0_539 = arith.constant 0 : index
    %493 = tpu.strided_load %arg23[%c33_538, %c0_539] {strides = array<i32: 2, 1>} : memref<128x32xf32, #tpu.memory_space<vmem>>, vector<4x32xf32>
    %c48_540 = arith.constant 48 : index
    %c0_541 = arith.constant 0 : index
    %494 = tpu.strided_load %arg23[%c48_540, %c0_541] {strides = array<i32: 2, 1>} : memref<128x32xf32, #tpu.memory_space<vmem>>, vector<4x32xf32>
    %c49_542 = arith.constant 49 : index
    %c0_543 = arith.constant 0 : index
    %495 = tpu.strided_load %arg23[%c49_542, %c0_543] {strides = array<i32: 2, 1>} : memref<128x32xf32, #tpu.memory_space<vmem>>, vector<4x32xf32>
    %496 = arith.maximumf %492, %493 : vector<4x32xf32>
    %497 = arith.maximumf %494, %495 : vector<4x32xf32>
    %498 = arith.maximumf %496, %497 : vector<4x32xf32>
    %c17_544 = arith.constant 17 : index
    %c0_545 = arith.constant 0 : index
    %499 = vector.load %arg24[%c17_544, %c0_545] : memref<56x128xf32, #tpu.memory_space<vmem>>, vector<4x32xf32>
    tpu.vector_store %arg24[%c17_544, %c0_545], %498 {strides = array<i32>} : memref<56x128xf32, #tpu.memory_space<vmem>>, vector<4x32xf32>,
    %c64 = arith.constant 64 : index
    %c0_546 = arith.constant 0 : index
    %500 = tpu.strided_load %arg23[%c64, %c0_546] {strides = array<i32: 2, 1>} : memref<128x32xf32, #tpu.memory_space<vmem>>, vector<4x32xf32>
    %c65_547 = arith.constant 65 : index
    %c0_548 = arith.constant 0 : index
    %501 = tpu.strided_load %arg23[%c65_547, %c0_548] {strides = array<i32: 2, 1>} : memref<128x32xf32, #tpu.memory_space<vmem>>, vector<4x32xf32>
    %c80 = arith.constant 80 : index
    %c0_549 = arith.constant 0 : index
    %502 = tpu.strided_load %arg23[%c80, %c0_549] {strides = array<i32: 2, 1>} : memref<128x32xf32, #tpu.memory_space<vmem>>, vector<4x32xf32>
    %c81_550 = arith.constant 81 : index
    %c0_551 = arith.constant 0 : index
    %503 = tpu.strided_load %arg23[%c81_550, %c0_551] {strides = array<i32: 2, 1>} : memref<128x32xf32, #tpu.memory_space<vmem>>, vector<4x32xf32>
    %504 = arith.maximumf %500, %501 : vector<4x32xf32>
    %505 = arith.maximumf %502, %503 : vector<4x32xf32>
    %506 = arith.maximumf %504, %505 : vector<4x32xf32>
    %c25_552 = arith.constant 25 : index
    %c0_553 = arith.constant 0 : index
    %507 = vector.load %arg24[%c25_552, %c0_553] : memref<56x128xf32, #tpu.memory_space<vmem>>, vector<4x32xf32>
    tpu.vector_store %arg24[%c25_552, %c0_553], %506 {strides = array<i32>} : memref<56x128xf32, #tpu.memory_space<vmem>>, vector<4x32xf32>,
    %c96_554 = arith.constant 96 : index
    %c0_555 = arith.constant 0 : index
    %508 = tpu.strided_load %arg23[%c96_554, %c0_555] {strides = array<i32: 2, 1>} : memref<128x32xf32, #tpu.memory_space<vmem>>, vector<4x32xf32>
    %c97_556 = arith.constant 97 : index
    %c0_557 = arith.constant 0 : index
    %509 = tpu.strided_load %arg23[%c97_556, %c0_557] {strides = array<i32: 2, 1>} : memref<128x32xf32, #tpu.memory_space<vmem>>, vector<4x32xf32>
    %c112 = arith.constant 112 : index
    %c0_558 = arith.constant 0 : index
    %510 = tpu.strided_load %arg23[%c112, %c0_558] {strides = array<i32: 2, 1>} : memref<128x32xf32, #tpu.memory_space<vmem>>, vector<4x32xf32>
    %c113_559 = arith.constant 113 : index
    %c0_560 = arith.constant 0 : index
    %511 = tpu.strided_load %arg23[%c113_559, %c0_560] {strides = array<i32: 2, 1>} : memref<128x32xf32, #tpu.memory_space<vmem>>, vector<4x32xf32>
    %512 = arith.maximumf %508, %509 : vector<4x32xf32>
    %513 = arith.maximumf %510, %511 : vector<4x32xf32>
    %514 = arith.maximumf %512, %513 : vector<4x32xf32>
    %c33_561 = arith.constant 33 : index
    %c0_562 = arith.constant 0 : index
    %515 = vector.load %arg24[%c33_561, %c0_562] : memref<56x128xf32, #tpu.memory_space<vmem>>, vector<4x32xf32>
    tpu.vector_store %arg24[%c33_561, %c0_562], %514 {strides = array<i32>} : memref<56x128xf32, #tpu.memory_space<vmem>>, vector<4x32xf32>,
    %c0_563 = arith.constant 0 : index
    %c0_564 = arith.constant 0 : index
    %516 = vector.load %arg24[%c0_563, %c0_564] : memref<56x128xf32, #tpu.memory_space<vmem>>, vector<32x128xf32>
    %517 = arith.truncf %516 : vector<32x128xf32> to vector<32x128xbf16>
    %c0_565 = arith.constant 0 : index
    %c0_566 = arith.constant 0 : index
    %518 = vector.load %arg25[%c0_565, %c0_566] : memref<32x1152xbf16, #tpu.memory_space<vmem>>, vector<32x128xbf16>
    tpu.vector_store %arg25[%c0_565, %c0_566], %517 {strides = array<i32>} : memref<32x1152xbf16, #tpu.memory_space<vmem>>, vector<32x128xbf16>,
    %c1_567 = arith.constant 1 : index
    %c0_568 = arith.constant 0 : index
    %519 = vector.load %arg24[%c1_567, %c0_568] : memref<56x128xf32, #tpu.memory_space<vmem>>, vector<32x128xf32>
    %520 = arith.truncf %519 : vector<32x128xf32> to vector<32x128xbf16>
    %c0_569 = arith.constant 0 : index
    %c128_570 = arith.constant 128 : index
    %521 = vector.load %arg25[%c0_569, %c128_570] : memref<32x1152xbf16, #tpu.memory_space<vmem>>, vector<32x128xbf16>
    tpu.vector_store %arg25[%c0_569, %c128_570], %520 {strides = array<i32>} : memref<32x1152xbf16, #tpu.memory_space<vmem>>, vector<32x128xbf16>,
    %c2_571 = arith.constant 2 : index
    %c0_572 = arith.constant 0 : index
    %522 = vector.load %arg24[%c2_571, %c0_572] : memref<56x128xf32, #tpu.memory_space<vmem>>, vector<32x128xf32>
    %523 = arith.truncf %522 : vector<32x128xf32> to vector<32x128xbf16>
    %c0_573 = arith.constant 0 : index
    %c256_574 = arith.constant 256 : index
    %524 = vector.load %arg25[%c0_573, %c256_574] : memref<32x1152xbf16, #tpu.memory_space<vmem>>, vector<32x128xbf16>
    tpu.vector_store %arg25[%c0_573, %c256_574], %523 {strides = array<i32>} : memref<32x1152xbf16, #tpu.memory_space<vmem>>, vector<32x128xbf16>,
    %c8_575 = arith.constant 8 : index
    %c0_576 = arith.constant 0 : index
    %525 = vector.load %arg24[%c8_575, %c0_576] : memref<56x128xf32, #tpu.memory_space<vmem>>, vector<32x128xf32>
    %526 = arith.truncf %525 : vector<32x128xf32> to vector<32x128xbf16>
    %c0_577 = arith.constant 0 : index
    %c384_578 = arith.constant 384 : index
    %527 = vector.load %arg25[%c0_577, %c384_578] : memref<32x1152xbf16, #tpu.memory_space<vmem>>, vector<32x128xbf16>
    tpu.vector_store %arg25[%c0_577, %c384_578], %526 {strides = array<i32>} : memref<32x1152xbf16, #tpu.memory_space<vmem>>, vector<32x128xbf16>,
    %c9_579 = arith.constant 9 : index
    %c0_580 = arith.constant 0 : index
    %528 = vector.load %arg24[%c9_579, %c0_580] : memref<56x128xf32, #tpu.memory_space<vmem>>, vector<32x128xf32>
    %529 = arith.truncf %528 : vector<32x128xf32> to vector<32x128xbf16>
    %c0_581 = arith.constant 0 : index
    %c512_582 = arith.constant 512 : index
    %530 = vector.load %arg25[%c0_581, %c512_582] : memref<32x1152xbf16, #tpu.memory_space<vmem>>, vector<32x128xbf16>
    tpu.vector_store %arg25[%c0_581, %c512_582], %529 {strides = array<i32>} : memref<32x1152xbf16, #tpu.memory_space<vmem>>, vector<32x128xbf16>,
    %c10_583 = arith.constant 10 : index
    %c0_584 = arith.constant 0 : index
    %531 = vector.load %arg24[%c10_583, %c0_584] : memref<56x128xf32, #tpu.memory_space<vmem>>, vector<32x128xf32>
    %532 = arith.truncf %531 : vector<32x128xf32> to vector<32x128xbf16>
    %c0_585 = arith.constant 0 : index
    %c640_586 = arith.constant 640 : index
    %533 = vector.load %arg25[%c0_585, %c640_586] : memref<32x1152xbf16, #tpu.memory_space<vmem>>, vector<32x128xbf16>
    tpu.vector_store %arg25[%c0_585, %c640_586], %532 {strides = array<i32>} : memref<32x1152xbf16, #tpu.memory_space<vmem>>, vector<32x128xbf16>,
    %c16_587 = arith.constant 16 : index
    %c0_588 = arith.constant 0 : index
    %534 = vector.load %arg24[%c16_587, %c0_588] : memref<56x128xf32, #tpu.memory_space<vmem>>, vector<32x128xf32>
    %535 = arith.truncf %534 : vector<32x128xf32> to vector<32x128xbf16>
    %c0_589 = arith.constant 0 : index
    %c768_590 = arith.constant 768 : index
    %536 = vector.load %arg25[%c0_589, %c768_590] : memref<32x1152xbf16, #tpu.memory_space<vmem>>, vector<32x128xbf16>
    tpu.vector_store %arg25[%c0_589, %c768_590], %535 {strides = array<i32>} : memref<32x1152xbf16, #tpu.memory_space<vmem>>, vector<32x128xbf16>,
    %c17_591 = arith.constant 17 : index
    %c0_592 = arith.constant 0 : index
    %537 = vector.load %arg24[%c17_591, %c0_592] : memref<56x128xf32, #tpu.memory_space<vmem>>, vector<32x128xf32>
    %538 = arith.truncf %537 : vector<32x128xf32> to vector<32x128xbf16>
    %c0_593 = arith.constant 0 : index
    %c896_594 = arith.constant 896 : index
    %539 = vector.load %arg25[%c0_593, %c896_594] : memref<32x1152xbf16, #tpu.memory_space<vmem>>, vector<32x128xbf16>
    tpu.vector_store %arg25[%c0_593, %c896_594], %538 {strides = array<i32>} : memref<32x1152xbf16, #tpu.memory_space<vmem>>, vector<32x128xbf16>,
    %c18_595 = arith.constant 18 : index
    %c0_596 = arith.constant 0 : index
    %540 = vector.load %arg24[%c18_595, %c0_596] : memref<56x128xf32, #tpu.memory_space<vmem>>, vector<32x128xf32>
    %541 = arith.truncf %540 : vector<32x128xf32> to vector<32x128xbf16>
    %c0_597 = arith.constant 0 : index
    %c1024_598 = arith.constant 1024 : index
    %542 = vector.load %arg25[%c0_597, %c1024_598] : memref<32x1152xbf16, #tpu.memory_space<vmem>>, vector<32x128xbf16>
    tpu.vector_store %arg25[%c0_597, %c1024_598], %541 {strides = array<i32>} : memref<32x1152xbf16, #tpu.memory_space<vmem>>, vector<32x128xbf16>,
    %c0_599 = arith.constant 0 : index
    %c0_600 = arith.constant 0 : index
    %543 = vector.load %arg25[%c0_599, %c0_600] : memref<32x1152xbf16, #tpu.memory_space<vmem>>, vector<32x1152xbf16>
    %c0_601 = arith.constant 0 : index
    %c0_602 = arith.constant 0 : index
    %544 = vector.load %arg9[%c0_601, %c0_602] : memref<1152x32xbf16, #tpu.memory_space<vmem>>, vector<1152x32xbf16>
    %cst_603 = arith.constant dense<0.000000e+00> : vector<32x32xf32>
    %545 = tpu.matmul %543, %544, %cst_603 {dimension_numbers = #tpu.dot_dimension_numbers<[1], [0], [0], [1], [0, 0, 1, 1], [], []>} : vector<32x1152xbf16>, vector<1152x32xbf16>, vector<32x32xf32> -> vector<32x32xf32>
    %c3_604 = arith.constant 3 : index
    %c0_605 = arith.constant 0 : index
    %546 = vector.load %arg10[%c3_604, %c0_605] : memref<4x32xf32, #tpu.memory_space<vmem>>, vector<1x32xf32>
    %547 = vector.broadcast %546 : vector<1x32xf32> to vector<32x32xf32>
    %548 = arith.addf %545, %547 : vector<32x32xf32>
    %cst_606 = arith.constant 0.000000e+00 : f32
    %549 = vector.broadcast %cst_606 : f32 to vector<32x32xf32>
    %550 = arith.maximumf %548, %549 : vector<32x32xf32>
    %551 = vector.extract_strided_slice %550 {offsets = [0, 0], sizes = [4, 32], strides = [1, 1]} : vector<32x32xf32> to vector<4x32xf32>
    %c0_607 = arith.constant 0 : index
    %c0_608 = arith.constant 0 : index
    %c0_609 = arith.constant 0 : index
    %c0_610 = arith.constant 0 : index
    %552 = vector.load %arg13[%c0_607, %c0_608, %c0_609, %c0_610] : memref<1x4x4x32xf32, #tpu.memory_space<vmem>>, vector<1x1x4x32xf32>
    %553 = vector.shape_cast %552 : vector<1x1x4x32xf32> to vector<4x32xf32>
    %554 = vector.shape_cast %551 : vector<4x32xf32> to vector<1x1x4x32xf32>
    tpu.vector_store %arg13[%c0_607, %c0_608, %c0_609, %c0_610], %554 {strides = array<i32>} : memref<1x4x4x32xf32, #tpu.memory_space<vmem>>, vector<1x1x4x32xf32>,
    %555 = vector.extract_strided_slice %550 {offsets = [8, 0], sizes = [4, 32], strides = [1, 1]} : vector<32x32xf32> to vector<4x32xf32>
    %c0_611 = arith.constant 0 : index
    %c1_612 = arith.constant 1 : index
    %c0_613 = arith.constant 0 : index
    %c0_614 = arith.constant 0 : index
    %556 = vector.load %arg13[%c0_611, %c1_612, %c0_613, %c0_614] : memref<1x4x4x32xf32, #tpu.memory_space<vmem>>, vector<1x1x4x32xf32>
    %557 = vector.shape_cast %556 : vector<1x1x4x32xf32> to vector<4x32xf32>
    %558 = vector.shape_cast %555 : vector<4x32xf32> to vector<1x1x4x32xf32>
    tpu.vector_store %arg13[%c0_611, %c1_612, %c0_613, %c0_614], %558 {strides = array<i32>} : memref<1x4x4x32xf32, #tpu.memory_space<vmem>>, vector<1x1x4x32xf32>,
    %559 = vector.extract_strided_slice %550 {offsets = [16, 0], sizes = [4, 32], strides = [1, 1]} : vector<32x32xf32> to vector<4x32xf32>
    %c0_615 = arith.constant 0 : index
    %c2_616 = arith.constant 2 : index
    %c0_617 = arith.constant 0 : index
    %c0_618 = arith.constant 0 : index
    %560 = vector.load %arg13[%c0_615, %c2_616, %c0_617, %c0_618] : memref<1x4x4x32xf32, #tpu.memory_space<vmem>>, vector<1x1x4x32xf32>
    %561 = vector.shape_cast %560 : vector<1x1x4x32xf32> to vector<4x32xf32>
    %562 = vector.shape_cast %559 : vector<4x32xf32> to vector<1x1x4x32xf32>
    tpu.vector_store %arg13[%c0_615, %c2_616, %c0_617, %c0_618], %562 {strides = array<i32>} : memref<1x4x4x32xf32, #tpu.memory_space<vmem>>, vector<1x1x4x32xf32>,
    %563 = vector.extract_strided_slice %550 {offsets = [24, 0], sizes = [4, 32], strides = [1, 1]} : vector<32x32xf32> to vector<4x32xf32>
    %c0_619 = arith.constant 0 : index
    %c3_620 = arith.constant 3 : index
    %c0_621 = arith.constant 0 : index
    %c0_622 = arith.constant 0 : index
    %564 = vector.load %arg13[%c0_619, %c3_620, %c0_621, %c0_622] : memref<1x4x4x32xf32, #tpu.memory_space<vmem>>, vector<1x1x4x32xf32>
    %565 = vector.shape_cast %564 : vector<1x1x4x32xf32> to vector<4x32xf32>
    %566 = vector.shape_cast %563 : vector<4x32xf32> to vector<1x1x4x32xf32>
    tpu.vector_store %arg13[%c0_619, %c3_620, %c0_621, %c0_622], %566 {strides = array<i32>} : memref<1x4x4x32xf32, #tpu.memory_space<vmem>>, vector<1x1x4x32xf32>,
    return
  }
  func.func @transform_0(%arg0: i32) -> (i32, i32, i32) {
    %c0_i32 = arith.constant 0 : i32
    %c0_i32_0 = arith.constant 0 : i32
    %c0_i32_1 = arith.constant 0 : i32
    return %arg0, %c0_i32, %c0_i32_0 : i32, i32, i32
  }
  func.func @transform_1(%arg0: i32) -> (i32, i32, i32, i32) {
    %c0_i32 = arith.constant 0 : i32
    %c0_i32_0 = arith.constant 0 : i32
    %c0_i32_1 = arith.constant 0 : i32
    %c0_i32_2 = arith.constant 0 : i32
    return %arg0, %c0_i32, %c0_i32_0, %c0_i32_1 : i32, i32, i32, i32
  }
  func.func @transform_2(%arg0: i32) -> (i32, i32, i32, i32) {
    %c0_i32 = arith.constant 0 : i32
    %c0_i32_0 = arith.constant 0 : i32
    %c0_i32_1 = arith.constant 0 : i32
    %c0_i32_2 = arith.constant 0 : i32
    return %arg0, %c0_i32, %c0_i32_0, %c0_i32_1 : i32, i32, i32, i32
  }
  func.func @transform_3(%arg0: i32) -> (i32, i32) {
    %c0_i32 = arith.constant 0 : i32
    %c0_i32_0 = arith.constant 0 : i32
    %c0_i32_1 = arith.constant 0 : i32
    return %c0_i32, %c0_i32_0 : i32, i32
  }
  func.func @transform_4(%arg0: i32) -> (i32, i32) {
    %c0_i32 = arith.constant 0 : i32
    %c0_i32_0 = arith.constant 0 : i32
    %c0_i32_1 = arith.constant 0 : i32
    return %c0_i32, %c0_i32_0 : i32, i32
  }
  func.func @transform_5(%arg0: i32) -> (i32, i32) {
    %c0_i32 = arith.constant 0 : i32
    %c0_i32_0 = arith.constant 0 : i32
    %c0_i32_1 = arith.constant 0 : i32
    return %c0_i32, %c0_i32_0 : i32, i32
  }
  func.func @transform_6(%arg0: i32) -> (i32, i32) {
    %c0_i32 = arith.constant 0 : i32
    %c0_i32_0 = arith.constant 0 : i32
    %c0_i32_1 = arith.constant 0 : i32
    return %c0_i32, %c0_i32_0 : i32, i32
  }
  func.func @transform_7(%arg0: i32) -> (i32, i32) {
    %c0_i32 = arith.constant 0 : i32
    %c0_i32_0 = arith.constant 0 : i32
    %c0_i32_1 = arith.constant 0 : i32
    return %c0_i32, %c0_i32_0 : i32, i32
  }
  func.func @transform_8(%arg0: i32) -> (i32, i32) {
    %c0_i32 = arith.constant 0 : i32
    %c0_i32_0 = arith.constant 0 : i32
    %c0_i32_1 = arith.constant 0 : i32
    return %c0_i32, %c0_i32_0 : i32, i32
  }
  func.func @transform_9(%arg0: i32) -> (i32, i32) {
    %c0_i32 = arith.constant 0 : i32
    %c0_i32_0 = arith.constant 0 : i32
    %c0_i32_1 = arith.constant 0 : i32
    return %c0_i32, %c0_i32_0 : i32, i32
  }
  func.func @transform_10(%arg0: i32) -> (i32, i32, i32, i32) {
    %c0_i32 = arith.constant 0 : i32
    %c0_i32_0 = arith.constant 0 : i32
    %c0_i32_1 = arith.constant 0 : i32
    %c0_i32_2 = arith.constant 0 : i32
    return %arg0, %c0_i32, %c0_i32_0, %c0_i32_1 : i32, i32, i32, i32
  }
  func.func @transform_11(%arg0: i32) -> (i32, i32, i32, i32) {
    %c0_i32 = arith.constant 0 : i32
    %c0_i32_0 = arith.constant 0 : i32
    %c0_i32_1 = arith.constant 0 : i32
    %c0_i32_2 = arith.constant 0 : i32
    return %arg0, %c0_i32, %c0_i32_0, %c0_i32_1 : i32, i32, i32, i32
  }
  func.func @transform_12(%arg0: i32) -> (i32, i32, i32, i32) {
    %c0_i32 = arith.constant 0 : i32
    %c0_i32_0 = arith.constant 0 : i32
    %c0_i32_1 = arith.constant 0 : i32
    %c0_i32_2 = arith.constant 0 : i32
    return %arg0, %c0_i32, %c0_i32_0, %c0_i32_1 : i32, i32, i32, i32
  }
}

</mosaic_0001>

<bundles_post_ra>
// kernel: tpu_custom_call.1
= control target key start
LH: loop header
LB: loop body
LE: loop exit
PB: predicated region body
PF: predicated region fallthrough
CT: control target
= control target key end

     0   :  { %s19341_s0 = inlined_call_operand.vmem [shape: bf16[2,16,32], index: 0, kind: input, shape index: {}]   ;;  %s19342_s1 = inlined_call_operand.vmem [shape: bf16[2,8,8,16], index: 1, kind: input, shape index: {}]   ;;  %s19343_s2 = inlined_call_operand.vmem [shape: bf16[2,16,16,16], index: 2, kind: input, shape index: {}]   ;;  %s19344_s3 = inlined_call_operand.vmem [shape: bf16[64,16], index: 3, kind: input, shape index: {}]   ;;  %s19345_s4 = inlined_call_operand.vmem [shape: bf16[256,128], index: 4, kind: input, shape index: {}]   ;;  %s19346_s5 = inlined_call_operand.vmem [shape: bf16[2304,32], index: 5, kind: input, shape index: {}]   ;;  %s19347_s6 = inlined_call_operand.vmem [shape: bf16[2304,32], index: 6, kind: input, shape index: {}]   ;;  %s19348_s7 = inlined_call_operand.vmem [shape: bf16[1152,32], index: 7, kind: input, shape index: {}]   ;;  %s19349_s8 = inlined_call_operand.vmem [shape: bf16[1152,32], index: 8, kind: input, shape index: {}]   ;;  %s19350_s9 = inlined_call_operand.vmem [shape: f32[4,32], index: 9, kind: input, shape index: {}]   ;;  %s19351_s10 = inlined_call_operand.hbm [shape: f32[2,16,16,32], index: 10, kind: output, shape index: {0}]   ;;  %s19352_s11 = inlined_call_operand.hbm [shape: f32[2,8,8,32], index: 11, kind: output, shape index: {1}]   ;;  %s19353_s12 = inlined_call_operand.hbm [shape: f32[2,4,4,32], index: 12, kind: output, shape index: {2}]  }
   0x1   :  { %19378 = sst [smem:[#allocation51_spill]] %s19341_s0 }
   0x2   :  { %18 = vsyncpa [#allocation15], 0 }
   0x3   :  { %20 = vsyncpa [#allocation15 + $0x1], 0 }
   0x4   :  { %21 = vsyncpa [#allocation17], 0 }
   0x5   :  { %23 = vsyncpa [#allocation17 + $0x1], 0  ;;  %s15563_s21 = smov 0   ;;  %s15565_s22 = smov 0  }
   0x6   :  { %s15567_s23 = smov 0   ;;  %s15569_s24 = smov 0  }
   0x7 LB: > { %19379 = sst [smem:[#allocation21_spill]] %s15474_s21  ;;  %s15584_s25 = sadd.s32 4294967295, %s15486_s24   ;;  %s15486_s24 = sphi %s15569_s24, %s19482_s24   ;;  %s15482_s23 = sphi %s15567_s23, %s19484_s23   ;;  %s15478_s22 = sphi %s15565_s22, %s19486_s22   ;;  %s15474_s21 = sphi %s15563_s21, %s19485_s21  }
   0x8   : > { %19380 = sst [smem:[#allocation22_spill]] %s15482_s23  ;;  %s19354_s26 = sadd.s32 4294967294, %s15486_s24  }
   0x9   : > { %s15588_s27 = sadd.s32 1, %s15486_s24   ;;  %s261_s28 = sadd.s32 1, %s15482_s23 }
   0xa   : > { %19381 = sst [smem:[#allocation23_spill]] %s15588_s27  ;;  %s258_s29 = ssub.s32 %s15486_s24, %s15588_s27 }
   0xb   : > { %p271_p0 = scmp.ne.s32.totalorder %s15482_s23, %s15478_s22  ;;  %p259_p1 = scmp.eq.s32.totalorder %s258_s29, 0 }
   0xc   : > { %p272_p2 = scmp.eq.s32.totalorder %s15584_s25, 1  ;;  %p277_p3 = scmp.ne.s32.totalorder %s15478_s22, %s15474_s21 }
   0xd   : > { %p278_p4 = scmp.eq.s32.totalorder %s19354_s26, 1  ;;  %p12245_p7 = scmp.ge.s32.totalorder %s15486_s24, 1 }
   0xe   : > { %s15601_s30 = scalar_select %p259_p1, %s15482_s23, %s261_s28  }
   0xf   : > { %p15603_p5 = por %p272_p2, %p271_p0  ;;  %p15607_p6 = por %p278_p4, %p277_p3 }
  0x10   : > { %19382 = sst [smem:[#allocation24_spill]] %s15601_s30  ;;  %p393_p8 = scmp.lt.s32.totalorder %s15486_s24, 3 }
  0x11   : > { %s19384_s14 = scalar_select %p15607_p6, 1, 0 }
  0x12   : > { %p394_p9 = pnand %p12245_p7, %p393_p8 }
  0x13   : > { %19385 = sst [smem:[#allocation25_spill]] %s19384_s14 }
  0x14   : > { %397 = sbr.rel (%p394_p9) target bundleno = 3132 (0xc3c), region = 60 }
  0x1b   : > { %p455_p10 = scmp.lt.s32.totalorder %s15584_s25, 1  ;;  %vm549_vm0 = vcmask 130048   ;;  %v15617_v0 = vld [vmem:[%s19344_s3] sm:$0xff]   ;;  %v15488_v1 = vmov 0.0   ;;  %s19386_s0 = sld [smem:[#allocation51_spill]]  ;;  %v14874_v4 = vld [vmem:[%s19344_s3 + $0x8] sm:$0xff]  }
  0x1c   : > { %496 = vst [vmem:[#allocation3 + $0x10] sm:$0xff] %v15488_v1  ;;  %497 = vst [vmem:[#allocation3 + $0x18] sm:$0xff] %v15488_v1  ;;  %13909 = vmatprep.mubr.msk.bf16.mxu0 %vm549_vm0, %v15617_v0  ;;  %v14877_v2 = vld [vmem:[%s19346_s5 + $0x40] sm:$0xff]   ;;  %v14875_v8 = vld [vmem:[%s19344_s3 + $0x10] sm:$0xff]   ;;  %v15489_v49 = vmov 0.0|0.0   ;;  %vm627_vm1 = vcmask 261120  }
  0x1d   : > { %498 = vst [vmem:[#allocation3 + $0x20] sm:$0xff] %v15488_v1  ;;  %499 = vst [vmem:[#allocation3 + $0x28] sm:$0xff] %v15488_v1  ;;  %s15802_s17 = scalar_select %p455_p10, %s15584_s25, 1  ;;  %12913 = vmatprep.subr.bf16.mxu1 %v14877_v2  ;;  %v14878_v14 = vld [vmem:[%s19346_s5] sm:$0xff]   ;;  %v14879_v19 = vld [vmem:[%s19346_s5 + $0x48] sm:$0xff]   ;;  %vm11074_vm2 = vcmask 257024  }
  0x1e   : > { %500 = vst [vmem:[#allocation3 + $0x30] sm:$0xff] %v15488_v1  ;;  %501 = vst [vmem:[#allocation3 + $0x38] sm:$0xff] %v15488_v1  ;;  %12914 = vmatpush3.bf16.msra.mxu1 %v14878_v14  ;;  %v14880_v20 = vld [vmem:[%s19346_s5 + $0x8] sm:$0xff]   ;;  %v14881_v21 = vld [vmem:[%s19346_s5 + $0x50] sm:$0xff]   ;;  %s12044_s27 = sand.u32 1, %s15584_s25   ;;  %s12808_s14 = sshll.u32 %s15584_s25, 10 }
  0x1f   : > { %502 = vst [vmem:[#allocation3 + $0x40] sm:$0xff] %v15488_v1  ;;  %503 = vst [vmem:[#allocation3 + $0x48] sm:$0xff] %v15488_v1  ;;  %s12804_s18 = sshll.u32 %s15802_s17, 3  ;;  %s12805_s19 = sshll.u32 %s15802_s17, 5  ;;  %12915 = vmatprep.subr.bf16.mxu1 %v14879_v19  ;;  %v14882_v22 = vld [vmem:[%s19346_s5 + $0x10] sm:$0xff]   ;;  %v14883_v23 = vld [vmem:[%s19346_s5 + $0xc0] sm:$0xff]  }
  0x20   : > { %504 = vst [vmem:[#allocation3 + $0x50] sm:$0xff] %v15488_v1  ;;  %505 = vst [vmem:[#allocation3 + $0x58] sm:$0xff] %v15488_v1  ;;  %s464_s23 = scalar_lea.vmem %s19342_s1, %s12805_s19  ;;  %v14876_v24 = vld [vmem:[%s19344_s3 + $0x18] sm:$0xff]   ;;  %v14885_v26 = vld [vmem:[%s19346_s5 + $0x80] sm:$0xff]   ;;  %s19219_s15 = scalar_lea.sflag [#allocation17], %s12044_s27 }
  0x21   : > { %506 = vst [vmem:[#allocation3 + $0x60] sm:$0xff] %v15488_v1  ;;  %507 = vst [vmem:[#allocation3 + $0x68] sm:$0xff] %v15488_v1  ;;  %s459_s16 = scalar_lea.vmem %s19386_s0, %s12804_s18  ;;  %v12811_v5 = vld [vmem:[%s464_s23] sm:$0xff]   ;;  %v12890_v6 = vld [vmem:[%s464_s23 + $0x8] sm:$0xff]   ;;  %s12806_s18 = sshll.u32 %s15802_s17, 7 }
  0x22   : > { %508 = vst [vmem:[#allocation3 + $0x70] sm:$0xff] %v15488_v1  ;;  %509 = vst [vmem:[#allocation3 + $0x78] sm:$0xff] %v15488_v1  ;;  %v14872_v3 = vld [vmem:[%s459_s16] sm:$0xff]   ;;  %v12891_v7 = vld [vmem:[%s464_s23 + $0x10] sm:$0xff]   ;;  %v12812_v9 = vunpack.c.l.bf16 %v12811_v5  ;;  %v12813_v10 = vunpack.c.h.bf16 %v12811_v5  ;;  %v12816_v11 = vunpack.c.l.bf16 %v12890_v6  ;;  %v12817_v12 = vunpack.c.h.bf16 %v12890_v6  ;;  %12916 = vmatpush3.bf16.msra.mxu1 %v14880_v20  ;;  %s16940_s16 = scalar_lea.vmem %s19343_s2, %s12806_s18  ;;  %s15491_s17 = smov [#allocation16]  }
  0x23   : > { %510 = vst [vmem:[#allocation3 + $0x80] sm:$0xff] %v15488_v1  ;;  %511 = vst [vmem:[#allocation3 + $0x88] sm:$0xff] %v15488_v1  ;;  %13907 = vmatprep.subr.bf16.mxu0 %v14872_v3  ;;  %v12892_v13 = vld [vmem:[%s464_s23 + $0x18] sm:$0xff]   ;;  %v12820_v15 = vunpack.c.l.bf16 %v12891_v7  ;;  %v12821_v16 = vunpack.c.h.bf16 %v12891_v7  ;;  %12917 = vmatprep.subr.bf16.mxu1 %v14881_v21  ;;  %v14887_v28 = vld [vmem:[%s19346_s5 + $0xc8] sm:$0xff]   ;;  %s18422_s23 = sand.u32 1, %s15478_s22   ;;  %s15368_s20 = sshll.u32 %s15491_s17, 4  ;;  %s15369_s20 = int_to_ptr.vmem [resolvable:$false] %s15368_s20 }
  0x24   : > { %473 = vst [vmem:[#allocation2] sm:$0xff] %v15488_v1  ;;  %474 = vst [vmem:[#allocation2 + $0x8] sm:$0xff] %v15488_v1  ;;  %v12824_v17 = vunpack.c.l.bf16 %v12892_v13  ;;  %v12825_v18 = vunpack.c.h.bf16 %v12892_v13  ;;  %13908 = vmatpush3.bf16.msra.mxu0 %v14872_v3  ;;  %v14884_v25 = vld [vmem:[%s19346_s5 + $0x58] sm:$0xff]   ;;  %v14888_v29 = vld [vmem:[%s19346_s5 + $0x60] sm:$0xff]   ;;  %s12246_s28 = sshll.u32 %s18422_s23, 8  ;;  %s12247_s26 = sshll.u32 %s18422_s23, 6 }
  0x25   : > { %475 = vst [vmem:[#allocation2 + $0x10] sm:$0xff] %v15488_v1  ;;  %476 = vst [vmem:[#allocation2 + $0x18] sm:$0xff] %v15488_v1  ;;  %12977 = vmatprep.subr.bf16.mxu0 %v14883_v23  ;;  %v14886_v27 = vld [vmem:[%s19346_s5 + $0x18] sm:$0xff]   ;;  %v14889_v30 = vld [vmem:[%s19346_s5 + $0x88] sm:$0xff]   ;;  %s18434_s29 = scalar_lea.vmem [#allocation14], %s12246_s28  ;;  %s18976_s30 = scalar_lea.vmem [#allocation16], %s12247_s26 }
  0x26   : > { %477 = vst [vmem:[#allocation2 + $0x20] sm:$0xff] %v15488_v1  ;;  %478 = vst [vmem:[#allocation2 + $0x28] sm:$0xff] %v15488_v1  ;;  %12918 = vmatpush3.bf16.msra.mxu1 %v14882_v22  ;;  %v14890_v31 = vld [vmem:[%s19346_s5 + $0x20] sm:$0xff]   ;;  %v14891_v32 = vld [vmem:[%s19346_s5 + $0xd0] sm:$0xff]   ;;  %s12079_s21 = sshll.u32 %s18976_s30, 4  ;;  %s19215_s28 = scalar_lea.hbm %s19352_s11, %s12808_s14  ;;  %s19217_s21 = int_to_ptr.vmem [resolvable:$true] %s12079_s21 }
  0x27   : > { %479 = vst [vmem:[#allocation2 + $0x30] sm:$0xff] %v15488_v1  ;;  %480 = vst [vmem:[#allocation2 + $0x38] sm:$0xff] %v15488_v1  ;;  %13910 = vmatmul.mubr.msk.bf16.vlgmr.msra.gmra.mrb[0].mxu0 %vm549_vm0, %v14874_v4  ;;  %12919 = vmatprep.subr.bf16.mxu1 %v14884_v25  ;;  %v14892_v33 = vld [vmem:[%s19346_s5 + $0x68] sm:$0xff]   ;;  %v14893_v34 = vld [vmem:[%s19346_s5 + $0x90] sm:$0xff]   ;;  %p15371_p0 = scmp.lt.s32.totalorder %s19217_s21, %s15369_s20 }
  0x28   : > { %481 = vst [vmem:[#allocation2 + $0x40] sm:$0xff] %v15488_v1  ;;  %482 = vst [vmem:[#allocation2 + $0x48] sm:$0xff] %v15488_v1  ;;  %13913 = vmatprep.mubr.msk.bf16.mxu0 %vm549_vm0, %v14875_v8  ;;  %12978 = vmatpush3.bf16.msra.mxu0 %v14885_v26  ;;  %v14894_v35 = vld [vmem:[%s19346_s5 + $0x28] sm:$0xff]   ;;  %v14895_v36 = vld [vmem:[%s19346_s5 + $0xd8] sm:$0xff]  }
  0x29   : > { %483 = vst [vmem:[#allocation2 + $0x50] sm:$0xff] %v15488_v1  ;;  %484 = vst [vmem:[#allocation2 + $0x58] sm:$0xff] %v15488_v1  ;;  %12979 = vmatprep.subr.bf16.mxu0 %v14887_v28  ;;  %v14896_v37 = vld [vmem:[%s19346_s5 + $0x70] sm:$0xff]   ;;  %v14897_v38 = vld [vmem:[%s19346_s5 + $0x98] sm:$0xff]  }
  0x2a   : > { %485 = vst [vmem:[#allocation2 + $0x60] sm:$0xff] %v15488_v1  ;;  %486 = vst [vmem:[#allocation2 + $0x68] sm:$0xff] %v15488_v1  ;;  %12920 = vmatpush3.bf16.msra.mxu1 %v14886_v27  ;;  %v14898_v39 = vld [vmem:[%s19346_s5 + $0x30] sm:$0xff]   ;;  %v14899_v40 = vld [vmem:[%s19346_s5 + $0xe0] sm:$0xff]  }
  0x2b   : > { %487 = vst [vmem:[#allocation2 + $0x70] sm:$0xff] %v15488_v1  ;;  %488 = vst [vmem:[#allocation2 + $0x78] sm:$0xff] %v15488_v1  ;;  %12921 = vmatprep.subr.bf16.mxu1 %v14888_v29  ;;  %v14900_v41 = vld [vmem:[%s19346_s5 + $0x78] sm:$0xff]   ;;  %v14901_v42 = vld [vmem:[%s19346_s5 + $0xa0] sm:$0xff]  }
  0x2c   : > { %489 = vst [vmem:[#allocation2 + $0x80] sm:$0xff] %v15488_v1  ;;  %490 = vst [vmem:[#allocation2 + $0x88] sm:$0xff] %v15488_v1  ;;  %12980 = vmatpush3.bf16.msra.mxu0 %v14889_v30  ;;  %v14902_v43 = vld [vmem:[%s19346_s5 + $0x38] sm:$0xff]   ;;  %v699_v44 = vld [vmem:[#allocation2 + $0x1] sm:$0xff] }
  0x2d   : > { %491 = vst [vmem:[#allocation2 + $0x90] sm:$0xff] %v15488_v1  ;;  %492 = vst [vmem:[#allocation2 + $0x98] sm:$0xff] %v15488_v1  ;;  %12981 = vmatprep.subr.bf16.mxu0 %v14891_v32  ;;  %v700_v45 = vld [vmem:[#allocation2 + $0x9] sm:$0xff]  ;;  %v14907_v52 = vld [vmem:[%s19346_s5 + $0xf8] sm:$0xff]  }
  0x2e   : > { %493 = vst [vmem:[#allocation2 + $0xa0] sm:$0xff] %v15488_v1  ;;  %494 = vst [vmem:[#allocation3] sm:$0xff] %v15488_v1  ;;  %12922 = vmatpush3.bf16.msra.mxu1 %v14890_v31  ;;  %v715_v46 = vpack.c.bf16 %v700_v45, %v699_v44  ;;  %v14903_v47 = vld [vmem:[%s19346_s5 + $0xe8] sm:$0xff]   ;;  %v14905_v50 = vld [vmem:[%s19346_s5 + $0xf0] sm:$0xff]  }
  0x2f   : > { %495 = vst [vmem:[#allocation3 + $0x8] sm:$0xff] %v15488_v1  ;;  %512 = vst [vmem:[#allocation3 + $0x90] sm:$0xff] %v15488_v1  ;;  %13914 = vmatmul.mubr.msk.bf16.gmra.mrb[4].mxu0 %vm549_vm0, %v14876_v24  ;;  %12923 = vmatprep.subr.bf16.mxu1 %v14892_v33  ;;  %v14904_v48 = vld [vmem:[%s19346_s5 + $0xa8] sm:$0xff]   ;;  %v14906_v51 = vld [vmem:[%s19346_s5 + $0xb0] sm:$0xff]  }
  0x30   : > { %513 = vst [vmem:[#allocation3 + $0x98] sm:$0xff] %v15488_v1  ;;  %514 = vst [vmem:[#allocation3 + $0xa0] sm:$0xff] %v15488_v1  ;;  %12982 = vmatpush3.bf16.msra.mxu0 %v14893_v34  ;;  %2576 = vmatprep.mubr.bf16.mxu1 %v715_v46  ;;  %v14909_v53 = vld [vmem:[%s19346_s5 + $0xb8] sm:$0xff]   ;;  %v14908_v54 = vld [vmem:[%s19346_s5 + $0x140] sm:$0xff]  }
  0x31   : > { %3441 = vst [vmem:[#allocation5] sm:$0xff] %v15488_v1  ;;  %3442 = vst [vmem:[#allocation5 + $0x8] sm:$0xff] %v15488_v1  ;;  %12983 = vmatprep.subr.bf16.mxu0 %v14895_v36  ;;  %v14910_v55 = vld [vmem:[%s19346_s5 + $0x100] sm:$0xff]   ;;  %v14911_v56 = vld [vmem:[%s19346_s5 + $0x148] sm:$0xff]  }
  0x32   : > { %3443 = vst [vmem:[#allocation5 + $0x10] sm:$0xff] %v15488_v1  ;;  %3444 = vst [vmem:[#allocation5 + $0x18] sm:$0xff] %v15488_v1  ;;  %12924 = vmatpush3.bf16.msra.mxu1 %v14894_v35  ;;  %v14912_v57 = vld [vmem:[%s19346_s5 + $0x108] sm:$0xff]   ;;  %v14913_v58 = vld [vmem:[%s19346_s5 + $0x150] sm:$0xff]  }
  0x33   : > { %3445 = vst [vmem:[#allocation5 + $0x20] sm:$0xff] %v15488_v1  ;;  %3446 = vst [vmem:[#allocation5 + $0x28] sm:$0xff] %v15488_v1  ;;  %12925 = vmatprep.subr.bf16.mxu1 %v14896_v37  ;;  %v14914_v59 = vld [vmem:[%s19346_s5 + $0x110] sm:$0xff]   ;;  %v14915_v60 = vld [vmem:[%s19346_s5 + $0x158] sm:$0xff]  }
  0x34   : > { %3447 = vst [vmem:[#allocation5 + $0x30] sm:$0xff] %v15488_v1  ;;  %3448 = vst [vmem:[#allocation5 + $0x38] sm:$0xff] %v15488_v1  ;;  %12984 = vmatpush3.bf16.msra.mxu0 %v14897_v38  ;;  %v14916_v61 = vld [vmem:[%s19346_s5 + $0x118] sm:$0xff]   ;;  %v14917_v62 = vld [vmem:[%s19346_s5 + $0x160] sm:$0xff]  }
  0x35   : > { %3449 = vst [vmem:[#allocation5 + $0x40] sm:$0xff] %v15488_v1  ;;  %3450 = vst [vmem:[#allocation5 + $0x48] sm:$0xff] %v15488_v1  ;;  %12985 = vmatprep.subr.bf16.mxu0 %v14899_v40  ;;  %v14918_v63 = vld [vmem:[%s19346_s5 + $0x120] sm:$0xff]   ;;  %v14923_v2 = vld [vmem:[%s19346_s5 + $0x128] sm:$0xff]  }
  0x36   : > { %3451 = vst [vmem:[#allocation5 + $0x50] sm:$0xff] %v15488_v1  ;;  %3452 = vst [vmem:[#allocation5 + $0x58] sm:$0xff] %v15488_v1  ;;  %12926 = vmatpush3.bf16.msra.mxu1 %v14898_v39  ;;  %v14919_v0 = vld [vmem:[%s19346_s5 + $0x1c0] sm:$0xff]   ;;  %v14927_v3 = vld [vmem:[%s19346_s5 + $0x170] sm:$0xff]  }
  0x37   : > { %3453 = vst [vmem:[#allocation5 + $0x60] sm:$0xff] %v15488_v1  ;;  %3454 = vst [vmem:[#allocation5 + $0x68] sm:$0xff] %v15488_v1  ;;  %12927 = vmatprep.subr.bf16.mxu1 %v14900_v41  ;;  %v14929_v4 = vld [vmem:[%s19346_s5 + $0x130] sm:$0xff]   ;;  %v14933_v5 = vld [vmem:[%s19346_s5 + $0x178] sm:$0xff]  }
  0x38   : > { %3455 = vst [vmem:[#allocation5 + $0x70] sm:$0xff] %v15488_v1  ;;  %3456 = vst [vmem:[#allocation5 + $0x78] sm:$0xff] %v15488_v1  ;;  %12986 = vmatpush3.bf16.msra.mxu0 %v14901_v42  ;;  %v14935_v6 = vld [vmem:[%s19346_s5 + $0x138] sm:$0xff]   ;;  %v14940_v7 = vld [vmem:[%s19346_s5 + $0x240] sm:$0xff]  }
  0x39   : > { %3457 = vst [vmem:[#allocation5 + $0x80] sm:$0xff] %v15488_v1  ;;  %3458 = vst [vmem:[#allocation5 + $0x88] sm:$0xff] %v15488_v1  ;;  %12987 = vmatprep.subr.bf16.mxu0 %v14903_v47  ;;  %v731_v14 = vld [vmem:[#allocation2 + $0x2] sm:$0xff]  ;;  %v706_v35 = vld [vmem:[#allocation2 + $0x39] sm:$0xff] }
  0x3a   : > { %3459 = vst [vmem:[#allocation5 + $0x90] sm:$0xff] %v15488_v1  ;;  %3460 = vst [vmem:[#allocation5 + $0x98] sm:$0xff] %v15488_v1  ;;  %12928 = vmatpush3.bf16.msra.mxu1 %v14902_v43  ;;  %v14920_v24 = vld [vmem:[%s19346_s5 + $0x180] sm:$0xff]   ;;  %v14922_v32 = vld [vmem:[%s19346_s5 + $0x1c8] sm:$0xff]  }
  0x3b   : > { %3461 = vst [vmem:[#allocation5 + $0xa0] sm:$0xff] %v15488_v1  ;;  %3462 = vst [vmem:[#allocation5 + $0xa8] sm:$0xff] %v15488_v1  ;;  %13041 = vmatprep.subr.bf16.mxu1 %v14908_v54  ;;  %v14924_v33 = vld [vmem:[%s19346_s5 + $0x188] sm:$0xff]   ;;  %v14925_v36 = vld [vmem:[%s19346_s5 + $0x1d0] sm:$0xff]  }
  0x3c   : > { %3463 = vst [vmem:[#allocation5 + $0xb0] sm:$0xff] %v15488_v1  ;;  %3464 = vst [vmem:[#allocation5 + $0xb8] sm:$0xff] %v15488_v1  ;;  %12988 = vmatpush3.bf16.msra.mxu0 %v14904_v48  ;;  %v14926_v42 = vld [vmem:[%s19346_s5 + $0x190] sm:$0xff]   ;;  %v14928_v45 = vld [vmem:[%s19346_s5 + $0x1d8] sm:$0xff]  }
  0x3d   : > { %3465 = vst [vmem:[#allocation5 + $0xc0] sm:$0xff] %v15488_v1  ;;  %3466 = vst [vmem:[#allocation5 + $0xc8] sm:$0xff] %v15488_v1  ;;  %2577 = vmatmul.mubr.bf16.vlgmr.msra.gmra.mrb[0].mxu1 %v15489_v49  ;;  %12989 = vmatprep.subr.bf16.mxu0 %v14905_v50  ;;  %v14930_v46 = vld [vmem:[%s19346_s5 + $0x198] sm:$0xff]   ;;  %v708_v48 = vld [vmem:[#allocation2 + $0x49] sm:$0xff] }
  0x3e   : > { %3467 = vst [vmem:[#allocation5 + $0xd0] sm:$0xff] %v15488_v1  ;;  %3468 = vst [vmem:[#allocation5 + $0xd8] sm:$0xff] %v15488_v1  ;;  %13042 = vmatpush3.bf16.msra.mxu1 %v14910_v55  ;;  %v14931_v49 = vld [vmem:[%s19346_s5 + $0x1e0] sm:$0xff]   ;;  %v14934_v55 = vld [vmem:[%s19346_s5 + $0x1e8] sm:$0xff]  }
  0x3f   : > { %3469 = vst [vmem:[#allocation5 + $0xe0] sm:$0xff] %v15488_v1  ;;  %3470 = vst [vmem:[#allocation5 + $0xe8] sm:$0xff] %v15488_v1  ;;  %13043 = vmatprep.subr.bf16.mxu1 %v14911_v56  ;;  %v14932_v54 = vld [vmem:[%s19346_s5 + $0x1a0] sm:$0xff]  }
  0x40   : > { %3471 = vst [vmem:[#allocation5 + $0xf0] sm:$0xff] %v15488_v1  ;;  %3472 = vst [vmem:[#allocation5 + $0xf8] sm:$0xff] %v15488_v1  ;;  %12990 = vmatpush3.bf16.msra.mxu0 %v14906_v51 }
  0x41   : > { %3473 = vst [vmem:[#allocation5 + $0x100] sm:$0xff] %v15488_v1  ;;  %3474 = vst [vmem:[#allocation5 + $0x108] sm:$0xff] %v15488_v1  ;;  %12991 = vmatprep.subr.bf16.mxu0 %v14907_v52 }
  0x42   : > { %3475 = vst [vmem:[#allocation5 + $0x110] sm:$0xff] %v15488_v1  ;;  %3476 = vst [vmem:[#allocation5 + $0x118] sm:$0xff] %v15488_v1  ;;  %13044 = vmatpush3.bf16.msra.mxu1 %v14912_v57 }
  0x43   : > { %3477 = vst [vmem:[#allocation5 + $0x120] sm:$0xff] %v15488_v1  ;;  %3478 = vst [vmem:[#allocation5 + $0x128] sm:$0xff] %v15488_v1  ;;  %13045 = vmatprep.subr.bf16.mxu1 %v14913_v58 }
  0x44   : > { %3479 = vst [vmem:[#allocation5 + $0x130] sm:$0xff] %v15488_v1  ;;  %3480 = vst [vmem:[#allocation5 + $0x138] sm:$0xff] %v15488_v1  ;;  %12992 = vmatpush3.bf16.msra.mxu0 %v14909_v53 }
  0x45   : > { %3481 = vst [vmem:[#allocation5 + $0x140] sm:$0xff] %v15488_v1  ;;  %3482 = vst [vmem:[#allocation5 + $0x148] sm:$0xff] %v15488_v1  ;;  %13105 = vmatprep.subr.bf16.mxu0 %v14919_v0 }
  0x46   : > { %3483 = vst [vmem:[#allocation5 + $0x150] sm:$0xff] %v15488_v1  ;;  %3484 = vst [vmem:[#allocation5 + $0x158] sm:$0xff] %v15488_v1  ;;  %13046 = vmatpush3.bf16.msra.mxu1 %v14914_v59  ;;  %v710_v59 = vld [vmem:[#allocation2 + $0x59] sm:$0xff] }
  0x47   : > { %3485 = vst [vmem:[#allocation5 + $0x160] sm:$0xff] %v15488_v1  ;;  %3486 = vst [vmem:[#allocation5 + $0x168] sm:$0xff] %v15488_v1  ;;  %13047 = vmatprep.subr.bf16.mxu1 %v14915_v60  ;;  %v14936_v60 = vld [vmem:[%s19346_s5 + $0x1a8] sm:$0xff]  }
  0x48   : > { %3487 = vst [vmem:[#allocation5 + $0x170] sm:$0xff] %v15488_v1  ;;  %3488 = vst [vmem:[#allocation5 + $0x178] sm:$0xff] %v15488_v1 }
  0x49   : > { %3489 = vst [vmem:[#allocation5 + $0x180] sm:$0xff] %v15488_v1  ;;  %3490 = vst [vmem:[#allocation5 + $0x188] sm:$0xff] %v15488_v1 }
  0x4a   : > { %3491 = vst [vmem:[#allocation5 + $0x190] sm:$0xff] %v15488_v1  ;;  %3492 = vst [vmem:[#allocation5 + $0x198] sm:$0xff] %v15488_v1  ;;  %13048 = vmatpush3.bf16.msra.mxu1 %v14916_v61 }
  0x4b   : > { %3493 = vst [vmem:[#allocation5 + $0x1a0] sm:$0xff] %v15488_v1  ;;  %3494 = vst [vmem:[#allocation5 + $0x1a8] sm:$0xff] %v15488_v1  ;;  %13049 = vmatprep.subr.bf16.mxu1 %v14917_v62 }
  0x4c   : > { %3495 = vst [vmem:[#allocation5 + $0x1b0] sm:$0xff] %v15488_v1  ;;  %3496 = vst [vmem:[#allocation6] sm:$0xff] %v15488_v1 }
  0x4d   : > { %3497 = vst [vmem:[#allocation6 + $0x8] sm:$0xff] %v15488_v1  ;;  %3498 = vst [vmem:[#allocation6 + $0x10] sm:$0xff] %v15488_v1 }
  0x4e   : > { %3499 = vst [vmem:[#allocation6 + $0x18] sm:$0xff] %v15488_v1  ;;  %3500 = vst [vmem:[#allocation6 + $0x20] sm:$0xff] %v15488_v1  ;;  %13050 = vmatpush3.bf16.msra.mxu1 %v14918_v63  ;;  %v14937_v63 = vld [vmem:[%s19346_s5 + $0x1f0] sm:$0xff]  }
  0x4f   : > { %3501 = vst [vmem:[#allocation6 + $0x28] sm:$0xff] %v15488_v1  ;;  %3502 = vst [vmem:[#allocation6 + $0x30] sm:$0xff] %v15488_v1 }
  0x50   : > { %3503 = vst [vmem:[#allocation6 + $0x38] sm:$0xff] %v15488_v1  ;;  %3504 = vst [vmem:[#allocation6 + $0x40] sm:$0xff] %v15488_v1 }
  0x51   : > { %3505 = vst [vmem:[#allocation6 + $0x48] sm:$0xff] %v15488_v1  ;;  %3506 = vst [vmem:[#allocation6 + $0x50] sm:$0xff] %v15488_v1 }
  0x52   : > { %3507 = vst [vmem:[#allocation6 + $0x58] sm:$0xff] %v15488_v1  ;;  %3508 = vst [vmem:[#allocation6 + $0x60] sm:$0xff] %v15488_v1 }
  0x53   : > { %3509 = vst [vmem:[#allocation6 + $0x68] sm:$0xff] %v15488_v1  ;;  %3510 = vst [vmem:[#allocation6 + $0x70] sm:$0xff] %v15488_v1 }
  0x54   : > { %3511 = vst [vmem:[#allocation6 + $0x78] sm:$0xff] %v15488_v1  ;;  %3512 = vst [vmem:[#allocation6 + $0x80] sm:$0xff] %v15488_v1 }
  0x55   : > { %3513 = vst [vmem:[#allocation6 + $0x88] sm:$0xff] %v15488_v1  ;;  %3514 = vst [vmem:[#allocation6 + $0x90] sm:$0xff] %v15488_v1 }
  0x56   : > { %3515 = vst [vmem:[#allocation6 + $0x98] sm:$0xff] %v15488_v1  ;;  %3516 = vst [vmem:[#allocation6 + $0xa0] sm:$0xff] %v15488_v1 }
  0x57   : > { %3517 = vst [vmem:[#allocation6 + $0xa8] sm:$0xff] %v15488_v1  ;;  %3518 = vst [vmem:[#allocation6 + $0xb0] sm:$0xff] %v15488_v1 }
  0x58   : > { %3519 = vst [vmem:[#allocation6 + $0xb8] sm:$0xff] %v15488_v1  ;;  %3520 = vst [vmem:[#allocation6 + $0xc0] sm:$0xff] %v15488_v1 }
  0x59   : > { %3521 = vst [vmem:[#allocation6 + $0xc8] sm:$0xff] %v15488_v1  ;;  %3522 = vst [vmem:[#allocation6 + $0xd0] sm:$0xff] %v15488_v1 }
  0x5a   : > { %3523 = vst [vmem:[#allocation6 + $0xd8] sm:$0xff] %v15488_v1  ;;  %3524 = vst [vmem:[#allocation6 + $0xe0] sm:$0xff] %v15488_v1 }
  0x5b   : > { %3525 = vst [vmem:[#allocation6 + $0xe8] sm:$0xff] %v15488_v1  ;;  %3526 = vst [vmem:[#allocation6 + $0xf0] sm:$0xff] %v15488_v1 }
  0x5c   : > { %3527 = vst [vmem:[#allocation6 + $0xf8] sm:$0xff] %v15488_v1  ;;  %3528 = vst [vmem:[#allocation6 + $0x100] sm:$0xff] %v15488_v1 }
  0x5d   : > { %3529 = vst [vmem:[#allocation6 + $0x108] sm:$0xff] %v15488_v1  ;;  %3530 = vst [vmem:[#allocation6 + $0x110] sm:$0xff] %v15488_v1 }
  0x5e   : > { %3531 = vst [vmem:[#allocation6 + $0x118] sm:$0xff] %v15488_v1  ;;  %3532 = vst [vmem:[#allocation6 + $0x120] sm:$0xff] %v15488_v1 }
  0x5f   : > { %3533 = vst [vmem:[#allocation6 + $0x128] sm:$0xff] %v15488_v1  ;;  %3534 = vst [vmem:[#allocation6 + $0x130] sm:$0xff] %v15488_v1 }
  0x60   : > { %3535 = vst [vmem:[#allocation6 + $0x138] sm:$0xff] %v15488_v1  ;;  %3536 = vst [vmem:[#allocation6 + $0x140] sm:$0xff] %v15488_v1 }
  0x61   : > { %3537 = vst [vmem:[#allocation6 + $0x148] sm:$0xff] %v15488_v1  ;;  %3538 = vst [vmem:[#allocation6 + $0x150] sm:$0xff] %v15488_v1 }
  0x62   : > { %3539 = vst [vmem:[#allocation6 + $0x158] sm:$0xff] %v15488_v1  ;;  %3540 = vst [vmem:[#allocation6 + $0x160] sm:$0xff] %v15488_v1 }
  0x63   : > { %3541 = vst [vmem:[#allocation6 + $0x168] sm:$0xff] %v15488_v1  ;;  %3542 = vst [vmem:[#allocation6 + $0x170] sm:$0xff] %v15488_v1 }
  0x64   : > { %3543 = vst [vmem:[#allocation6 + $0x178] sm:$0xff] %v15488_v1  ;;  %3544 = vst [vmem:[#allocation6 + $0x180] sm:$0xff] %v15488_v1 }
  0x65   : > { %3545 = vst [vmem:[#allocation6 + $0x188] sm:$0xff] %v15488_v1  ;;  %3546 = vst [vmem:[#allocation6 + $0x190] sm:$0xff] %v15488_v1 }
  0x66   : > { %3547 = vst [vmem:[#allocation6 + $0x198] sm:$0xff] %v15488_v1  ;;  %3548 = vst [vmem:[#allocation6 + $0x1a0] sm:$0xff] %v15488_v1 }
  0x67   : > { %3549 = vst [vmem:[#allocation6 + $0x1a8] sm:$0xff] %v15488_v1  ;;  %3550 = vst [vmem:[#allocation6 + $0x1b0] sm:$0xff] %v15488_v1 }
  0x68   : > { %9468 = vst [vmem:[#allocation9] sm:$0xff] %v15488_v1  ;;  %9469 = vst [vmem:[#allocation9 + $0x8] sm:$0xff] %v15488_v1 }
  0x69   : > { %9470 = vst [vmem:[#allocation9 + $0x10] sm:$0xff] %v15488_v1  ;;  %9471 = vst [vmem:[#allocation9 + $0x18] sm:$0xff] %v15488_v1 }
  0x6a   : > { %9472 = vst [vmem:[#allocation9 + $0x20] sm:$0xff] %v15488_v1  ;;  %9473 = vst [vmem:[#allocation9 + $0x28] sm:$0xff] %v15488_v1 }
  0x6b   : > { %9474 = vst [vmem:[#allocation9 + $0x30] sm:$0xff] %v15488_v1  ;;  %9475 = vst [vmem:[#allocation9 + $0x38] sm:$0xff] %v15488_v1 }
  0x6c   : > { %9476 = vst [vmem:[#allocation9 + $0x40] sm:$0xff] %v15488_v1  ;;  %9477 = vst [vmem:[#allocation9 + $0x48] sm:$0xff] %v15488_v1 }
  0x6d   : > { %9478 = vst [vmem:[#allocation9 + $0x50] sm:$0xff] %v15488_v1  ;;  %9479 = vst [vmem:[#allocation9 + $0x58] sm:$0xff] %v15488_v1 }
  0x6e   : > { %9480 = vst [vmem:[#allocation9 + $0x60] sm:$0xff] %v15488_v1  ;;  %9481 = vst [vmem:[#allocation9 + $0x68] sm:$0xff] %v15488_v1 }
  0x6f   : > { %9482 = vst [vmem:[#allocation9 + $0x70] sm:$0xff] %v15488_v1  ;;  %9483 = vst [vmem:[#allocation9 + $0x78] sm:$0xff] %v15488_v1 }
  0x70   : > { %9484 = vst [vmem:[#allocation9 + $0x80] sm:$0xff] %v15488_v1  ;;  %9485 = vst [vmem:[#allocation9 + $0x88] sm:$0xff] %v15488_v1 }
  0x71   : > { %9486 = vst [vmem:[#allocation9 + $0x90] sm:$0xff] %v15488_v1  ;;  %9487 = vst [vmem:[#allocation9 + $0x98] sm:$0xff] %v15488_v1 }
  0x72   : > { %9488 = vst [vmem:[#allocation9 + $0xa0] sm:$0xff] %v15488_v1  ;;  %11057 = vst [vmem:[#allocation12] sm:$0xff] %v15488_v1 }
  0x73   : > { %11058 = vst [vmem:[#allocation12 + $0x8] sm:$0xff] %v15488_v1  ;;  %11059 = vst [vmem:[#allocation12 + $0x10] sm:$0xff] %v15488_v1 }
  0x74   : > { %11060 = vst [vmem:[#allocation12 + $0x18] sm:$0xff] %v15488_v1  ;;  %11061 = vst [vmem:[#allocation12 + $0x20] sm:$0xff] %v15488_v1 }
  0x75   : > { %11062 = vst [vmem:[#allocation12 + $0x28] sm:$0xff] %v15488_v1  ;;  %11063 = vst [vmem:[#allocation12 + $0x30] sm:$0xff] %v15488_v1  ;;  %v14921_v1 = vld [vmem:[%s19346_s5 + $0x168] sm:$0xff]  }
  0x76   : > { %638 = vst.msk [vmem:[#allocation3 + $0x11] sm:$0xff] %vm549_vm0, %v12812_v9  ;;  %642 = vst.msk [vmem:[#allocation3 + $0x21] sm:$0xff] %vm549_vm0, %v12813_v10  ;;  %13051 = vmatprep.subr.bf16.mxu1 %v14921_v1 }
  0x77   : > { %646 = vst.msk [vmem:[#allocation3 + $0x31] sm:$0xff] %vm549_vm0, %v12816_v11  ;;  %650 = vst.msk [vmem:[#allocation3 + $0x41] sm:$0xff] %vm549_vm0, %v12817_v12  ;;  %13052 = vmatpush3.bf16.msra.mxu1 %v14923_v2  ;;  %v702_v12 = vld [vmem:[#allocation2 + $0x19] sm:$0xff] }
  0x78   : > { %654 = vst.msk [vmem:[#allocation3 + $0x51] sm:$0xff] %vm549_vm0, %v12820_v15  ;;  %658 = vst.msk [vmem:[#allocation3 + $0x61] sm:$0xff] %vm549_vm0, %v12821_v16  ;;  %13053 = vmatprep.subr.bf16.mxu1 %v14927_v3  ;;  %v704_v15 = vld [vmem:[#allocation2 + $0x29] sm:$0xff] }
  0x79   : > { %662 = vst.msk [vmem:[#allocation3 + $0x71] sm:$0xff] %vm549_vm0, %v12824_v17  ;;  %666 = vst.msk [vmem:[#allocation3 + $0x81] sm:$0xff] %vm549_vm0, %v12825_v18  ;;  %v14938_v3 = vld [vmem:[%s19346_s5 + $0x1b0] sm:$0xff]  }
  0x7b   : > { %13054 = vmatpush3.bf16.msra.mxu1 %v14929_v4 }
  0x7c   : > { %13055 = vmatprep.subr.bf16.mxu1 %v14933_v5 }
  0x7f   : > { %13056 = vmatpush3.bf16.msra.mxu1 %v14935_v6  ;;  %v14939_v6 = vld [vmem:[%s19346_s5 + $0x1f8] sm:$0xff]  }
  0x80   : > { %13169 = vmatprep.subr.bf16.mxu1 %v14940_v7 }
  0xfa   : > { %v13911_v8 = vpop.f32.mrb[0].mxu0 }
  0xfb   : > { %630 = vst.msk [vmem:[#allocation2 + $0x31] sm:$0xff] %vm627_vm1, %v13911_v8  ;;  %v596_v9 = vpop.f32.mrb[1].mxu0 }
  0xfc   : > { %628 = vst.msk [vmem:[#allocation2 + $0x11] sm:$0xff] %vm627_vm1, %v596_v9  ;;  %v13912_v10 = vpop.f32.mrb[2].mxu0  ;;  %v14941_v9 = vld [vmem:[%s19346_s5 + $0x1b8] sm:$0xff]  }
  0xfd   : > { %631 = vst.msk [vmem:[#allocation2 + $0x41] sm:$0xff] %vm627_vm1, %v13912_v10  ;;  %v599_v11 = vpop.f32.mrb[3].mxu0  ;;  %v14951_v10 = vld [vmem:[%s19346_s5 + $0x2c0] sm:$0xff]  }
  0xfe   : > { %629 = vst.msk [vmem:[#allocation2 + $0x21] sm:$0xff] %vm627_vm1, %v599_v11 }
 0x102   : > { %v13915_v13 = vpop.f32.mrb[4].mxu0  ;;  %v705_v37 = vld [vmem:[#allocation2 + $0x31] sm:$0xff] }
 0x103   : > { %634 = vst.msk [vmem:[#allocation2 + $0x71] sm:$0xff] %vm627_vm1, %v13915_v13  ;;  %v612_v16 = vpop.f32.mrb[5].mxu0  ;;  %v701_v17 = vld [vmem:[#allocation2 + $0x11] sm:$0xff]  ;;  %v16018_v43 = vpack.c.bf16 %v706_v35, %v705_v37 }
 0x104   : > { %v763_v18 = vld [vmem:[#allocation2 + $0x10] sm:$0xff]  ;;  %v764_v19 = vld [vmem:[#allocation2 + $0x18] sm:$0xff]  ;;  %632 = vst.msk [vmem:[#allocation2 + $0x51] sm:$0xff] %vm627_vm1, %v612_v16  ;;  %v15990_v20 = vpack.c.bf16 %v702_v12, %v701_v17  ;;  %v13916_v23 = vpop.f32.mrb[6].mxu0  ;;  %v707_v50 = vld [vmem:[#allocation2 + $0x41] sm:$0xff] }
 0x105   : > { %v779_v21 = vpack.c.bf16 %v764_v19, %v763_v18  ;;  %v732_v22 = vld [vmem:[#allocation2 + $0xa] sm:$0xff]  ;;  %v703_v26 = vld [vmem:[#allocation2 + $0x21] sm:$0xff]  ;;  %635 = vst.msk [vmem:[#allocation2 + $0x81] sm:$0xff] %vm627_vm1, %v13916_v23  ;;  %v615_v29 = vpop.f32.mrb[7].mxu0  ;;  %v768_v39 = vld [vmem:[#allocation2 + $0x38] sm:$0xff]  ;;  %v16043_v57 = vpack.c.bf16 %v708_v48, %v707_v50 }
 0x106   : > { %v747_v25 = vpack.c.bf16 %v732_v22, %v731_v14  ;;  %v765_v27 = vld [vmem:[#allocation2 + $0x20] sm:$0xff]  ;;  %v766_v28 = vld [vmem:[#allocation2 + $0x28] sm:$0xff]  ;;  %2584 = vmatprep.mubr.bf16.mxu1 %v15990_v20  ;;  %v15997_v30 = vpack.c.bf16 %v704_v15, %v703_v26  ;;  %633 = vst.msk [vmem:[#allocation2 + $0x61] sm:$0xff] %vm627_vm1, %v615_v29  ;;  %v767_v38 = vld [vmem:[#allocation2 + $0x30] sm:$0xff] }
 0x107   : > { %2673 = vmatprep.mubr.bf16.mxu0 %v779_v21  ;;  %v15999_v31 = vpack.c.bf16 %v766_v28, %v765_v27  ;;  %2585 = vmatmul.mubr.bf16.gmra.mrb[4].mxu1 %v779_v21  ;;  %v734_v34 = vld [vmem:[#allocation2 + $0x1a] sm:$0xff]  ;;  %v733_v40 = vld [vmem:[#allocation2 + $0x12] sm:$0xff]  ;;  %v16020_v44 = vpack.c.bf16 %v768_v39, %v767_v38  ;;  %v735_v47 = vld [vmem:[#allocation2 + $0x22] sm:$0xff] }
 0x108   : > { %2674 = vmatmul.mubr.bf16.vlgmr.msra.gmra.mrb[8].mxu0 %v747_v25  ;;  %2592 = vmatprep.mubr.bf16.mxu1 %v15997_v30  ;;  %v16013_v41 = vpack.c.bf16 %v734_v34, %v733_v40  ;;  %v769_v51 = vld [vmem:[#allocation2 + $0x40] sm:$0xff]  ;;  %v770_v52 = vld [vmem:[#allocation2 + $0x48] sm:$0xff]  ;;  %v737_v2 = vld [vmem:[#allocation2 + $0x32] sm:$0xff] }
 0x109   : > { %2681 = vmatprep.mubr.bf16.mxu0 %v15999_v31  ;;  %13106 = vmatpush3.bf16.msra.mxu0 %v14920_v24  ;;  %v736_v53 = vld [vmem:[#allocation2 + $0x2a] sm:$0xff]  ;;  %v16045_v58 = vpack.c.bf16 %v770_v52, %v769_v51  ;;  %v738_v61 = vld [vmem:[#allocation2 + $0x3a] sm:$0xff]  ;;  %v739_v15 = vld [vmem:[#allocation2 + $0x42] sm:$0xff] }
 0x10a   : > { %13107 = vmatprep.subr.bf16.mxu0 %v14922_v32  ;;  %v16041_v56 = vpack.c.bf16 %v736_v53, %v735_v47  ;;  %v16067_v7 = vpack.c.bf16 %v738_v61, %v737_v2  ;;  %v712_v12 = vld [vmem:[#allocation2 + $0x69] sm:$0xff]  ;;  %v713_v19 = vld [vmem:[#allocation2 + $0x71] sm:$0xff]  ;;  %v714_v21 = vld [vmem:[#allocation2 + $0x79] sm:$0xff] }
 0x10b   : > { %v709_v62 = vld [vmem:[#allocation2 + $0x51] sm:$0xff]  ;;  %v16091_v27 = vpack.c.bf16 %v714_v21, %v713_v19  ;;  %v14942_v39 = vld [vmem:[%s19346_s5 + $0x200] sm:$0xff]   ;;  %v14943_v40 = vld [vmem:[%s19346_s5 + $0x248] sm:$0xff]  }
 0x10c   : > { %v771_v0 = vld [vmem:[#allocation2 + $0x50] sm:$0xff]  ;;  %v772_v1 = vld [vmem:[#allocation2 + $0x58] sm:$0xff]  ;;  %v16060_v4 = vpack.c.bf16 %v710_v59, %v709_v62  ;;  %v778_v34 = vld [vmem:[#allocation2 + $0x88] sm:$0xff] }
 0x10d   : > { %13108 = vmatpush3.bf16.msra.mxu0 %v14924_v33  ;;  %v16062_v5 = vpack.c.bf16 %v772_v1, %v771_v0  ;;  %v740_v8 = vld [vmem:[#allocation2 + $0x4a] sm:$0xff]  ;;  %v711_v11 = vld [vmem:[#allocation2 + $0x61] sm:$0xff]  ;;  %v741_v23 = vld [vmem:[#allocation2 + $0x52] sm:$0xff] }
 0x10e   : > { %13109 = vmatprep.subr.bf16.mxu0 %v14925_v36  ;;  %v773_v13 = vld [vmem:[#allocation2 + $0x60] sm:$0xff]  ;;  %v774_v14 = vld [vmem:[#allocation2 + $0x68] sm:$0xff]  ;;  %v16079_v16 = vpack.c.bf16 %v740_v8, %v739_v15  ;;  %v16081_v17 = vpack.c.bf16 %v712_v12, %v711_v11  ;;  %v775_v22 = vld [vmem:[#allocation2 + $0x70] sm:$0xff] }
 0x10f   : > { %2593 = vmatmul.mubr.bf16.gmra.mrb[8].mxu1 %v15999_v31  ;;  %v16083_v18 = vpack.c.bf16 %v774_v14, %v773_v13  ;;  %v742_v24 = vld [vmem:[#allocation2 + $0x5a] sm:$0xff]  ;;  %v743_v29 = vld [vmem:[#allocation2 + $0x62] sm:$0xff]  ;;  %v744_v32 = vld [vmem:[#allocation2 + $0x6a] sm:$0xff] }
 0x110   : > { %2682 = vmatmul.mubr.bf16.gmra.mrb[12].mxu0 %v16013_v41  ;;  %2600 = vmatprep.mubr.bf16.mxu1 %v16018_v43  ;;  %v776_v25 = vld [vmem:[#allocation2 + $0x78] sm:$0xff]  ;;  %v16089_v26 = vpack.c.bf16 %v742_v24, %v741_v23  ;;  %v777_v33 = vld [vmem:[#allocation2 + $0x80] sm:$0xff]  ;;  %v16099_v35 = vpack.c.bf16 %v744_v32, %v743_v29  ;;  %v14954_v48 = vld [vmem:[%s19346_s5 + $0x2c8] sm:$0xff]   ;;  %v12929_v59 = vpop.f32.mrb[0].mxu1 }
 0x111   : > { %2689 = vmatprep.mubr.bf16.mxu0 %v16020_v44  ;;  %13110 = vmatpush3.bf16.msra.mxu0 %v14926_v42  ;;  %v16093_v28 = vpack.c.bf16 %v776_v25, %v775_v22  ;;  %v16101_v36 = vpack.c.bf16 %v778_v34, %v777_v33  ;;  %v745_v37 = vld [vmem:[#allocation2 + $0x72] sm:$0xff]  ;;  %v746_v38 = vld [vmem:[#allocation2 + $0x7a] sm:$0xff]  ;;  %v14956_v50 = vld [vmem:[%s19346_s5 + $0x288] sm:$0xff]   ;;  %v12930_v61 = vpop.f32.mrb[1].mxu1 }
 0x112   : > { %13111 = vmatprep.subr.bf16.mxu0 %v14928_v45  ;;  %v16113_v42 = vpack.c.bf16 %v746_v38, %v745_v37  ;;  %v14945_v45 = vld [vmem:[%s19346_s5 + $0x250] sm:$0xff]   ;;  %v14947_v47 = vld [vmem:[%s19346_s5 + $0x258] sm:$0xff]   ;;  %v14949_v51 = vld [vmem:[%s19346_s5 + $0x260] sm:$0xff]   ;;  %v12932_v62 = vpop.f32.mrb[2].mxu1 }
 0x113   : > { %v14958_v52 = vld [vmem:[%s19346_s5 + $0x290] sm:$0xff]   ;;  %v14953_v53 = vld [vmem:[%s19346_s5 + $0x268] sm:$0xff]   ;;  %v12933_v0 = vpop.f32.mrb[3].mxu1  ;;  %v14964_v2 = vld [vmem:[%s19346_s5 + $0x2a0] sm:$0xff]  }
 0x114   : > { %v14961_v1 = vld [vmem:[%s19346_s5 + $0x230] sm:$0xff]   ;;  %v14966_v8 = vld [vmem:[%s19346_s5 + $0x2e8] sm:$0xff]   ;;  %v14971_v12 = vld [vmem:[%s19346_s5 + $0x2f8] sm:$0xff]  }
 0x115   : > { %13112 = vmatpush3.bf16.msra.mxu0 %v14930_v46  ;;  %v14946_v46 = vld [vmem:[%s19346_s5 + $0x210] sm:$0xff]   ;;  %v14973_v13 = vld [vmem:[%s19346_s5 + $0x2b8] sm:$0xff]   ;;  %v14983_v14 = vld [vmem:[%s19346_s5 + $0x3c0] sm:$0xff]  }
 0x116   : > { %13113 = vmatprep.subr.bf16.mxu0 %v14931_v49  ;;  %v14948_v49 = vld [vmem:[%s19346_s5 + $0x218] sm:$0xff]   ;;  %v14969_v11 = vld [vmem:[%s19346_s5 + $0x2f0] sm:$0xff]   ;;  %v903_v15 = vld [vmem:[#allocation2 + $0x81] sm:$0xff] }
 0x117   : > { %2601 = vmatmul.mubr.bf16.gmra.mrb[12].mxu1 %v16020_v44  ;;  %v904_v19 = vld [vmem:[#allocation2 + $0x89] sm:$0xff]  ;;  %v905_v23 = vld [vmem:[#allocation2 + $0x91] sm:$0xff]  ;;  %v906_v24 = vld [vmem:[#allocation2 + $0x99] sm:$0xff] }
 0x118   : > { %2690 = vmatmul.mubr.bf16.gmra.mrb[16].mxu0 %v16041_v56  ;;  %2608 = vmatprep.mubr.bf16.mxu1 %v16043_v57  ;;  %v913_v22 = vpack.c.bf16 %v904_v19, %v903_v15  ;;  %v957_v29 = vld [vmem:[#allocation3 + $0x10] sm:$0xff]  ;;  %v958_v32 = vld [vmem:[#allocation3 + $0x18] sm:$0xff]  ;;  %v14975_v34 = vld [vmem:[%s19346_s5 + $0x348] sm:$0xff]  }
 0x119   : > { %2697 = vmatprep.mubr.bf16.mxu0 %v16045_v58  ;;  %13114 = vmatpush3.bf16.msra.mxu0 %v14932_v54  ;;  %v14960_v54 = vld [vmem:[%s19346_s5 + $0x2d8] sm:$0xff]   ;;  %v16248_v37 = vpack.c.bf16 %v958_v32, %v957_v29  ;;  %v14993_v19 = vld [vmem:[%s19346_s5 + $0x330] sm:$0xff]   ;;  %v994_v32 = vld [vmem:[#allocation3 + $0x39] sm:$0xff] }
 0x11a   : > { %13115 = vmatprep.subr.bf16.mxu0 %v14934_v55  ;;  %v14955_v55 = vld [vmem:[%s19346_s5 + $0x228] sm:$0xff]   ;;  %v1020_v33 = vld [vmem:[#allocation3 + $0xa] sm:$0xff] }
 0x11b   : > { %v993_v29 = vld [vmem:[#allocation3 + $0x31] sm:$0xff] }
 0x11d   : > { %13116 = vmatpush3.bf16.msra.mxu0 %v14936_v60  ;;  %v14959_v60 = vld [vmem:[%s19346_s5 + $0x270] sm:$0xff]  }
 0x11e   : > { %13117 = vmatprep.subr.bf16.mxu0 %v14937_v63  ;;  %v14963_v63 = vld [vmem:[%s19346_s5 + $0x2e0] sm:$0xff]  }
 0x11f   : > { %2609 = vmatmul.mubr.bf16.gmra.mrb[16].mxu1 %v16045_v58 }
 0x120   : > { %2698 = vmatmul.mubr.bf16.gmra.mrb[20].mxu0 %v16067_v7  ;;  %2616 = vmatprep.mubr.bf16.mxu1 %v16060_v4 }
 0x121   : > { %2705 = vmatprep.mubr.bf16.mxu0 %v16062_v5  ;;  %13118 = vmatpush3.bf16.msra.mxu0 %v14938_v3  ;;  %v16189_v3 = vadd.f32 %v12933_v0, %v12932_v62  ;;  %v14989_v62 = vld [vmem:[%s19346_s5 + $0x3d0] sm:$0xff]   ;;  %v14982_v0 = vld [vmem:[%s19346_s5 + $0x320] sm:$0xff]  }
 0x122   : > { %13119 = vmatprep.subr.bf16.mxu0 %v14939_v6  ;;  %v14965_v6 = vld [vmem:[%s19346_s5 + $0x278] sm:$0xff]  }
 0x125   : > { %13120 = vmatpush3.bf16.msra.mxu0 %v14941_v9  ;;  %v14967_v9 = vld [vmem:[%s19346_s5 + $0x238] sm:$0xff]  }
 0x126   : > { %13233 = vmatprep.subr.bf16.mxu0 %v14951_v10  ;;  %v14968_v10 = vld [vmem:[%s19346_s5 + $0x2a8] sm:$0xff]  }
 0x127   : > { %2617 = vmatmul.mubr.bf16.gmra.mrb[20].mxu1 %v16062_v5 }
 0x128   : > { %2706 = vmatmul.mubr.bf16.gmra.mrb[24].mxu0 %v16079_v16  ;;  %2624 = vmatprep.mubr.bf16.mxu1 %v16081_v17 }
 0x129   : > { %2713 = vmatprep.mubr.bf16.mxu0 %v16083_v18 }
 0x12f   : > { %2625 = vmatmul.mubr.bf16.gmra.mrb[24].mxu1 %v16083_v18 }
 0x130   : > { %2714 = vmatmul.mubr.bf16.gmra.mrb[28].mxu0 %v16089_v26  ;;  %2632 = vmatprep.mubr.bf16.mxu1 %v16091_v27 }
 0x131   : > { %2721 = vmatprep.mubr.bf16.mxu0 %v16093_v28 }
 0x137   : > { %2633 = vmatmul.mubr.bf16.gmra.mrb[28].mxu1 %v16093_v28 }
 0x138   : > { %2722 = vmatmul.mubr.bf16.gmra.mrb[32].mxu0 %v16099_v35  ;;  %2770 = vmatprep.mubr.bf16.mxu1 %v16013_v41  ;;  %v14944_v41 = vld [vmem:[%s19346_s5 + $0x208] sm:$0xff]  }
 0x139   : > { %2729 = vmatprep.mubr.bf16.mxu0 %v16101_v36 }
 0x13f   : > { %2771 = vmatmul.mubr.bf16.vlgmr.msra.gmra.mrb[32].mxu1 %v15990_v20  ;;  %v14952_v20 = vld [vmem:[%s19346_s5 + $0x280] sm:$0xff]  }
 0x140   : > { %2730 = vmatmul.mubr.bf16.gmra.mrb[36].mxu0 %v16113_v42  ;;  %2778 = vmatprep.mubr.bf16.mxu1 %v16041_v56 }
 0x141   : > { %2867 = vmatprep.mubr.bf16.mxu0 %v15997_v30  ;;  %13170 = vmatpush3.bf16.msra.mxu1 %v14942_v39  ;;  %v987_v39 = vld [vmem:[#allocation3 + $0x1] sm:$0xff] }
 0x142   : > { %13171 = vmatprep.subr.bf16.mxu1 %v14943_v40  ;;  %v14976_v40 = vld [vmem:[%s19346_s5 + $0x308] sm:$0xff]  }
 0x145   : > { %13172 = vmatpush3.bf16.msra.mxu1 %v14944_v41  ;;  %v959_v41 = vld [vmem:[#allocation3 + $0x20] sm:$0xff] }
 0x146   : > { %13173 = vmatprep.subr.bf16.mxu1 %v14945_v45  ;;  %v960_v45 = vld [vmem:[#allocation3 + $0x28] sm:$0xff] }
 0x147   : > { %2779 = vmatmul.mubr.bf16.gmra.mrb[36].mxu1 %v15997_v30  ;;  %v14957_v30 = vld [vmem:[%s19346_s5 + $0x2d0] sm:$0xff]  }
 0x148   : > { %2868 = vmatmul.mubr.bf16.vlgmr.msra.gmra.mrb[40].mxu0 %v15999_v31  ;;  %2786 = vmatprep.mubr.bf16.mxu1 %v16067_v7  ;;  %v14950_v31 = vld [vmem:[%s19346_s5 + $0x220] sm:$0xff]  }
 0x149   : > { %2875 = vmatprep.mubr.bf16.mxu0 %v16018_v43  ;;  %13174 = vmatpush3.bf16.msra.mxu1 %v14946_v46  ;;  %v1021_v46 = vld [vmem:[#allocation3 + $0x12] sm:$0xff] }
 0x14a   : > { %13234 = vmatpush3.bf16.msra.mxu0 %v14952_v20  ;;  %13175 = vmatprep.subr.bf16.mxu1 %v14947_v47  ;;  %v1022_v20 = vld [vmem:[#allocation3 + $0x1a] sm:$0xff]  ;;  %v14977_v47 = vld [vmem:[%s19346_s5 + $0x350] sm:$0xff]  }
 0x14b   : > { %13235 = vmatprep.subr.bf16.mxu0 %v14954_v48 }
 0x14d   : > { %13176 = vmatpush3.bf16.msra.mxu1 %v14948_v49  ;;  %v14978_v49 = vld [vmem:[%s19346_s5 + $0x310] sm:$0xff]  }
 0x14e   : > { %13236 = vmatpush3.bf16.msra.mxu0 %v14956_v50  ;;  %13177 = vmatprep.subr.bf16.mxu1 %v14949_v51  ;;  %v16265_v50 = vpack.c.bf16 %v960_v45, %v959_v41  ;;  %v16267_v51 = vpack.c.bf16 %v1022_v20, %v1021_v46  ;;  %v15002_v41 = vld [vmem:[%s19346_s5 + $0x3b0] sm:$0xff]   ;;  %v15003_v20 = vld [vmem:[%s19346_s5 + $0x3f8] sm:$0xff]  }
 0x14f   : > { %13237 = vmatprep.subr.bf16.mxu0 %v14957_v30  ;;  %2787 = vmatmul.mubr.bf16.gmra.mrb[40].mxu1 %v16018_v43  ;;  %v14962_v43 = vld [vmem:[%s19346_s5 + $0x298] sm:$0xff]  }
 0x150   : > { %2876 = vmatmul.mubr.bf16.gmra.mrb[44].mxu0 %v16020_v44  ;;  %2794 = vmatprep.mubr.bf16.mxu1 %v16079_v16  ;;  %v16178_v44 = vadd.f32 %v12930_v61, %v12929_v59  ;;  %v14979_v30 = vld [vmem:[%s19346_s5 + $0x358] sm:$0xff]   ;;  %v1023_v59 = vld [vmem:[#allocation3 + $0x22] sm:$0xff] }
 0x151   : > { %2883 = vmatprep.mubr.bf16.mxu0 %v16043_v57  ;;  %13178 = vmatpush3.bf16.msra.mxu1 %v14950_v31  ;;  %v14986_v31 = vld [vmem:[%s19346_s5 + $0x3c8] sm:$0xff]   ;;  %v14980_v61 = vld [vmem:[%s19346_s5 + $0x318] sm:$0xff]  }
 0x152   : > { %13238 = vmatpush3.bf16.msra.mxu0 %v14958_v52  ;;  %13179 = vmatprep.subr.bf16.mxu1 %v14953_v53  ;;  %v989_v52 = vld [vmem:[#allocation3 + $0x11] sm:$0xff]  ;;  %v990_v53 = vld [vmem:[#allocation3 + $0x19] sm:$0xff] }
 0x153   : > { %13239 = vmatprep.subr.bf16.mxu0 %v14960_v54  ;;  %v961_v54 = vld [vmem:[#allocation3 + $0x30] sm:$0xff] }
 0x155   : > { %13180 = vmatpush3.bf16.msra.mxu1 %v14955_v55  ;;  %v962_v55 = vld [vmem:[#allocation3 + $0x38] sm:$0xff] }
 0x156   : > { %13240 = vmatpush3.bf16.msra.mxu0 %v14962_v43  ;;  %13181 = vmatprep.subr.bf16.mxu1 %v14959_v60  ;;  %v1024_v60 = vld [vmem:[#allocation3 + $0x2a] sm:$0xff]  ;;  %v14988_v43 = vld [vmem:[%s19346_s5 + $0x388] sm:$0xff]  }
 0x157   : > { %13241 = vmatprep.subr.bf16.mxu0 %v14963_v63  ;;  %2795 = vmatmul.mubr.bf16.gmra.mrb[44].mxu1 %v16043_v57  ;;  %v14972_v57 = vld [vmem:[%s19346_s5 + $0x340] sm:$0xff]   ;;  %v16290_v63 = vpack.c.bf16 %v990_v53, %v989_v52  ;;  %v15005_v52 = vld [vmem:[%s19346_s5 + $0x3b8] sm:$0xff]  }
 0x158   : > { %2884 = vmatmul.mubr.bf16.gmra.mrb[48].mxu0 %v16045_v58  ;;  %2802 = vmatprep.mubr.bf16.mxu1 %v16089_v26  ;;  %v14970_v58 = vld [vmem:[%s19346_s5 + $0x2b0] sm:$0xff]  }
 0x159   : > { %2891 = vmatprep.mubr.bf16.mxu0 %v16060_v4  ;;  %13182 = vmatpush3.bf16.msra.mxu1 %v14961_v1  ;;  %v14990_v1 = vld [vmem:[%s19346_s5 + $0x390] sm:$0xff]  }
 0x15a   : > { %13242 = vmatpush3.bf16.msra.mxu0 %v14964_v2  ;;  %13183 = vmatprep.subr.bf16.mxu1 %v14965_v6  ;;  %v16298_v2 = vpack.c.bf16 %v962_v55, %v961_v54  ;;  %v16300_v6 = vpack.c.bf16 %v1024_v60, %v1023_v59  ;;  %v997_v55 = vld [vmem:[#allocation3 + $0x51] sm:$0xff]  ;;  %v998_v59 = vld [vmem:[#allocation3 + $0x59] sm:$0xff] }
 0x15b   : > { %13243 = vmatprep.subr.bf16.mxu0 %v14966_v8  ;;  %v14985_v8 = vld [vmem:[%s19346_s5 + $0x368] sm:$0xff]   ;;  %v969_v60 = vld [vmem:[#allocation3 + $0x70] sm:$0xff] }
 0x15d   : > { %13184 = vmatpush3.bf16.msra.mxu1 %v14967_v9  ;;  %v14992_v9 = vld [vmem:[%s19346_s5 + $0x3d8] sm:$0xff]  }
 0x15e   : > { %13244 = vmatpush3.bf16.msra.mxu0 %v14968_v10  ;;  %13297 = vmatprep.subr.bf16.mxu1 %v14972_v57  ;;  %v991_v10 = vld [vmem:[#allocation3 + $0x21] sm:$0xff] }
 0x15f   : > { %13245 = vmatprep.subr.bf16.mxu0 %v14969_v11  ;;  %2803 = vmatmul.mubr.bf16.gmra.mrb[48].mxu1 %v16060_v4  ;;  %v841_v4 = vld [vmem:[#allocation2 + $0x82] sm:$0xff]  ;;  %v992_v11 = vld [vmem:[#allocation3 + $0x29] sm:$0xff] }
 0x160   : > { %2892 = vmatmul.mubr.bf16.gmra.mrb[52].mxu0 %v16062_v5  ;;  %2810 = vmatprep.mubr.bf16.mxu1 %v16099_v35  ;;  %v842_v5 = vld [vmem:[#allocation2 + $0x8a] sm:$0xff]  ;;  %v16324_v15 = vpack.c.bf16 %v992_v11, %v991_v10  ;;  %v1033_v11 = vld [vmem:[#allocation3 + $0x72] sm:$0xff] }
 0x161   : > { %2899 = vmatprep.mubr.bf16.mxu0 %v16081_v17  ;;  %v16233_v21 = vpack.c.bf16 %v842_v5, %v841_v4  ;;  %v963_v57 = vld [vmem:[#allocation3 + $0x40] sm:$0xff]  ;;  %v14994_v4 = vld [vmem:[%s19346_s5 + $0x398] sm:$0xff]   ;;  %v14995_v5 = vld [vmem:[%s19346_s5 + $0x3e0] sm:$0xff]  }
 0x162   : > { %13246 = vmatpush3.bf16.msra.mxu0 %v14970_v58  ;;  %v964_v58 = vld [vmem:[#allocation3 + $0x48] sm:$0xff] }
 0x163   : > { %13247 = vmatprep.subr.bf16.mxu0 %v14971_v12  ;;  %v1025_v12 = vld [vmem:[#allocation3 + $0x32] sm:$0xff]  ;;  %v1000_v10 = vld [vmem:[#allocation3 + $0x69] sm:$0xff] }
 0x166   : > { %13248 = vmatpush3.bf16.msra.mxu0 %v14973_v13  ;;  %v1026_v13 = vld [vmem:[#allocation3 + $0x3a] sm:$0xff] }
 0x167   : > { %13361 = vmatprep.subr.bf16.mxu0 %v14983_v14  ;;  %2811 = vmatmul.mubr.bf16.gmra.mrb[52].mxu1 %v16081_v17  ;;  %v914_v17 = vpack.c.bf16 %v906_v24, %v905_v23  ;;  %v14987_v14 = vld [vmem:[%s19346_s5 + $0x328] sm:$0xff]   ;;  %v16332_v23 = vpack.c.bf16 %v964_v58, %v963_v57  ;;  %v16334_v24 = vpack.c.bf16 %v1026_v13, %v1025_v12 }
 0x168   : > { %2900 = vmatmul.mubr.bf16.gmra.mrb[56].mxu0 %v16083_v18  ;;  %2818 = vmatprep.mubr.bf16.mxu1 %v16113_v42  ;;  %v15325_v18 = vld [vmem:[#allocation2] sm:$0xff] }
 0x169   : > { %2907 = vmatprep.mubr.bf16.mxu0 %v16091_v27  ;;  %v16238_v25 = vpack.c.bf16 %v15325_v18, %v15325_v18  ;;  %v14998_v18 = vld [vmem:[%s19346_s5 + $0x3e8] sm:$0xff]  }
 0x16a   : > { %v1034_v57 = vld [vmem:[#allocation3 + $0x7a] sm:$0xff] }
 0x16b   : > { %v16399_v13 = vpack.c.bf16 %v1034_v57, %v1033_v11 }
 0x16f   : > { %2819 = vmatmul.mubr.bf16.gmra.mrb[56].mxu1 %v16091_v27  ;;  %v1019_v27 = vld [vmem:[#allocation3 + $0x2] sm:$0xff] }
 0x170   : > { %2908 = vmatmul.mubr.bf16.gmra.mrb[60].mxu0 %v16093_v28  ;;  %2826 = vmatprep.mubr.bf16.mxu1 %v16233_v21  ;;  %v14974_v28 = vld [vmem:[%s19346_s5 + $0x300] sm:$0xff]   ;;  %v1035_v38 = vpack.c.bf16 %v1020_v33, %v1019_v27  ;;  %v965_v27 = vld [vmem:[#allocation3 + $0x50] sm:$0xff] }
 0x171   : > { %2915 = vmatprep.mubr.bf16.mxu0 %v913_v22  ;;  %v966_v33 = vld [vmem:[#allocation3 + $0x58] sm:$0xff] }
 0x172   : > { %v16363_v45 = vpack.c.bf16 %v966_v33, %v965_v27  ;;  %v15019_v27 = vld [vmem:[%s19346_s5 + $0x478] sm:$0xff]   ;;  %v16467_v33 = vld [vmem:[%s19350_s9] ss:$0 sm:$0xff] }
 0x177   : > { %2827 = vmatmul.mubr.bf16.gmra.mrb[60].mxu1 %v913_v22  ;;  %v14996_v22 = vld [vmem:[%s19346_s5 + $0x3a0] sm:$0xff]  }
 0x178   : > { %2916 = vmatmul.mubr.bf16.gmra.mrb[64].mxu0 %v16101_v36  ;;  %2964 = vmatprep.mubr.bf16.mxu1 %v16238_v25  ;;  %v988_v36 = vld [vmem:[#allocation3 + $0x9] sm:$0xff] }
 0x179   : > { %2923 = vmatprep.mubr.bf16.mxu0 %v914_v17  ;;  %v1003_v48 = vpack.c.bf16 %v988_v36, %v987_v39  ;;  %v14997_v17 = vld [vmem:[%s19346_s5 + $0x378] sm:$0xff]   ;;  %v15000_v39 = vld [vmem:[%s19346_s5 + $0x3a8] sm:$0xff]   ;;  %v15004_v36 = vld [vmem:[%s19346_s5 + $0x440] sm:$0xff]  }
 0x17f   : > { %2965 = vmatmul.mubr.bf16.vlgmr.msra.gmra.mrb[64].mxu1 %v16041_v56  ;;  %v14984_v56 = vld [vmem:[%s19346_s5 + $0x380] sm:$0xff]  }
 0x180   : > { %2924 = vmatmul.mubr.bf16.gmra.mrb[68].mxu0 %v16238_v25  ;;  %13298 = vmatpush3.bf16.msra.mxu1 %v14974_v28  ;;  %v1027_v28 = vld [vmem:[#allocation3 + $0x42] sm:$0xff] }
 0x181   : > { %2972 = vmatprep.mubr.bf16.mxu1 %v16248_v37  ;;  %3061 = vmatprep.mubr.bf16.mxu0 %v1035_v38  ;;  %v14999_v38 = vld [vmem:[%s19346_s5 + $0x338] sm:$0xff]  }
 0x182   : > { %13299 = vmatprep.subr.bf16.mxu1 %v14975_v34  ;;  %v1028_v34 = vld [vmem:[#allocation3 + $0x4a] sm:$0xff] }
 0x183   : > { %v16365_v46 = vpack.c.bf16 %v1028_v34, %v1027_v28  ;;  %v15020_v28 = vld [vmem:[%s19346_s5 + $0x438] sm:$0xff]  }
 0x184   : > { %13300 = vmatpush3.bf16.msra.mxu1 %v14976_v40  ;;  %v16358_v40 = vpack.c.bf16 %v994_v32, %v993_v29  ;;  %v15016_v29 = vld [vmem:[%s19346_s5 + $0x428] sm:$0xff]   ;;  %v15017_v32 = vld [vmem:[%s19346_s5 + $0x470] sm:$0xff]  }
 0x185   : > { %13301 = vmatprep.subr.bf16.mxu1 %v14977_v47  ;;  %v995_v47 = vld [vmem:[#allocation3 + $0x41] sm:$0xff] }
 0x187   : > { %2973 = vmatmul.mubr.bf16.gmra.mrb[68].mxu1 %v16067_v7  ;;  %v14981_v7 = vld [vmem:[%s19346_s5 + $0x360] sm:$0xff]  }
 0x188   : > { %3062 = vmatmul.mubr.bf16.vlgmr.msra.gmra.mrb[72].mxu0 %v1003_v48  ;;  %2980 = vmatprep.mubr.bf16.mxu1 %v16265_v50  ;;  %v996_v48 = vld [vmem:[#allocation3 + $0x49] sm:$0xff] }
 0x189   : > { %3069 = vmatprep.mubr.bf16.mxu0 %v16267_v51  ;;  %13302 = vmatpush3.bf16.msra.mxu1 %v14978_v49  ;;  %v967_v49 = vld [vmem:[#allocation3 + $0x60] sm:$0xff]  ;;  %v16377_v53 = vpack.c.bf16 %v996_v48, %v995_v47 }
 0x18a   : > { %13362 = vmatpush3.bf16.msra.mxu0 %v14984_v56  ;;  %13303 = vmatprep.subr.bf16.mxu1 %v14979_v30  ;;  %v968_v56 = vld [vmem:[#allocation3 + $0x68] sm:$0xff]  ;;  %v1029_v30 = vld [vmem:[#allocation3 + $0x52] sm:$0xff] }
 0x18b   : > { %13363 = vmatprep.subr.bf16.mxu0 %v14986_v31  ;;  %v1030_v31 = vld [vmem:[#allocation3 + $0x5a] sm:$0xff]  ;;  %v16379_v54 = vpack.c.bf16 %v968_v56, %v967_v49  ;;  %v2582_v56 = vadd.f32 %v16189_v3, %v16467_v33 }
 0x18d   : > { %13304 = vmatpush3.bf16.msra.mxu1 %v14980_v61  ;;  %v970_v61 = vld [vmem:[#allocation3 + $0x78] sm:$0xff] }
 0x18e   : > { %13364 = vmatpush3.bf16.msra.mxu0 %v14988_v43  ;;  %13305 = vmatprep.subr.bf16.mxu1 %v14981_v7  ;;  %v1031_v43 = vld [vmem:[#allocation3 + $0x62] sm:$0xff]  ;;  %v1032_v7 = vld [vmem:[#allocation3 + $0x6a] sm:$0xff] }
 0x18f   : > { %13365 = vmatprep.subr.bf16.mxu0 %v14989_v62  ;;  %2981 = vmatmul.mubr.bf16.gmra.mrb[72].mxu1 %v16079_v16  ;;  %v14991_v16 = vld [vmem:[%s19346_s5 + $0x370] sm:$0xff]   ;;  %v16387_v62 = vpack.c.bf16 %v998_v59, %v997_v55 }
 0x190   : > { %3070 = vmatmul.mubr.bf16.gmra.mrb[76].mxu0 %v16290_v63  ;;  %2988 = vmatprep.mubr.bf16.mxu1 %v16298_v2 }
 0x191   : > { %3077 = vmatprep.mubr.bf16.mxu0 %v16300_v6  ;;  %13306 = vmatpush3.bf16.msra.mxu1 %v14982_v0  ;;  %v16389_v0 = vpack.c.bf16 %v970_v61, %v969_v60 }
 0x192   : > { %13366 = vmatpush3.bf16.msra.mxu0 %v14990_v1  ;;  %13307 = vmatprep.subr.bf16.mxu1 %v14985_v8  ;;  %v16391_v1 = vpack.c.bf16 %v1032_v7, %v1031_v43  ;;  %v938_v8 = vld [vmem:[#allocation2 + $0x9a] sm:$0xff] }
 0x193   : > { %13367 = vmatprep.subr.bf16.mxu0 %v14992_v9  ;;  %v999_v9 = vld [vmem:[#allocation3 + $0x61] sm:$0xff] }
 0x194   : > { %v16397_v12 = vpack.c.bf16 %v1000_v10, %v999_v9 }
 0x195   : > { %13308 = vmatpush3.bf16.msra.mxu1 %v14987_v14  ;;  %v1002_v14 = vld [vmem:[#allocation3 + $0x79] sm:$0xff] }
 0x196   : > { %13368 = vmatpush3.bf16.msra.mxu0 %v14994_v4  ;;  %13309 = vmatprep.subr.bf16.mxu1 %v14991_v16  ;;  %v15006_v16 = vld [vmem:[%s19346_s5 + $0x400] sm:$0xff]  }
 0x197   : > { %13369 = vmatprep.subr.bf16.mxu0 %v14995_v5  ;;  %2989 = vmatmul.mubr.bf16.gmra.mrb[76].mxu1 %v16089_v26  ;;  %v15001_v26 = vld [vmem:[%s19346_s5 + $0x3f0] sm:$0xff]   ;;  %v15007_v5 = vld [vmem:[%s19346_s5 + $0x448] sm:$0xff]  }
 0x198   : > { %3078 = vmatmul.mubr.bf16.gmra.mrb[80].mxu0 %v16324_v15  ;;  %2996 = vmatprep.mubr.bf16.mxu1 %v16332_v23 }
 0x199   : > { %3085 = vmatprep.mubr.bf16.mxu0 %v16334_v24  ;;  %13310 = vmatpush3.bf16.msra.mxu1 %v14993_v19  ;;  %v15009_v19 = vld [vmem:[%s19346_s5 + $0x450] sm:$0xff]  }
 0x19a   : > { %13370 = vmatpush3.bf16.msra.mxu0 %v14996_v22  ;;  %13311 = vmatprep.subr.bf16.mxu1 %v14997_v17  ;;  %v15011_v22 = vld [vmem:[%s19346_s5 + $0x458] sm:$0xff]  }
 0x19b   : > { %13371 = vmatprep.subr.bf16.mxu0 %v14998_v18  ;;  %v15012_v17 = vld [vmem:[%s19346_s5 + $0x418] sm:$0xff]   ;;  %v15013_v18 = vld [vmem:[%s19346_s5 + $0x460] sm:$0xff]  }
 0x19d   : > { %13312 = vmatpush3.bf16.msra.mxu1 %v14999_v38 }
 0x19e   : > { %13372 = vmatpush3.bf16.msra.mxu0 %v15000_v39  ;;  %13425 = vmatprep.subr.bf16.mxu1 %v15004_v36 }
 0x19f   : > { %13373 = vmatprep.subr.bf16.mxu0 %v15001_v26  ;;  %2997 = vmatmul.mubr.bf16.gmra.mrb[80].mxu1 %v16099_v35  ;;  %v16381_v35 = vpack.c.bf16 %v1030_v31, %v1029_v30  ;;  %v2579_v26 = vadd.f32 %v16178_v44, %v16467_v33 }
 0x1a0   : > { %3086 = vmatmul.mubr.bf16.gmra.mrb[84].mxu0 %v16358_v40  ;;  %3004 = vmatprep.mubr.bf16.mxu1 %v16363_v45 }
 0x1a1   : > { %3093 = vmatprep.mubr.bf16.mxu0 %v16365_v46 }
 0x1a2   : > { %13374 = vmatpush3.bf16.msra.mxu0 %v15002_v41 }
 0x1a3   : > { %13375 = vmatprep.subr.bf16.mxu0 %v15003_v20 }
 0x1a6   : > { %13376 = vmatpush3.bf16.msra.mxu0 %v15005_v52 }
 0x1a7   : > { %3005 = vmatmul.mubr.bf16.gmra.mrb[84].mxu1 %v16113_v42  ;;  %v937_v42 = vld [vmem:[#allocation2 + $0x92] sm:$0xff] }
 0x1a8   : > { %3094 = vmatmul.mubr.bf16.gmra.mrb[88].mxu0 %v16377_v53  ;;  %3012 = vmatprep.mubr.bf16.mxu1 %v16379_v54  ;;  %v946_v58 = vpack.c.bf16 %v938_v8, %v937_v42 }
 0x1a9   : > { %3101 = vmatprep.mubr.bf16.mxu0 %v16381_v35 }
 0x1af   : > { %3013 = vmatmul.mubr.bf16.gmra.mrb[88].mxu1 %v16233_v21  ;;  %v1001_v21 = vld [vmem:[#allocation3 + $0x71] sm:$0xff] }
 0x1b0   : > { %3102 = vmatmul.mubr.bf16.gmra.mrb[92].mxu0 %v16387_v62  ;;  %3020 = vmatprep.mubr.bf16.mxu1 %v16389_v0  ;;  %v16404_v4 = vpack.c.bf16 %v1002_v14, %v1001_v21  ;;  %v1097_v21 = vld [vmem:[#allocation3 + $0x81] sm:$0xff]  ;;  %v1098_v14 = vld [vmem:[#allocation3 + $0x89] sm:$0xff] }
 0x1b1   : > { %3109 = vmatprep.mubr.bf16.mxu0 %v16391_v1 }
 0x1b7   : > { %3021 = vmatmul.mubr.bf16.gmra.mrb[92].mxu1 %v946_v58 }
 0x1b8   : > { %3110 = vmatmul.mubr.bf16.gmra.mrb[96].mxu0 %v16397_v12  ;;  %3158 = vmatprep.mubr.bf16.mxu1 %v16290_v63  ;;  %v15008_v63 = vld [vmem:[%s19346_s5 + $0x408] sm:$0xff]  }
 0x1b9   : > { %3117 = vmatprep.mubr.bf16.mxu0 %v16399_v13 }
 0x1bf   : > { %3159 = vmatmul.mubr.bf16.vlgmr.msra.gmra.mrb[96].mxu1 %v16248_v37  ;;  %v15010_v37 = vld [vmem:[%s19346_s5 + $0x410] sm:$0xff]  }
 0x1c0   : > { %3118 = vmatmul.mubr.bf16.gmra.mrb[100].mxu0 %v16404_v4  ;;  %13426 = vmatpush3.bf16.msra.mxu1 %v15006_v16 }
 0x1c1   : > { %3166 = vmatprep.mubr.bf16.mxu1 %v16324_v15  ;;  %3255 = vmatprep.mubr.bf16.mxu0 %v16265_v50 }
 0x1c2   : > { %13427 = vmatprep.subr.bf16.mxu1 %v15007_v5  ;;  %v1159_v5 = vld [vmem:[#allocation3 + $0x80] sm:$0xff] }
 0x1c4   : > { %13428 = vmatpush3.bf16.msra.mxu1 %v15008_v63  ;;  %v1160_v63 = vld [vmem:[#allocation3 + $0x88] sm:$0xff] }
 0x1c5   : > { %13429 = vmatprep.subr.bf16.mxu1 %v15009_v19 }
 0x1c7   : > { %3167 = vmatmul.mubr.bf16.gmra.mrb[100].mxu1 %v16265_v50  ;;  %v15014_v50 = vld [vmem:[%s19346_s5 + $0x420] sm:$0xff]  }
 0x1c8   : > { %3256 = vmatmul.mubr.bf16.vlgmr.msra.gmra.mrb[104].mxu0 %v16267_v51  ;;  %3174 = vmatprep.mubr.bf16.mxu1 %v16358_v40  ;;  %v15015_v51 = vld [vmem:[%s19346_s5 + $0x468] sm:$0xff]  }
 0x1c9   : > { %3263 = vmatprep.mubr.bf16.mxu0 %v16298_v2  ;;  %13430 = vmatpush3.bf16.msra.mxu1 %v15010_v37 }
 0x1ca   : > { %13431 = vmatprep.subr.bf16.mxu1 %v15011_v22 }
 0x1cd   : > { %13432 = vmatpush3.bf16.msra.mxu1 %v15012_v17 }
 0x1ce   : > { %13433 = vmatprep.subr.bf16.mxu1 %v15013_v18  ;;  %v16494_v18 = vpack.c.bf16 %v1098_v14, %v1097_v21 }
 0x1cf   : > { %3175 = vmatmul.mubr.bf16.gmra.mrb[104].mxu1 %v16298_v2  ;;  %v15018_v2 = vld [vmem:[%s19346_s5 + $0x430] sm:$0xff]  }
 0x1d0   : > { %3264 = vmatmul.mubr.bf16.gmra.mrb[108].mxu0 %v16300_v6  ;;  %3182 = vmatprep.mubr.bf16.mxu1 %v16377_v53 }
 0x1d1   : > { %3271 = vmatprep.mubr.bf16.mxu0 %v16332_v23  ;;  %13434 = vmatpush3.bf16.msra.mxu1 %v15014_v50 }
 0x1d2   : > { %13435 = vmatprep.subr.bf16.mxu1 %v15015_v51 }
 0x1d5   : > { %13436 = vmatpush3.bf16.msra.mxu1 %v15016_v29 }
 0x1d6   : > { %13437 = vmatprep.subr.bf16.mxu1 %v15017_v32 }
 0x1d7   : > { %3183 = vmatmul.mubr.bf16.gmra.mrb[108].mxu1 %v16332_v23 }
 0x1d8   : > { %3272 = vmatmul.mubr.bf16.gmra.mrb[112].mxu0 %v16334_v24  ;;  %3190 = vmatprep.mubr.bf16.mxu1 %v16387_v62 }
 0x1d9   : > { %3279 = vmatprep.mubr.bf16.mxu0 %v16363_v45  ;;  %13438 = vmatpush3.bf16.msra.mxu1 %v15018_v2  ;;  %v1169_v2 = vpack.c.bf16 %v1160_v63, %v1159_v5 }
 0x1da   : > { %v12935_v34 = vpop.f32.mrb[4].mxu1  ;;  %13439 = vmatprep.subr.bf16.mxu1 %v15019_v27 }
 0x1db   : > { %v12993_v38 = vpop.f32.mrb[8].mxu0  ;;  %v12936_v23 = vpop.f32.mrb[5].mxu1 }
 0x1dc   : > { %v12994_v39 = vpop.f32.mrb[9].mxu0  ;;  %v12937_v36 = vadd.f32 %v12936_v23, %v12935_v34  ;;  %v12938_v20 = vpop.f32.mrb[6].mxu1 }
 0x1dd   : > { %v12995_v41 = vadd.f32 %v12994_v39, %v12993_v38  ;;  %v12996_v47 = vpop.f32.mrb[10].mxu0  ;;  %v12939_v48 = vpop.f32.mrb[7].mxu1  ;;  %13440 = vmatpush3.bf16.msra.mxu1 %v15020_v28 }
 0x1de   : > { %v12997_v49 = vpop.f32.mrb[11].mxu0  ;;  %v12940_v30 = vadd.f32 %v12939_v48, %v12938_v20  ;;  %v2587_v3 = vadd.f32 %v12937_v36, %v16467_v33 }
 0x1df   : > { %v12998_v31 = vadd.f32 %v12997_v49, %v12996_v47  ;;  %v16476_v52 = vadd.f32 %v12995_v41, %v2579_v26  ;;  %3191 = vmatmul.mubr.bf16.gmra.mrb[112].mxu1 %v16363_v45 }
 0x1e0   : > { %3280 = vmatmul.mubr.bf16.gmra.mrb[116].mxu0 %v16365_v46  ;;  %3198 = vmatprep.mubr.bf16.mxu1 %v16397_v12  ;;  %v2590_v10 = vadd.f32 %v12940_v30, %v16467_v33 }
 0x1e1   : > { %3287 = vmatprep.mubr.bf16.mxu0 %v16379_v54  ;;  %v16482_v44 = vadd.f32 %v12998_v31, %v2582_v56 }
 0x1e2   : > { %v12941_v55 = vpop.f32.mrb[8].mxu1 }
 0x1e3   : > { %v12999_v59 = vpop.f32.mrb[12].mxu0  ;;  %v12942_v60 = vpop.f32.mrb[9].mxu1 }
 0x1e4   : > { %v13000_v61 = vpop.f32.mrb[13].mxu0  ;;  %v12943_v43 = vadd.f32 %v12942_v60, %v12941_v55  ;;  %v12944_v42 = vpop.f32.mrb[10].mxu1 }
 0x1e5   : > { %v13001_v7 = vadd.f32 %v13000_v61, %v12999_v59  ;;  %v13002_v8 = vpop.f32.mrb[14].mxu0  ;;  %v12945_v9 = vpop.f32.mrb[11].mxu1 }
 0x1e6   : > { %v13003_v45 = vpop.f32.mrb[15].mxu0  ;;  %v12946_v11 = vadd.f32 %v12945_v9, %v12944_v42 }
 0x1e7   : > { %v13004_v57 = vadd.f32 %v13003_v45, %v13002_v8  ;;  %v16486_v58 = vadd.f32 %v13001_v7, %v2587_v3  ;;  %3199 = vmatmul.mubr.bf16.gmra.mrb[116].mxu1 %v16379_v54  ;;  %v2595_v54 = vadd.f32 %v12943_v43, %v16467_v33  ;;  %v1129_v43 = vld [vmem:[#allocation3 + $0x82] sm:$0xff]  ;;  %v1130_v7 = vld [vmem:[#allocation3 + $0x8a] sm:$0xff] }
 0x1e8   : > { %3288 = vmatmul.mubr.bf16.gmra.mrb[120].mxu0 %v16381_v35  ;;  %3206 = vmatprep.mubr.bf16.mxu1 %v16404_v4  ;;  %v2598_v34 = vadd.f32 %v12946_v11, %v16467_v33  ;;  %v16514_v11 = vpack.c.bf16 %v1130_v7, %v1129_v43 }
 0x1e9   : > { %3295 = vmatprep.mubr.bf16.mxu0 %v16389_v0  ;;  %v16492_v16 = vadd.f32 %v13004_v57, %v2590_v10 }
 0x1ea   : > { %v12947_v19 = vpop.f32.mrb[12].mxu1 }
 0x1eb   : > { %v13005_v37 = vpop.f32.mrb[16].mxu0  ;;  %v12948_v22 = vpop.f32.mrb[13].mxu1 }
 0x1ec   : > { %v13006_v17 = vpop.f32.mrb[17].mxu0  ;;  %v12949_v50 = vadd.f32 %v12948_v22, %v12947_v19  ;;  %v12950_v29 = vpop.f32.mrb[14].mxu1 }
 0x1ed   : > { %v13007_v51 = vadd.f32 %v13006_v17, %v13005_v37  ;;  %v13008_v32 = vpop.f32.mrb[18].mxu0  ;;  %v12951_v27 = vpop.f32.mrb[15].mxu1 }
 0x1ee   : > { %v13009_v28 = vpop.f32.mrb[19].mxu0  ;;  %v12952_v38 = vadd.f32 %v12951_v27, %v12950_v29  ;;  %v2603_v48 = vadd.f32 %v12949_v50, %v16467_v33 }
 0x1ef   : > { %v13010_v23 = vadd.f32 %v13009_v28, %v13008_v32  ;;  %v16498_v39 = vadd.f32 %v13007_v51, %v2595_v54  ;;  %3207 = vmatmul.mubr.bf16.gmra.mrb[120].mxu1 %v16389_v0 }
 0x1f0   : > { %3296 = vmatmul.mubr.bf16.gmra.mrb[124].mxu0 %v16391_v1  ;;  %3214 = vmatprep.mubr.bf16.mxu1 %v16494_v18  ;;  %v2606_v0 = vadd.f32 %v12952_v38, %v16467_v33 }
 0x1f1   : > { %3303 = vmatprep.mubr.bf16.mxu0 %v1169_v2  ;;  %v16503_v26 = vadd.f32 %v13010_v23, %v2598_v34 }
 0x1f2   : > { %v12953_v36 = vpop.f32.mrb[16].mxu1 }
 0x1f3   : > { %v13011_v41 = vpop.f32.mrb[20].mxu0  ;;  %v12954_v20 = vpop.f32.mrb[17].mxu1 }
 0x1f4   : > { %v13012_v47 = vpop.f32.mrb[21].mxu0  ;;  %v12955_v49 = vadd.f32 %v12954_v20, %v12953_v36  ;;  %v12956_v30 = vpop.f32.mrb[18].mxu1 }
 0x1f5   : > { %v13013_v56 = vadd.f32 %v13012_v47, %v13011_v41  ;;  %v13014_v31 = vpop.f32.mrb[22].mxu0  ;;  %v12957_v55 = vpop.f32.mrb[19].mxu1 }
 0x1f6   : > { %v13015_v59 = vpop.f32.mrb[23].mxu0  ;;  %v12958_v60 = vadd.f32 %v12957_v55, %v12956_v30  ;;  %v2611_v57 = vadd.f32 %v12955_v49, %v16467_v33 }
 0x1f7   : > { %v13016_v61 = vadd.f32 %v13015_v59, %v13014_v31  ;;  %v16507_v3 = vadd.f32 %v13013_v56, %v2603_v48  ;;  %3215 = vmatmul.mubr.bf16.gmra.mrb[124].mxu1 %v1169_v2 }
 0x1f8   : > { %3304 = vmatmul.mubr.bf16.gmra.mrb[128].mxu0 %v16399_v13  ;;  %3352 = vmatprep.mubr.bf16.mxu1 %v16300_v6  ;;  %v2614_v6 = vadd.f32 %v12958_v60, %v16467_v33 }
 0x1f9   : > { %3311 = vmatprep.mubr.bf16.mxu0 %v16238_v25  ;;  %v16512_v42 = vadd.f32 %v13016_v61, %v2606_v0 }
 0x1fa   : > { %v12959_v8 = vpop.f32.mrb[20].mxu1 }
 0x1fb   : > { %v13017_v9 = vpop.f32.mrb[24].mxu0  ;;  %v12960_v45 = vpop.f32.mrb[21].mxu1 }
 0x1fc   : > { %v13018_v10 = vpop.f32.mrb[25].mxu0  ;;  %v12961_v21 = vadd.f32 %v12960_v45, %v12959_v8  ;;  %v12962_v5 = vpop.f32.mrb[22].mxu1 }
 0x1fd   : > { %v13019_v14 = vadd.f32 %v13018_v10, %v13017_v9  ;;  %v13020_v63 = vpop.f32.mrb[26].mxu0  ;;  %v12963_v19 = vpop.f32.mrb[23].mxu1 }
 0x1fe   : > { %v13021_v25 = vpop.f32.mrb[27].mxu0  ;;  %v12964_v37 = vadd.f32 %v12963_v19, %v12962_v5  ;;  %v2619_v2 = vadd.f32 %v12961_v21, %v16467_v33 }
 0x1ff   : > { %v13022_v22 = vadd.f32 %v13021_v25, %v13020_v63  ;;  %v16518_v17 = vadd.f32 %v13019_v14, %v2611_v57  ;;  %3353 = vmatmul.mubr.bf16.vlgmr.msra.gmra.mrb[128].mxu1 %v16324_v15 }
 0x200   : > { %3312 = vmatmul.mubr.bf16.gmra.mrb[132].mxu0 %v16514_v11  ;;  %3360 = vmatprep.mubr.bf16.mxu1 %v16334_v24  ;;  %v2622_v41 = vadd.f32 %v12964_v37, %v16467_v33 }
 0x201   : > { %v16523_v54 = vadd.f32 %v13022_v22, %v2614_v6 }
 0x202   : > { %v12965_v50 = vpop.f32.mrb[24].mxu1 }
 0x203   : > { %v13023_v51 = vpop.f32.mrb[28].mxu0  ;;  %v12966_v29 = vpop.f32.mrb[25].mxu1 }
 0x204   : > { %v13024_v32 = vpop.f32.mrb[29].mxu0  ;;  %v12967_v27 = vadd.f32 %v12966_v29, %v12965_v50  ;;  %v12968_v34 = vpop.f32.mrb[26].mxu1 }
 0x205   : > { %v13025_v28 = vadd.f32 %v13024_v32, %v13023_v51  ;;  %v13026_v38 = vpop.f32.mrb[30].mxu0  ;;  %v12969_v23 = vpop.f32.mrb[27].mxu1 }
 0x206   : > { %v13027_v36 = vpop.f32.mrb[31].mxu0  ;;  %v12970_v20 = vadd.f32 %v12969_v23, %v12968_v34  ;;  %v2627_v31 = vadd.f32 %v12967_v27, %v16467_v33 }
 0x207   : > { %v13028_v15 = vadd.f32 %v13027_v36, %v13026_v38  ;;  %v16527_v47 = vadd.f32 %v13025_v28, %v2619_v2  ;;  %3361 = vmatmul.mubr.bf16.gmra.mrb[132].mxu1 %v16358_v40 }
 0x208   : > { %3368 = vmatprep.mubr.bf16.mxu1 %v16365_v46  ;;  %v2630_v7 = vadd.f32 %v12970_v20, %v16467_v33 }
 0x209   : > { %v16531_v24 = vadd.f32 %v13028_v15, %v2622_v41 }
 0x20a   : > { %v12971_v48 = vpop.f32.mrb[28].mxu1 }
 0x20b   : > { %v13029_v49 = vpop.f32.mrb[32].mxu0  ;;  %v12972_v56 = vpop.f32.mrb[29].mxu1 }
 0x20c   : > { %v13030_v30 = vpop.f32.mrb[33].mxu0  ;;  %v12973_v55 = vadd.f32 %v12972_v56, %v12971_v48  ;;  %v12974_v0 = vpop.f32.mrb[30].mxu1 }
 0x20d   : > { %v13031_v59 = vadd.f32 %v13030_v30, %v13029_v49  ;;  %v13032_v60 = vpop.f32.mrb[34].mxu0  ;;  %v12975_v61 = vpop.f32.mrb[31].mxu1 }
 0x20e   : > { %v13033_v43 = vpop.f32.mrb[35].mxu0  ;;  %v12976_v8 = vadd.f32 %v12975_v61, %v12974_v0  ;;  %v2635_v14 = vadd.f32 %v12973_v55, %v16467_v33 }
 0x20f   : > { %v13034_v40 = vadd.f32 %v13033_v43, %v13032_v60  ;;  %v16535_v9 = vadd.f32 %v13031_v59, %v2627_v31  ;;  %3369 = vmatmul.mubr.bf16.gmra.mrb[136].mxu1 %v16377_v53 }
 0x210   : > { %3376 = vmatprep.mubr.bf16.mxu1 %v16381_v35  ;;  %v2638_v6 = vadd.f32 %v12976_v8, %v16467_v33 }
 0x211   : > { %v16539_v46 = vadd.f32 %v13034_v40, %v2630_v7  ;;  %v1225_v40 = vld [vmem:[#allocation3 + $0x92] sm:$0xff] }
 0x212   : > { %v13057_v10 = vpop.f32.mrb[32].mxu1 }
 0x213   : > { %v13035_v45 = vpop.f32.mrb[36].mxu0  ;;  %v13058_v21 = vpop.f32.mrb[33].mxu1 }
 0x214   : > { %v13036_v57 = vpop.f32.mrb[37].mxu0  ;;  %v13059_v63 = vadd.f32 %v13058_v21, %v13057_v10  ;;  %v13060_v25 = vpop.f32.mrb[34].mxu1 }
 0x215   : > { %v13037_v5 = vadd.f32 %v13036_v57, %v13035_v45  ;;  %v13038_v19 = vpop.f32.mrb[38].mxu0  ;;  %v13061_v22 = vpop.f32.mrb[35].mxu1  ;;  %v1226_v45 = vld [vmem:[#allocation3 + $0x9a] sm:$0xff] }
 0x216   : > { %v13039_v37 = vpop.f32.mrb[39].mxu0  ;;  %v2773_v53 = vadd.f32 %v13059_v63, %v16476_v52  ;;  %v13062_v35 = vadd.f32 %v13061_v22, %v13060_v25  ;;  %v1234_v25 = vpack.c.bf16 %v1226_v45, %v1225_v40 }
 0x217   : > { %v13040_v50 = vadd.f32 %v13039_v37, %v13038_v19  ;;  %v16544_v51 = vadd.f32 %v13037_v5, %v2635_v14  ;;  %3377 = vmatmul.mubr.bf16.gmra.mrb[140].mxu1 %v16387_v62 }
 0x218   : > { %v2776_v29 = vadd.f32 %v13062_v35, %v16482_v44  ;;  %3384 = vmatprep.mubr.bf16.mxu1 %v16391_v1  ;;  %v1194_v35 = vld [vmem:[#allocation3 + $0x99] sm:$0xff] }
 0x219   : > { %v16549_v32 = vadd.f32 %v13040_v50, %v2638_v6  ;;  %v1193_v50 = vld [vmem:[#allocation3 + $0x91] sm:$0xff] }
 0x21a   : > { %v13063_v2 = vpop.f32.mrb[36].mxu1 }
 0x21b   : > { %v13121_v27 = vpop.f32.mrb[40].mxu0  ;;  %v13064_v28 = vpop.f32.mrb[37].mxu1 }
 0x21c   : > { %v13122_v33 = vpop.f32.mrb[41].mxu0  ;;  %v13065_v34 = vadd.f32 %v13064_v28, %v13063_v2  ;;  %v13066_v23 = vpop.f32.mrb[38].mxu1 }
 0x21d   : > { %v13123_v38 = vadd.f32 %v13122_v33, %v13121_v27  ;;  %v13124_v52 = vpop.f32.mrb[42].mxu0  ;;  %v13067_v36 = vpop.f32.mrb[39].mxu1 }
 0x21e   : > { %v13125_v41 = vpop.f32.mrb[43].mxu0  ;;  %v2781_v20 = vadd.f32 %v13065_v34, %v16486_v58  ;;  %v13068_v15 = vadd.f32 %v13067_v36, %v13066_v23  ;;  %v1202_v34 = vpack.c.bf16 %v1194_v35, %v1193_v50 }
 0x21f   : > { %v13126_v62 = vadd.f32 %v13125_v41, %v13124_v52  ;;  %v16552_v48 = vadd.f32 %v13123_v38, %v2773_v53  ;;  %3385 = vmatmul.mubr.bf16.gmra.mrb[144].mxu1 %v16397_v12 }
 0x220   : > { %v2784_v1 = vadd.f32 %v13068_v15, %v16492_v16  ;;  %3392 = vmatprep.mubr.bf16.mxu1 %v16399_v13 }
 0x221   : > { %v16557_v44 = vadd.f32 %v13126_v62, %v2776_v29 }
 0x222   : > { %v13069_v49 = vpop.f32.mrb[40].mxu1 }
 0x223   : > { %v13127_v56 = vpop.f32.mrb[44].mxu0  ;;  %v13070_v30 = vpop.f32.mrb[41].mxu1 }
 0x224   : > { %v13128_v31 = vpop.f32.mrb[45].mxu0  ;;  %v13071_v55 = vadd.f32 %v13070_v30, %v13069_v49  ;;  %v13072_v0 = vpop.f32.mrb[42].mxu1 }
 0x225   : > { %v13129_v59 = vadd.f32 %v13128_v31, %v13127_v56  ;;  %v13130_v58 = vpop.f32.mrb[46].mxu0  ;;  %v13073_v60 = vpop.f32.mrb[43].mxu1 }
 0x226   : > { %v13131_v61 = vpop.f32.mrb[47].mxu0  ;;  %v2789_v43 = vadd.f32 %v13071_v55, %v16498_v39  ;;  %v13074_v7 = vadd.f32 %v13073_v60, %v13072_v0 }
 0x227   : > { %v13132_v12 = vadd.f32 %v13131_v61, %v13130_v58  ;;  %v16560_v8 = vadd.f32 %v13129_v59, %v2781_v20  ;;  %3393 = vmatmul.mubr.bf16.gmra.mrb[148].mxu1 %v16404_v4 }
 0x228   : > { %v2792_v13 = vadd.f32 %v13074_v7, %v16503_v26  ;;  %3400 = vmatprep.mubr.bf16.mxu1 %v16514_v11 }
 0x229   : > { %v16565_v16 = vadd.f32 %v13132_v12, %v2784_v1 }
 0x22a   : > { %v13075_v10 = vpop.f32.mrb[44].mxu1 }
 0x22b   : > { %v13133_v57 = vpop.f32.mrb[48].mxu0  ;;  %v13076_v21 = vpop.f32.mrb[45].mxu1 }
 0x22c   : > { %v13134_v14 = vpop.f32.mrb[49].mxu0  ;;  %v13077_v5 = vadd.f32 %v13076_v21, %v13075_v10  ;;  %v13078_v63 = vpop.f32.mrb[46].mxu1 }
 0x22d   : > { %v13135_v39 = vadd.f32 %v13134_v14, %v13133_v57  ;;  %v13136_v19 = vpop.f32.mrb[50].mxu0  ;;  %v13079_v6 = vpop.f32.mrb[47].mxu1 }
 0x22e   : > { %v13137_v37 = vpop.f32.mrb[51].mxu0  ;;  %v2797_v4 = vadd.f32 %v13077_v5, %v16507_v3  ;;  %v13080_v26 = vadd.f32 %v13079_v6, %v13078_v63 }
 0x22f   : > { %v13138_v22 = vadd.f32 %v13137_v37, %v13136_v19  ;;  %v16568_v11 = vadd.f32 %v13135_v39, %v2789_v43  ;;  %3401 = vmatmul.mubr.bf16.gmra.mrb[152].mxu1 %v16494_v18 }
 0x230   : > { %v2800_v53 = vadd.f32 %v13080_v26, %v16512_v42  ;;  %3408 = vmatprep.mubr.bf16.mxu1 %v1234_v25 }
 0x231   : > { %v16572_v29 = vadd.f32 %v13138_v22, %v2792_v13 }
 0x232   : > { %v13081_v2 = vpop.f32.mrb[48].mxu1 }
 0x233   : > { %v13139_v27 = vpop.f32.mrb[52].mxu0  ;;  %v13082_v28 = vpop.f32.mrb[49].mxu1 }
 0x234   : > { %v13140_v33 = vpop.f32.mrb[53].mxu0  ;;  %v13083_v38 = vadd.f32 %v13082_v28, %v13081_v2  ;;  %v13084_v23 = vpop.f32.mrb[50].mxu1 }
 0x235   : > { %v13141_v3 = vadd.f32 %v13140_v33, %v13139_v27  ;;  %v13142_v52 = vpop.f32.mrb[54].mxu0  ;;  %v13085_v36 = vpop.f32.mrb[51].mxu1 }
 0x236   : > { %v13143_v41 = vpop.f32.mrb[55].mxu0  ;;  %v2805_v18 = vadd.f32 %v13083_v38, %v16518_v17  ;;  %v13086_v20 = vadd.f32 %v13085_v36, %v13084_v23 }
 0x237   : > { %v13144_v42 = vadd.f32 %v13143_v41, %v13142_v52  ;;  %v16575_v15 = vadd.f32 %v13141_v3, %v2797_v4  ;;  %3409 = vmatmul.mubr.bf16.gmra.mrb[156].mxu1 %v1202_v34 }
 0x238   : > { %v2808_v62 = vadd.f32 %v13086_v20, %v16523_v54 }
 0x239   : > { %v16578_v1 = vadd.f32 %v13144_v42, %v2800_v53 }
 0x23a   : > { %v13087_v49 = vpop.f32.mrb[52].mxu1 }
 0x23b   : > { %v13145_v56 = vpop.f32.mrb[56].mxu0  ;;  %v13088_v30 = vpop.f32.mrb[53].mxu1 }
 0x23c   : > { %v13146_v31 = vpop.f32.mrb[57].mxu0  ;;  %v13089_v55 = vadd.f32 %v13088_v30, %v13087_v49  ;;  %v13090_v0 = vpop.f32.mrb[54].mxu1 }
 0x23d   : > { %v13147_v59 = vadd.f32 %v13146_v31, %v13145_v56  ;;  %v13148_v58 = vpop.f32.mrb[58].mxu0  ;;  %v13091_v60 = vpop.f32.mrb[55].mxu1 }
 0x23e   : > { %v13149_v61 = vpop.f32.mrb[59].mxu0  ;;  %v2813_v17 = vadd.f32 %v13089_v55, %v16527_v47  ;;  %v13092_v43 = vadd.f32 %v13091_v60, %v13090_v0 }
 0x23f   : > { %v13150_v7 = vadd.f32 %v13149_v61, %v13148_v58  ;;  %v16581_v12 = vadd.f32 %v13147_v59, %v2805_v18 }
 0x240   : > { %v2816_v54 = vadd.f32 %v13092_v43, %v16531_v24 }
 0x241   : > { %v16584_v13 = vadd.f32 %v13150_v7, %v2808_v62 }
 0x242   : > { %v13093_v40 = vpop.f32.mrb[56].mxu1 }
 0x243   : > { %v13151_v45 = vpop.f32.mrb[60].mxu0  ;;  %v13094_v10 = vpop.f32.mrb[57].mxu1 }
 0x244   : > { %v13152_v57 = vpop.f32.mrb[61].mxu0  ;;  %v13095_v21 = vadd.f32 %v13094_v10, %v13093_v40  ;;  %v13096_v5 = vpop.f32.mrb[58].mxu1 }
 0x245   : > { %v13153_v14 = vadd.f32 %v13152_v57, %v13151_v45  ;;  %v13154_v39 = vpop.f32.mrb[62].mxu0  ;;  %v13097_v63 = vpop.f32.mrb[59].mxu1 }
 0x246   : > { %v13155_v19 = vpop.f32.mrb[63].mxu0  ;;  %v2821_v47 = vadd.f32 %v13095_v21, %v16535_v9  ;;  %v13098_v25 = vadd.f32 %v13097_v63, %v13096_v5 }
 0x247   : > { %v13156_v6 = vadd.f32 %v13155_v19, %v13154_v39  ;;  %v16587_v37 = vadd.f32 %v13153_v14, %v2813_v17 }
 0x248   : > { %v2824_v24 = vadd.f32 %v13098_v25, %v16539_v46 }
 0x249   : > { %v16590_v4 = vadd.f32 %v13156_v6, %v2816_v54 }
 0x24a   : > { %v13099_v26 = vpop.f32.mrb[60].mxu1 }
 0x24b   : > { %v13157_v22 = vpop.f32.mrb[64].mxu0  ;;  %v13100_v53 = vpop.f32.mrb[61].mxu1 }
 0x24c   : > { %v13158_v50 = vpop.f32.mrb[65].mxu0  ;;  %v13101_v35 = vadd.f32 %v13100_v53, %v13099_v26  ;;  %v13102_v27 = vpop.f32.mrb[62].mxu1 }
 0x24d   : > { %v13159_v2 = vadd.f32 %v13158_v50, %v13157_v22  ;;  %v13160_v28 = vpop.f32.mrb[66].mxu0  ;;  %v13103_v33 = vpop.f32.mrb[63].mxu1 }
 0x24e   : > { %v13161_v34 = vpop.f32.mrb[67].mxu0  ;;  %v2829_v9 = vadd.f32 %v13101_v35, %v16544_v51  ;;  %v13104_v38 = vadd.f32 %v13103_v33, %v13102_v27 }
 0x24f   : > { %v13162_v3 = vadd.f32 %v13161_v34, %v13160_v28  ;;  %v16593_v23 = vadd.f32 %v13159_v2, %v2821_v47 }
 0x250   : > { %v2832_v46 = vadd.f32 %v13104_v38, %v16549_v32 }
 0x251   : > { %v16596_v52 = vadd.f32 %v13162_v3, %v2824_v24 }
 0x252   : > { %v13185_v41 = vpop.f32.mrb[64].mxu1 }
 0x253   : > { %v13163_v36 = vpop.f32.mrb[68].mxu0  ;;  %v13186_v20 = vpop.f32.mrb[65].mxu1 }
 0x254   : > { %v13164_v18 = vpop.f32.mrb[69].mxu0  ;;  %v13187_v62 = vadd.f32 %v13186_v20, %v13185_v41  ;;  %v13188_v56 = vpop.f32.mrb[66].mxu1 }
 0x255   : > { %v13165_v42 = vadd.f32 %v13164_v18, %v13163_v36  ;;  %v13166_v49 = vpop.f32.mrb[70].mxu0  ;;  %v13189_v31 = vpop.f32.mrb[67].mxu1 }
 0x256   : > { %v13167_v30 = vpop.f32.mrb[71].mxu0  ;;  %v2967_v51 = vadd.f32 %v13187_v62, %v16552_v48  ;;  %v13190_v59 = vadd.f32 %v13189_v31, %v13188_v56 }
 0x257   : > { %v13168_v55 = vadd.f32 %v13167_v30, %v13166_v49  ;;  %v16599_v0 = vadd.f32 %v13165_v42, %v2829_v9 }
 0x258   : > { %v2970_v32 = vadd.f32 %v13190_v59, %v16557_v44 }
 0x259   : > { %v16602_v58 = vadd.f32 %v13168_v55, %v2832_v46 }
 0x25a   : > { %v13191_v60 = vpop.f32.mrb[68].mxu1 }
 0x25b   : > { %v13249_v61 = vpop.f32.mrb[72].mxu0  ;;  %v13192_v17 = vpop.f32.mrb[69].mxu1 }
 0x25c   : > { %v13250_v43 = vpop.f32.mrb[73].mxu0  ;;  %v13193_v7 = vadd.f32 %v13192_v17, %v13191_v60  ;;  %v13194_v40 = vpop.f32.mrb[70].mxu1 }
 0x25d   : > { %v13251_v54 = vadd.f32 %v13250_v43, %v13249_v61  ;;  %v13252_v45 = vpop.f32.mrb[74].mxu0  ;;  %v13195_v10 = vpop.f32.mrb[71].mxu1 }
 0x25e   : > { %v13253_v57 = vpop.f32.mrb[75].mxu0  ;;  %v2975_v48 = vadd.f32 %v13193_v7, %v16560_v8  ;;  %v13196_v21 = vadd.f32 %v13195_v10, %v13194_v40 }
 0x25f   : > { %v13254_v14 = vadd.f32 %v13253_v57, %v13252_v45  ;;  %v16605_v5 = vadd.f32 %v13251_v54, %v2967_v51 }
 0x260   : > { %v2978_v44 = vadd.f32 %v13196_v21, %v16565_v16 }
 0x261   : > { %v16608_v39 = vadd.f32 %v13254_v14, %v2970_v32 }
 0x262   : > { %v13197_v63 = vpop.f32.mrb[72].mxu1 }
 0x263   : > { %v13255_v19 = vpop.f32.mrb[76].mxu0  ;;  %v13198_v47 = vpop.f32.mrb[73].mxu1 }
 0x264   : > { %v13256_v25 = vpop.f32.mrb[77].mxu0  ;;  %v13199_v6 = vadd.f32 %v13198_v47, %v13197_v63  ;;  %v13200_v26 = vpop.f32.mrb[74].mxu1 }
 0x265   : > { %v13257_v24 = vadd.f32 %v13256_v25, %v13255_v19  ;;  %v13258_v22 = vpop.f32.mrb[78].mxu0  ;;  %v13201_v53 = vpop.f32.mrb[75].mxu1 }
 0x266   : > { %v13259_v50 = vpop.f32.mrb[79].mxu0  ;;  %v2983_v8 = vadd.f32 %v13199_v6, %v16568_v11  ;;  %v13202_v35 = vadd.f32 %v13201_v53, %v13200_v26 }
 0x267   : > { %v13260_v2 = vadd.f32 %v13259_v50, %v13258_v22  ;;  %v16611_v27 = vadd.f32 %v13257_v24, %v2975_v48 }
 0x268   : > { %v2986_v16 = vadd.f32 %v13202_v35, %v16572_v29 }
 0x269   : > { %v16614_v28 = vadd.f32 %v13260_v2, %v2978_v44 }
 0x26a   : > { %v13203_v33 = vpop.f32.mrb[76].mxu1 }
 0x26b   : > { %v13261_v34 = vpop.f32.mrb[80].mxu0  ;;  %v13204_v9 = vpop.f32.mrb[77].mxu1 }
 0x26c   : > { %v13262_v38 = vpop.f32.mrb[81].mxu0  ;;  %v13205_v3 = vadd.f32 %v13204_v9, %v13203_v33  ;;  %v13206_v36 = vpop.f32.mrb[78].mxu1 }
 0x26d   : > { %v13263_v46 = vadd.f32 %v13262_v38, %v13261_v34  ;;  %v13264_v41 = vpop.f32.mrb[82].mxu0  ;;  %v13207_v18 = vpop.f32.mrb[79].mxu1 }
 0x26e   : > { %v13265_v20 = vpop.f32.mrb[83].mxu0  ;;  %v2991_v11 = vadd.f32 %v13205_v3, %v16575_v15  ;;  %v13208_v42 = vadd.f32 %v13207_v18, %v13206_v36 }
 0x26f   : > { %v13266_v62 = vadd.f32 %v13265_v20, %v13264_v41  ;;  %v16617_v49 = vadd.f32 %v13263_v46, %v2983_v8 }
 0x270   : > { %v2994_v29 = vadd.f32 %v13208_v42, %v16578_v1 }
 0x271   : > { %v16620_v56 = vadd.f32 %v13266_v62, %v2986_v16 }
 0x272   : > { %v13209_v30 = vpop.f32.mrb[80].mxu1 }
 0x273   : > { %v13267_v31 = vpop.f32.mrb[84].mxu0  ;;  %v13210_v51 = vpop.f32.mrb[81].mxu1 }
 0x274   : > { %v13268_v55 = vpop.f32.mrb[85].mxu0  ;;  %v13211_v59 = vadd.f32 %v13210_v51, %v13209_v30  ;;  %v13212_v60 = vpop.f32.mrb[82].mxu1 }
 0x275   : > { %v13269_v32 = vadd.f32 %v13268_v55, %v13267_v31  ;;  %v13270_v61 = vpop.f32.mrb[86].mxu0  ;;  %v13213_v17 = vpop.f32.mrb[83].mxu1 }
 0x276   : > { %v13271_v43 = vpop.f32.mrb[87].mxu0  ;;  %v2999_v15 = vadd.f32 %v13211_v59, %v16581_v12  ;;  %v13214_v7 = vadd.f32 %v13213_v17, %v13212_v60 }
 0x277   : > { %v13272_v54 = vadd.f32 %v13271_v43, %v13270_v61  ;;  %v16623_v40 = vadd.f32 %v13269_v32, %v2991_v11 }
 0x278   : > { %v3002_v1 = vadd.f32 %v13214_v7, %v16584_v13 }
 0x279   : > { %v16626_v45 = vadd.f32 %v13272_v54, %v2994_v29 }
 0x27a   : > { %v13215_v10 = vpop.f32.mrb[84].mxu1 }
 0x27b   : > { %v13273_v57 = vpop.f32.mrb[88].mxu0  ;;  %v13216_v48 = vpop.f32.mrb[85].mxu1 }
 0x27c   : > { %v13274_v21 = vpop.f32.mrb[89].mxu0  ;;  %v13217_v14 = vadd.f32 %v13216_v48, %v13215_v10  ;;  %v13218_v63 = vpop.f32.mrb[86].mxu1 }
 0x27d   : > { %v13275_v44 = vadd.f32 %v13274_v21, %v13273_v57  ;;  %v13276_v19 = vpop.f32.mrb[90].mxu0  ;;  %v13219_v47 = vpop.f32.mrb[87].mxu1 }
 0x27e   : > { %v13277_v25 = vpop.f32.mrb[91].mxu0  ;;  %v3007_v12 = vadd.f32 %v13217_v14, %v16587_v37  ;;  %v13220_v6 = vadd.f32 %v13219_v47, %v13218_v63 }
 0x27f   : > { %v13278_v24 = vadd.f32 %v13277_v25, %v13276_v19  ;;  %v16629_v26 = vadd.f32 %v13275_v44, %v2999_v15 }
 0x280   : > { %v3010_v13 = vadd.f32 %v13220_v6, %v16590_v4 }
 0x281   : > { %v16632_v22 = vadd.f32 %v13278_v24, %v3002_v1 }
 0x282   : > { %v13221_v53 = vpop.f32.mrb[88].mxu1 }
 0x283   : > { %v13279_v50 = vpop.f32.mrb[92].mxu0  ;;  %v13222_v8 = vpop.f32.mrb[89].mxu1 }
 0x284   : > { %v13280_v35 = vpop.f32.mrb[93].mxu0  ;;  %v13223_v2 = vadd.f32 %v13222_v8, %v13221_v53  ;;  %v13224_v33 = vpop.f32.mrb[90].mxu1 }
 0x285   : > { %v13281_v16 = vadd.f32 %v13280_v35, %v13279_v50  ;;  %v13282_v34 = vpop.f32.mrb[94].mxu0  ;;  %v13225_v9 = vpop.f32.mrb[91].mxu1 }
 0x286   : > { %v13283_v38 = vpop.f32.mrb[95].mxu0  ;;  %v3015_v37 = vadd.f32 %v13223_v2, %v16593_v23  ;;  %v13226_v3 = vadd.f32 %v13225_v9, %v13224_v33 }
 0x287   : > { %v13284_v46 = vadd.f32 %v13283_v38, %v13282_v34  ;;  %v16635_v36 = vadd.f32 %v13281_v16, %v3007_v12 }
 0x288   : > { %v3018_v4 = vadd.f32 %v13226_v3, %v16596_v52 }
 0x289   : > { %v16638_v41 = vadd.f32 %v13284_v46, %v3010_v13 }
 0x28a   : > { %v13227_v18 = vpop.f32.mrb[92].mxu1 }
 0x28b   : > { %v13285_v20 = vpop.f32.mrb[96].mxu0  ;;  %v13228_v11 = vpop.f32.mrb[93].mxu1 }
 0x28c   : > { %v13286_v42 = vpop.f32.mrb[97].mxu0  ;;  %v13229_v62 = vadd.f32 %v13228_v11, %v13227_v18  ;;  %v13230_v30 = vpop.f32.mrb[94].mxu1 }
 0x28d   : > { %v13287_v29 = vadd.f32 %v13286_v42, %v13285_v20  ;;  %v13288_v31 = vpop.f32.mrb[98].mxu0  ;;  %v13231_v51 = vpop.f32.mrb[95].mxu1 }
 0x28e   : > { %v13289_v55 = vpop.f32.mrb[99].mxu0  ;;  %v3023_v23 = vadd.f32 %v13229_v62, %v16599_v0  ;;  %v13232_v59 = vadd.f32 %v13231_v51, %v13230_v30 }
 0x28f   : > { %v13290_v32 = vadd.f32 %v13289_v55, %v13288_v31  ;;  %v16641_v60 = vadd.f32 %v13287_v29, %v3015_v37 }
 0x290   : > { %v3026_v52 = vadd.f32 %v13232_v59, %v16602_v58  ;;  %v15021_v58 = vld [vmem:[%s19345_s4] sm:$0xff]  }
 0x291   : > { %v16644_v61 = vadd.f32 %v13290_v32, %v3018_v4  ;;  %13933 = vmatprep.mubr.bf16.mxu0 %v15021_v58 }
 0x292   : > { %v13313_v43 = vpop.f32.mrb[96].mxu1 }
 0x293   : > { %v13291_v17 = vpop.f32.mrb[100].mxu0  ;;  %v13314_v7 = vpop.f32.mrb[97].mxu1 }
 0x294   : > { %v13292_v15 = vpop.f32.mrb[101].mxu0  ;;  %v13315_v1 = vadd.f32 %v13314_v7, %v13313_v43  ;;  %v13316_v57 = vpop.f32.mrb[98].mxu1 }
 0x295   : > { %v13293_v54 = vadd.f32 %v13292_v15, %v13291_v17  ;;  %v13294_v10 = vpop.f32.mrb[102].mxu0  ;;  %v13317_v21 = vpop.f32.mrb[99].mxu1 }
 0x296   : > { %v13295_v48 = vpop.f32.mrb[103].mxu0  ;;  %v3161_v0 = vadd.f32 %v13315_v1, %v16605_v5  ;;  %v13318_v44 = vadd.f32 %v13317_v21, %v13316_v57 }
 0x297   : > { %v13296_v14 = vadd.f32 %v13295_v48, %v13294_v10  ;;  %v16647_v63 = vadd.f32 %v13293_v54, %v3023_v23 }
 0x298   : > { %v3164_v19 = vadd.f32 %v13318_v44, %v16608_v39 }
 0x299   : > { %v16653_v47 = vadd.f32 %v13296_v14, %v3026_v52 }
 0x29a   : > { %v13319_v25 = vpop.f32.mrb[100].mxu1 }
 0x29b   : > { %v13377_v12 = vpop.f32.mrb[104].mxu0  ;;  %v13320_v6 = vpop.f32.mrb[101].mxu1 }
 0x29c   : > { %v13378_v24 = vpop.f32.mrb[105].mxu0  ;;  %v13321_v13 = vadd.f32 %v13320_v6, %v13319_v25  ;;  %v13322_v5 = vpop.f32.mrb[102].mxu1 }
 0x29d   : > { %v13379_v53 = vadd.f32 %v13378_v24, %v13377_v12  ;;  %v13380_v50 = vpop.f32.mrb[106].mxu0  ;;  %v13323_v8 = vpop.f32.mrb[103].mxu1 }
 0x29e   : > { %v13381_v35 = vpop.f32.mrb[107].mxu0  ;;  %v3169_v2 = vadd.f32 %v13321_v13, %v16611_v27  ;;  %v13324_v16 = vadd.f32 %v13323_v8, %v13322_v5 }
 0x29f   : > { %v13382_v33 = vadd.f32 %v13381_v35, %v13380_v50  ;;  %v16656_v34 = vadd.f32 %v13379_v53, %v3161_v0 }
 0x2a0   : > { %v3172_v39 = vadd.f32 %v13324_v16, %v16614_v28 }
 0x2a1   : > { %v16659_v9 = vadd.f32 %v13382_v33, %v3164_v19 }
 0x2a2   : > { %v13325_v38 = vpop.f32.mrb[104].mxu1 }
 0x2a3   : > { %v13383_v37 = vpop.f32.mrb[108].mxu0  ;;  %v13326_v3 = vpop.f32.mrb[105].mxu1 }
 0x2a4   : > { %v13384_v46 = vpop.f32.mrb[109].mxu0  ;;  %v13327_v4 = vadd.f32 %v13326_v3, %v13325_v38  ;;  %v13328_v20 = vpop.f32.mrb[106].mxu1 }
 0x2a5   : > { %v13385_v18 = vadd.f32 %v13384_v46, %v13383_v37  ;;  %v13386_v11 = vpop.f32.mrb[110].mxu0  ;;  %v13329_v42 = vpop.f32.mrb[107].mxu1 }
 0x2a6   : > { %v13387_v62 = vpop.f32.mrb[111].mxu0  ;;  %v3177_v27 = vadd.f32 %v13327_v4, %v16617_v49  ;;  %v13330_v29 = vadd.f32 %v13329_v42, %v13328_v20 }
 0x2a7   : > { %v13388_v30 = vadd.f32 %v13387_v62, %v13386_v11  ;;  %v16662_v31 = vadd.f32 %v13385_v18, %v3169_v2 }
 0x2a8   : > { %v3180_v28 = vadd.f32 %v13330_v29, %v16620_v56 }
 0x2a9   : > { %v16665_v51 = vadd.f32 %v13388_v30, %v3172_v39 }
 0x2aa   : > { %v13331_v55 = vpop.f32.mrb[108].mxu1 }
 0x2ab   : > { %v13389_v23 = vpop.f32.mrb[112].mxu0  ;;  %v13332_v59 = vpop.f32.mrb[109].mxu1 }
 0x2ac   : > { %v13390_v32 = vpop.f32.mrb[113].mxu0  ;;  %v13333_v52 = vadd.f32 %v13332_v59, %v13331_v55  ;;  %v13334_v43 = vpop.f32.mrb[110].mxu1 }
 0x2ad   : > { %v13391_v17 = vadd.f32 %v13390_v32, %v13389_v23  ;;  %v13392_v15 = vpop.f32.mrb[114].mxu0  ;;  %v13335_v7 = vpop.f32.mrb[111].mxu1 }
 0x2ae   : > { %v13393_v54 = vpop.f32.mrb[115].mxu0  ;;  %v3185_v49 = vadd.f32 %v13333_v52, %v16623_v40  ;;  %v13336_v1 = vadd.f32 %v13335_v7, %v13334_v43 }
 0x2af   : > { %v13394_v10 = vadd.f32 %v13393_v54, %v13392_v15  ;;  %v16668_v57 = vadd.f32 %v13391_v17, %v3177_v27 }
 0x2b0   : > { %v3188_v56 = vadd.f32 %v13336_v1, %v16626_v45 }
 0x2b1   : > { %v16671_v48 = vadd.f32 %v13394_v10, %v3180_v28 }
 0x2b2   : > { %v13337_v21 = vpop.f32.mrb[112].mxu1 }
 0x2b3   : > { %v13395_v0 = vpop.f32.mrb[116].mxu0  ;;  %v13338_v14 = vpop.f32.mrb[113].mxu1 }
 0x2b4   : > { %v13396_v44 = vpop.f32.mrb[117].mxu0  ;;  %v13339_v58 = vadd.f32 %v13338_v14, %v13337_v21  ;;  %v13340_v25 = vpop.f32.mrb[114].mxu1 }
 0x2b5   : > { %v13397_v19 = vadd.f32 %v13396_v44, %v13395_v0  ;;  %v13398_v12 = vpop.f32.mrb[118].mxu0  ;;  %v13341_v6 = vpop.f32.mrb[115].mxu1 }
 0x2b6   : > { %v13399_v24 = vpop.f32.mrb[119].mxu0  ;;  %v3193_v40 = vadd.f32 %v13339_v58, %v16629_v26  ;;  %v13342_v13 = vadd.f32 %v13341_v6, %v13340_v25 }
 0x2b7   : > { %v13400_v53 = vadd.f32 %v13399_v24, %v13398_v12  ;;  %v16674_v5 = vadd.f32 %v13397_v19, %v3185_v49 }
 0x2b8   : > { %v3196_v45 = vadd.f32 %v13342_v13, %v16632_v22 }
 0x2b9   : > { %v16677_v50 = vadd.f32 %v13400_v53, %v3188_v56  ;;  %v19360_v53 = vmov 0  }
 0x2ba   : > { %v13343_v8 = vpop.f32.mrb[116].mxu1  ;;  %14017 = vmatprep.subr.bf16.mxu1 %v19360_v53 }
 0x2bb   : > { %v13401_v35 = vpop.f32.mrb[120].mxu0  ;;  %v13344_v2 = vpop.f32.mrb[117].mxu1 }
 0x2bc   : > { %v13402_v16 = vpop.f32.mrb[121].mxu0  ;;  %v13345_v33 = vadd.f32 %v13344_v2, %v13343_v8  ;;  %v13346_v38 = vpop.f32.mrb[118].mxu1 }
 0x2bd   : > { %v13403_v39 = vadd.f32 %v13402_v16, %v13401_v35  ;;  %v13404_v37 = vpop.f32.mrb[122].mxu0  ;;  %v13347_v3 = vpop.f32.mrb[119].mxu1 }
 0x2be   : > { %v13405_v46 = vpop.f32.mrb[123].mxu0  ;;  %v3201_v26 = vadd.f32 %v13345_v33, %v16635_v36  ;;  %v13348_v4 = vadd.f32 %v13347_v3, %v13346_v38  ;;  %v15046_v33 = vld [vmem:[%s19347_s6 + $0x180] sm:$0xff]   ;;  %v15048_v3 = vld [vmem:[%s19347_s6 + $0x188] sm:$0xff]  }
 0x2bf   : > { %v13406_v18 = vadd.f32 %v13405_v46, %v13404_v37  ;;  %v16680_v20 = vadd.f32 %v13403_v39, %v3193_v40  ;;  %14033 = vmatpush1.bf16.msra.mxu1 %v15046_v33 }
 0x2c0   : > { %v3204_v22 = vadd.f32 %v13348_v4, %v16638_v41  ;;  %14018 = vmatprep.subr.bf16.mxu1 %v19360_v53 }
 0x2c1   : > { %v16683_v11 = vadd.f32 %v13406_v18, %v3196_v45 }
 0x2c2   : > { %v13349_v42 = vpop.f32.mrb[120].mxu1 }
 0x2c3   : > { %v13407_v62 = vpop.f32.mrb[124].mxu0  ;;  %v13350_v27 = vpop.f32.mrb[121].mxu1  ;;  %14034 = vmatpush1.bf16.msra.mxu1 %v15048_v3 }
 0x2c4   : > { %v13408_v29 = vpop.f32.mrb[125].mxu0  ;;  %v13351_v30 = vadd.f32 %v13350_v27, %v13349_v42  ;;  %v13352_v55 = vpop.f32.mrb[122].mxu1  ;;  %14019 = vmatprep.subr.bf16.mxu1 %v19360_v53 }
 0x2c5   : > { %v13409_v28 = vadd.f32 %v13408_v29, %v13407_v62  ;;  %v13410_v23 = vpop.f32.mrb[126].mxu0  ;;  %v13353_v59 = vpop.f32.mrb[123].mxu1 }
 0x2c6   : > { %v13411_v32 = vpop.f32.mrb[127].mxu0  ;;  %v3209_v36 = vadd.f32 %v13351_v30, %v16641_v60  ;;  %v13354_v52 = vadd.f32 %v13353_v59, %v13352_v55  ;;  %v15052_v55 = vld [vmem:[%s19347_s6 + $0x198] sm:$0xff]  }
 0x2c7   : > { %v13412_v17 = vadd.f32 %v13411_v32, %v13410_v23  ;;  %v16686_v43 = vadd.f32 %v13409_v28, %v3201_v26 }
 0x2c8   : > { %v3212_v41 = vadd.f32 %v13354_v52, %v16644_v61 }
 0x2c9   : > { %v16689_v15 = vadd.f32 %v13412_v17, %v3204_v22 }
 0x2ca   : > { %v13355_v7 = vpop.f32.mrb[124].mxu1 }
 0x2cb   : > { %v13413_v54 = vpop.f32.mrb[128].mxu0  ;;  %v13356_v49 = vpop.f32.mrb[125].mxu1 }
 0x2cc   : > { %v13414_v1 = vpop.f32.mrb[129].mxu0  ;;  %v13357_v10 = vadd.f32 %v13356_v49, %v13355_v7  ;;  %v13358_v21 = vpop.f32.mrb[126].mxu1 }
 0x2cd   : > { %v13415_v56 = vadd.f32 %v13414_v1, %v13413_v54  ;;  %v13416_v0 = vpop.f32.mrb[130].mxu0  ;;  %v13359_v14 = vpop.f32.mrb[127].mxu1  ;;  %v15056_v1 = vld [vmem:[%s19347_s6 + $0x1a8] sm:$0xff]  }
 0x2ce   : > { %v13417_v44 = vpop.f32.mrb[131].mxu0  ;;  %v3217_v60 = vadd.f32 %v13357_v10, %v16647_v63  ;;  %v13360_v58 = vadd.f32 %v13359_v14, %v13358_v21 }
 0x2cf   : > { %v13418_v19 = vadd.f32 %v13417_v44, %v13416_v0  ;;  %v16692_v25 = vadd.f32 %v13415_v56, %v3209_v36 }
 0x2d0   : > { %v3220_v61 = vadd.f32 %v13360_v58, %v16653_v47 }
 0x2d1   : > { %v16695_v12 = vadd.f32 %v13418_v19, %v3212_v41 }
 0x2d2   : > { %v13441_v24 = vpop.f32.mrb[128].mxu1 }
 0x2d3   : > { %v13419_v6 = vpop.f32.mrb[132].mxu0  ;;  %v13442_v13 = vpop.f32.mrb[129].mxu1 }
 0x2d4   : > { %v13420_v40 = vpop.f32.mrb[133].mxu0  ;;  %v13443_v8 = vadd.f32 %v13442_v13, %v13441_v24  ;;  %v13444_v2 = vpop.f32.mrb[130].mxu1 }
 0x2d5   : > { %v13421_v45 = vadd.f32 %v13420_v40, %v13419_v6  ;;  %v13422_v35 = vpop.f32.mrb[134].mxu0  ;;  %v13445_v16 = vpop.f32.mrb[131].mxu1 }
 0x2d6   : > { %v13423_v63 = vpop.f32.mrb[135].mxu0  ;;  %v3355_v47 = vadd.f32 %v13443_v8, %v16656_v34  ;;  %v13446_v38 = vadd.f32 %v13445_v16, %v13444_v2  ;;  %v15050_v34 = vld [vmem:[%s19347_s6 + $0x190] sm:$0xff]  }
 0x2d7   : > { %v13424_v39 = vadd.f32 %v13423_v63, %v13422_v35  ;;  %v16702_v37 = vadd.f32 %v13421_v45, %v3217_v60  ;;  %14035 = vmatpush1.bf16.msra.mxu1 %v15050_v34 }
 0x2d8   : > { %v3358_v46 = vadd.f32 %v13446_v38, %v16659_v9  ;;  %v3417_v4 = vmax.f32 %v3355_v47, 0.0  ;;  %14020 = vmatprep.subr.bf16.mxu1 %v19360_v53 }
 0x2d9   : > { %v16708_v26 = vadd.f32 %v13424_v39, %v3220_v61 }
 0x2da   : > { %v3418_v18 = vmax.f32 %v3358_v46, 0.0  ;;  %v13447_v22 = vpop.f32.mrb[132].mxu1 }
 0x2db   : > { %v13448_v42 = vpop.f32.mrb[133].mxu1  ;;  %14036 = vmatpush1.bf16.msra.mxu1 %v15052_v55 }
 0x2dc   : > { %v13449_v62 = vadd.f32 %v13448_v42, %v13447_v22  ;;  %v13450_v27 = vpop.f32.mrb[134].mxu1  ;;  %v3433_v29 = vpack.c.bf16 %v3418_v18, %v3417_v4  ;;  %14021 = vmatprep.subr.bf16.mxu1 %v19360_v53 }
 0x2dd   : > { %v13451_v30 = vpop.f32.mrb[135].mxu1 }
 0x2de   : > { %v3363_v9 = vadd.f32 %v13449_v62, %v16662_v31  ;;  %v13452_v28 = vadd.f32 %v13451_v30, %v13450_v27  ;;  %13917 = vmatprep.subr.bf16.mxu0 %v3433_v29  ;;  %v15054_v31 = vld [vmem:[%s19347_s6 + $0x1a0] sm:$0xff]  }
 0x2df   : > { %13918 = vmatpush3.bf16.msra.mxu0 %v3433_v29  ;;  %14037 = vmatpush1.bf16.msra.mxu1 %v15054_v31 }
 0x2e0   : > { %v3366_v23 = vadd.f32 %v13452_v28, %v16665_v51  ;;  %v3419_v59 = vmax.f32 %v3363_v9, 0.0  ;;  %14022 = vmatprep.subr.bf16.mxu1 %v19360_v53 }
 0x2e2   : > { %v3420_v32 = vmax.f32 %v3366_v23, 0.0  ;;  %v13453_v36 = vpop.f32.mrb[136].mxu1 }
 0x2e3   : > { %v13454_v52 = vpop.f32.mrb[137].mxu1  ;;  %14038 = vmatpush1.bf16.msra.mxu1 %v15056_v1 }
 0x2e4   : > { %v13455_v17 = vadd.f32 %v13454_v52, %v13453_v36  ;;  %v13456_v41 = vpop.f32.mrb[138].mxu1  ;;  %v3434_v7 = vpack.c.bf16 %v3420_v32, %v3419_v59  ;;  %14023 = vmatprep.subr.bf16.mxu1 %v19360_v53 }
 0x2e5   : > { %v13457_v54 = vpop.f32.mrb[139].mxu1 }
 0x2e6   : > { %v3371_v49 = vadd.f32 %v13455_v17, %v16668_v57  ;;  %v13458_v51 = vadd.f32 %v13457_v54, %v13456_v41  ;;  %13919 = vmatprep.subr.bf16.mxu0 %v3434_v7  ;;  %v15058_v57 = vld [vmem:[%s19347_s6 + $0x1b0] sm:$0xff]  }
 0x2e7   : > { %13920 = vmatpush3.bf16.msra.mxu0 %v3434_v7  ;;  %14039 = vmatpush1.bf16.msra.mxu1 %v15058_v57  ;;  %v15026_v57 = vld [vmem:[%s19345_s4 + $0x28] sm:$0xff]  }
 0x2e8   : > { %v3374_v10 = vadd.f32 %v13458_v51, %v16671_v48  ;;  %v3421_v56 = vmax.f32 %v3371_v49, 0.0  ;;  %14024 = vmatprep.subr.bf16.mxu1 %v19360_v53 }
 0x2ea   : > { %v3422_v21 = vmax.f32 %v3374_v10, 0.0  ;;  %v13459_v0 = vpop.f32.mrb[140].mxu1  ;;  %v15023_v10 = vld [vmem:[%s19345_s4 + $0x10] sm:$0xff]  }
 0x2eb   : > { %v13460_v14 = vpop.f32.mrb[141].mxu1 }
 0x2ec   : > { %v13461_v44 = vadd.f32 %v13460_v14, %v13459_v0  ;;  %v13462_v60 = vpop.f32.mrb[142].mxu1  ;;  %v3435_v58 = vpack.c.bf16 %v3422_v21, %v3421_v56  ;;  %v15024_v56 = vld [vmem:[%s19345_s4 + $0x18] sm:$0xff]   ;;  %v15025_v21 = vld [vmem:[%s19345_s4 + $0x20] sm:$0xff]   ;;  %v15039_v0 = vld [vmem:[%s19347_s6 + $0x10] sm:$0xff]  }
 0x2ed   : > { %v13463_v19 = vpop.f32.mrb[143].mxu1  ;;  %v15040_v14 = vld [vmem:[%s19347_s6 + $0x18] sm:$0xff]  }
 0x2ee   : > { %v3379_v61 = vadd.f32 %v13461_v44, %v16674_v5  ;;  %v13464_v48 = vadd.f32 %v13463_v19, %v13462_v60  ;;  %13921 = vmatprep.subr.bf16.mxu0 %v3435_v58  ;;  %v15027_v44 = vld [vmem:[%s19345_s4 + $0x30] sm:$0xff]   ;;  %v15041_v60 = vld [vmem:[%s19347_s6 + $0x20] sm:$0xff]   ;;  %v15028_v19 = vld [vmem:[%s19345_s4 + $0x38] sm:$0xff]  }
 0x2ef   : > { %13922 = vmatpush3.bf16.msra.mxu0 %v3435_v58  ;;  %v15042_v58 = vld [vmem:[%s19347_s6 + $0x28] sm:$0xff]  }
 0x2f0   : > { %v3382_v6 = vadd.f32 %v13464_v48, %v16677_v50  ;;  %v3423_v24 = vmax.f32 %v3379_v61, 0.0  ;;  %v15029_v61 = vld [vmem:[%s19345_s4 + $0x40] sm:$0xff]   ;;  %v15043_v48 = vld [vmem:[%s19347_s6 + $0x30] sm:$0xff]  }
 0x2f2   : > { %v3424_v40 = vmax.f32 %v3382_v6, 0.0  ;;  %v13465_v13 = vpop.f32.mrb[144].mxu1  ;;  %v15044_v6 = vld [vmem:[%s19347_s6 + $0x38] sm:$0xff]  }
 0x2f3   : > { %v13466_v45 = vpop.f32.mrb[145].mxu1 }
 0x2f4   : > { %v13467_v8 = vadd.f32 %v13466_v45, %v13465_v13  ;;  %v13468_v35 = vpop.f32.mrb[146].mxu1  ;;  %v3436_v2 = vpack.c.bf16 %v3424_v40, %v3423_v24  ;;  %v15030_v24 = vld [vmem:[%s19345_s4 + $0x48] sm:$0xff]   ;;  %v15031_v40 = vld [vmem:[%s19345_s4 + $0x50] sm:$0xff]   ;;  %v15045_v13 = vld [vmem:[%s19347_s6 + $0x40] sm:$0xff]  }
 0x2f5   : > { %v13469_v63 = vpop.f32.mrb[147].mxu1  ;;  %v15047_v45 = vld [vmem:[%s19347_s6 + $0x48] sm:$0xff]  }
 0x2f6   : > { %v3387_v16 = vadd.f32 %v13467_v8, %v16680_v20  ;;  %v13470_v33 = vadd.f32 %v13469_v63, %v13468_v35  ;;  %13923 = vmatprep.subr.bf16.mxu0 %v3436_v2  ;;  %v15032_v8 = vld [vmem:[%s19345_s4 + $0x58] sm:$0xff]   ;;  %v15033_v35 = vld [vmem:[%s19345_s4 + $0x60] sm:$0xff]  }
 0x2f7   : > { %13924 = vmatpush3.bf16.msra.mxu0 %v3436_v2  ;;  %v15049_v2 = vld [vmem:[%s19347_s6 + $0x50] sm:$0xff]   ;;  %v15051_v63 = vld [vmem:[%s19347_s6 + $0x58] sm:$0xff]  }
 0x2f8   : > { %v3390_v5 = vadd.f32 %v13470_v33, %v16683_v11  ;;  %v3425_v47 = vmax.f32 %v3387_v16, 0.0  ;;  %v15034_v16 = vld [vmem:[%s19345_s4 + $0x68] sm:$0xff]   ;;  %v15035_v33 = vld [vmem:[%s19345_s4 + $0x70] sm:$0xff]  }
 0x2fa   : > { %v3426_v39 = vmax.f32 %v3390_v5, 0.0  ;;  %v13471_v50 = vpop.f32.mrb[148].mxu1  ;;  %v15053_v5 = vld [vmem:[%s19347_s6 + $0x60] sm:$0xff]  }
 0x2fb   : > { %v13472_v38 = vpop.f32.mrb[149].mxu1 }
 0x2fc   : > { %v13473_v3 = vadd.f32 %v13472_v38, %v13471_v50  ;;  %v13474_v46 = vpop.f32.mrb[150].mxu1  ;;  %v3437_v4 = vpack.c.bf16 %v3426_v39, %v3425_v47  ;;  %v15055_v47 = vld [vmem:[%s19347_s6 + $0x68] sm:$0xff]   ;;  %v15036_v39 = vld [vmem:[%s19345_s4 + $0x78] sm:$0xff]   ;;  %v15057_v50 = vld [vmem:[%s19347_s6 + $0x70] sm:$0xff]  }
 0x2fd   : > { %v13475_v18 = vpop.f32.mrb[151].mxu1  ;;  %v15059_v38 = vld [vmem:[%s19347_s6 + $0x78] sm:$0xff]  }
 0x2fe   : > { %v3395_v22 = vadd.f32 %v13473_v3, %v16686_v43  ;;  %v13476_v42 = vadd.f32 %v13475_v18, %v13474_v46  ;;  %13925 = vmatprep.subr.bf16.mxu0 %v3437_v4  ;;  %v15060_v3 = vld [vmem:[%s19347_s6 + $0x1b8] sm:$0xff]  }
 0x2ff   : > { %13926 = vmatpush3.bf16.msra.mxu0 %v3437_v4  ;;  %v4079_v46 = vld [vmem:[#allocation5 + $0x1] sm:$0xff]  ;;  %v4080_v4 = vld [vmem:[#allocation5 + $0x9] sm:$0xff]  ;;  %14040 = vmatpush1.bf16.msra.mxu1 %v15060_v3 }
 0x300   : > { %v3398_v20 = vadd.f32 %v13476_v42, %v16689_v15  ;;  %v3427_v34 = vmax.f32 %v3395_v22, 0.0  ;;  %v4127_v18 = vpack.c.bf16 %v4080_v4, %v4079_v46  ;;  %v16858_v22 = vld [vmem:[#allocation2] sm:$0xff]  ;;  %14025 = vmatprep.subr.bf16.mxu1 %v19360_v53 }
 0x301   : > { %v16862_v42 = vpack.c.bf16 %v16858_v22, %v16858_v22 }
 0x302   : > { %v3428_v62 = vmax.f32 %v3398_v20, 0.0  ;;  %v13477_v27 = vpop.f32.mrb[152].mxu1  ;;  %v15061_v20 = vld [vmem:[%s19347_s6 + $0x1c0] sm:$0xff]  }
 0x303   : > { %v13478_v29 = vpop.f32.mrb[153].mxu1  ;;  %14041 = vmatpush1.bf16.msra.mxu1 %v15061_v20 }
 0x304   : > { %v13479_v11 = vadd.f32 %v13478_v29, %v13477_v27  ;;  %v13480_v30 = vpop.f32.mrb[154].mxu1  ;;  %v3438_v9 = vpack.c.bf16 %v3428_v62, %v3427_v34  ;;  %14026 = vmatprep.subr.bf16.mxu1 %v19360_v53  ;;  %v15062_v34 = vld [vmem:[%s19347_s6 + $0x1c8] sm:$0xff]   ;;  %v15063_v62 = vld [vmem:[%s19347_s6 + $0x1d0] sm:$0xff]   ;;  %v15064_v27 = vld [vmem:[%s19347_s6 + $0x1d8] sm:$0xff]  }
 0x305   : > { %v13481_v28 = vpop.f32.mrb[155].mxu1  ;;  %v15065_v29 = vld [vmem:[%s19347_s6 + $0x1e0] sm:$0xff]  }
 0x306   : > { %v3403_v55 = vadd.f32 %v13479_v11, %v16692_v25  ;;  %v13482_v23 = vadd.f32 %v13481_v28, %v13480_v30  ;;  %13927 = vmatprep.subr.bf16.mxu0 %v3438_v9  ;;  %v15066_v11 = vld [vmem:[%s19347_s6 + $0x1e8] sm:$0xff]   ;;  %v15067_v30 = vld [vmem:[%s19347_s6 + $0x1f0] sm:$0xff]  }
 0x307   : > { %13928 = vmatpush3.bf16.msra.mxu0 %v3438_v9  ;;  %14042 = vmatpush1.bf16.msra.mxu1 %v15062_v34  ;;  %v15068_v9 = vld [vmem:[%s19347_s6 + $0x1f8] sm:$0xff]  }
 0x308   : > { %v3406_v43 = vadd.f32 %v13482_v23, %v16695_v12  ;;  %v3429_v59 = vmax.f32 %v3403_v55, 0.0  ;;  %v15022_v12 = vld [vmem:[%s19345_s4 + $0x8] sm:$0xff]   ;;  %14027 = vmatprep.subr.bf16.mxu1 %v19360_v53 }
 0x30a   : > { %v3430_v32 = vmax.f32 %v3406_v43, 0.0  ;;  %v13483_v36 = vpop.f32.mrb[156].mxu1 }
 0x30b   : > { %v13484_v52 = vpop.f32.mrb[157].mxu1  ;;  %14043 = vmatpush1.bf16.msra.mxu1 %v15063_v62 }
 0x30c   : > { %v13485_v15 = vadd.f32 %v13484_v52, %v13483_v36  ;;  %v13486_v31 = vpop.f32.mrb[158].mxu1  ;;  %v3439_v17 = vpack.c.bf16 %v3430_v32, %v3429_v59  ;;  %14028 = vmatprep.subr.bf16.mxu1 %v19360_v53  ;;  %v15082_v59 = vld [vmem:[%s19347_s6 + $0x80] sm:$0xff]   ;;  %v15083_v52 = vld [vmem:[%s19347_s6 + $0x88] sm:$0xff]  }
 0x30d   : > { %v13487_v41 = vpop.f32.mrb[159].mxu1  ;;  %v4081_v32 = vld [vmem:[#allocation5 + $0x11] sm:$0xff] }
 0x30e   : > { %v3411_v7 = vadd.f32 %v13485_v15, %v16702_v37  ;;  %v13488_v54 = vadd.f32 %v13487_v41, %v13486_v31  ;;  %13929 = vmatprep.subr.bf16.mxu0 %v3439_v17  ;;  %v15037_v37 = vld [vmem:[%s19347_s6] sm:$0xff]  }
 0x30f   : > { %13930 = vmatpush3.bf16.msra.mxu0 %v3439_v17  ;;  %14044 = vmatpush1.bf16.msra.mxu1 %v15064_v27  ;;  %v4084_v41 = vld [vmem:[#allocation5 + $0x29] sm:$0xff] }
 0x310   : > { %v3414_v25 = vadd.f32 %v13488_v54, %v16708_v26  ;;  %v3431_v49 = vmax.f32 %v3411_v7, 0.0  ;;  %v15038_v26 = vld [vmem:[%s19347_s6 + $0x8] sm:$0xff]   ;;  %14029 = vmatprep.subr.bf16.mxu1 %v19360_v53 }
 0x312   : > { %v3432_v51 = vmax.f32 %v3414_v25, 0.0 }
 0x313   : > { %14045 = vmatpush1.bf16.msra.mxu1 %v15065_v29 }
 0x314   : > { %v3440_v1 = vpack.c.bf16 %v3432_v51, %v3431_v49  ;;  %14030 = vmatprep.subr.bf16.mxu1 %v19360_v53 }
 0x316   : > { %13931 = vmatprep.subr.bf16.mxu0 %v3440_v1 }
 0x317   : > { %13932 = vmatpush3.bf16.msra.mxu0 %v3440_v1  ;;  %14046 = vmatpush1.bf16.msra.mxu1 %v15066_v11 }
 0x318   : > { %7300 = vmatprep.subr.bf16.mxu0 %v19360_v53  ;;  %14031 = vmatprep.subr.bf16.mxu1 %v19360_v53 }
 0x31a   : > { %13934 = vmatmul.mubr.bf16.vlgmr.msra.gmra.mrb[136].mxu0 %v15022_v12  ;;  %v15085_v12 = vld [vmem:[%s19347_s6 + $0x90] sm:$0xff]  }
 0x31b   : > { %13937 = vmatprep.mubr.bf16.mxu0 %v15023_v10  ;;  %7301 = vmatpush1.bf16.msra.mxu0 %v15037_v37 }
 0x31c   : > { %7302 = vmatprep.subr.bf16.mxu0 %v19360_v53  ;;  %14047 = vmatpush1.bf16.msra.mxu1 %v15067_v30 }
 0x31d   : > { %14032 = vmatprep.subr.bf16.mxu1 %v19360_v53 }
 0x31f   : > { %7303 = vmatpush1.bf16.msra.mxu0 %v15038_v26 }
 0x320   : > { %7304 = vmatprep.subr.bf16.mxu0 %v19360_v53  ;;  %14048 = vmatpush1.bf16.msra.mxu1 %v15068_v9 }
 0x321   : > { %8200 = vmatprep.subr.bf16.mxu1 %v19360_v53 }
 0x322   : > { %13938 = vmatmul.mubr.bf16.gmra.mrb[140].mxu0 %v15024_v56  ;;  %v15086_v56 = vld [vmem:[%s19347_s6 + $0x98] sm:$0xff]  }
 0x323   : > { %13941 = vmatprep.mubr.bf16.mxu0 %v15025_v21  ;;  %7305 = vmatpush1.bf16.msra.mxu0 %v15039_v0 }
 0x324   : > { %7306 = vmatprep.subr.bf16.mxu0 %v19360_v53 }
 0x327   : > { %7307 = vmatpush1.bf16.msra.mxu0 %v15040_v14 }
 0x328   : > { %7308 = vmatprep.subr.bf16.mxu0 %v19360_v53 }
 0x32a   : > { %13942 = vmatmul.mubr.bf16.gmra.mrb[144].mxu0 %v15026_v57 }
 0x32b   : > { %13945 = vmatprep.mubr.bf16.mxu0 %v15027_v44  ;;  %7309 = vmatpush1.bf16.msra.mxu0 %v15041_v60 }
 0x32c   : > { %7310 = vmatprep.subr.bf16.mxu0 %v19360_v53 }
 0x32f   : > { %7311 = vmatpush1.bf16.msra.mxu0 %v15042_v58 }
 0x330   : > { %7312 = vmatprep.subr.bf16.mxu0 %v19360_v53 }
 0x332   : > { %13946 = vmatmul.mubr.bf16.gmra.mrb[148].mxu0 %v15028_v19  ;;  %v15088_v19 = vld [vmem:[%s19347_s6 + $0xa0] sm:$0xff]  }
 0x333   : > { %13949 = vmatprep.mubr.bf16.mxu0 %v15029_v61  ;;  %7313 = vmatpush1.bf16.msra.mxu0 %v15043_v48 }
 0x334   : > { %7314 = vmatprep.subr.bf16.mxu0 %v19360_v53 }
 0x337   : > { %7315 = vmatpush1.bf16.msra.mxu0 %v15044_v6  ;;  %v15089_v6 = vld [vmem:[%s19347_s6 + $0xa8] sm:$0xff]  }
 0x338   : > { %7316 = vmatprep.subr.bf16.mxu0 %v19360_v53 }
 0x33a   : > { %13950 = vmatmul.mubr.bf16.gmra.mrb[152].mxu0 %v15030_v24 }
 0x33b   : > { %13953 = vmatprep.mubr.bf16.mxu0 %v15031_v40  ;;  %7317 = vmatpush1.bf16.msra.mxu0 %v15045_v13  ;;  %v4087_v40 = vld [vmem:[#allocation5 + $0x41] sm:$0xff] }
 0x33c   : > { %7318 = vmatprep.subr.bf16.mxu0 %v19360_v53 }
 0x33f   : > { %7319 = vmatpush1.bf16.msra.mxu0 %v15047_v45 }
 0x340   : > { %7320 = vmatprep.subr.bf16.mxu0 %v19360_v53 }
 0x342   : > { %13954 = vmatmul.mubr.bf16.gmra.mrb[156].mxu0 %v15032_v8 }
 0x343   : > { %13957 = vmatprep.mubr.bf16.mxu0 %v15033_v35  ;;  %7321 = vmatpush1.bf16.msra.mxu0 %v15049_v2 }
 0x344   : > { %7322 = vmatprep.subr.bf16.mxu0 %v19360_v53 }
 0x347   : > { %7323 = vmatpush1.bf16.msra.mxu0 %v15051_v63 }
 0x348   : > { %7324 = vmatprep.subr.bf16.mxu0 %v19360_v53 }
 0x34a   : > { %13958 = vmatmul.mubr.bf16.gmra.mrb[160].mxu0 %v15034_v16  ;;  %v12827_v16 = vld [vmem:[%s16940_s16] sm:$0xff]  }
 0x34b   : > { %13961 = vmatprep.mubr.bf16.mxu0 %v15035_v33  ;;  %7325 = vmatpush1.bf16.msra.mxu0 %v15053_v5  ;;  %v15091_v33 = vld [vmem:[%s19347_s6 + $0xb0] sm:$0xff]   ;;  %v12828_v5 = vunpack.c.l.bf16 %v12827_v16 }
 0x34c   : > { %7326 = vmatprep.subr.bf16.mxu0 %v19360_v53 }
 0x34d   : > { %3876 = vst.msk [vmem:[#allocation6 + $0x19] sm:$0xff] %vm549_vm0, %v12828_v5 }
 0x34f   : > { %7327 = vmatpush1.bf16.msra.mxu0 %v15055_v47 }
 0x350   : > { %7328 = vmatprep.subr.bf16.mxu0 %v19360_v53 }
 0x352   : > { %13962 = vmatmul.mubr.bf16.gmra.mrb[164].mxu0 %v15036_v39 }
 0x353   : > { %7329 = vmatpush1.bf16.msra.mxu0 %v15057_v50  ;;  %7332 = vmatprep.mubr.bf16.mxu0 %v4127_v18  ;;  %v4090_v50 = vld [vmem:[#allocation5 + $0x59] sm:$0xff] }
 0x354   : > { %7330 = vmatprep.subr.bf16.mxu0 %v19360_v53 }
 0x357   : > { %7331 = vmatpush1.bf16.msra.mxu0 %v15059_v38  ;;  %v15092_v38 = vld [vmem:[%s19347_s6 + $0xb8] sm:$0xff]  }
 0x358   : > { %7525 = vmatprep.subr.bf16.mxu0 %v19360_v53 }
 0x35a   : > { %7333 = vmatmul.mubr.bf16.vlgmr.msra.gmra.mrb[168].mxu0 %v16862_v42 }
 0x35b   : > { %7526 = vmatpush1.bf16.msra.mxu0 %v15082_v59  ;;  %v4675_v59 = vld [vmem:[#allocation5 + $0xd1] sm:$0xff] }
 0x35c   : > { %7527 = vmatprep.subr.bf16.mxu0 %v19360_v53 }
 0x35f   : > { %7528 = vmatpush1.bf16.msra.mxu0 %v15083_v52 }
 0x360   : > { %7529 = vmatprep.subr.bf16.mxu0 %v19360_v53 }
 0x363   : > { %7530 = vmatpush1.bf16.msra.mxu0 %v15085_v12 }
 0x364   : > { %7531 = vmatprep.subr.bf16.mxu0 %v19360_v53 }
 0x367   : > { %7532 = vmatpush1.bf16.msra.mxu0 %v15086_v56 }
 0x368   : > { %7533 = vmatprep.subr.bf16.mxu0 %v19360_v53 }
 0x36b   : > { %7534 = vmatpush1.bf16.msra.mxu0 %v15088_v19 }
 0x36c   : > { %7535 = vmatprep.subr.bf16.mxu0 %v19360_v53 }
 0x36f   : > { %7536 = vmatpush1.bf16.msra.mxu0 %v15089_v6  ;;  %v15096_v6 = vld [vmem:[%s19347_s6 + $0xd0] sm:$0xff]  }
 0x370   : > { %7537 = vmatprep.subr.bf16.mxu0 %v19360_v53 }
 0x373   : > { %7538 = vmatpush1.bf16.msra.mxu0 %v15091_v33  ;;  %v15073_v33 = vld [vmem:[%s19347_s6 + $0x220] sm:$0xff]  }
 0x374   : > { %7539 = vmatprep.subr.bf16.mxu0 %v19360_v53 }
 0x377   : > { %7540 = vmatpush1.bf16.msra.mxu0 %v15092_v38 }
 0x378   : > { %7541 = vmatprep.subr.bf16.mxu0 %v19360_v53 }
 0x3ed   : > { %v13935_v28 = vpop.f32.mrb[136].mxu0 }
 0x3ee   : > { %3842 = vst.msk [vmem:[#allocation5 + $0x31] sm:$0xff] %vm627_vm1, %v13935_v28  ;;  %v3713_v55 = vpop.f32.mrb[137].mxu0  ;;  %v15069_v28 = vld [vmem:[%s19347_s6 + $0x200] sm:$0xff]  }
 0x3ef   : > { %3840 = vst.msk [vmem:[#allocation5 + $0x19] sm:$0xff] %vm627_vm1, %v3713_v55  ;;  %v13936_v23 = vpop.f32.mrb[138].mxu0 }
 0x3f0   : > { %3843 = vst.msk [vmem:[#allocation5 + $0x39] sm:$0xff] %vm627_vm1, %v13936_v23  ;;  %v3716_v43 = vpop.f32.mrb[139].mxu0  ;;  %v15094_v23 = vld [vmem:[%s19347_s6 + $0xc0] sm:$0xff]  }
 0x3f1   : > { %3841 = vst.msk [vmem:[#allocation5 + $0x21] sm:$0xff] %vm627_vm1, %v3716_v43  ;;  %v12829_v43 = vunpack.c.h.bf16 %v12827_v16  ;;  %7542 = vmatpush1.bf16.msra.mxu0 %v15094_v23 }
 0x3f2   : > { %7543 = vmatprep.subr.bf16.mxu0 %v19360_v53 }
 0x3f3   : > { %3877 = vst.msk [vmem:[#allocation6 + $0x21] sm:$0xff] %vm549_vm0, %v12829_v43 }
 0x3f5   : > { %v13939_v36 = vpop.f32.mrb[140].mxu0  ;;  %v4085_v60 = vld [vmem:[#allocation5 + $0x31] sm:$0xff] }
 0x3f6   : > { %3846 = vst.msk [vmem:[#allocation5 + $0x61] sm:$0xff] %vm627_vm1, %v13939_v36  ;;  %v3729_v15 = vpop.f32.mrb[141].mxu0  ;;  %v4082_v31 = vld [vmem:[#allocation5 + $0x19] sm:$0xff]  ;;  %v3989_v8 = vld [vmem:[#allocation5 + $0x30] sm:$0xff] }
 0x3f7   : > { %v3986_v17 = vld [vmem:[#allocation5 + $0x18] sm:$0xff]  ;;  %3844 = vst.msk [vmem:[#allocation5 + $0x49] sm:$0xff] %vm627_vm1, %v3729_v15  ;;  %v13940_v7 = vpop.f32.mrb[142].mxu0  ;;  %v4128_v54 = vpack.c.bf16 %v4082_v31, %v4081_v32  ;;  %v3991_v46 = vld [vmem:[#allocation5 + $0x40] sm:$0xff]  ;;  %v4678_v31 = vld [vmem:[#allocation5 + $0xe9] sm:$0xff] }
 0x3f8   : > { %v4032_v25 = vpack.c.bf16 %v3986_v17, %v16858_v22  ;;  %3847 = vst.msk [vmem:[#allocation5 + $0x69] sm:$0xff] %vm627_vm1, %v13940_v7  ;;  %v3732_v49 = vpop.f32.mrb[143].mxu0  ;;  %v4083_v51 = vld [vmem:[#allocation5 + $0x21] sm:$0xff]  ;;  %v4086_v0 = vld [vmem:[#allocation5 + $0x39] sm:$0xff] }
 0x3f9   : > { %7340 = vmatprep.mubr.bf16.mxu0 %v4128_v54  ;;  %3845 = vst.msk [vmem:[#allocation5 + $0x51] sm:$0xff] %vm627_vm1, %v3732_v49  ;;  %v4129_v1 = vpack.c.bf16 %v4084_v41, %v4083_v51  ;;  %v3987_v37 = vld [vmem:[#allocation5 + $0x20] sm:$0xff]  ;;  %v3988_v26 = vld [vmem:[#allocation5 + $0x28] sm:$0xff]  ;;  %v4130_v58 = vpack.c.bf16 %v4086_v0, %v4085_v60  ;;  %v3990_v48 = vld [vmem:[#allocation5 + $0x38] sm:$0xff] }
 0x3fa   : > { %7341 = vmatmul.mubr.bf16.gmra.mrb[172].mxu0 %v4032_v25  ;;  %v4033_v44 = vpack.c.bf16 %v3988_v26, %v3987_v37  ;;  %v4034_v2 = vpack.c.bf16 %v3990_v48, %v3989_v8  ;;  %v15070_v32 = vld [vmem:[%s19347_s6 + $0x208] sm:$0xff]   ;;  %v15071_v49 = vld [vmem:[%s19347_s6 + $0x210] sm:$0xff]  }
 0x3fb   : > { %7348 = vmatprep.mubr.bf16.mxu0 %v4129_v1 }
 0x3fd   : > { %v13943_v10 = vpop.f32.mrb[144].mxu0  ;;  %v4091_v12 = vld [vmem:[#allocation5 + $0x61] sm:$0xff] }
 0x3fe   : > { %3850 = vst.msk [vmem:[#allocation5 + $0x91] sm:$0xff] %vm627_vm1, %v13943_v10  ;;  %v3745_v21 = vpop.f32.mrb[145].mxu0  ;;  %v4088_v13 = vld [vmem:[#allocation5 + $0x49] sm:$0xff]  ;;  %v3995_v8 = vld [vmem:[#allocation5 + $0x60] sm:$0xff] }
 0x3ff   : > { %3848 = vst.msk [vmem:[#allocation5 + $0x79] sm:$0xff] %vm627_vm1, %v3745_v21  ;;  %v13944_v14 = vpop.f32.mrb[146].mxu0  ;;  %v4131_v63 = vpack.c.bf16 %v4088_v13, %v4087_v40  ;;  %v3992_v39 = vld [vmem:[#allocation5 + $0x48] sm:$0xff]  ;;  %v3997_v43 = vld [vmem:[#allocation5 + $0x70] sm:$0xff] }
 0x400   : > { %3851 = vst.msk [vmem:[#allocation5 + $0x99] sm:$0xff] %vm627_vm1, %v13944_v14  ;;  %v3748_v57 = vpop.f32.mrb[147].mxu0  ;;  %v4089_v18 = vld [vmem:[#allocation5 + $0x51] sm:$0xff]  ;;  %v4035_v29 = vpack.c.bf16 %v3992_v39, %v3991_v46  ;;  %v4092_v7 = vld [vmem:[#allocation5 + $0x69] sm:$0xff] }
 0x401   : > { %3849 = vst.msk [vmem:[#allocation5 + $0x81] sm:$0xff] %vm627_vm1, %v3748_v57  ;;  %v4132_v55 = vpack.c.bf16 %v4090_v50, %v4089_v18  ;;  %v3993_v52 = vld [vmem:[#allocation5 + $0x50] sm:$0xff]  ;;  %v3994_v15 = vld [vmem:[#allocation5 + $0x58] sm:$0xff]  ;;  %v4133_v56 = vpack.c.bf16 %v4092_v7, %v4091_v12  ;;  %v3996_v19 = vld [vmem:[#allocation5 + $0x68] sm:$0xff] }
 0x402   : > { %7349 = vmatmul.mubr.bf16.gmra.mrb[176].mxu0 %v4033_v44  ;;  %v4036_v1 = vpack.c.bf16 %v3994_v15, %v3993_v52  ;;  %v15095_v14 = vld [vmem:[%s19347_s6 + $0xc8] sm:$0xff]   ;;  %v4037_v16 = vpack.c.bf16 %v3996_v19, %v3995_v8  ;;  %v15098_v50 = vld [vmem:[%s19347_s6 + $0xd8] sm:$0xff]   ;;  %v15075_v52 = vld [vmem:[%s19347_s6 + $0x230] sm:$0xff]  }
 0x403   : > { %7356 = vmatprep.mubr.bf16.mxu0 %v4130_v58  ;;  %v12893_v57 = vld [vmem:[%s16940_s16 + $0x8] sm:$0xff]   ;;  %v15072_v58 = vld [vmem:[%s19347_s6 + $0x218] sm:$0xff]   ;;  %7544 = vmatpush1.bf16.msra.mxu0 %v15095_v14 }
 0x404   : > { %v12832_v44 = vunpack.c.l.bf16 %v12893_v57  ;;  %v12833_v60 = vunpack.c.h.bf16 %v12893_v57  ;;  %7545 = vmatprep.subr.bf16.mxu0 %v19360_v53  ;;  %v4681_v18 = vld [vmem:[#allocation5 + $0x101] sm:$0xff] }
 0x405   : > { %v13947_v61 = vpop.f32.mrb[148].mxu0  ;;  %v4097_v14 = vld [vmem:[#allocation5 + $0x91] sm:$0xff]  ;;  %v15103_v19 = vld [vmem:[%s19347_s6 + $0xf8] sm:$0xff]  }
 0x406   : > { %3854 = vst.msk [vmem:[#allocation5 + $0xc1] sm:$0xff] %vm627_vm1, %v13947_v61  ;;  %v3761_v24 = vpop.f32.mrb[149].mxu0  ;;  %v4093_v61 = vld [vmem:[#allocation5 + $0x71] sm:$0xff] }
 0x407   : > { %3852 = vst.msk [vmem:[#allocation5 + $0xa9] sm:$0xff] %vm627_vm1, %v3761_v24  ;;  %v13948_v45 = vpop.f32.mrb[150].mxu0  ;;  %v4094_v24 = vld [vmem:[#allocation5 + $0x79] sm:$0xff]  ;;  %7546 = vmatpush1.bf16.msra.mxu0 %v15096_v6 }
 0x408   : > { %3855 = vst.msk [vmem:[#allocation5 + $0xc9] sm:$0xff] %vm627_vm1, %v13948_v45  ;;  %v3764_v35 = vpop.f32.mrb[151].mxu0  ;;  %7547 = vmatprep.subr.bf16.mxu0 %v19360_v53  ;;  %v4098_v12 = vld [vmem:[#allocation5 + $0x99] sm:$0xff] }
 0x409   : > { %3853 = vst.msk [vmem:[#allocation5 + $0xb1] sm:$0xff] %vm627_vm1, %v3764_v35  ;;  %v15078_v6 = vld [vmem:[%s19347_s6 + $0x248] sm:$0xff]  }
 0x40a   : > { %7357 = vmatmul.mubr.bf16.gmra.mrb[180].mxu0 %v4034_v2  ;;  %3883 = vst.msk [vmem:[#allocation6 + $0x31] sm:$0xff] %vm549_vm0, %v12832_v44  ;;  %3884 = vst.msk [vmem:[#allocation6 + $0x39] sm:$0xff] %vm549_vm0, %v12833_v60  ;;  %v15077_v44 = vld [vmem:[%s19347_s6 + $0x240] sm:$0xff]   ;;  %v4136_v60 = vpack.c.bf16 %v4098_v12, %v4097_v14 }
 0x40b   : > { %7364 = vmatprep.mubr.bf16.mxu0 %v4131_v63  ;;  %7548 = vmatpush1.bf16.msra.mxu0 %v15098_v50  ;;  %v17132_v14 = vld [vmem:[#allocation5 + $0x89] sm:$0xff] }
 0x40c   : > { %7549 = vmatprep.subr.bf16.mxu0 %v19360_v53 }
 0x40d   : > { %v13951_v47 = vpop.f32.mrb[152].mxu0  ;;  %v4673_v4 = vld [vmem:[#allocation5 + $0xc1] sm:$0xff] }
 0x40e   : > { %3858 = vst.msk [vmem:[#allocation5 + $0xf1] sm:$0xff] %vm627_vm1, %v13951_v47  ;;  %v3777_v3 = vpop.f32.mrb[153].mxu0  ;;  %v4577_v62 = vld [vmem:[#allocation5 + $0xc0] sm:$0xff]  ;;  %v4134_v47 = vpack.c.bf16 %v4094_v24, %v4093_v61  ;;  %v4100_v8 = vld [vmem:[#allocation5 + $0xa9] sm:$0xff] }
 0x40f   : > { %3856 = vst.msk [vmem:[#allocation5 + $0xd9] sm:$0xff] %vm627_vm1, %v3777_v3  ;;  %v13952_v20 = vpop.f32.mrb[154].mxu0  ;;  %v4674_v34 = vld [vmem:[#allocation5 + $0xc9] sm:$0xff]  ;;  %v12894_v3 = vld [vmem:[%s16940_s16 + $0x10] sm:$0xff]  }
 0x410   : > { %v4578_v27 = vld [vmem:[#allocation5 + $0xc8] sm:$0xff]  ;;  %3859 = vst.msk [vmem:[#allocation5 + $0xf9] sm:$0xff] %vm627_vm1, %v13952_v20  ;;  %v16958_v11 = vpack.c.bf16 %v4674_v34, %v4673_v4  ;;  %v3780_v30 = vpop.f32.mrb[155].mxu0  ;;  %v4579_v10 = vld [vmem:[#allocation5 + $0xd0] sm:$0xff]  ;;  %v12836_v46 = vunpack.c.l.bf16 %v12894_v3  ;;  %v15074_v20 = vld [vmem:[%s19347_s6 + $0x228] sm:$0xff]   ;;  %v12837_v7 = vunpack.c.h.bf16 %v12894_v3 }
 0x411   : > { %v16960_v9 = vpack.c.bf16 %v4578_v27, %v4577_v62  ;;  %3857 = vst.msk [vmem:[#allocation5 + $0xe1] sm:$0xff] %vm627_vm1, %v3780_v30  ;;  %v4096_v4 = vld [vmem:[#allocation5 + $0x89] sm:$0xff]  ;;  %v3998_v34 = vld [vmem:[#allocation5 + $0x78] sm:$0xff]  ;;  %v4095_v30 = vld [vmem:[#allocation5 + $0x81] sm:$0xff] }
 0x412   : > { %7365 = vmatmul.mubr.bf16.gmra.mrb[184].mxu0 %v4035_v29  ;;  %8079 = vmatprep.mubr.bf16.mxu1 %v16958_v11  ;;  %v15099_v29 = vld [vmem:[%s19347_s6 + $0xe0] sm:$0xff]   ;;  %3890 = vst.msk [vmem:[#allocation6 + $0x49] sm:$0xff] %vm549_vm0, %v12836_v46  ;;  %3891 = vst.msk [vmem:[#allocation6 + $0x51] sm:$0xff] %vm549_vm0, %v12837_v7 }
 0x413   : > { %7372 = vmatprep.mubr.bf16.mxu0 %v4132_v55  ;;  %8080 = vmatmul.mubr.bf16.vlgmr.msra.gmra.mrb[160].mxu1 %v16960_v9  ;;  %v17115_v7 = vld [vmem:[#allocation5 + $0x49] sm:$0xff] }
 0x414   : > { %8201 = vmatpush1.bf16.msra.mxu1 %v15069_v28  ;;  %7550 = vmatpush1.bf16.msra.mxu0 %v15099_v29 }
 0x415   : > { %v13955_v36 = vpop.f32.mrb[156].mxu0  ;;  %8202 = vmatprep.subr.bf16.mxu1 %v19360_v53  ;;  %v4679_v35 = vld [vmem:[#allocation5 + $0xf1] sm:$0xff]  ;;  %7551 = vmatprep.subr.bf16.mxu0 %v19360_v53 }
 0x416   : > { %3862 = vst.msk [vmem:[#allocation5 + $0x121] sm:$0xff] %vm627_vm1, %v13955_v36  ;;  %v3793_v17 = vpop.f32.mrb[157].mxu0  ;;  %v4676_v41 = vld [vmem:[#allocation5 + $0xd9] sm:$0xff]  ;;  %v4583_v28 = vld [vmem:[#allocation5 + $0xf0] sm:$0xff] }
 0x417   : > { %v4580_v54 = vld [vmem:[#allocation5 + $0xd8] sm:$0xff]  ;;  %3860 = vst.msk [vmem:[#allocation5 + $0x109] sm:$0xff] %vm627_vm1, %v3793_v17  ;;  %v16980_v25 = vpack.c.bf16 %v4676_v41, %v4675_v59  ;;  %v13956_v51 = vpop.f32.mrb[158].mxu0  ;;  %v4585_v57 = vld [vmem:[#allocation5 + $0x100] sm:$0xff] }
 0x418   : > { %v4677_v37 = vld [vmem:[#allocation5 + $0xe1] sm:$0xff]  ;;  %8203 = vmatpush1.bf16.msra.mxu1 %v15070_v32  ;;  %3863 = vst.msk [vmem:[#allocation5 + $0x129] sm:$0xff] %vm627_vm1, %v13956_v51  ;;  %v3796_v26 = vpop.f32.mrb[159].mxu0  ;;  %v16987_v21 = vpack.c.bf16 %v4580_v54, %v4579_v10  ;;  %v4680_v2 = vld [vmem:[#allocation5 + $0xf9] sm:$0xff]  ;;  %v4038_v32 = vpack.c.bf16 %v3998_v34, %v3997_v43  ;;  %v4687_v34 = vld [vmem:[#allocation5 + $0x131] sm:$0xff] }
 0x419   : > { %8087 = vmatprep.mubr.bf16.mxu1 %v16980_v25  ;;  %v16989_v0 = vpack.c.bf16 %v4678_v31, %v4677_v37  ;;  %8204 = vmatprep.subr.bf16.mxu1 %v19360_v53  ;;  %3861 = vst.msk [vmem:[#allocation5 + $0x111] sm:$0xff] %vm627_vm1, %v3796_v26  ;;  %v4581_v40 = vld [vmem:[#allocation5 + $0xe0] sm:$0xff]  ;;  %v4582_v13 = vld [vmem:[#allocation5 + $0xe8] sm:$0xff]  ;;  %v17022_v38 = vpack.c.bf16 %v4680_v2, %v4679_v35  ;;  %v4584_v55 = vld [vmem:[#allocation5 + $0xf8] sm:$0xff] }
 0x41a   : > { %7373 = vmatmul.mubr.bf16.gmra.mrb[188].mxu0 %v4036_v1  ;;  %v17015_v39 = vpack.c.bf16 %v4582_v13, %v4581_v40  ;;  %v4135_v31 = vpack.c.bf16 %v4096_v4, %v4095_v30  ;;  %v17045_v17 = vpack.c.bf16 %v4584_v55, %v4583_v28  ;;  %v15100_v41 = vld [vmem:[%s19347_s6 + $0xe8] sm:$0xff]   ;;  %v15076_v54 = vld [vmem:[%s19347_s6 + $0x238] sm:$0xff]   ;;  %v15102_v1 = vld [vmem:[%s19347_s6 + $0xf0] sm:$0xff]  }
 0x41b   : > { %7380 = vmatprep.mubr.bf16.mxu0 %v4133_v56  ;;  %8088 = vmatmul.mubr.bf16.gmra.mrb[164].mxu1 %v16987_v21  ;;  %v4000_v51 = vld [vmem:[#allocation5 + $0x88] sm:$0xff]  ;;  %v4684_v26 = vld [vmem:[#allocation5 + $0x119] sm:$0xff]  ;;  %v15081_v43 = vld [vmem:[%s19347_s6 + $0x260] sm:$0xff]  }
 0x41c   : > { %8095 = vmatprep.mubr.bf16.mxu1 %v16989_v0  ;;  %8205 = vmatpush1.bf16.msra.mxu1 %v15071_v49  ;;  %v3999_v49 = vld [vmem:[#allocation5 + $0x80] sm:$0xff]  ;;  %v4002_v13 = vld [vmem:[#allocation5 + $0x98] sm:$0xff] }
 0x41d   : > { %v13959_v48 = vpop.f32.mrb[160].mxu0  ;;  %8206 = vmatprep.subr.bf16.mxu1 %v19360_v53  ;;  %7552 = vmatpush1.bf16.msra.mxu0 %v15100_v41  ;;  %v4039_v56 = vpack.c.bf16 %v4000_v51, %v3999_v49  ;;  %v4102_v4 = vld [vmem:[#allocation5 + $0xb9] sm:$0xff]  ;;  %v17113_v41 = vld [vmem:[#allocation5 + $0x41] sm:$0xff]  ;;  %v17120_v51 = vld [vmem:[#allocation5 + $0x51] sm:$0xff] }
 0x41e   : > { %3866 = vst.msk [vmem:[#allocation5 + $0x151] sm:$0xff] %vm627_vm1, %v13959_v48  ;;  %v3809_v45 = vpop.f32.mrb[161].mxu0  ;;  %v4682_v62 = vld [vmem:[#allocation5 + $0x109] sm:$0xff]  ;;  %7553 = vmatprep.subr.bf16.mxu0 %v19360_v53  ;;  %v4589_v29 = vld [vmem:[#allocation5 + $0x120] sm:$0xff]  ;;  %v4486_v12 = vld [vmem:[#allocation5 + $0xd2] sm:$0xff] }
 0x41f   : > { %3864 = vst.msk [vmem:[#allocation5 + $0x139] sm:$0xff] %vm627_vm1, %v3809_v45  ;;  %v13960_v63 = vpop.f32.mrb[162].mxu0  ;;  %v17039_v36 = vpack.c.bf16 %v4682_v62, %v4681_v18  ;;  %v4586_v10 = vld [vmem:[#allocation5 + $0x108] sm:$0xff]  ;;  %v4003_v28 = vld [vmem:[#allocation5 + $0xa0] sm:$0xff] }
 0x420   : > { %8207 = vmatpush1.bf16.msra.mxu1 %v15072_v58  ;;  %3867 = vst.msk [vmem:[#allocation5 + $0x159] sm:$0xff] %vm627_vm1, %v13960_v63  ;;  %v3812_v5 = vpop.f32.mrb[163].mxu0  ;;  %v4683_v37 = vld [vmem:[#allocation5 + $0x111] sm:$0xff]  ;;  %v17067_v58 = vpack.c.bf16 %v4586_v10, %v4585_v57  ;;  %v12895_v48 = vld [vmem:[%s16940_s16 + $0x18] sm:$0xff]  }
 0x421   : > { %8208 = vmatprep.subr.bf16.mxu1 %v19360_v53  ;;  %3865 = vst.msk [vmem:[#allocation5 + $0x141] sm:$0xff] %vm627_vm1, %v3812_v5  ;;  %7554 = vmatpush1.bf16.msra.mxu0 %v15102_v1  ;;  %v17073_v61 = vpack.c.bf16 %v4684_v26, %v4683_v37  ;;  %v12840_v24 = vunpack.c.l.bf16 %v12895_v48  ;;  %v12841_v40 = vunpack.c.h.bf16 %v12895_v48  ;;  %v4099_v45 = vld [vmem:[#allocation5 + $0xa1] sm:$0xff]  ;;  %v4587_v35 = vld [vmem:[#allocation5 + $0x110] sm:$0xff]  ;;  %v4588_v2 = vld [vmem:[#allocation5 + $0x118] sm:$0xff] }
 0x422   : > { %7381 = vmatmul.mubr.bf16.gmra.mrb[192].mxu0 %v4037_v16  ;;  %7555 = vmatprep.subr.bf16.mxu0 %v19360_v53  ;;  %v4001_v63 = vld [vmem:[#allocation5 + $0x90] sm:$0xff]  ;;  %v4685_v16 = vld [vmem:[#allocation5 + $0x121] sm:$0xff]  ;;  %v4137_v50 = vpack.c.bf16 %v4100_v8, %v4099_v45  ;;  %v17089_v3 = vpack.c.bf16 %v4588_v2, %v4587_v35  ;;  %v17122_v1 = vld [vmem:[#allocation5 + $0x59] sm:$0xff] }
 0x423   : > { %7388 = vmatprep.mubr.bf16.mxu0 %v4134_v47  ;;  %8096 = vmatmul.mubr.bf16.gmra.mrb[168].mxu1 %v17015_v39  ;;  %3897 = vst.msk [vmem:[#allocation6 + $0x61] sm:$0xff] %vm549_vm0, %v12840_v24  ;;  %3898 = vst.msk [vmem:[#allocation6 + $0x69] sm:$0xff] %vm549_vm0, %v12841_v40  ;;  %v4040_v5 = vpack.c.bf16 %v4002_v13, %v4001_v63  ;;  %v15079_v47 = vld [vmem:[%s19347_s6 + $0x250] sm:$0xff]   ;;  %v15080_v18 = vld [vmem:[%s19347_s6 + $0x258] sm:$0xff]  }
 0x424   : > { %8103 = vmatprep.mubr.bf16.mxu1 %v17022_v38  ;;  %8209 = vmatpush1.bf16.msra.mxu1 %v15073_v33  ;;  %v4686_v33 = vld [vmem:[#allocation5 + $0x129] sm:$0xff]  ;;  %v4006_v37 = vld [vmem:[#allocation5 + $0xb8] sm:$0xff]  ;;  %v17144_v24 = vld [vmem:[#allocation5 + $0x81] sm:$0xff] }
 0x425   : > { %8210 = vmatprep.subr.bf16.mxu1 %v19360_v53  ;;  %v13963_v27 = vpop.f32.mrb[164].mxu0  ;;  %7556 = vmatpush1.bf16.msra.mxu0 %v15103_v19  ;;  %v17092_v46 = vpack.c.bf16 %v4686_v33, %v4685_v16  ;;  %v4590_v30 = vld [vmem:[#allocation5 + $0x128] sm:$0xff]  ;;  %v4005_v10 = vld [vmem:[#allocation5 + $0xb0] sm:$0xff]  ;;  %v15084_v26 = vld [vmem:[%s19347_s6 + $0x268] sm:$0xff]  }
 0x426   : > { %3870 = vst.msk [vmem:[#allocation5 + $0x181] sm:$0xff] %vm627_vm1, %v13963_v27  ;;  %v3825_v23 = vpop.f32.mrb[165].mxu0  ;;  %7750 = vmatprep.subr.bf16.mxu0 %v19360_v53  ;;  %v4688_v62 = vld [vmem:[#allocation5 + $0x139] sm:$0xff]  ;;  %v4101_v27 = vld [vmem:[#allocation5 + $0xb1] sm:$0xff]  ;;  %v17140_v19 = vld [vmem:[#allocation5 + $0x69] sm:$0xff]  ;;  %v4042_v2 = vpack.c.bf16 %v4006_v37, %v4005_v10 }
 0x427   : > { %3868 = vst.msk [vmem:[#allocation5 + $0x169] sm:$0xff] %vm627_vm1, %v3825_v23  ;;  %v13964_v59 = vpop.f32.mrb[166].mxu0  ;;  %v17100_v23 = vpack.c.bf16 %v4688_v62, %v4687_v34  ;;  %v4592_v48 = vld [vmem:[#allocation5 + $0x138] sm:$0xff]  ;;  %v4690_v45 = vld [vmem:[#allocation5 + $0x149] sm:$0xff]  ;;  %v15087_v63 = vld [vmem:[%s19347_s6 + $0x270] sm:$0xff]  }
 0x428   : > { %8211 = vmatpush1.bf16.msra.mxu1 %v15074_v20  ;;  %3871 = vst.msk [vmem:[#allocation5 + $0x189] sm:$0xff] %vm627_vm1, %v13964_v59  ;;  %v3828_v15 = vpop.f32.mrb[167].mxu0  ;;  %v4004_v20 = vld [vmem:[#allocation5 + $0xa8] sm:$0xff]  ;;  %v4138_v59 = vpack.c.bf16 %v4102_v4, %v4101_v27  ;;  %v17155_v16 = vld [vmem:[#allocation5 + $0x91] sm:$0xff]  ;;  %v17157_v33 = vld [vmem:[#allocation5 + $0x99] sm:$0xff] }
 0x429   : > { %8212 = vmatprep.subr.bf16.mxu1 %v19360_v53  ;;  %3869 = vst.msk [vmem:[#allocation5 + $0x171] sm:$0xff] %vm627_vm1, %v3828_v15  ;;  %v4041_v55 = vpack.c.bf16 %v4004_v20, %v4003_v28  ;;  %v17110_v15 = vld [vmem:[#allocation5 + $0x39] sm:$0xff]  ;;  %v4689_v13 = vld [vmem:[#allocation5 + $0x141] sm:$0xff]  ;;  %v17166_v4 = vld [vmem:[#allocation5 + $0xb1] sm:$0xff] }
 0x42a   : > { %7389 = vmatmul.mubr.bf16.gmra.mrb[196].mxu0 %v4038_v32  ;;  %v17105_v32 = vpack.c.bf16 %v4590_v30, %v4589_v29  ;;  %19387 = vst [vmem:[#allocation26_spill] sm:$0xff] %v17166_v4  ;;  %v17170_v20 = vpack.c.bf16 %v4690_v45, %v4689_v13  ;;  %v17172_v62 = vld [vmem:[#allocation5 + $0xb9] sm:$0xff]  ;;  %v15090_v30 = vld [vmem:[%s19347_s6 + $0x278] sm:$0xff]  }
 0x42b   : > { %7396 = vmatprep.mubr.bf16.mxu0 %v4135_v31  ;;  %8104 = vmatmul.mubr.bf16.gmra.mrb[172].mxu1 %v17045_v17  ;;  %v12896_v31 = vld [vmem:[%s16940_s16 + $0x20] sm:$0xff]   ;;  %19388 = vst [vmem:[#allocation27_spill] sm:$0xff] %v17172_v62  ;;  %v4593_v28 = vld [vmem:[#allocation5 + $0x140] sm:$0xff] }
 0x42c   : > { %8111 = vmatprep.mubr.bf16.mxu1 %v17039_v36  ;;  %8213 = vmatpush1.bf16.msra.mxu1 %v15075_v52  ;;  %v17108_v52 = vld [vmem:[#allocation5 + $0x31] sm:$0xff]  ;;  %v12844_v49 = vunpack.c.l.bf16 %v12896_v31  ;;  %v12845_v34 = vunpack.c.h.bf16 %v12896_v31  ;;  %v4484_v40 = vld [vmem:[#allocation5 + $0xc2] sm:$0xff]  ;;  %v4487_v4 = vld [vmem:[#allocation5 + $0xda] sm:$0xff] }
 0x42d   : > { %8214 = vmatprep.subr.bf16.mxu1 %v19360_v53  ;;  %v4488_v62 = vld [vmem:[#allocation5 + $0xe2] sm:$0xff] }
 0x42e   : > { %3904 = vst.msk [vmem:[#allocation6 + $0x79] sm:$0xff] %vm549_vm0, %v12844_v49  ;;  %3905 = vst.msk [vmem:[#allocation6 + $0x81] sm:$0xff] %vm549_vm0, %v12845_v34  ;;  %v12897_v49 = vld [vmem:[%s16940_s16 + $0x28] sm:$0xff]   ;;  %v4598_v34 = vld [vmem:[#allocation5 + $0x168] sm:$0xff] }
 0x42f   : > { %v12848_v10 = vunpack.c.l.bf16 %v12897_v49  ;;  %v12849_v37 = vunpack.c.h.bf16 %v12897_v49  ;;  %v4697_v49 = vld [vmem:[#allocation5 + $0x181] sm:$0xff] }
 0x430   : > { %8215 = vmatpush1.bf16.msra.mxu1 %v15076_v54 }
 0x431   : > { %8216 = vmatprep.subr.bf16.mxu1 %v19360_v53  ;;  %3911 = vst.msk [vmem:[#allocation6 + $0x91] sm:$0xff] %vm549_vm0, %v12848_v10  ;;  %3912 = vst.msk [vmem:[#allocation6 + $0x99] sm:$0xff] %vm549_vm0, %v12849_v37  ;;  %v4698_v10 = vld [vmem:[#allocation5 + $0x189] sm:$0xff] }
 0x432   : > { %7397 = vmatmul.mubr.bf16.gmra.mrb[200].mxu0 %v4039_v56  ;;  %v17130_v56 = vld [vmem:[#allocation5 + $0x71] sm:$0xff] }
 0x433   : > { %7404 = vmatprep.mubr.bf16.mxu0 %v4136_v60  ;;  %8112 = vmatmul.mubr.bf16.gmra.mrb[176].mxu1 %v17067_v58  ;;  %v17138_v60 = vld [vmem:[#allocation5 + $0x61] sm:$0xff] }
 0x434   : > { %8119 = vmatprep.mubr.bf16.mxu1 %v17073_v61  ;;  %8217 = vmatpush1.bf16.msra.mxu1 %v15077_v44  ;;  %v4591_v44 = vld [vmem:[#allocation5 + $0x130] sm:$0xff] }
 0x435   : > { %8218 = vmatprep.subr.bf16.mxu1 %v19360_v53 }
 0x438   : > { %8219 = vmatpush1.bf16.msra.mxu1 %v15078_v6  ;;  %v17142_v6 = vld [vmem:[#allocation5 + $0x79] sm:$0xff] }
 0x439   : > { %8220 = vmatprep.subr.bf16.mxu1 %v19360_v53 }
 0x43a   : > { %7405 = vmatmul.mubr.bf16.gmra.mrb[204].mxu0 %v4040_v5  ;;  %v17159_v5 = vpack.c.bf16 %v4592_v48, %v4591_v44  ;;  %v4694_v44 = vld [vmem:[#allocation5 + $0x169] sm:$0xff] }
 0x43b   : > { %7412 = vmatprep.mubr.bf16.mxu0 %v4137_v50  ;;  %8120 = vmatmul.mubr.bf16.gmra.mrb[180].mxu1 %v17089_v3  ;;  %v17164_v50 = vld [vmem:[#allocation5 + $0xa9] sm:$0xff] }
 0x43c   : > { %8127 = vmatprep.mubr.bf16.mxu1 %v17092_v46  ;;  %8221 = vmatpush1.bf16.msra.mxu1 %v15079_v47  ;;  %v17162_v47 = vld [vmem:[#allocation5 + $0xa1] sm:$0xff]  ;;  %v4595_v48 = vld [vmem:[#allocation5 + $0x150] sm:$0xff] }
 0x43d   : > { %8222 = vmatprep.subr.bf16.mxu1 %v19360_v53 }
 0x440   : > { %8223 = vmatpush1.bf16.msra.mxu1 %v15080_v18  ;;  %v17686_v18 = vld [vmem:[#allocation6 + $0xe9] sm:$0xff] }
 0x441   : > { %8224 = vmatprep.subr.bf16.mxu1 %v19360_v53 }
 0x442   : > { %7413 = vmatmul.mubr.bf16.gmra.mrb[208].mxu0 %v4041_v55  ;;  %v4594_v55 = vld [vmem:[#allocation5 + $0x148] sm:$0xff] }
 0x443   : > { %7420 = vmatprep.mubr.bf16.mxu0 %v4138_v59  ;;  %8128 = vmatmul.mubr.bf16.gmra.mrb[184].mxu1 %v17105_v32  ;;  %v17186_v59 = vpack.c.bf16 %v4594_v55, %v4593_v28  ;;  %v4696_v28 = vld [vmem:[#allocation5 + $0x179] sm:$0xff] }
 0x444   : > { %8135 = vmatprep.mubr.bf16.mxu1 %v17100_v23  ;;  %8225 = vmatpush1.bf16.msra.mxu1 %v15081_v43  ;;  %v4692_v43 = vld [vmem:[#allocation5 + $0x159] sm:$0xff] }
 0x445   : > { %8226 = vmatprep.subr.bf16.mxu1 %v19360_v53 }
 0x448   : > { %8227 = vmatpush1.bf16.msra.mxu1 %v15084_v26  ;;  %v4693_v26 = vld [vmem:[#allocation5 + $0x161] sm:$0xff] }
 0x449   : > { %8228 = vmatprep.subr.bf16.mxu1 %v19360_v53  ;;  %v17198_v13 = vpack.c.bf16 %v4694_v44, %v4693_v26  ;;  %v12899_v26 = vld [vmem:[%s16940_s16 + $0x38] sm:$0xff]  }
 0x44a   : > { %7421 = vmatmul.mubr.bf16.gmra.mrb[212].mxu0 %v4042_v2  ;;  %v12857_v44 = vunpack.c.h.bf16 %v12899_v26 }
 0x44b   : > { %7428 = vmatprep.mubr.bf16.mxu0 %v16958_v11  ;;  %8136 = vmatmul.mubr.bf16.gmra.mrb[188].mxu1 %v17159_v5  ;;  %v4691_v11 = vld [vmem:[#allocation5 + $0x151] sm:$0xff] }
 0x44c   : > { %8143 = vmatprep.mubr.bf16.mxu1 %v17170_v20  ;;  %8229 = vmatpush1.bf16.msra.mxu1 %v15087_v63  ;;  %v17190_v31 = vpack.c.bf16 %v4692_v43, %v4691_v11  ;;  %v4597_v63 = vld [vmem:[#allocation5 + $0x160] sm:$0xff]  ;;  %v4600_v43 = vld [vmem:[#allocation5 + $0x178] sm:$0xff]  ;;  %3926 = vst.msk [vmem:[#allocation6 + $0xc9] sm:$0xff] %vm549_vm0, %v12857_v44 }
 0x44d   : > { %8230 = vmatprep.subr.bf16.mxu1 %v19360_v53  ;;  %v17208_v55 = vpack.c.bf16 %v4598_v34, %v4597_v63  ;;  %v12900_v34 = vld [vmem:[%s16940_s16 + $0x40] sm:$0xff]   ;;  %v15097_v44 = vld [vmem:[%s19347_s6 + $0x288] sm:$0xff]  }
 0x450   : > { %8231 = vmatpush1.bf16.msra.mxu1 %v15090_v30  ;;  %v4695_v30 = vld [vmem:[#allocation5 + $0x171] sm:$0xff] }
 0x451   : > { %8425 = vmatprep.subr.bf16.mxu1 %v19360_v53 }
 0x452   : > { %7429 = vmatmul.mubr.bf16.gmra.mrb[216].mxu0 %v16960_v9  ;;  %v4596_v9 = vld [vmem:[#allocation5 + $0x158] sm:$0xff] }
 0x453   : > { %7436 = vmatprep.mubr.bf16.mxu0 %v16980_v25  ;;  %8144 = vmatmul.mubr.bf16.gmra.mrb[192].mxu1 %v17186_v59  ;;  %v17200_v45 = vpack.c.bf16 %v4596_v9, %v4595_v48  ;;  %v12898_v25 = vld [vmem:[%s16940_s16 + $0x30] sm:$0xff]   ;;  %v4699_v48 = vld [vmem:[#allocation5 + $0x191] sm:$0xff] }
 0x454   : > { %8151 = vmatprep.mubr.bf16.mxu1 %v17190_v31  ;;  %v12852_v2 = vunpack.c.l.bf16 %v12898_v25  ;;  %v12853_v11 = vunpack.c.h.bf16 %v12898_v25  ;;  %v4700_v9 = vld [vmem:[#allocation5 + $0x199] sm:$0xff] }
 0x455   : > { %v4601_v25 = vld [vmem:[#allocation5 + $0x180] sm:$0xff]  ;;  %v4725_v63 = vpack.c.bf16 %v4700_v9, %v4699_v48  ;;  %v4851_v48 = vld [vmem:[#allocation6 + $0x20] sm:$0xff] }
 0x456   : > { %3918 = vst.msk [vmem:[#allocation6 + $0xa9] sm:$0xff] %vm549_vm0, %v12852_v2  ;;  %3919 = vst.msk [vmem:[#allocation6 + $0xb1] sm:$0xff] %vm549_vm0, %v12853_v11  ;;  %v4602_v2 = vld [vmem:[#allocation5 + $0x188] sm:$0xff]  ;;  %v4603_v11 = vld [vmem:[#allocation5 + $0x190] sm:$0xff] }
 0x457   : > { %v4852_v9 = vld [vmem:[#allocation6 + $0x28] sm:$0xff] }
 0x45a   : > { %7437 = vmatmul.mubr.bf16.gmra.mrb[220].mxu0 %v16987_v21  ;;  %v17211_v21 = vpack.c.bf16 %v4696_v28, %v4695_v30  ;;  %v4701_v30 = vld [vmem:[#allocation5 + $0x1a1] sm:$0xff]  ;;  %v4702_v28 = vld [vmem:[#allocation5 + $0x1a9] sm:$0xff] }
 0x45b   : > { %7444 = vmatprep.mubr.bf16.mxu0 %v16989_v0  ;;  %8152 = vmatmul.mubr.bf16.gmra.mrb[196].mxu1 %v17200_v45  ;;  %v4599_v0 = vld [vmem:[#allocation5 + $0x170] sm:$0xff] }
 0x45c   : > { %8159 = vmatprep.mubr.bf16.mxu1 %v17198_v13  ;;  %v17217_v37 = vpack.c.bf16 %v4600_v43, %v4599_v0  ;;  %v4726_v0 = vpack.c.bf16 %v4702_v28, %v4701_v30  ;;  %v4629_v43 = vpack.c.bf16 %v16858_v22, %v4603_v11  ;;  %v4755_v30 = vld [vmem:[#allocation5 + $0x52] sm:$0xff] }
 0x462   : > { %7445 = vmatmul.mubr.bf16.gmra.mrb[224].mxu0 %v17015_v39  ;;  %v4724_v39 = vpack.c.bf16 %v4698_v10, %v4697_v49  ;;  %v12861_v49 = vunpack.c.h.bf16 %v12900_v34 }
 0x463   : > { %7452 = vmatprep.mubr.bf16.mxu0 %v17022_v38  ;;  %8160 = vmatmul.mubr.bf16.gmra.mrb[200].mxu1 %v17208_v55  ;;  %v12856_v38 = vunpack.c.l.bf16 %v12899_v26 }
 0x464   : > { %8167 = vmatprep.mubr.bf16.mxu1 %v17211_v21  ;;  %3933 = vst.msk [vmem:[#allocation6 + $0xe1] sm:$0xff] %vm549_vm0, %v12861_v49 }
 0x465   : > { %3925 = vst.msk [vmem:[#allocation6 + $0xc1] sm:$0xff] %vm549_vm0, %v12856_v38  ;;  %v12902_v38 = vld [vmem:[%s16940_s16 + $0x50] sm:$0xff]  }
 0x46a   : > { %7453 = vmatmul.mubr.bf16.gmra.mrb[228].mxu0 %v17045_v17  ;;  %v4628_v17 = vpack.c.bf16 %v4602_v2, %v4601_v25  ;;  %v4897_v25 = vpack.c.bf16 %v4852_v9, %v4851_v48  ;;  %v4272_v48 = vld [vmem:[#allocation5 + $0x20] sm:$0xff]  ;;  %v4271_v9 = vld [vmem:[#allocation5 + $0x18] sm:$0xff] }
 0x46b   : > { %7460 = vmatprep.mubr.bf16.mxu0 %v17039_v36  ;;  %8168 = vmatmul.mubr.bf16.gmra.mrb[204].mxu1 %v17217_v37  ;;  %v12860_v36 = vunpack.c.l.bf16 %v12900_v34  ;;  %v4853_v34 = vld [vmem:[#allocation6 + $0x30] sm:$0xff]  ;;  %v5067_v27 = vld [vmem:[#allocation6 + $0xe2] sm:$0xff] }
 0x46c   : > { %8175 = vmatprep.mubr.bf16.mxu1 %v4724_v39  ;;  %v4752_v39 = vld [vmem:[#allocation5 + $0x3a] sm:$0xff] }
 0x46d   : > { %3932 = vst.msk [vmem:[#allocation6 + $0xd9] sm:$0xff] %vm549_vm0, %v12860_v36  ;;  %v4854_v36 = vld [vmem:[#allocation6 + $0x38] sm:$0xff] }
 0x46e   : > { %v4898_v28 = vpack.c.bf16 %v4854_v36, %v4853_v34  ;;  %v4176_v34 = vld [vmem:[#allocation5 + $0xa] sm:$0xff]  ;;  %v15110_v36 = vld [vmem:[%s19347_s6 + $0x2c8] sm:$0xff]  }
 0x472   : > { %7461 = vmatmul.mubr.bf16.gmra.mrb[232].mxu0 %v17067_v58  ;;  %v12901_v58 = vld [vmem:[%s16940_s16 + $0x48] sm:$0xff]  }
 0x473   : > { %7468 = vmatprep.mubr.bf16.mxu0 %v17073_v61  ;;  %8176 = vmatmul.mubr.bf16.gmra.mrb[208].mxu1 %v4628_v17  ;;  %v12864_v61 = vunpack.c.l.bf16 %v12901_v58  ;;  %v12865_v10 = vunpack.c.h.bf16 %v12901_v58  ;;  %v15104_v17 = vld [vmem:[%s19347_s6 + $0x298] sm:$0xff]   ;;  %v15106_v58 = vld [vmem:[%s19347_s6 + $0x2a8] sm:$0xff]  }
 0x474   : > { %8183 = vmatprep.mubr.bf16.mxu1 %v4725_v63  ;;  %v12869_v63 = vunpack.c.h.bf16 %v12902_v38  ;;  %v17673_v29 = vld [vmem:[#allocation6 + $0xd9] sm:$0xff] }
 0x475   : > { %3939 = vst.msk [vmem:[#allocation6 + $0xf1] sm:$0xff] %vm549_vm0, %v12864_v61  ;;  %3940 = vst.msk [vmem:[#allocation6 + $0xf9] sm:$0xff] %vm549_vm0, %v12865_v10  ;;  %v4855_v61 = vld [vmem:[#allocation6 + $0x40] sm:$0xff]  ;;  %v4856_v10 = vld [vmem:[#allocation6 + $0x48] sm:$0xff] }
 0x476   : > { %3947 = vst.msk [vmem:[#allocation6 + $0x111] sm:$0xff] %vm549_vm0, %v12869_v63 }
 0x47a   : > { %7469 = vmatmul.mubr.bf16.gmra.mrb[236].mxu0 %v17089_v3  ;;  %v4850_v3 = vld [vmem:[#allocation6 + $0x18] sm:$0xff] }
 0x47b   : > { %7476 = vmatprep.mubr.bf16.mxu0 %v17092_v46  ;;  %8184 = vmatmul.mubr.bf16.gmra.mrb[212].mxu1 %v4629_v43  ;;  %v4751_v46 = vld [vmem:[#allocation5 + $0x32] sm:$0xff]  ;;  %v4896_v26 = vpack.c.bf16 %v4850_v3, %v16858_v22  ;;  %v4754_v22 = vld [vmem:[#allocation5 + $0x4a] sm:$0xff]  ;;  %v4899_v3 = vpack.c.bf16 %v4856_v10, %v4855_v61 }
 0x47c   : > { %8191 = vmatprep.mubr.bf16.mxu1 %v4726_v0  ;;  %v12903_v0 = vld [vmem:[%s16940_s16 + $0x58] sm:$0xff]   ;;  %v5070_v8 = vld [vmem:[#allocation6 + $0xfa] sm:$0xff] }
 0x47d   : > { %v12872_v43 = vunpack.c.l.bf16 %v12903_v0  ;;  %v12873_v49 = vunpack.c.h.bf16 %v12903_v0  ;;  %v4274_v0 = vld [vmem:[#allocation5 + $0x30] sm:$0xff] }
 0x47e   : > { %v5069_v35 = vld [vmem:[#allocation6 + $0xf2] sm:$0xff] }
 0x47f   : > { %3953 = vst.msk [vmem:[#allocation6 + $0x121] sm:$0xff] %vm549_vm0, %v12872_v43  ;;  %3954 = vst.msk [vmem:[#allocation6 + $0x129] sm:$0xff] %vm549_vm0, %v12873_v49  ;;  %v4762_v43 = vld [vmem:[#allocation5 + $0x8a] sm:$0xff] }
 0x482   : > { %7477 = vmatmul.mubr.bf16.gmra.mrb[240].mxu0 %v17105_v32  ;;  %v15093_v32 = vld [vmem:[%s19347_s6 + $0x280] sm:$0xff]  }
 0x483   : > { %7484 = vmatprep.mubr.bf16.mxu0 %v17100_v23  ;;  %8192 = vmatmul.mubr.bf16.gmra.mrb[216].mxu1 %v16862_v42  ;;  %v17244_v23 = vpack.c.bf16 %v4752_v39, %v4751_v46  ;;  %v15107_v46 = vld [vmem:[%s19347_s6 + $0x2b0] sm:$0xff]  }
 0x484   : > { %8232 = vmatprep.mubr.bf16.mxu1 %v16862_v42  ;;  %v12868_v42 = vunpack.c.l.bf16 %v12902_v38  ;;  %v15108_v38 = vld [vmem:[%s19347_s6 + $0x2b8] sm:$0xff]  }
 0x486   : > { %3946 = vst.msk [vmem:[#allocation6 + $0x109] sm:$0xff] %vm549_vm0, %v12868_v42  ;;  %v4857_v42 = vld [vmem:[#allocation6 + $0x50] sm:$0xff] }
 0x48a   : > { %7485 = vmatmul.mubr.bf16.gmra.mrb[244].mxu0 %v17159_v5  ;;  %v4753_v5 = vld [vmem:[#allocation5 + $0x42] sm:$0xff] }
 0x48b   : > { %7492 = vmatprep.mubr.bf16.mxu0 %v17170_v20  ;;  %8233 = vmatmul.mubr.bf16.vlgmr.msra.gmra.mrb[220].mxu1 %v17244_v23  ;;  %v15101_v20 = vld [vmem:[%s19347_s6 + $0x290] sm:$0xff]   ;;  %v17258_v2 = vpack.c.bf16 %v4754_v22, %v4753_v5  ;;  %v4759_v22 = vld [vmem:[#allocation5 + $0x72] sm:$0xff] }
 0x48c   : > { %8426 = vmatpush1.bf16.msra.mxu1 %v15093_v32  ;;  %8240 = vmatprep.mubr.bf16.mxu1 %v4896_v26  ;;  %v12904_v32 = vld [vmem:[%s16940_s16 + $0x60] sm:$0xff]  }
 0x48d   : > { %8427 = vmatprep.subr.bf16.mxu1 %v19360_v53  ;;  %v12876_v26 = vunpack.c.l.bf16 %v12904_v32  ;;  %v15109_v5 = vld [vmem:[%s19347_s6 + $0x2c0] sm:$0xff]   ;;  %v12877_v63 = vunpack.c.h.bf16 %v12904_v32  ;;  %v4178_v32 = vld [vmem:[#allocation5 + $0x1a] sm:$0xff]  ;;  %v5072_v57 = vld [vmem:[#allocation6 + $0x10a] sm:$0xff] }
 0x48f   : > { %3960 = vst.msk [vmem:[#allocation6 + $0x139] sm:$0xff] %vm549_vm0, %v12876_v26  ;;  %3961 = vst.msk [vmem:[#allocation6 + $0x141] sm:$0xff] %vm549_vm0, %v12877_v63  ;;  %v4275_v26 = vld [vmem:[#allocation5 + $0x38] sm:$0xff]  ;;  %v15113_v63 = vld [vmem:[%s19347_s6 + $0x2e0] sm:$0xff]  }
 0x490   : > { %8428 = vmatpush1.bf16.msra.mxu1 %v15097_v44  ;;  %v4858_v44 = vld [vmem:[#allocation6 + $0x58] sm:$0xff] }
 0x491   : > { %8429 = vmatprep.subr.bf16.mxu1 %v19360_v53 }
 0x492   : > { %7493 = vmatmul.mubr.bf16.gmra.mrb[248].mxu0 %v17186_v59  ;;  %v4756_v59 = vld [vmem:[#allocation5 + $0x5a] sm:$0xff] }
 0x493   : > { %7500 = vmatprep.mubr.bf16.mxu0 %v17190_v31  ;;  %8241 = vmatmul.mubr.bf16.gmra.mrb[224].mxu1 %v17258_v2  ;;  %v15105_v31 = vld [vmem:[%s19347_s6 + $0x2a0] sm:$0xff]   ;;  %v17272_v11 = vpack.c.bf16 %v4756_v59, %v4755_v30  ;;  %v4859_v30 = vld [vmem:[#allocation6 + $0x60] sm:$0xff]  ;;  %v4860_v59 = vld [vmem:[#allocation6 + $0x68] sm:$0xff] }
 0x494   : > { %8248 = vmatprep.mubr.bf16.mxu1 %v4897_v25  ;;  %8430 = vmatpush1.bf16.msra.mxu1 %v15101_v20  ;;  %v4319_v25 = vpack.c.bf16 %v4272_v48, %v4271_v9  ;;  %v4901_v49 = vpack.c.bf16 %v4860_v59, %v4859_v30  ;;  %v15116_v48 = vld [vmem:[%s19347_s6 + $0x108] sm:$0xff]   ;;  %v15118_v59 = vld [vmem:[%s19347_s6 + $0x110] sm:$0xff]  }
 0x495   : > { %8431 = vmatprep.subr.bf16.mxu1 %v19360_v53  ;;  %v4763_v9 = vld [vmem:[#allocation5 + $0x92] sm:$0xff] }
 0x498   : > { %8432 = vmatpush1.bf16.msra.mxu1 %v15104_v17  ;;  %v4175_v17 = vld [vmem:[#allocation5 + $0x2] sm:$0xff] }
 0x499   : > { %8433 = vmatprep.subr.bf16.mxu1 %v19360_v53 }
 0x49a   : > { %7501 = vmatmul.mubr.bf16.gmra.mrb[252].mxu0 %v17200_v45  ;;  %v4758_v45 = vld [vmem:[#allocation5 + $0x6a] sm:$0xff] }
 0x49b   : > { %7508 = vmatprep.mubr.bf16.mxu0 %v17198_v13  ;;  %8249 = vmatmul.mubr.bf16.gmra.mrb[228].mxu1 %v17272_v11  ;;  %v4757_v13 = vld [vmem:[#allocation5 + $0x62] sm:$0xff] }
 0x49c   : > { %8256 = vmatprep.mubr.bf16.mxu1 %v4898_v28  ;;  %8434 = vmatpush1.bf16.msra.mxu1 %v15105_v31  ;;  %v17288_v39 = vpack.c.bf16 %v4758_v45, %v4757_v13  ;;  %v4273_v28 = vld [vmem:[#allocation5 + $0x28] sm:$0xff]  ;;  %v12905_v13 = vld [vmem:[%s16940_s16 + $0x68] sm:$0xff]  }
 0x49d   : > { %8435 = vmatprep.subr.bf16.mxu1 %v19360_v53  ;;  %v4761_v31 = vld [vmem:[#allocation5 + $0x82] sm:$0xff]  ;;  %v4320_v61 = vpack.c.bf16 %v4274_v0, %v4273_v28  ;;  %v12880_v45 = vunpack.c.l.bf16 %v12905_v13  ;;  %v15114_v28 = vld [vmem:[%s19347_s6 + $0x2e8] sm:$0xff]  }
 0x49e   : > { %v17316_v10 = vpack.c.bf16 %v4762_v43, %v4761_v31  ;;  %v4863_v31 = vld [vmem:[#allocation6 + $0x80] sm:$0xff]  ;;  %v4864_v0 = vld [vmem:[#allocation6 + $0x88] sm:$0xff]  ;;  %v15119_v43 = vld [vmem:[%s19347_s6 + $0x118] sm:$0xff]  }
 0x49f   : > { %3967 = vst.msk [vmem:[#allocation6 + $0x151] sm:$0xff] %vm549_vm0, %v12880_v45  ;;  %v4277_v45 = vld [vmem:[#allocation5 + $0x48] sm:$0xff] }
 0x4a0   : > { %8436 = vmatpush1.bf16.msra.mxu1 %v15106_v58  ;;  %v15111_v58 = vld [vmem:[%s19347_s6 + $0x2d0] sm:$0xff]  }
 0x4a1   : > { %8437 = vmatprep.subr.bf16.mxu1 %v19360_v53 }
 0x4a2   : > { %7509 = vmatmul.mubr.bf16.gmra.mrb[0].mxu0 %v17208_v55  ;;  %v4760_v55 = vld [vmem:[#allocation5 + $0x7a] sm:$0xff] }
 0x4a3   : > { %7516 = vmatprep.mubr.bf16.mxu0 %v17211_v21  ;;  %8257 = vmatmul.mubr.bf16.gmra.mrb[232].mxu1 %v17288_v39  ;;  %v4900_v21 = vpack.c.bf16 %v4858_v44, %v4857_v42  ;;  %v17303_v20 = vpack.c.bf16 %v4760_v55, %v4759_v22  ;;  %v4861_v42 = vld [vmem:[#allocation6 + $0x70] sm:$0xff]  ;;  %v4862_v44 = vld [vmem:[#allocation6 + $0x78] sm:$0xff]  ;;  %v4276_v55 = vld [vmem:[#allocation5 + $0x40] sm:$0xff] }
 0x4a4   : > { %8264 = vmatprep.mubr.bf16.mxu1 %v4899_v3  ;;  %8438 = vmatpush1.bf16.msra.mxu1 %v15107_v46  ;;  %v12881_v3 = vunpack.c.h.bf16 %v12905_v13  ;;  %v15115_v46 = vld [vmem:[%s19347_s6 + $0x100] sm:$0xff]   ;;  %v4764_v22 = vld [vmem:[#allocation5 + $0x9a] sm:$0xff] }
 0x4a5   : > { %8439 = vmatprep.subr.bf16.mxu1 %v19360_v53 }
 0x4a6   : > { %3968 = vst.msk [vmem:[#allocation6 + $0x159] sm:$0xff] %vm549_vm0, %v12881_v3  ;;  %v4765_v3 = vld [vmem:[#allocation5 + $0xa2] sm:$0xff] }
 0x4a8   : > { %8440 = vmatpush1.bf16.msra.mxu1 %v15108_v38  ;;  %v15112_v38 = vld [vmem:[%s19347_s6 + $0x2d8] sm:$0xff]  }
 0x4a9   : > { %8441 = vmatprep.subr.bf16.mxu1 %v19360_v53 }
 0x4aa   : > { %7517 = vmatmul.mubr.bf16.gmra.mrb[4].mxu0 %v17217_v37  ;;  %v4223_v37 = vpack.c.bf16 %v4176_v34, %v4175_v17  ;;  %v4321_v17 = vpack.c.bf16 %v4276_v55, %v4275_v26  ;;  %v17337_v34 = vpack.c.bf16 %v4764_v22, %v4763_v9  ;;  %v4865_v55 = vld [vmem:[#allocation6 + $0x90] sm:$0xff]  ;;  %v4866_v9 = vld [vmem:[#allocation6 + $0x98] sm:$0xff]  ;;  %v15122_v22 = vld [vmem:[%s19347_s6 + $0x128] sm:$0xff]  }
 0x4ab   : > { %7557 = vmatprep.mubr.bf16.mxu0 %v4319_v25  ;;  %8265 = vmatmul.mubr.bf16.gmra.mrb[236].mxu1 %v17303_v20  ;;  %v4902_v25 = vpack.c.bf16 %v4862_v44, %v4861_v42  ;;  %v15120_v44 = vld [vmem:[%s19347_s6 + $0x120] sm:$0xff]  }
 0x4ac   : > { %8272 = vmatprep.mubr.bf16.mxu1 %v4900_v21  ;;  %8442 = vmatpush1.bf16.msra.mxu1 %v15109_v5  ;;  %v4177_v21 = vld [vmem:[#allocation5 + $0x12] sm:$0xff] }
 0x4ad   : > { %8443 = vmatprep.subr.bf16.mxu1 %v19360_v53  ;;  %v4224_v5 = vpack.c.bf16 %v4178_v32, %v4177_v21  ;;  %v15117_v32 = vld [vmem:[%s19347_s6 + $0x2f0] sm:$0xff]   ;;  %v4279_v21 = vld [vmem:[#allocation5 + $0x58] sm:$0xff] }
 0x4b0   : > { %8444 = vmatpush1.bf16.msra.mxu1 %v15110_v36  ;;  %v12906_v36 = vld [vmem:[%s16940_s16 + $0x70] sm:$0xff]  }
 0x4b1   : > { %8445 = vmatprep.subr.bf16.mxu1 %v19360_v53  ;;  %v12884_v30 = vunpack.c.l.bf16 %v12906_v36  ;;  %v12885_v42 = vunpack.c.h.bf16 %v12906_v36 }
 0x4b2   : > { %7558 = vmatmul.mubr.bf16.vlgmr.msra.gmra.mrb[168].mxu0 %v4223_v37  ;;  %v4179_v37 = vld [vmem:[#allocation5 + $0x22] sm:$0xff] }
 0x4b3   : > { %7565 = vmatprep.mubr.bf16.mxu0 %v4320_v61  ;;  %8273 = vmatmul.mubr.bf16.gmra.mrb[240].mxu1 %v17316_v10  ;;  %3974 = vst.msk [vmem:[#allocation6 + $0x169] sm:$0xff] %vm549_vm0, %v12884_v30  ;;  %v4180_v61 = vld [vmem:[#allocation5 + $0x2a] sm:$0xff]  ;;  %3975 = vst.msk [vmem:[#allocation6 + $0x171] sm:$0xff] %vm549_vm0, %v12885_v42  ;;  %v4772_v42 = vld [vmem:[#allocation5 + $0xda] sm:$0xff] }
 0x4b4   : > { %8280 = vmatprep.mubr.bf16.mxu1 %v4901_v49  ;;  %8446 = vmatpush1.bf16.msra.mxu1 %v15111_v58  ;;  %v4278_v49 = vld [vmem:[#allocation5 + $0x50] sm:$0xff]  ;;  %v4225_v13 = vpack.c.bf16 %v4180_v61, %v4179_v37  ;;  %v4281_v37 = vld [vmem:[#allocation5 + $0x68] sm:$0xff] }
 0x4b5   : > { %8447 = vmatprep.subr.bf16.mxu1 %v19360_v53  ;;  %7751 = vmatpush1.bf16.msra.mxu0 %v15115_v46  ;;  %v4766_v58 = vld [vmem:[#allocation5 + $0xaa] sm:$0xff]  ;;  %v4903_v46 = vpack.c.bf16 %v4864_v0, %v4863_v31  ;;  %v4322_v26 = vpack.c.bf16 %v4278_v49, %v4277_v45  ;;  %v4868_v31 = vld [vmem:[#allocation6 + $0xa8] sm:$0xff] }
 0x4b6   : > { %7752 = vmatprep.subr.bf16.mxu0 %v19360_v53  ;;  %v15124_v0 = vld [vmem:[%s19347_s6 + $0x138] sm:$0xff]   ;;  %v15126_v45 = vld [vmem:[%s19347_s6 + $0x140] sm:$0xff]  }
 0x4b7   : > { %v4770_v49 = vld [vmem:[#allocation5 + $0xca] sm:$0xff] }
 0x4b8   : > { %8448 = vmatpush1.bf16.msra.mxu1 %v15112_v38  ;;  %v17358_v38 = vpack.c.bf16 %v4766_v58, %v4765_v3  ;;  %v4869_v3 = vld [vmem:[#allocation6 + $0xb0] sm:$0xff] }
 0x4b9   : > { %8449 = vmatprep.subr.bf16.mxu1 %v19360_v53  ;;  %7753 = vmatpush1.bf16.msra.mxu0 %v15116_v48  ;;  %v15121_v48 = vld [vmem:[%s19347_s6 + $0x2f8] sm:$0xff]  }
 0x4ba   : > { %7566 = vmatmul.mubr.bf16.gmra.mrb[172].mxu0 %v4224_v5  ;;  %7754 = vmatprep.subr.bf16.mxu0 %v19360_v53  ;;  %v4767_v5 = vld [vmem:[#allocation5 + $0xb2] sm:$0xff] }
 0x4bb   : > { %7573 = vmatprep.mubr.bf16.mxu0 %v4321_v17  ;;  %8281 = vmatmul.mubr.bf16.gmra.mrb[244].mxu1 %v17337_v34  ;;  %v4904_v17 = vpack.c.bf16 %v4866_v9, %v4865_v55 }
 0x4bc   : > { %8288 = vmatprep.mubr.bf16.mxu1 %v4902_v25  ;;  %8450 = vmatpush1.bf16.msra.mxu1 %v15113_v63  ;;  %v4280_v25 = vld [vmem:[#allocation5 + $0x60] sm:$0xff] }
 0x4bd   : > { %8451 = vmatprep.subr.bf16.mxu1 %v19360_v53  ;;  %7755 = vmatpush1.bf16.msra.mxu0 %v15118_v59  ;;  %v4768_v63 = vld [vmem:[#allocation5 + $0xba] sm:$0xff]  ;;  %v4323_v36 = vpack.c.bf16 %v4280_v25, %v4279_v21  ;;  %v15130_v25 = vld [vmem:[%s19347_s6 + $0x158] sm:$0xff]  }
 0x4be   : > { %7756 = vmatprep.subr.bf16.mxu0 %v19360_v53  ;;  %v17375_v30 = vpack.c.bf16 %v4768_v63, %v4767_v5  ;;  %v15123_v59 = vld [vmem:[%s19347_s6 + $0x130] sm:$0xff]   ;;  %v4871_v21 = vld [vmem:[#allocation6 + $0xc0] sm:$0xff]  ;;  %v4285_v63 = vld [vmem:[#allocation5 + $0x88] sm:$0xff] }
 0x4bf   : > { %v4872_v5 = vld [vmem:[#allocation6 + $0xc8] sm:$0xff] }
 0x4c0   : > { %8452 = vmatpush1.bf16.msra.mxu1 %v15114_v28  ;;  %v4867_v28 = vld [vmem:[#allocation6 + $0xa0] sm:$0xff] }
 0x4c1   : > { %8453 = vmatprep.subr.bf16.mxu1 %v19360_v53  ;;  %7757 = vmatpush1.bf16.msra.mxu0 %v15119_v43  ;;  %v4282_v43 = vld [vmem:[#allocation5 + $0x70] sm:$0xff]  ;;  %v4905_v58 = vpack.c.bf16 %v4868_v31, %v4867_v28 }
 0x4c2   : > { %7574 = vmatmul.mubr.bf16.gmra.mrb[176].mxu0 %v4225_v13  ;;  %7758 = vmatprep.subr.bf16.mxu0 %v19360_v53  ;;  %v4324_v61 = vpack.c.bf16 %v4282_v43, %v4281_v37  ;;  %v15131_v31 = vld [vmem:[%s19347_s6 + $0x160] sm:$0xff]   ;;  %v4873_v43 = vld [vmem:[#allocation6 + $0xd0] sm:$0xff] }
 0x4c3   : > { %7581 = vmatprep.mubr.bf16.mxu0 %v4322_v26  ;;  %8289 = vmatmul.mubr.bf16.gmra.mrb[248].mxu1 %v17358_v38  ;;  %v4284_v26 = vld [vmem:[#allocation5 + $0x80] sm:$0xff] }
 0x4c4   : > { %8296 = vmatprep.mubr.bf16.mxu1 %v4903_v46  ;;  %8454 = vmatpush1.bf16.msra.mxu1 %v15117_v32  ;;  %v4870_v46 = vld [vmem:[#allocation6 + $0xb8] sm:$0xff]  ;;  %v15127_v32 = vld [vmem:[%s19347_s6 + $0x148] sm:$0xff]  }
 0x4c5   : > { %7759 = vmatpush1.bf16.msra.mxu0 %v15120_v44  ;;  %8455 = vmatprep.subr.bf16.mxu1 %v19360_v53  ;;  %v4771_v44 = vld [vmem:[#allocation5 + $0xd2] sm:$0xff] }
 0x4c6   : > { %7760 = vmatprep.subr.bf16.mxu0 %v19360_v53  ;;  %v17400_v9 = vpack.c.bf16 %v4772_v42, %v4771_v44  ;;  %v4876_v42 = vld [vmem:[#allocation6 + $0xe8] sm:$0xff]  ;;  %v4290_v44 = vld [vmem:[#allocation5 + $0xb0] sm:$0xff] }
 0x4c8   : > { %8456 = vmatpush1.bf16.msra.mxu1 %v15121_v48  ;;  %v4906_v48 = vpack.c.bf16 %v4870_v46, %v4869_v3 }
 0x4c9   : > { %7761 = vmatpush1.bf16.msra.mxu0 %v15122_v22  ;;  %8650 = vmatprep.subr.bf16.mxu1 %v19360_v53  ;;  %v15128_v22 = vld [vmem:[%s19347_s6 + $0x150] sm:$0xff]  }
 0x4ca   : > { %7582 = vmatmul.mubr.bf16.gmra.mrb[180].mxu0 %v17244_v23  ;;  %7762 = vmatprep.subr.bf16.mxu0 %v19360_v53  ;;  %v4769_v23 = vld [vmem:[#allocation5 + $0xc2] sm:$0xff] }
 0x4cb   : > { %7589 = vmatprep.mubr.bf16.mxu0 %v4323_v36  ;;  %8297 = vmatmul.mubr.bf16.gmra.mrb[252].mxu1 %v17375_v30  ;;  %v17388_v13 = vpack.c.bf16 %v4770_v49, %v4769_v23  ;;  %v4774_v36 = vld [vmem:[#allocation5 + $0xea] sm:$0xff]  ;;  %v15132_v49 = vld [vmem:[%s19347_s6 + $0x168] sm:$0xff]  }
 0x4cc   : > { %8304 = vmatprep.mubr.bf16.mxu1 %v4904_v17  ;;  %v4773_v17 = vld [vmem:[#allocation5 + $0xe2] sm:$0xff]  ;;  %v4874_v23 = vld [vmem:[#allocation6 + $0xd8] sm:$0xff] }
 0x4cd   : > { %7763 = vmatpush1.bf16.msra.mxu0 %v15123_v59  ;;  %v4907_v59 = vpack.c.bf16 %v4872_v5, %v4871_v21  ;;  %v17412_v28 = vpack.c.bf16 %v4774_v36, %v4773_v17  ;;  %v4291_v17 = vld [vmem:[#allocation5 + $0xb8] sm:$0xff] }
 0x4ce   : > { %7764 = vmatprep.subr.bf16.mxu0 %v19360_v53  ;;  %v4780_v36 = vld [vmem:[#allocation5 + $0x11a] sm:$0xff] }
 0x4d1   : > { %7765 = vmatpush1.bf16.msra.mxu0 %v15124_v0  ;;  %v4287_v0 = vld [vmem:[#allocation5 + $0x98] sm:$0xff] }
 0x4d2   : > { %7590 = vmatmul.mubr.bf16.gmra.mrb[184].mxu0 %v17258_v2  ;;  %7766 = vmatprep.subr.bf16.mxu0 %v19360_v53  ;;  %v4283_v2 = vld [vmem:[#allocation5 + $0x78] sm:$0xff] }
 0x4d3   : > { %7597 = vmatprep.mubr.bf16.mxu0 %v4324_v61  ;;  %8305 = vmatmul.mubr.bf16.gmra.mrb[160].mxu1 %v17388_v13  ;;  %v4325_v55 = vpack.c.bf16 %v4284_v26, %v4283_v2  ;;  %v4776_v61 = vld [vmem:[#allocation5 + $0xfa] sm:$0xff]  ;;  %v15135_v2 = vld [vmem:[%s19347_s6 + $0x178] sm:$0xff]  }
 0x4d4   : > { %8312 = vmatprep.mubr.bf16.mxu1 %v4905_v58  ;;  %v4288_v58 = vld [vmem:[#allocation5 + $0xa0] sm:$0xff]  ;;  %v4875_v26 = vld [vmem:[#allocation6 + $0xe0] sm:$0xff] }
 0x4d5   : > { %7767 = vmatpush1.bf16.msra.mxu0 %v15126_v45  ;;  %v4908_v45 = vpack.c.bf16 %v4874_v23, %v4873_v43  ;;  %v4327_v3 = vpack.c.bf16 %v4288_v58, %v4287_v0  ;;  %v4879_v43 = vld [vmem:[#allocation6 + $0x100] sm:$0xff]  ;;  %v4880_v23 = vld [vmem:[#allocation6 + $0x108] sm:$0xff] }
 0x4d6   : > { %7768 = vmatprep.subr.bf16.mxu0 %v19360_v53  ;;  %v4781_v58 = vld [vmem:[#allocation5 + $0x122] sm:$0xff] }
 0x4d9   : > { %7769 = vmatpush1.bf16.msra.mxu0 %v15127_v32  ;;  %v15134_v32 = vld [vmem:[%s19347_s6 + $0x170] sm:$0xff]  }
 0x4da   : > { %7598 = vmatmul.mubr.bf16.gmra.mrb[188].mxu0 %v17272_v11  ;;  %7770 = vmatprep.subr.bf16.mxu0 %v19360_v53  ;;  %v4286_v11 = vld [vmem:[#allocation5 + $0x90] sm:$0xff] }
 0x4db   : > { %7605 = vmatprep.mubr.bf16.mxu0 %v4325_v55  ;;  %8313 = vmatmul.mubr.bf16.gmra.mrb[164].mxu1 %v17400_v9  ;;  %v4326_v37 = vpack.c.bf16 %v4286_v11, %v4285_v63  ;;  %v4289_v55 = vld [vmem:[#allocation5 + $0xa8] sm:$0xff]  ;;  %v4878_v63 = vld [vmem:[#allocation6 + $0xf8] sm:$0xff] }
 0x4dc   : > { %8320 = vmatprep.mubr.bf16.mxu1 %v4906_v48  ;;  %v4777_v48 = vld [vmem:[#allocation5 + $0x102] sm:$0xff]  ;;  %v4328_v21 = vpack.c.bf16 %v4290_v44, %v4289_v55  ;;  %v4779_v11 = vld [vmem:[#allocation5 + $0x112] sm:$0xff] }
 0x4dd   : > { %7771 = vmatpush1.bf16.msra.mxu0 %v15128_v22  ;;  %v4909_v22 = vpack.c.bf16 %v4876_v42, %v4875_v26  ;;  %v17441_v0 = vpack.c.bf16 %v4780_v36, %v4779_v11  ;;  %v4296_v26 = vld [vmem:[#allocation5 + $0xe0] sm:$0xff]  ;;  %v4783_v42 = vld [vmem:[#allocation5 + $0x132] sm:$0xff] }
 0x4de   : > { %7772 = vmatprep.subr.bf16.mxu0 %v19360_v53  ;;  %v4295_v44 = vld [vmem:[#allocation5 + $0xd8] sm:$0xff] }
 0x4e1   : > { %7773 = vmatpush1.bf16.msra.mxu0 %v15130_v25  ;;  %v4877_v25 = vld [vmem:[#allocation6 + $0xf0] sm:$0xff] }
 0x4e2   : > { %7606 = vmatmul.mubr.bf16.gmra.mrb[192].mxu0 %v17288_v39  ;;  %7774 = vmatprep.subr.bf16.mxu0 %v19360_v53  ;;  %v4775_v39 = vld [vmem:[#allocation5 + $0xf2] sm:$0xff] }
 0x4e3   : > { %7613 = vmatprep.mubr.bf16.mxu0 %v4326_v37  ;;  %8321 = vmatmul.mubr.bf16.gmra.mrb[168].mxu1 %v17412_v28  ;;  %v17424_v46 = vpack.c.bf16 %v4776_v61, %v4775_v39  ;;  %v4910_v37 = vpack.c.bf16 %v4878_v63, %v4877_v25  ;;  %v4782_v39 = vld [vmem:[#allocation5 + $0x12a] sm:$0xff]  ;;  %v4911_v61 = vpack.c.bf16 %v4880_v23, %v4879_v43  ;;  %v4785_v25 = vld [vmem:[#allocation5 + $0x142] sm:$0xff]  ;;  %v4787_v43 = vld [vmem:[#allocation5 + $0x152] sm:$0xff] }
 0x4e4   : > { %8328 = vmatprep.mubr.bf16.mxu1 %v4907_v59  ;;  %v4292_v59 = vld [vmem:[#allocation5 + $0xc0] sm:$0xff]  ;;  %v4786_v63 = vld [vmem:[#allocation5 + $0x14a] sm:$0xff] }
 0x4e5   : > { %7775 = vmatpush1.bf16.msra.mxu0 %v15131_v31  ;;  %v4329_v31 = vpack.c.bf16 %v4292_v59, %v4291_v17  ;;  %v4298_v17 = vld [vmem:[#allocation5 + $0xf0] sm:$0xff]  ;;  %v17453_v59 = vpack.c.bf16 %v4786_v63, %v4785_v25  ;;  %v4788_v23 = vld [vmem:[#allocation5 + $0x15a] sm:$0xff] }
 0x4e6   : > { %7776 = vmatprep.subr.bf16.mxu0 %v19360_v53 }
 0x4e9   : > { %7777 = vmatpush1.bf16.msra.mxu0 %v15132_v49  ;;  %v4294_v49 = vld [vmem:[#allocation5 + $0xd0] sm:$0xff] }
 0x4ea   : > { %7614 = vmatmul.mubr.bf16.gmra.mrb[196].mxu0 %v17303_v20  ;;  %7778 = vmatprep.subr.bf16.mxu0 %v19360_v53  ;;  %v4778_v20 = vld [vmem:[#allocation5 + $0x10a] sm:$0xff] }
 0x4eb   : > { %7621 = vmatprep.mubr.bf16.mxu0 %v4327_v3  ;;  %8329 = vmatmul.mubr.bf16.gmra.mrb[172].mxu1 %v17424_v46  ;;  %v17436_v5 = vpack.c.bf16 %v4778_v20, %v4777_v48  ;;  %v17445_v3 = vpack.c.bf16 %v4782_v39, %v4781_v58  ;;  %v4331_v20 = vpack.c.bf16 %v4296_v26, %v4295_v44  ;;  %v4790_v26 = vld [vmem:[#allocation5 + $0x16a] sm:$0xff] }
 0x4ec   : > { %8336 = vmatprep.mubr.bf16.mxu1 %v4908_v45  ;;  %v17457_v39 = vpack.c.bf16 %v4788_v23, %v4787_v43 }
 0x4ed   : > { %7779 = vmatpush1.bf16.msra.mxu0 %v15134_v32  ;;  %v4882_v32 = vld [vmem:[#allocation6 + $0x118] sm:$0xff] }
 0x4ee   : > { %7780 = vmatprep.subr.bf16.mxu0 %v19360_v53 }
 0x4f1   : > { %7781 = vmatpush1.bf16.msra.mxu0 %v15135_v2  ;;  %v4784_v2 = vld [vmem:[#allocation5 + $0x13a] sm:$0xff] }
 0x4f2   : > { %7622 = vmatmul.mubr.bf16.gmra.mrb[200].mxu0 %v17316_v10  ;;  %7975 = vmatprep.subr.bf16.mxu0 %v19360_v53  ;;  %v4293_v10 = vld [vmem:[#allocation5 + $0xc8] sm:$0xff]  ;;  %v17449_v55 = vpack.c.bf16 %v4784_v2, %v4783_v42 }
 0x4f3   : > { %7629 = vmatprep.mubr.bf16.mxu0 %v4328_v21  ;;  %8337 = vmatmul.mubr.bf16.gmra.mrb[176].mxu1 %v17436_v5  ;;  %v4330_v45 = vpack.c.bf16 %v4294_v49, %v4293_v10  ;;  %v4297_v21 = vld [vmem:[#allocation5 + $0xe8] sm:$0xff]  ;;  %v4300_v10 = vld [vmem:[#allocation5 + $0x100] sm:$0xff] }
 0x4f4   : > { %8344 = vmatprep.mubr.bf16.mxu1 %v4909_v22  ;;  %v4884_v22 = vld [vmem:[#allocation6 + $0x128] sm:$0xff]  ;;  %v4332_v36 = vpack.c.bf16 %v4298_v17, %v4297_v21 }
 0x4f5   : > { %v4792_v21 = vld [vmem:[#allocation5 + $0x17a] sm:$0xff] }
 0x4fa   : > { %7630 = vmatmul.mubr.bf16.gmra.mrb[204].mxu0 %v17337_v34  ;;  %v4881_v34 = vld [vmem:[#allocation6 + $0x110] sm:$0xff] }
 0x4fb   : > { %7637 = vmatprep.mubr.bf16.mxu0 %v4329_v31  ;;  %8345 = vmatmul.mubr.bf16.gmra.mrb[180].mxu1 %v17441_v0  ;;  %v4912_v48 = vpack.c.bf16 %v4882_v32, %v4881_v34  ;;  %v4886_v31 = vld [vmem:[#allocation6 + $0x138] sm:$0xff]  ;;  %v4789_v32 = vld [vmem:[#allocation5 + $0x162] sm:$0xff] }
 0x4fc   : > { %8352 = vmatprep.mubr.bf16.mxu1 %v4910_v37  ;;  %v4885_v37 = vld [vmem:[#allocation6 + $0x130] sm:$0xff]  ;;  %v4302_v34 = vld [vmem:[#allocation5 + $0x110] sm:$0xff]  ;;  %v17461_v44 = vpack.c.bf16 %v4790_v26, %v4789_v32 }
 0x4fd   : > { %v4914_v49 = vpack.c.bf16 %v4886_v31, %v4885_v37  ;;  %v4793_v37 = vld [vmem:[#allocation5 + $0x182] sm:$0xff]  ;;  %v4794_v31 = vld [vmem:[#allocation5 + $0x18a] sm:$0xff] }
 0x4fe   : > { %v4820_v23 = vpack.c.bf16 %v4794_v31, %v4793_v37  ;;  %v15125_v37 = vld [vmem:[%s19347_s6 + $0x300] sm:$0xff]  }
 0x502   : > { %7638 = vmatmul.mubr.bf16.gmra.mrb[208].mxu0 %v17358_v38  ;;  %v4883_v38 = vld [vmem:[#allocation6 + $0x120] sm:$0xff] }
 0x503   : > { %7645 = vmatprep.mubr.bf16.mxu0 %v4330_v45  ;;  %8353 = vmatmul.mubr.bf16.gmra.mrb[184].mxu1 %v17445_v3  ;;  %v4913_v11 = vpack.c.bf16 %v4884_v22, %v4883_v38  ;;  %v4888_v45 = vld [vmem:[#allocation6 + $0x148] sm:$0xff]  ;;  %v4791_v22 = vld [vmem:[#allocation5 + $0x172] sm:$0xff] }
 0x504   : > { %8360 = vmatprep.mubr.bf16.mxu1 %v4911_v61  ;;  %v4887_v61 = vld [vmem:[#allocation6 + $0x140] sm:$0xff]  ;;  %v4304_v38 = vld [vmem:[#allocation5 + $0x120] sm:$0xff]  ;;  %v17465_v17 = vpack.c.bf16 %v4792_v21, %v4791_v22 }
 0x505   : > { %v4915_v42 = vpack.c.bf16 %v4888_v45, %v4887_v61  ;;  %v4307_v61 = vld [vmem:[#allocation5 + $0x138] sm:$0xff]  ;;  %v4308_v45 = vld [vmem:[#allocation5 + $0x140] sm:$0xff] }
 0x506   : > { %v4337_v26 = vpack.c.bf16 %v4308_v45, %v4307_v61  ;;  %v15133_v45 = vld [vmem:[%s19347_s6 + $0x310] sm:$0xff]  }
 0x50a   : > { %7646 = vmatmul.mubr.bf16.gmra.mrb[212].mxu0 %v17375_v30  ;;  %v4299_v30 = vld [vmem:[#allocation5 + $0xf8] sm:$0xff] }
 0x50b   : > { %7653 = vmatprep.mubr.bf16.mxu0 %v4331_v20  ;;  %8361 = vmatmul.mubr.bf16.gmra.mrb[188].mxu1 %v17449_v55  ;;  %v4333_v58 = vpack.c.bf16 %v4300_v10, %v4299_v30  ;;  %v4890_v20 = vld [vmem:[#allocation6 + $0x158] sm:$0xff] }
 0x50c   : > { %8368 = vmatprep.mubr.bf16.mxu1 %v4912_v48  ;;  %v4889_v48 = vld [vmem:[#allocation6 + $0x150] sm:$0xff]  ;;  %v4306_v30 = vld [vmem:[#allocation5 + $0x130] sm:$0xff] }
 0x50d   : > { %v4916_v25 = vpack.c.bf16 %v4890_v20, %v4889_v48  ;;  %v4309_v48 = vld [vmem:[#allocation5 + $0x148] sm:$0xff]  ;;  %v4310_v20 = vld [vmem:[#allocation5 + $0x150] sm:$0xff] }
 0x50e   : > { %v4338_v21 = vpack.c.bf16 %v4310_v20, %v4309_v48  ;;  %v4316_v48 = vld [vmem:[#allocation5 + $0x180] sm:$0xff] }
 0x512   : > { %7654 = vmatmul.mubr.bf16.gmra.mrb[216].mxu0 %v17388_v13  ;;  %v4301_v13 = vld [vmem:[#allocation5 + $0x108] sm:$0xff] }
 0x513   : > { %7661 = vmatprep.mubr.bf16.mxu0 %v4332_v36  ;;  %8369 = vmatmul.mubr.bf16.gmra.mrb[192].mxu1 %v17453_v59  ;;  %v4334_v2 = vpack.c.bf16 %v4302_v34, %v4301_v13  ;;  %v4892_v36 = vld [vmem:[#allocation6 + $0x168] sm:$0xff]  ;;  %v4894_v13 = vld [vmem:[#allocation6 + $0x178] sm:$0xff] }
 0x514   : > { %8376 = vmatprep.mubr.bf16.mxu1 %v4913_v11  ;;  %v4891_v11 = vld [vmem:[#allocation6 + $0x160] sm:$0xff] }
 0x515   : > { %v4917_v10 = vpack.c.bf16 %v4892_v36, %v4891_v11  ;;  %v4311_v11 = vld [vmem:[#allocation5 + $0x158] sm:$0xff]  ;;  %v4312_v36 = vld [vmem:[#allocation5 + $0x160] sm:$0xff] }
 0x51a   : > { %7662 = vmatmul.mubr.bf16.gmra.mrb[220].mxu0 %v17400_v9  ;;  %v4303_v9 = vld [vmem:[#allocation5 + $0x118] sm:$0xff] }
 0x51b   : > { %7669 = vmatprep.mubr.bf16.mxu0 %v4333_v58  ;;  %8377 = vmatmul.mubr.bf16.gmra.mrb[196].mxu1 %v17457_v39  ;;  %v4335_v63 = vpack.c.bf16 %v4304_v38, %v4303_v9  ;;  %v4893_v58 = vld [vmem:[#allocation6 + $0x170] sm:$0xff] }
 0x51c   : > { %8384 = vmatprep.mubr.bf16.mxu1 %v4914_v49  ;;  %v4795_v49 = vld [vmem:[#allocation5 + $0x192] sm:$0xff]  ;;  %v4918_v32 = vpack.c.bf16 %v4894_v13, %v4893_v58  ;;  %v5040_v9 = vld [vmem:[#allocation6 + $0xa] sm:$0xff] }
 0x51d   : > { %v4313_v58 = vld [vmem:[#allocation5 + $0x168] sm:$0xff]  ;;  %v4314_v13 = vld [vmem:[#allocation5 + $0x170] sm:$0xff] }
 0x522   : > { %7670 = vmatmul.mubr.bf16.gmra.mrb[224].mxu0 %v17412_v28  ;;  %v4305_v28 = vld [vmem:[#allocation5 + $0x128] sm:$0xff] }
 0x523   : > { %7677 = vmatprep.mubr.bf16.mxu0 %v4334_v2  ;;  %8385 = vmatmul.mubr.bf16.gmra.mrb[200].mxu1 %v17461_v44  ;;  %v4336_v43 = vpack.c.bf16 %v4306_v30, %v4305_v28  ;;  %v4798_v2 = vld [vmem:[#allocation5 + $0x1aa] sm:$0xff]  ;;  %v5042_v28 = vld [vmem:[#allocation6 + $0x1a] sm:$0xff] }
 0x524   : > { %8392 = vmatprep.mubr.bf16.mxu1 %v4915_v42  ;;  %v4797_v42 = vld [vmem:[#allocation5 + $0x1a2] sm:$0xff] }
 0x525   : > { %v4822_v38 = vpack.c.bf16 %v4798_v2, %v4797_v42  ;;  %v15136_v42 = vld [vmem:[%s19347_s6 + $0x318] sm:$0xff]  }
 0x526   : > { %v5045_v2 = vld [vmem:[#allocation6 + $0x32] sm:$0xff] }
 0x52a   : > { %7678 = vmatmul.mubr.bf16.gmra.mrb[228].mxu0 %v17424_v46  ;;  %v4796_v46 = vld [vmem:[#allocation5 + $0x19a] sm:$0xff] }
 0x52b   : > { %7685 = vmatprep.mubr.bf16.mxu0 %v4335_v63  ;;  %8393 = vmatmul.mubr.bf16.gmra.mrb[204].mxu1 %v17465_v17  ;;  %v4821_v34 = vpack.c.bf16 %v4796_v46, %v4795_v49  ;;  %v4944_v63 = vld [vmem:[#allocation6 + $0x9] sm:$0xff] }
 0x52c   : > { %8400 = vmatprep.mubr.bf16.mxu1 %v4916_v25  ;;  %v4943_v25 = vld [vmem:[#allocation6 + $0x1] sm:$0xff]  ;;  %v5044_v46 = vld [vmem:[#allocation6 + $0x2a] sm:$0xff] }
 0x52d   : > { %v4991_v30 = vpack.c.bf16 %v4944_v63, %v4943_v25  ;;  %v5043_v49 = vld [vmem:[#allocation6 + $0x22] sm:$0xff]  ;;  %v17505_v25 = vld [vmem:[#allocation6 + $0x39] sm:$0xff] }
 0x52e   : > { %v15138_v63 = vld [vmem:[%s19347_s6 + $0x328] sm:$0xff]  }
 0x532   : > { %7686 = vmatmul.mubr.bf16.gmra.mrb[232].mxu0 %v17436_v5  ;;  %v5039_v5 = vld [vmem:[#allocation6 + $0x2] sm:$0xff] }
 0x533   : > { %7693 = vmatprep.mubr.bf16.mxu0 %v4336_v43  ;;  %8401 = vmatmul.mubr.bf16.gmra.mrb[208].mxu1 %v4820_v23  ;;  %v5087_v22 = vpack.c.bf16 %v5040_v9, %v5039_v5  ;;  %v17476_v43 = vld [vmem:[#allocation6 + $0x19] sm:$0xff] }
 0x534   : > { %8408 = vmatprep.mubr.bf16.mxu1 %v4917_v10  ;;  %v4339_v10 = vpack.c.bf16 %v4312_v36, %v4311_v11  ;;  %v15129_v23 = vld [vmem:[%s19347_s6 + $0x308] sm:$0xff]   ;;  %v4317_v11 = vld [vmem:[#allocation5 + $0x188] sm:$0xff]  ;;  %v4318_v36 = vld [vmem:[#allocation5 + $0x190] sm:$0xff] }
 0x535   : > { %v5046_v5 = vld [vmem:[#allocation6 + $0x3a] sm:$0xff] }
 0x536   : > { %v4315_v9 = vld [vmem:[#allocation5 + $0x178] sm:$0xff]  ;;  %v5090_v20 = vpack.c.bf16 %v5046_v5, %v5045_v2  ;;  %v4368_v5 = vld [vmem:[#allocation5 + $0x21] sm:$0xff] }
 0x537   : > { %v15142_v2 = vld [vmem:[%s19347_s6 + $0x348] sm:$0xff]  }
 0x53a   : > { %7694 = vmatmul.mubr.bf16.gmra.mrb[236].mxu0 %v17441_v0  ;;  %v5041_v0 = vld [vmem:[#allocation6 + $0x12] sm:$0xff] }
 0x53b   : > { %7701 = vmatprep.mubr.bf16.mxu0 %v4337_v26  ;;  %8409 = vmatmul.mubr.bf16.gmra.mrb[212].mxu1 %v4821_v34  ;;  %v5088_v31 = vpack.c.bf16 %v5042_v28, %v5041_v0  ;;  %v4340_v34 = vpack.c.bf16 %v4314_v13, %v4313_v58  ;;  %v17490_v26 = vld [vmem:[#allocation6 + $0x29] sm:$0xff] }
 0x53c   : > { %8416 = vmatprep.mubr.bf16.mxu1 %v4918_v32  ;;  %v17488_v32 = vld [vmem:[#allocation6 + $0x21] sm:$0xff]  ;;  %v5048_v28 = vld [vmem:[#allocation6 + $0x4a] sm:$0xff] }
 0x53d   : > { %v5047_v0 = vld [vmem:[#allocation6 + $0x42] sm:$0xff]  ;;  %v4464_v13 = vld [vmem:[#allocation5 + $0x22] sm:$0xff] }
 0x53e   : > { %v4463_v58 = vld [vmem:[#allocation5 + $0x1a] sm:$0xff] }
 0x542   : > { %7702 = vmatmul.mubr.bf16.gmra.mrb[240].mxu0 %v17445_v3  ;;  %v4945_v3 = vld [vmem:[#allocation6 + $0x11] sm:$0xff] }
 0x543   : > { %7709 = vmatprep.mubr.bf16.mxu0 %v4338_v21  ;;  %8417 = vmatmul.mubr.bf16.gmra.mrb[216].mxu1 %v4822_v38  ;;  %v4992_v61 = vpack.c.bf16 %v17476_v43, %v4945_v3  ;;  %v15137_v38 = vld [vmem:[%s19347_s6 + $0x320] sm:$0xff]   ;;  %v17520_v3 = vld [vmem:[#allocation6 + $0x49] sm:$0xff] }
 0x544   : > { %8457 = vmatprep.mubr.bf16.mxu1 %v5087_v22  ;;  %v4341_v22 = vpack.c.bf16 %v4316_v48, %v4315_v9  ;;  %v17503_v21 = vld [vmem:[#allocation6 + $0x31] sm:$0xff]  ;;  %v5051_v9 = vld [vmem:[#allocation6 + $0x62] sm:$0xff] }
 0x545   : > { %v5052_v48 = vld [vmem:[#allocation6 + $0x6a] sm:$0xff] }
 0x54a   : > { %7710 = vmatmul.mubr.bf16.gmra.mrb[244].mxu0 %v17449_v55  ;;  %v5089_v55 = vpack.c.bf16 %v5044_v46, %v5043_v49  ;;  %v5049_v49 = vld [vmem:[#allocation6 + $0x52] sm:$0xff]  ;;  %v5050_v46 = vld [vmem:[#allocation6 + $0x5a] sm:$0xff] }
 0x54b   : > { %7717 = vmatprep.mubr.bf16.mxu0 %v4339_v10  ;;  %8458 = vmatmul.mubr.bf16.vlgmr.msra.gmra.mrb[220].mxu1 %v4991_v30  ;;  %v5091_v30 = vpack.c.bf16 %v5048_v28, %v5047_v0  ;;  %v17518_v10 = vld [vmem:[#allocation6 + $0x41] sm:$0xff] }
 0x54c   : > { %8651 = vmatpush1.bf16.msra.mxu1 %v15125_v37  ;;  %8465 = vmatprep.mubr.bf16.mxu1 %v5088_v31  ;;  %v15139_v37 = vld [vmem:[%s19347_s6 + $0x330] sm:$0xff]   ;;  %v4342_v31 = vpack.c.bf16 %v4318_v36, %v4317_v11 }
 0x54d   : > { %8652 = vmatprep.subr.bf16.mxu1 %v19360_v53  ;;  %v15143_v0 = vld [vmem:[%s19347_s6 + $0x350] sm:$0xff]  }
 0x54e   : > { %v17547_v11 = vld [vmem:[#allocation6 + $0x61] sm:$0xff]  ;;  %v17549_v36 = vld [vmem:[#allocation6 + $0x69] sm:$0xff] }
 0x550   : > { %8653 = vmatpush1.bf16.msra.mxu1 %v15129_v23  ;;  %v15140_v23 = vld [vmem:[%s19347_s6 + $0x338] sm:$0xff]  }
 0x551   : > { %8654 = vmatprep.subr.bf16.mxu1 %v19360_v53 }
 0x552   : > { %7718 = vmatmul.mubr.bf16.gmra.mrb[248].mxu0 %v17453_v59  ;;  %v4993_v59 = vpack.c.bf16 %v17490_v26, %v17488_v32 }
 0x553   : > { %7725 = vmatprep.mubr.bf16.mxu0 %v4340_v34  ;;  %8466 = vmatmul.mubr.bf16.gmra.mrb[224].mxu1 %v4992_v61  ;;  %v5092_v61 = vpack.c.bf16 %v5050_v46, %v5049_v49  ;;  %v17533_v34 = vld [vmem:[#allocation6 + $0x51] sm:$0xff]  ;;  %v4997_v46 = vpack.c.bf16 %v17549_v36, %v17547_v11 }
 0x554   : > { %8473 = vmatprep.mubr.bf16.mxu1 %v5089_v55  ;;  %8655 = vmatpush1.bf16.msra.mxu1 %v15133_v45  ;;  %v15141_v55 = vld [vmem:[%s19347_s6 + $0x340] sm:$0xff]   ;;  %v4511_v45 = vpack.c.bf16 %v4464_v13, %v4463_v58  ;;  %v4468_v49 = vld [vmem:[#allocation5 + $0x42] sm:$0xff] }
 0x555   : > { %8656 = vmatprep.subr.bf16.mxu1 %v19360_v53  ;;  %v15328_v58 = vld [vmem:[#allocation5 + $0x31] sm:$0xff] }
 0x558   : > { %8657 = vmatpush1.bf16.msra.mxu1 %v15136_v42  ;;  %v17535_v42 = vld [vmem:[#allocation6 + $0x59] sm:$0xff] }
 0x559   : > { %8658 = vmatprep.subr.bf16.mxu1 %v19360_v53 }
 0x55a   : > { %7726 = vmatmul.mubr.bf16.gmra.mrb[252].mxu0 %v17457_v39  ;;  %v4994_v39 = vpack.c.bf16 %v17505_v25, %v17503_v21 }
 0x55b   : > { %7733 = vmatprep.mubr.bf16.mxu0 %v4341_v22  ;;  %8474 = vmatmul.mubr.bf16.gmra.mrb[228].mxu1 %v4993_v59  ;;  %v4466_v59 = vld [vmem:[#allocation5 + $0x32] sm:$0xff]  ;;  %v4465_v22 = vld [vmem:[#allocation5 + $0x2a] sm:$0xff] }
 0x55c   : > { %8481 = vmatprep.mubr.bf16.mxu1 %v5090_v20  ;;  %8659 = vmatpush1.bf16.msra.mxu1 %v15137_v38  ;;  %v4367_v20 = vld [vmem:[#allocation5 + $0x19] sm:$0xff]  ;;  %v4512_v28 = vpack.c.bf16 %v4466_v59, %v4465_v22 }
 0x55d   : > { %8660 = vmatprep.subr.bf16.mxu1 %v19360_v53  ;;  %v4415_v38 = vpack.c.bf16 %v4368_v5, %v4367_v20  ;;  %v17569_v5 = vld [vmem:[#allocation6 + $0x71] sm:$0xff]  ;;  %v5055_v59 = vld [vmem:[#allocation6 + $0x82] sm:$0xff]  ;;  %v4470_v22 = vld [vmem:[#allocation5 + $0x52] sm:$0xff] }
 0x55e   : > { %v5056_v20 = vld [vmem:[#allocation6 + $0x8a] sm:$0xff] }
 0x560   : > { %8661 = vmatpush1.bf16.msra.mxu1 %v15138_v63  ;;  %v5093_v63 = vpack.c.bf16 %v5052_v48, %v5051_v9  ;;  %v17571_v9 = vld [vmem:[#allocation6 + $0x79] sm:$0xff] }
 0x561   : > { %8662 = vmatprep.subr.bf16.mxu1 %v19360_v53  ;;  %v15146_v48 = vld [vmem:[%s19347_s6 + $0x368] sm:$0xff]  }
 0x562   : > { %7734 = vmatmul.mubr.bf16.gmra.mrb[0].mxu0 %v17461_v44  ;;  %v4995_v44 = vpack.c.bf16 %v17520_v3, %v17518_v10 }
 0x563   : > { %7741 = vmatprep.mubr.bf16.mxu0 %v4342_v31  ;;  %8482 = vmatmul.mubr.bf16.gmra.mrb[232].mxu1 %v4994_v39  ;;  %v15144_v39 = vld [vmem:[%s19347_s6 + $0x358] sm:$0xff]   ;;  %v5054_v31 = vld [vmem:[#allocation6 + $0x7a] sm:$0xff] }
 0x564   : > { %8489 = vmatprep.mubr.bf16.mxu1 %v5091_v30  ;;  %8663 = vmatpush1.bf16.msra.mxu1 %v15139_v37  ;;  %v4369_v30 = vld [vmem:[#allocation5 + $0x29] sm:$0xff] }
 0x565   : > { %8664 = vmatprep.subr.bf16.mxu1 %v19360_v53  ;;  %v5053_v37 = vld [vmem:[#allocation6 + $0x72] sm:$0xff]  ;;  %v4416_v13 = vpack.c.bf16 %v15328_v58, %v4369_v30  ;;  %v5095_v30 = vpack.c.bf16 %v5056_v20, %v5055_v59  ;;  %v17595_v58 = vld [vmem:[#allocation6 + $0x81] sm:$0xff] }
 0x566   : > { %v15335_v59 = vld [vmem:[#allocation5 + $0x49] sm:$0xff]  ;;  %v15336_v20 = vld [vmem:[#allocation5 + $0x51] sm:$0xff] }
 0x568   : > { %8665 = vmatpush1.bf16.msra.mxu1 %v15140_v23  ;;  %v15327_v23 = vld [vmem:[%s19347_s6 + $0x180] sm:$0xff]  }
 0x569   : > { %8666 = vmatprep.subr.bf16.mxu1 %v19360_v53 }
 0x56a   : > { %7742 = vmatmul.mubr.bf16.gmra.mrb[4].mxu0 %v17465_v17  ;;  %v4996_v17 = vpack.c.bf16 %v17535_v42, %v17533_v34 }
 0x56b   : > { %7782 = vmatprep.mubr.bf16.mxu0 %v4511_v45  ;;  %8490 = vmatmul.mubr.bf16.gmra.mrb[236].mxu1 %v4995_v44  ;;  %v4467_v44 = vld [vmem:[#allocation5 + $0x3a] sm:$0xff] }
 0x56c   : > { %8497 = vmatprep.mubr.bf16.mxu1 %v5092_v61  ;;  %8667 = vmatpush1.bf16.msra.mxu1 %v15141_v55  ;;  %v5094_v61 = vpack.c.bf16 %v5054_v31, %v5053_v37  ;;  %v15145_v55 = vld [vmem:[%s19347_s6 + $0x360] sm:$0xff]   ;;  %v4513_v45 = vpack.c.bf16 %v4468_v49, %v4467_v44  ;;  %v15147_v37 = vld [vmem:[%s19347_s6 + $0x370] sm:$0xff]   ;;  %v17592_v49 = vld [vmem:[%s16940_s16 + $0x78] sm:$0xff]   ;;  %s15364_s16 = scalar_lea.vmem %s19217_s21, 1024 }
 0x56d   : > { %8668 = vmatprep.subr.bf16.mxu1 %v19360_v53  ;;  %v15148_v44 = vld [vmem:[%s19347_s6 + $0x378] sm:$0xff]   ;;  %p15365_p11 = scmp.ne.s32.totalorder %s19217_s21, %s15364_s16 }
 0x56f   : > { %p15366_p12 = pnand %p15365_p11, %p15603_p5 }
 0x570   : > { %8669 = vmatpush1.bf16.msra.mxu1 %v15142_v2  ;;  %v15329_v2 = vld [vmem:[%s19347_s6 + $0x188] sm:$0xff]  }
 0x571   : > { %8670 = vmatprep.subr.bf16.mxu1 %v19360_v53  ;;  %p15367_p13 = pneg %p15366_p12 }
 0x572   : > { %7783 = vmatmul.mubr.bf16.vlgmr.msra.gmra.mrb[168].mxu0 %v4415_v38  ;;  %v4469_v38 = vld [vmem:[#allocation5 + $0x4a] sm:$0xff] }
 0x573   : > { %7790 = vmatprep.mubr.bf16.mxu0 %v4512_v28  ;;  %8498 = vmatmul.mubr.bf16.gmra.mrb[240].mxu1 %v4996_v17  ;;  %v15330_v17 = vld [vmem:[%s19347_s6 + $0x190] sm:$0xff]   ;;  %v4514_v31 = vpack.c.bf16 %v4470_v22, %v4469_v38 }
 0x574   : > { %8505 = vmatprep.mubr.bf16.mxu1 %v5093_v63  ;;  %8671 = vmatpush1.bf16.msra.mxu1 %v15143_v0  ;;  %v4998_v63 = vpack.c.bf16 %v17571_v9, %v17569_v5  ;;  %v15331_v0 = vld [vmem:[#allocation5 + $0x39] sm:$0xff]  ;;  %v15332_v28 = vld [vmem:[#allocation5 + $0x41] sm:$0xff] }
 0x575   : > { %8672 = vmatprep.subr.bf16.mxu1 %v19360_v53  ;;  %7976 = vmatpush1.bf16.msra.mxu0 %v15327_v23  ;;  %v15333_v23 = vld [vmem:[%s19347_s6 + $0x198] sm:$0xff]   ;;  %v4471_v38 = vld [vmem:[#allocation5 + $0x5a] sm:$0xff] }
 0x576   : > { %7977 = vmatprep.subr.bf16.mxu0 %v19360_v53 }
 0x578   : > { %8673 = vmatpush1.bf16.msra.mxu1 %v15144_v39  ;;  %v4417_v39 = vpack.c.bf16 %v15332_v28, %v15331_v0  ;;  %v15337_v0 = vld [vmem:[%s19347_s6 + $0x1a8] sm:$0xff]   ;;  %v17615_v28 = vld [vmem:[#allocation6 + $0x91] sm:$0xff] }
 0x579   : > { %8674 = vmatprep.subr.bf16.mxu1 %v19360_v53  ;;  %7978 = vmatpush1.bf16.msra.mxu0 %v15329_v2  ;;  %v4472_v2 = vld [vmem:[#allocation5 + $0x62] sm:$0xff] }
 0x57a   : > { %7791 = vmatmul.mubr.bf16.gmra.mrb[172].mxu0 %v4416_v13  ;;  %7979 = vmatprep.subr.bf16.mxu0 %v19360_v53  ;;  %v17597_v13 = vld [vmem:[#allocation6 + $0x89] sm:$0xff] }
 0x57b   : > { %7798 = vmatprep.mubr.bf16.mxu0 %v4513_v45  ;;  %8506 = vmatmul.mubr.bf16.gmra.mrb[244].mxu1 %v4997_v46  ;;  %v12888_v46 = vunpack.c.l.bf16 %v17592_v49  ;;  %v15334_v45 = vld [vmem:[%s19347_s6 + $0x1a0] sm:$0xff]  }
 0x57c   : > { %8513 = vmatprep.mubr.bf16.mxu1 %v5094_v61  ;;  %8675 = vmatpush1.bf16.msra.mxu1 %v15145_v55  ;;  %v5057_v61 = vld [vmem:[#allocation6 + $0x92] sm:$0xff]  ;;  %v5058_v55 = vld [vmem:[#allocation6 + $0x9a] sm:$0xff] }
 0x57d   : > { %8676 = vmatprep.subr.bf16.mxu1 %v19360_v53  ;;  %7980 = vmatpush1.bf16.msra.mxu0 %v15330_v17  ;;  %3981 = vst.msk [vmem:[#allocation6 + $0x181] sm:$0xff] %vm549_vm0, %v12888_v46  ;;  %v4418_v17 = vpack.c.bf16 %v15336_v20, %v15335_v59  ;;  %v5096_v22 = vpack.c.bf16 %v5058_v55, %v5057_v61  ;;  %v15340_v61 = vld [vmem:[#allocation5 + $0x61] sm:$0xff]  ;;  %v17629_v20 = vld [vmem:[#allocation6 + $0xa1] sm:$0xff] }
 0x57e   : > { %7981 = vmatprep.subr.bf16.mxu0 %v19360_v53  ;;  %v15341_v59 = vld [vmem:[%s19347_s6 + $0x1b8] sm:$0xff]  }
 0x580   : > { %8677 = vmatpush1.bf16.msra.mxu1 %v15146_v48  ;;  %v4999_v48 = vpack.c.bf16 %v17597_v13, %v17595_v58 }
 0x581   : > { %8678 = vmatprep.subr.bf16.mxu1 %v19360_v53  ;;  %7982 = vmatpush1.bf16.msra.mxu0 %v15333_v23  ;;  %v4474_v23 = vld [vmem:[#allocation5 + $0x72] sm:$0xff] }
 0x582   : > { %7799 = vmatmul.mubr.bf16.gmra.mrb[176].mxu0 %v4417_v39  ;;  %7983 = vmatprep.subr.bf16.mxu0 %v19360_v53  ;;  %v17617_v39 = vld [vmem:[#allocation6 + $0x99] sm:$0xff] }
 0x583   : > { %7806 = vmatprep.mubr.bf16.mxu0 %v4514_v31  ;;  %8514 = vmatmul.mubr.bf16.gmra.mrb[248].mxu1 %v4998_v63  ;;  %v4515_v63 = vpack.c.bf16 %v4472_v2, %v4471_v38  ;;  %v15338_v31 = vld [vmem:[%s19347_s6 + $0x1b0] sm:$0xff]   ;;  %v5000_v46 = vpack.c.bf16 %v17617_v39, %v17615_v28  ;;  %v5061_v38 = vld [vmem:[#allocation6 + $0xb2] sm:$0xff] }
 0x584   : > { %8521 = vmatprep.mubr.bf16.mxu1 %v5095_v30  ;;  %8679 = vmatpush1.bf16.msra.mxu1 %v15147_v37  ;;  %v5059_v30 = vld [vmem:[#allocation6 + $0xa2] sm:$0xff]  ;;  %v5060_v37 = vld [vmem:[#allocation6 + $0xaa] sm:$0xff] }
 0x585   : > { %7984 = vmatpush1.bf16.msra.mxu0 %v15334_v45  ;;  %8680 = vmatprep.subr.bf16.mxu1 %v19360_v53  ;;  %v4473_v45 = vld [vmem:[#allocation5 + $0x6a] sm:$0xff]  ;;  %v5097_v2 = vpack.c.bf16 %v5060_v37, %v5059_v30  ;;  %v4476_v30 = vld [vmem:[#allocation5 + $0x82] sm:$0xff] }
 0x586   : > { %7985 = vmatprep.subr.bf16.mxu0 %v19360_v53 }
 0x588   : > { %8681 = vmatpush1.bf16.msra.mxu1 %v15148_v44  ;;  %v15339_v44 = vld [vmem:[#allocation5 + $0x59] sm:$0xff] }
 0x589   : > { %7986 = vmatpush1.bf16.msra.mxu0 %v15337_v0  ;;  %8875 = vmatprep.subr.bf16.mxu1 %v19360_v53  ;;  %v4419_v55 = vpack.c.bf16 %v15340_v61, %v15339_v44  ;;  %v4475_v0 = vld [vmem:[#allocation5 + $0x7a] sm:$0xff] }
 0x58a   : > { %7807 = vmatmul.mubr.bf16.gmra.mrb[180].mxu0 %v4418_v17  ;;  %7987 = vmatprep.subr.bf16.mxu0 %v19360_v53  ;;  %v17631_v17 = vld [vmem:[#allocation6 + $0xa9] sm:$0xff]  ;;  %v4517_v61 = vpack.c.bf16 %v4476_v30, %v4475_v0  ;;  %v15347_v0 = vld [vmem:[#allocation5 + $0x79] sm:$0xff] }
 0x58b   : > { %7814 = vmatprep.mubr.bf16.mxu0 %v4515_v63  ;;  %8522 = vmatmul.mubr.bf16.gmra.mrb[252].mxu1 %v4999_v48  ;;  %v4516_v48 = vpack.c.bf16 %v4474_v23, %v4473_v45  ;;  %v15342_v63 = vld [vmem:[%s19347_s6 + $0x1c0] sm:$0xff]   ;;  %v5001_v37 = vpack.c.bf16 %v17631_v17, %v17629_v20  ;;  %v15348_v30 = vld [vmem:[#allocation5 + $0x81] sm:$0xff] }
 0x58c   : > { %8529 = vmatprep.mubr.bf16.mxu1 %v5096_v22  ;;  %v5062_v22 = vld [vmem:[#allocation6 + $0xba] sm:$0xff]  ;;  %v15344_v23 = vld [vmem:[#allocation5 + $0x69] sm:$0xff] }
 0x58d   : > { %7988 = vmatpush1.bf16.msra.mxu0 %v15338_v31  ;;  %v15343_v31 = vld [vmem:[#allocation5 + $0x71] sm:$0xff]  ;;  %v5098_v44 = vpack.c.bf16 %v5062_v22, %v5061_v38  ;;  %v17643_v45 = vld [vmem:[#allocation6 + $0xb1] sm:$0xff]  ;;  %v15346_v38 = vld [vmem:[%s19347_s6 + $0x1d0] sm:$0xff]  }
 0x58e   : > { %7989 = vmatprep.subr.bf16.mxu0 %v19360_v53  ;;  %v4478_v22 = vld [vmem:[#allocation5 + $0x92] sm:$0xff] }
 0x591   : > { %7990 = vmatpush1.bf16.msra.mxu0 %v15341_v59  ;;  %v5064_v59 = vld [vmem:[#allocation6 + $0xca] sm:$0xff] }
 0x592   : > { %7815 = vmatmul.mubr.bf16.gmra.mrb[184].mxu0 %v4419_v55  ;;  %7991 = vmatprep.subr.bf16.mxu0 %v19360_v53  ;;  %v15345_v55 = vld [vmem:[%s19347_s6 + $0x1c8] sm:$0xff]  }
 0x593   : > { %7822 = vmatprep.mubr.bf16.mxu0 %v4516_v48  ;;  %8530 = vmatmul.mubr.bf16.gmra.mrb[160].mxu1 %v5000_v46  ;;  %v4420_v46 = vpack.c.bf16 %v15343_v31, %v15344_v23  ;;  %v5063_v48 = vld [vmem:[#allocation6 + $0xc2] sm:$0xff]  ;;  %v4477_v31 = vld [vmem:[#allocation5 + $0x8a] sm:$0xff] }
 0x594   : > { %8537 = vmatprep.mubr.bf16.mxu1 %v5097_v2  ;;  %v17645_v2 = vld [vmem:[#allocation6 + $0xb9] sm:$0xff]  ;;  %v5099_v23 = vpack.c.bf16 %v5064_v59, %v5063_v48  ;;  %v4480_v59 = vld [vmem:[#allocation5 + $0xa2] sm:$0xff] }
 0x595   : > { %7992 = vmatpush1.bf16.msra.mxu0 %v15342_v63  ;;  %v5002_v63 = vpack.c.bf16 %v17645_v2, %v17643_v45  ;;  %v15350_v48 = vld [vmem:[%s19347_s6 + $0x1e0] sm:$0xff]  }
 0x596   : > { %7993 = vmatprep.subr.bf16.mxu0 %v19360_v53 }
 0x599   : > { %7994 = vmatpush1.bf16.msra.mxu0 %v15345_v55  ;;  %v17659_v55 = vld [vmem:[#allocation6 + $0xc9] sm:$0xff] }
 0x59a   : > { %7823 = vmatmul.mubr.bf16.gmra.mrb[188].mxu0 %v4420_v46  ;;  %7995 = vmatprep.subr.bf16.mxu0 %v19360_v53  ;;  %v4518_v46 = vpack.c.bf16 %v4478_v22, %v4477_v31  ;;  %v4479_v31 = vld [vmem:[#allocation5 + $0x9a] sm:$0xff] }
 0x59b   : > { %7830 = vmatprep.mubr.bf16.mxu0 %v4517_v61  ;;  %8538 = vmatmul.mubr.bf16.gmra.mrb[164].mxu1 %v5001_v37  ;;  %v4421_v37 = vpack.c.bf16 %v15348_v30, %v15347_v0  ;;  %v17657_v61 = vld [vmem:[#allocation6 + $0xc1] sm:$0xff]  ;;  %v15351_v30 = vld [vmem:[#allocation5 + $0x89] sm:$0xff] }
 0x59c   : > { %8545 = vmatprep.mubr.bf16.mxu1 %v5098_v44  ;;  %v15349_v44 = vld [vmem:[%s19347_s6 + $0x1d8] sm:$0xff]   ;;  %v5066_v0 = vld [vmem:[#allocation6 + $0xda] sm:$0xff]  ;;  %v5003_v22 = vpack.c.bf16 %v17659_v55, %v17657_v61 }
 0x59d   : > { %7996 = vmatpush1.bf16.msra.mxu0 %v15346_v38  ;;  %v5065_v38 = vld [vmem:[#allocation6 + $0xd2] sm:$0xff] }
 0x59e   : > { %7997 = vmatprep.subr.bf16.mxu0 %v19360_v53 }
 0x5a1   : > { %7998 = vmatpush1.bf16.msra.mxu0 %v15349_v44  ;;  %v15353_v44 = vld [vmem:[%s19347_s6 + $0x1e8] sm:$0xff]  }
 0x5a2   : > { %7831 = vmatmul.mubr.bf16.gmra.mrb[192].mxu0 %v4421_v37  ;;  %7999 = vmatprep.subr.bf16.mxu0 %v19360_v53 }
 0x5a3   : > { %7838 = vmatprep.mubr.bf16.mxu0 %v4518_v46  ;;  %8546 = vmatmul.mubr.bf16.gmra.mrb[168].mxu1 %v5002_v63  ;;  %v15352_v63 = vld [vmem:[#allocation5 + $0x91] sm:$0xff]  ;;  %v4519_v46 = vpack.c.bf16 %v4480_v59, %v4479_v31 }
 0x5a4   : > { %8553 = vmatprep.mubr.bf16.mxu1 %v5099_v23  ;;  %v4422_v37 = vpack.c.bf16 %v15352_v63, %v15351_v30  ;;  %v5100_v23 = vpack.c.bf16 %v5066_v0, %v5065_v38  ;;  %v5068_v30 = vld [vmem:[#allocation6 + $0xea] sm:$0xff]  ;;  %v4481_v0 = vld [vmem:[#allocation5 + $0xaa] sm:$0xff]  ;;  %v4482_v59 = vld [vmem:[#allocation5 + $0xb2] sm:$0xff] }
 0x5a5   : > { %8000 = vmatpush1.bf16.msra.mxu0 %v15350_v48  ;;  %v17671_v48 = vld [vmem:[#allocation6 + $0xd1] sm:$0xff]  ;;  %v15354_v38 = vld [vmem:[%s19347_s6 + $0x1f0] sm:$0xff]  }
 0x5a6   : > { %8001 = vmatprep.subr.bf16.mxu0 %v19360_v53  ;;  %v5004_v63 = vpack.c.bf16 %v17673_v29, %v17671_v48 }
 0x5a9   : > { %8002 = vmatpush1.bf16.msra.mxu0 %v15353_v44  ;;  %v15357_v44 = vld [vmem:[%s19347_s6 + $0x1f8] sm:$0xff]  }
 0x5aa   : > { %7839 = vmatmul.mubr.bf16.gmra.mrb[196].mxu0 %v4422_v37  ;;  %8003 = vmatprep.subr.bf16.mxu0 %v19360_v53  ;;  %v15356_v37 = vld [vmem:[#allocation5 + $0xa1] sm:$0xff] }
 0x5ab   : > { %7846 = vmatprep.mubr.bf16.mxu0 %v4519_v46  ;;  %8554 = vmatmul.mubr.bf16.gmra.mrb[172].mxu1 %v5003_v22  ;;  %v15355_v22 = vld [vmem:[#allocation5 + $0x99] sm:$0xff]  ;;  %v4520_v46 = vpack.c.bf16 %v4482_v59, %v4481_v0  ;;  %v15359_v0 = vld [vmem:[#allocation5 + $0xb1] sm:$0xff] }
 0x5ac   : > { %8561 = vmatprep.mubr.bf16.mxu1 %v5100_v23  ;;  %v4423_v31 = vpack.c.bf16 %v15356_v37, %v15355_v22  ;;  %v5101_v23 = vpack.c.bf16 %v5068_v30, %v5067_v27  ;;  %v15358_v30 = vld [vmem:[#allocation5 + $0xa9] sm:$0xff]  ;;  %v4483_v22 = vld [vmem:[#allocation5 + $0xba] sm:$0xff]  ;;  %v5102_v37 = vpack.c.bf16 %v5070_v8, %v5069_v35  ;;  %v4390_v35 = vld [vmem:[#allocation5 + $0xd1] sm:$0xff] }
 0x5ad   : > { %8004 = vmatpush1.bf16.msra.mxu0 %v15354_v38  ;;  %v17684_v38 = vld [vmem:[#allocation6 + $0xe1] sm:$0xff]  ;;  %v4424_v59 = vpack.c.bf16 %v15359_v0, %v15358_v30  ;;  %v4485_v0 = vld [vmem:[#allocation5 + $0xca] sm:$0xff] }
 0x5ae   : > { %8005 = vmatprep.subr.bf16.mxu0 %v19360_v53  ;;  %v5005_v27 = vpack.c.bf16 %v17686_v18, %v17684_v38  ;;  %v15360_v53 = vld [vmem:[#allocation5 + $0xb9] sm:$0xff] }
 0x5b1   : > { %8006 = vmatpush1.bf16.msra.mxu0 %v15357_v44  ;;  %v4521_v44 = vpack.c.bf16 %v4484_v40, %v4483_v22  ;;  %v4522_v40 = vpack.c.bf16 %v4486_v12, %v4485_v0  ;;  %v4389_v22 = vld [vmem:[#allocation5 + $0xc9] sm:$0xff]  ;;  %v4523_v12 = vpack.c.bf16 %v4488_v62, %v4487_v4  ;;  %v5075_v0 = vld [vmem:[#allocation6 + $0x122] sm:$0xff] }
 0x5b2   : > { %7847 = vmatmul.mubr.bf16.gmra.mrb[200].mxu0 %v4423_v31  ;;  %v17692_v31 = vld [vmem:[#allocation6 + $0xf9] sm:$0xff]  ;;  %v4393_v62 = vld [vmem:[#allocation5 + $0xe9] sm:$0xff] }
 0x5b3   : > { %7854 = vmatprep.mubr.bf16.mxu0 %v4520_v46  ;;  %8562 = vmatmul.mubr.bf16.gmra.mrb[176].mxu1 %v5004_v63  ;;  %v17690_v63 = vld [vmem:[#allocation6 + $0xf1] sm:$0xff]  ;;  %19390 = vst [vmem:[#allocation29_spill] sm:$0xff] %v17692_v31  ;;  %v5071_v46 = vld [vmem:[#allocation6 + $0x102] sm:$0xff] }
 0x5b4   : > { %8569 = vmatprep.mubr.bf16.mxu1 %v5101_v23  ;;  %19389 = vst [vmem:[#allocation28_spill] sm:$0xff] %v17690_v63  ;;  %v4388_v23 = vld [vmem:[#allocation5 + $0xc1] sm:$0xff]  ;;  %v5006_v54 = vpack.c.bf16 %v17692_v31, %v17690_v63  ;;  %v5103_v8 = vpack.c.bf16 %v5072_v57, %v5071_v46  ;;  %v17704_v46 = vld [vmem:[#allocation6 + $0x119] sm:$0xff]  ;;  %v4391_v63 = vld [vmem:[#allocation5 + $0xd9] sm:$0xff] }
 0x5b5   : > { %v4425_v30 = vpack.c.bf16 %v4388_v23, %v15360_v53  ;;  %v4426_v23 = vpack.c.bf16 %v4390_v35, %v4389_v22  ;;  %19394 = vst [vmem:[#allocation33_spill] sm:$0xff] %v17704_v46  ;;  %v4490_v31 = vld [vmem:[#allocation5 + $0xf2] sm:$0xff] }
 0x5ba   : > { %7855 = vmatmul.mubr.bf16.gmra.mrb[204].mxu0 %v4424_v59  ;;  %v17698_v59 = vld [vmem:[#allocation6 + $0x109] sm:$0xff] }
 0x5bb   : > { %7862 = vmatprep.mubr.bf16.mxu0 %v4521_v44  ;;  %8570 = vmatmul.mubr.bf16.gmra.mrb[180].mxu1 %v5005_v27  ;;  %v17696_v27 = vld [vmem:[#allocation6 + $0x101] sm:$0xff]  ;;  %19392 = vst [vmem:[#allocation31_spill] sm:$0xff] %v17698_v59 }
 0x5bc   : > { %8577 = vmatprep.mubr.bf16.mxu1 %v5102_v37  ;;  %19391 = vst [vmem:[#allocation30_spill] sm:$0xff] %v17696_v27  ;;  %v5073_v37 = vld [vmem:[#allocation6 + $0x112] sm:$0xff]  ;;  %v5074_v44 = vld [vmem:[#allocation6 + $0x11a] sm:$0xff]  ;;  %v5007_v53 = vpack.c.bf16 %v17698_v59, %v17696_v27 }
 0x5bd   : > { %v5104_v57 = vpack.c.bf16 %v5074_v44, %v5073_v37  ;;  %v17708_v37 = vld [vmem:[#allocation6 + $0x121] sm:$0xff]  ;;  %v17710_v44 = vld [vmem:[#allocation6 + $0x129] sm:$0xff] }
 0x5be   : > { %19395 = vst [vmem:[#allocation34_spill] sm:$0xff] %v17708_v37  ;;  %19396 = vst [vmem:[#allocation35_spill] sm:$0xff] %v17710_v44  ;;  %v5009_v27 = vpack.c.bf16 %v17710_v44, %v17708_v37  ;;  %v4495_v44 = vld [vmem:[#allocation5 + $0x11a] sm:$0xff]  ;;  %v4496_v37 = vld [vmem:[#allocation5 + $0x122] sm:$0xff] }
 0x5c2   : > { %7863 = vmatmul.mubr.bf16.gmra.mrb[208].mxu0 %v4425_v30  ;;  %v4392_v30 = vld [vmem:[#allocation5 + $0xe1] sm:$0xff] }
 0x5c3   : > { %7870 = vmatprep.mubr.bf16.mxu0 %v4522_v40  ;;  %8578 = vmatmul.mubr.bf16.gmra.mrb[184].mxu1 %v5006_v54  ;;  %v17702_v54 = vld [vmem:[#allocation6 + $0x111] sm:$0xff]  ;;  %v4427_v35 = vpack.c.bf16 %v4392_v30, %v4391_v63  ;;  %v4491_v63 = vld [vmem:[#allocation5 + $0xfa] sm:$0xff] }
 0x5c4   : > { %8585 = vmatprep.mubr.bf16.mxu1 %v5103_v8  ;;  %19393 = vst [vmem:[#allocation32_spill] sm:$0xff] %v17702_v54  ;;  %v5076_v8 = vld [vmem:[#allocation6 + $0x12a] sm:$0xff]  ;;  %v4489_v40 = vld [vmem:[#allocation5 + $0xea] sm:$0xff]  ;;  %v5008_v59 = vpack.c.bf16 %v17704_v46, %v17702_v54  ;;  %v4494_v54 = vld [vmem:[#allocation5 + $0x112] sm:$0xff] }
 0x5c5   : > { %v5105_v22 = vpack.c.bf16 %v5076_v8, %v5075_v0  ;;  %v4524_v4 = vpack.c.bf16 %v4490_v31, %v4489_v40  ;;  %v17714_v0 = vld [vmem:[#allocation6 + $0x131] sm:$0xff]  ;;  %v17716_v8 = vld [vmem:[#allocation6 + $0x139] sm:$0xff]  ;;  %v4395_v40 = vld [vmem:[#allocation5 + $0xf9] sm:$0xff] }
 0x5c6   : > { %19397 = vst [vmem:[#allocation36_spill] sm:$0xff] %v17714_v0  ;;  %19398 = vst [vmem:[#allocation37_spill] sm:$0xff] %v17716_v8 }
 0x5ca   : > { %7871 = vmatmul.mubr.bf16.gmra.mrb[212].mxu0 %v4426_v23  ;;  %v5077_v23 = vld [vmem:[#allocation6 + $0x132] sm:$0xff] }
 0x5cb   : > { %7878 = vmatprep.mubr.bf16.mxu0 %v4523_v12  ;;  %8586 = vmatmul.mubr.bf16.gmra.mrb[188].mxu1 %v5007_v53  ;;  %v4394_v53 = vld [vmem:[#allocation5 + $0xf1] sm:$0xff]  ;;  %v4492_v12 = vld [vmem:[#allocation5 + $0x102] sm:$0xff] }
 0x5cc   : > { %8593 = vmatprep.mubr.bf16.mxu1 %v5104_v57  ;;  %v5078_v57 = vld [vmem:[#allocation6 + $0x13a] sm:$0xff]  ;;  %v4428_v46 = vpack.c.bf16 %v4394_v53, %v4393_v62  ;;  %v4525_v31 = vpack.c.bf16 %v4492_v12, %v4491_v63  ;;  %v5010_v62 = vpack.c.bf16 %v17716_v8, %v17714_v0  ;;  %v17722_v12 = vld [vmem:[#allocation6 + $0x149] sm:$0xff] }
 0x5cd   : > { %v5106_v30 = vpack.c.bf16 %v5078_v57, %v5077_v23  ;;  %19400 = vst [vmem:[#allocation39_spill] sm:$0xff] %v17722_v12  ;;  %v4398_v63 = vld [vmem:[#allocation5 + $0x111] sm:$0xff] }
 0x5ce   : > { %v4498_v0 = vld [vmem:[#allocation5 + $0x132] sm:$0xff] }
 0x5d2   : > { %7879 = vmatmul.mubr.bf16.gmra.mrb[216].mxu0 %v4427_v35  ;;  %v5079_v35 = vld [vmem:[#allocation6 + $0x142] sm:$0xff] }
 0x5d3   : > { %7886 = vmatprep.mubr.bf16.mxu0 %v4524_v4  ;;  %8594 = vmatmul.mubr.bf16.gmra.mrb[192].mxu1 %v5008_v59  ;;  %v4396_v59 = vld [vmem:[#allocation5 + $0x101] sm:$0xff]  ;;  %v4493_v4 = vld [vmem:[#allocation5 + $0x10a] sm:$0xff] }
 0x5d4   : > { %8601 = vmatprep.mubr.bf16.mxu1 %v5105_v22  ;;  %v5080_v22 = vld [vmem:[#allocation6 + $0x14a] sm:$0xff]  ;;  %v4429_v53 = vpack.c.bf16 %v4396_v59, %v4395_v40  ;;  %v4526_v57 = vpack.c.bf16 %v4494_v54, %v4493_v4  ;;  %v4527_v54 = vpack.c.bf16 %v4496_v37, %v4495_v44  ;;  %v17728_v4 = vld [vmem:[#allocation6 + $0x159] sm:$0xff] }
 0x5d5   : > { %v5107_v23 = vpack.c.bf16 %v5080_v22, %v5079_v35  ;;  %v4399_v35 = vld [vmem:[#allocation5 + $0x119] sm:$0xff]  ;;  %v17726_v22 = vld [vmem:[#allocation6 + $0x151] sm:$0xff]  ;;  %19402 = vst [vmem:[#allocation41_spill] sm:$0xff] %v17728_v4 }
 0x5d6   : > { %19401 = vst [vmem:[#allocation40_spill] sm:$0xff] %v17726_v22  ;;  %v4401_v44 = vld [vmem:[#allocation5 + $0x129] sm:$0xff] }
 0x5da   : > { %7887 = vmatmul.mubr.bf16.gmra.mrb[220].mxu0 %v4428_v46  ;;  %v17720_v46 = vld [vmem:[#allocation6 + $0x141] sm:$0xff] }
 0x5db   : > { %7894 = vmatprep.mubr.bf16.mxu0 %v4525_v31  ;;  %8602 = vmatmul.mubr.bf16.gmra.mrb[196].mxu1 %v5009_v27  ;;  %v4397_v27 = vld [vmem:[#allocation5 + $0x109] sm:$0xff]  ;;  %19399 = vst [vmem:[#allocation38_spill] sm:$0xff] %v17720_v46  ;;  %v5082_v31 = vld [vmem:[#allocation6 + $0x15a] sm:$0xff]  ;;  %v5011_v8 = vpack.c.bf16 %v17722_v12, %v17720_v46  ;;  %v5012_v12 = vpack.c.bf16 %v17728_v4, %v17726_v22 }
 0x5dc   : > { %8609 = vmatprep.mubr.bf16.mxu1 %v5106_v30  ;;  %v5081_v30 = vld [vmem:[#allocation6 + $0x152] sm:$0xff]  ;;  %v4430_v59 = vpack.c.bf16 %v4398_v63, %v4397_v27  ;;  %v4500_v46 = vld [vmem:[#allocation5 + $0x142] sm:$0xff] }
 0x5dd   : > { %v5108_v40 = vpack.c.bf16 %v5082_v31, %v5081_v30  ;;  %v17734_v30 = vld [vmem:[#allocation6 + $0x169] sm:$0xff]  ;;  %v4402_v31 = vld [vmem:[#allocation5 + $0x131] sm:$0xff] }
 0x5e2   : > { %7895 = vmatmul.mubr.bf16.gmra.mrb[224].mxu0 %v4429_v53  ;;  %v5083_v53 = vld [vmem:[#allocation6 + $0x162] sm:$0xff] }
 0x5e3   : > { %7902 = vmatprep.mubr.bf16.mxu0 %v4526_v57  ;;  %8610 = vmatmul.mubr.bf16.gmra.mrb[200].mxu1 %v5010_v62  ;;  %v4400_v62 = vld [vmem:[#allocation5 + $0x121] sm:$0xff]  ;;  %v4497_v57 = vld [vmem:[#allocation5 + $0x12a] sm:$0xff] }
 0x5e4   : > { %8617 = vmatprep.mubr.bf16.mxu1 %v5107_v23  ;;  %v5084_v23 = vld [vmem:[#allocation6 + $0x16a] sm:$0xff]  ;;  %v4431_v27 = vpack.c.bf16 %v4400_v62, %v4399_v35  ;;  %v4528_v37 = vpack.c.bf16 %v4498_v0, %v4497_v57  ;;  %v4432_v35 = vpack.c.bf16 %v4402_v31, %v4401_v44  ;;  %v5279_v44 = vpack.c.bf16 %v17488_v32, %v17476_v43  ;;  %v5136_v31 = vld [vmem:[#allocation6 + $0x20] sm:$0xff] }
 0x5e5   : > { %v5109_v63 = vpack.c.bf16 %v5084_v23, %v5083_v53  ;;  %v17740_v53 = vld [vmem:[#allocation6 + $0x179] sm:$0xff]  ;;  %v4403_v23 = vld [vmem:[#allocation5 + $0x139] sm:$0xff]  ;;  %v4404_v57 = vld [vmem:[#allocation5 + $0x141] sm:$0xff]  ;;  %v5280_v43 = vpack.c.bf16 %v17503_v21, %v17490_v26 }
 0x5e6   : > { %v4433_v22 = vpack.c.bf16 %v4404_v57, %v4403_v23  ;;  %v15149_v23 = vld [vmem:[%s19347_s6 + $0x380] sm:$0xff]   ;;  %v17751_v57 = vld [vmem:[#allocation6 + $0x30] sm:$0xff] }
 0x5ea   : > { %7903 = vmatmul.mubr.bf16.gmra.mrb[228].mxu0 %v4430_v59  ;;  %v5085_v59 = vld [vmem:[#allocation6 + $0x172] sm:$0xff] }
 0x5eb   : > { %7910 = vmatprep.mubr.bf16.mxu0 %v4527_v54  ;;  %8618 = vmatmul.mubr.bf16.gmra.mrb[204].mxu1 %v5011_v8  ;;  %v17732_v8 = vld [vmem:[#allocation6 + $0x161] sm:$0xff] }
 0x5ec   : > { %8625 = vmatprep.mubr.bf16.mxu1 %v5108_v40  ;;  %v5086_v40 = vld [vmem:[#allocation6 + $0x17a] sm:$0xff]  ;;  %v4499_v54 = vld [vmem:[#allocation5 + $0x13a] sm:$0xff]  ;;  %v5013_v4 = vpack.c.bf16 %v17734_v30, %v17732_v8 }
 0x5ed   : > { %v5110_v62 = vpack.c.bf16 %v5086_v40, %v5085_v59  ;;  %v4529_v0 = vpack.c.bf16 %v4500_v46, %v4499_v54  ;;  %v4405_v59 = vld [vmem:[#allocation5 + $0x149] sm:$0xff]  ;;  %v4406_v40 = vld [vmem:[#allocation5 + $0x151] sm:$0xff]  ;;  %v4503_v54 = vld [vmem:[#allocation5 + $0x15a] sm:$0xff] }
 0x5f2   : > { %7911 = vmatmul.mubr.bf16.gmra.mrb[232].mxu0 %v4431_v27  ;;  %v4501_v27 = vld [vmem:[#allocation5 + $0x14a] sm:$0xff] }
 0x5f3   : > { %7918 = vmatprep.mubr.bf16.mxu0 %v4528_v37  ;;  %8626 = vmatmul.mubr.bf16.gmra.mrb[208].mxu1 %v5012_v12  ;;  %v17738_v12 = vld [vmem:[#allocation6 + $0x171] sm:$0xff] }
 0x5f4   : > { %8633 = vmatprep.mubr.bf16.mxu1 %v5109_v63  ;;  %v4502_v63 = vld [vmem:[#allocation5 + $0x152] sm:$0xff]  ;;  %v5014_v37 = vpack.c.bf16 %v17740_v53, %v17738_v12 }
 0x5f5   : > { %v4530_v46 = vpack.c.bf16 %v4502_v63, %v4501_v27  ;;  %v15150_v27 = vld [vmem:[%s19347_s6 + $0x388] sm:$0xff]  }
 0x5f6   : > { %v4407_v63 = vld [vmem:[#allocation5 + $0x159] sm:$0xff] }
 0x5fa   : > { %7919 = vmatmul.mubr.bf16.gmra.mrb[236].mxu0 %v4432_v35  ;;  %v4504_v35 = vld [vmem:[#allocation5 + $0x162] sm:$0xff] }
 0x5fb   : > { %7926 = vmatprep.mubr.bf16.mxu0 %v4529_v0  ;;  %8634 = vmatmul.mubr.bf16.gmra.mrb[212].mxu1 %v5013_v4  ;;  %v5135_v4 = vld [vmem:[#allocation6 + $0x18] sm:$0xff]  ;;  %v4434_v0 = vpack.c.bf16 %v4406_v40, %v4405_v59  ;;  %v4531_v32 = vpack.c.bf16 %v4504_v35, %v4503_v54  ;;  %v15151_v59 = vld [vmem:[%s19347_s6 + $0x390] sm:$0xff]   ;;  %v17766_v35 = vld [vmem:[#allocation6 + $0x40] sm:$0xff] }
 0x5fc   : > { %8641 = vmatprep.mubr.bf16.mxu1 %v5110_v62  ;;  %v5183_v62 = vpack.c.bf16 %v5136_v31, %v5135_v4  ;;  %v4506_v4 = vld [vmem:[#allocation5 + $0x172] sm:$0xff]  ;;  %v5281_v31 = vpack.c.bf16 %v17518_v10, %v17505_v25  ;;  %v15152_v25 = vld [vmem:[%s19347_s6 + $0x398] sm:$0xff]  }
 0x5fd   : > { %v17764_v54 = vld [vmem:[#allocation6 + $0x38] sm:$0xff] }
 0x5fe   : > { %v4409_v10 = vld [vmem:[#allocation5 + $0x169] sm:$0xff] }
 0x602   : > { %7927 = vmatmul.mubr.bf16.gmra.mrb[240].mxu0 %v4433_v22  ;;  %v5137_v22 = vld [vmem:[#allocation6 + $0x28] sm:$0xff] }
 0x603   : > { %7934 = vmatprep.mubr.bf16.mxu0 %v4530_v46  ;;  %8642 = vmatmul.mubr.bf16.gmra.mrb[216].mxu1 %v5014_v37  ;;  %v4408_v37 = vld [vmem:[#allocation5 + $0x161] sm:$0xff]  ;;  %v4505_v46 = vld [vmem:[#allocation5 + $0x16a] sm:$0xff]  ;;  %v5184_v26 = vpack.c.bf16 %v17751_v57, %v5137_v22  ;;  %v5282_v22 = vpack.c.bf16 %v17533_v34, %v17520_v3  ;;  %v15154_v3 = vld [vmem:[%s19347_s6 + $0x3a8] sm:$0xff]  }
 0x604   : > { %8682 = vmatprep.mubr.bf16.mxu1 %v5279_v44  ;;  %v19403_v44 = vmov 0   ;;  %v4435_v21 = vpack.c.bf16 %v4408_v37, %v4407_v63  ;;  %v4532_v40 = vpack.c.bf16 %v4506_v4, %v4505_v46  ;;  %v17780_v37 = vld [vmem:[#allocation6 + $0x48] sm:$0xff]  ;;  %v17782_v46 = vld [vmem:[#allocation6 + $0x50] sm:$0xff] }
 0x605   : > { %v4411_v34 = vld [vmem:[#allocation5 + $0x179] sm:$0xff]  ;;  %v4412_v4 = vld [vmem:[#allocation5 + $0x181] sm:$0xff] }
 0x60a   : > { %7935 = vmatmul.mubr.bf16.gmra.mrb[244].mxu0 %v4434_v0  ;;  %v4507_v0 = vld [vmem:[#allocation5 + $0x17a] sm:$0xff] }
 0x60b   : > { %7942 = vmatprep.mubr.bf16.mxu0 %v4531_v32  ;;  %8683 = vmatmul.mubr.bf16.vlgmr.msra.gmra.mrb[220].mxu1 %v5183_v62  ;;  %v4410_v62 = vld [vmem:[#allocation5 + $0x171] sm:$0xff] }
 0x60c   : > { %8876 = vmatpush1.bf16.msra.mxu1 %v15149_v23  ;;  %8690 = vmatprep.mubr.bf16.mxu1 %v5280_v43  ;;  %v4508_v23 = vld [vmem:[#allocation5 + $0x182] sm:$0xff]  ;;  %v5185_v43 = vpack.c.bf16 %v17766_v35, %v17764_v54  ;;  %v4436_v32 = vpack.c.bf16 %v4410_v62, %v4409_v10  ;;  %v17796_v62 = vld [vmem:[#allocation6 + $0x58] sm:$0xff] }
 0x60d   : > { %8877 = vmatprep.subr.bf16.mxu1 %v19403_v44  ;;  %v4533_v63 = vpack.c.bf16 %v4508_v23, %v4507_v0  ;;  %v17798_v0 = vld [vmem:[#allocation6 + $0x60] sm:$0xff] }
 0x60e   : > { %v4414_v23 = vld [vmem:[#allocation5 + $0x191] sm:$0xff] }
 0x610   : > { %8878 = vmatpush1.bf16.msra.mxu1 %v15150_v27  ;;  %v15153_v27 = vld [vmem:[%s19347_s6 + $0x3a0] sm:$0xff]  }
 0x611   : > { %8879 = vmatprep.subr.bf16.mxu1 %v19403_v44 }
 0x612   : > { %7943 = vmatmul.mubr.bf16.gmra.mrb[248].mxu0 %v4435_v21  ;;  %v4510_v21 = vld [vmem:[#allocation5 + $0x192] sm:$0xff] }
 0x613   : > { %7950 = vmatprep.mubr.bf16.mxu0 %v4532_v40  ;;  %8691 = vmatmul.mubr.bf16.gmra.mrb[224].mxu1 %v5184_v26  ;;  %v4509_v26 = vld [vmem:[#allocation5 + $0x18a] sm:$0xff]  ;;  %v5283_v40 = vpack.c.bf16 %v17547_v11, %v17535_v42 }
 0x614   : > { %8698 = vmatprep.mubr.bf16.mxu1 %v5281_v31  ;;  %8880 = vmatpush1.bf16.msra.mxu1 %v15151_v59  ;;  %v5186_v31 = vpack.c.bf16 %v17782_v46, %v17780_v37  ;;  %v4437_v59 = vpack.c.bf16 %v4412_v4, %v4411_v34  ;;  %v4534_v10 = vpack.c.bf16 %v4510_v21, %v4509_v26  ;;  %v15156_v42 = vld [vmem:[%s19347_s6 + $0x3b8] sm:$0xff]   ;;  %v4559_v4 = vld [vmem:[#allocation5 + $0x30] sm:$0xff]  ;;  %v15159_v21 = vld [vmem:[%s19347_s6 + $0x3d0] sm:$0xff]  }
 0x615   : > { %8881 = vmatprep.subr.bf16.mxu1 %v19403_v44  ;;  %v4413_v11 = vld [vmem:[#allocation5 + $0x189] sm:$0xff] }
 0x616   : > { %v17817_v34 = vld [vmem:[#allocation6 + $0x70] sm:$0xff] }
 0x618   : > { %8882 = vmatpush1.bf16.msra.mxu1 %v15152_v25  ;;  %v15155_v25 = vld [vmem:[%s19347_s6 + $0x3b0] sm:$0xff]  }
 0x619   : > { %8883 = vmatprep.subr.bf16.mxu1 %v19403_v44 }
 0x61a   : > { %7951 = vmatmul.mubr.bf16.gmra.mrb[252].mxu0 %v4436_v32  ;;  %v4438_v32 = vpack.c.bf16 %v4414_v23, %v4413_v11  ;;  %v19406_v11 = vpack.c.bf16 %v17122_v1, %v17120_v51  ;;  %v17853_v23 = vld [vmem:[#allocation6 + $0x88] sm:$0xff]  ;;  %v5287_v1 = vpack.c.bf16 %v17629_v20, %v17617_v39  ;;  %v17876_v39 = vld [vmem:[#allocation6 + $0xa0] sm:$0xff]  ;;  %v4566_v20 = vld [vmem:[#allocation5 + $0x68] sm:$0xff] }
 0x61b   : > { %7958 = vmatprep.mubr.bf16.mxu0 %v4533_v63  ;;  %8699 = vmatmul.mubr.bf16.gmra.mrb[228].mxu1 %v5185_v43  ;;  %v5187_v43 = vpack.c.bf16 %v17798_v0, %v17796_v62  ;;  %v19404_v63 = vpack.c.bf16 %v17110_v15, %v17108_v52  ;;  %v5285_v15 = vpack.c.bf16 %v17595_v58, %v17571_v9  ;;  %v15160_v9 = vld [vmem:[%s19347_s6 + $0x3d8] sm:$0xff]  }
 0x61c   : > { %8706 = vmatprep.mubr.bf16.mxu1 %v5282_v22  ;;  %8884 = vmatpush1.bf16.msra.mxu1 %v15153_v27  ;;  %v5284_v22 = vpack.c.bf16 %v17569_v5, %v17549_v36  ;;  %v15157_v27 = vld [vmem:[%s19347_s6 + $0x3c0] sm:$0xff]   ;;  %v15158_v36 = vld [vmem:[%s19347_s6 + $0x3c8] sm:$0xff]   ;;  %v4562_v58 = vld [vmem:[#allocation5 + $0x48] sm:$0xff] }
 0x61d   : > { %8885 = vmatprep.subr.bf16.mxu1 %v19403_v44  ;;  %v4560_v5 = vld [vmem:[#allocation5 + $0x38] sm:$0xff] }
 0x61e   : > { %v4607_v52 = vpack.c.bf16 %v4560_v5, %v4559_v4  ;;  %v17874_v5 = vld [vmem:[#allocation6 + $0x98] sm:$0xff]  ;;  %v4565_v4 = vld [vmem:[#allocation5 + $0x60] sm:$0xff] }
 0x620   : > { %8886 = vmatpush1.bf16.msra.mxu1 %v15154_v3  ;;  %v17815_v3 = vld [vmem:[#allocation6 + $0x68] sm:$0xff] }
 0x621   : > { %8887 = vmatprep.subr.bf16.mxu1 %v19403_v44  ;;  %v5188_v26 = vpack.c.bf16 %v17817_v34, %v17815_v3 }
 0x622   : > { %7959 = vmatmul.mubr.bf16.gmra.mrb[0].mxu0 %v4437_v59  ;;  %v17834_v59 = vld [vmem:[#allocation6 + $0x78] sm:$0xff] }
 0x623   : > { %7966 = vmatprep.mubr.bf16.mxu0 %v4534_v10  ;;  %8707 = vmatmul.mubr.bf16.gmra.mrb[232].mxu1 %v5186_v31  ;;  %v19405_v31 = vpack.c.bf16 %v17115_v7, %v17113_v41  ;;  %v5286_v7 = vpack.c.bf16 %v17615_v28, %v17597_v13  ;;  %v15162_v13 = vld [vmem:[%s19347_s6 + $0x3e8] sm:$0xff]   ;;  %v4563_v28 = vld [vmem:[#allocation5 + $0x50] sm:$0xff] }
 0x624   : > { %8714 = vmatprep.mubr.bf16.mxu1 %v5283_v40  ;;  %8888 = vmatpush1.bf16.msra.mxu1 %v15155_v25  ;;  %v17836_v40 = vld [vmem:[#allocation6 + $0x80] sm:$0xff]  ;;  %v4561_v25 = vld [vmem:[#allocation5 + $0x40] sm:$0xff] }
 0x625   : > { %8889 = vmatprep.subr.bf16.mxu1 %v19403_v44  ;;  %v5189_v10 = vpack.c.bf16 %v17836_v40, %v17834_v59  ;;  %v4608_v41 = vpack.c.bf16 %v4562_v58, %v4561_v25  ;;  %v17903_v25 = vld [vmem:[#allocation6 + $0xc0] sm:$0xff] }
 0x628   : > { %8890 = vmatpush1.bf16.msra.mxu1 %v15156_v42  ;;  %v15161_v42 = vld [vmem:[%s19347_s6 + $0x3e0] sm:$0xff]  }
 0x629   : > { %8891 = vmatprep.subr.bf16.mxu1 %v19403_v44 }
 0x62a   : > { %7967 = vmatmul.mubr.bf16.gmra.mrb[4].mxu0 %v4438_v32  ;;  %v4564_v32 = vld [vmem:[#allocation5 + $0x58] sm:$0xff] }
 0x62b   : > { %8007 = vmatprep.mubr.bf16.mxu0 %v19404_v63  ;;  %8715 = vmatmul.mubr.bf16.gmra.mrb[236].mxu1 %v5187_v43  ;;  %v17855_v43 = vld [vmem:[#allocation6 + $0x90] sm:$0xff]  ;;  %v4609_v51 = vpack.c.bf16 %v4564_v32, %v4563_v28  ;;  %v12889_v63 = vunpack.c.h.bf16 %v17592_v49 }
 0x62c   : > { %8722 = vmatprep.mubr.bf16.mxu1 %v5284_v22  ;;  %8892 = vmatpush1.bf16.msra.mxu1 %v15157_v27  ;;  %v5190_v22 = vpack.c.bf16 %v17855_v43, %v17853_v23  ;;  %v15163_v27 = vld [vmem:[%s19347_s6 + $0x3f0] sm:$0xff]   ;;  %v15164_v49 = vld [vmem:[%s19347_s6 + $0x3f8] sm:$0xff]  }
 0x62d   : > { %8893 = vmatprep.subr.bf16.mxu1 %v19403_v44  ;;  %3982 = vst.msk [vmem:[#allocation6 + $0x189] sm:$0xff] %vm549_vm0, %v12889_v63  ;;  %v19412_v63 = vld [vmem:[#allocation28_spill] sm:$0xff] }
 0x630   : > { %8894 = vmatpush1.bf16.msra.mxu1 %v15158_v36  ;;  %v19407_v36 = vpack.c.bf16 %v17140_v19, %v17138_v60  ;;  %v4610_v60 = vpack.c.bf16 %v4566_v20, %v4565_v4  ;;  %v5288_v19 = vpack.c.bf16 %v17643_v45, %v17631_v17  ;;  %v5289_v45 = vpack.c.bf16 %v17657_v61, %v17645_v2  ;;  %v17914_v61 = vld [vmem:[#allocation6 + $0xd0] sm:$0xff]  ;;  %v4575_v20 = vld [vmem:[#allocation5 + $0xb0] sm:$0xff]  ;;  %v4576_v4 = vld [vmem:[#allocation5 + $0xb8] sm:$0xff] }
 0x631   : > { %8895 = vmatprep.subr.bf16.mxu1 %v19403_v44  ;;  %v5290_v2 = vpack.c.bf16 %v17671_v48, %v17659_v55  ;;  %v5291_v55 = vpack.c.bf16 %v17684_v38, %v17673_v29  ;;  %v17925_v48 = vld [vmem:[#allocation6 + $0xe0] sm:$0xff]  ;;  %v5292_v29 = vpack.c.bf16 %v19412_v63, %v17686_v18 }
 0x632   : > { %8008 = vmatmul.mubr.bf16.vlgmr.msra.gmra.mrb[168].mxu0 %v4607_v52  ;;  %v19408_v52 = vpack.c.bf16 %v17142_v6, %v17130_v56  ;;  %v19409_v56 = vpack.c.bf16 %v17132_v14, %v17144_v24  ;;  %v17901_v6 = vld [vmem:[#allocation6 + $0xb8] sm:$0xff]  ;;  %v19410_v14 = vpack.c.bf16 %v17157_v33, %v17155_v16  ;;  %v17912_v24 = vld [vmem:[#allocation6 + $0xc8] sm:$0xff]  ;;  %v19411_v16 = vpack.c.bf16 %v17164_v50, %v17162_v47  ;;  %v19413_v38 = vld [vmem:[#allocation27_spill] sm:$0xff] }
 0x633   : > { %8015 = vmatprep.mubr.bf16.mxu0 %v19405_v31  ;;  %8723 = vmatmul.mubr.bf16.gmra.mrb[240].mxu1 %v5188_v26  ;;  %v5191_v26 = vpack.c.bf16 %v17876_v39, %v17874_v5  ;;  %v4568_v31 = vld [vmem:[#allocation5 + $0x78] sm:$0xff]  ;;  %v5194_v28 = vpack.c.bf16 %v17914_v61, %v17912_v24  ;;  %v17923_v33 = vld [vmem:[#allocation6 + $0xd8] sm:$0xff]  ;;  %v17934_v50 = vld [vmem:[#allocation6 + $0xe8] sm:$0xff] }
 0x634   : > { %8730 = vmatprep.mubr.bf16.mxu1 %v5285_v15  ;;  %8896 = vmatpush1.bf16.msra.mxu1 %v15159_v21  ;;  %v17890_v15 = vld [vmem:[#allocation6 + $0xa8] sm:$0xff]  ;;  %v17892_v21 = vld [vmem:[#allocation6 + $0xb0] sm:$0xff] }
 0x635   : > { %8897 = vmatprep.subr.bf16.mxu1 %v19403_v44  ;;  %v5192_v58 = vpack.c.bf16 %v17892_v21, %v17890_v15 }
 0x638   : > { %8898 = vmatpush1.bf16.msra.mxu1 %v15160_v9  ;;  %v4567_v9 = vld [vmem:[#allocation5 + $0x70] sm:$0xff] }
 0x639   : > { %8899 = vmatprep.subr.bf16.mxu1 %v19403_v44  ;;  %v4611_v17 = vpack.c.bf16 %v4568_v31, %v4567_v9  ;;  %v17942_v31 = vld [vmem:[#allocation6 + $0xf8] sm:$0xff]  ;;  %v17944_v9 = vld [vmem:[#allocation6 + $0x100] sm:$0xff] }
 0x63a   : > { %8016 = vmatmul.mubr.bf16.gmra.mrb[172].mxu0 %v4608_v41  ;;  %v4570_v41 = vld [vmem:[#allocation5 + $0x88] sm:$0xff] }
 0x63b   : > { %8023 = vmatprep.mubr.bf16.mxu0 %v19406_v11  ;;  %8731 = vmatmul.mubr.bf16.gmra.mrb[244].mxu1 %v5189_v10  ;;  %v4569_v10 = vld [vmem:[#allocation5 + $0x80] sm:$0xff]  ;;  %v4572_v11 = vld [vmem:[#allocation5 + $0x98] sm:$0xff] }
 0x63c   : > { %8738 = vmatprep.mubr.bf16.mxu1 %v5286_v7  ;;  %8900 = vmatpush1.bf16.msra.mxu1 %v15161_v42  ;;  %v5193_v7 = vpack.c.bf16 %v17903_v25, %v17901_v6  ;;  %v4612_v42 = vpack.c.bf16 %v4570_v41, %v4569_v10  ;;  %v17950_v10 = vld [vmem:[#allocation6 + $0x108] sm:$0xff]  ;;  %v17952_v41 = vld [vmem:[#allocation6 + $0x110] sm:$0xff] }
 0x63d   : > { %8901 = vmatprep.subr.bf16.mxu1 %v19403_v44 }
 0x640   : > { %8902 = vmatpush1.bf16.msra.mxu1 %v15162_v13  ;;  %v4571_v13 = vld [vmem:[#allocation5 + $0x90] sm:$0xff] }
 0x641   : > { %8903 = vmatprep.subr.bf16.mxu1 %v19403_v44  ;;  %v4613_v32 = vpack.c.bf16 %v4572_v11, %v4571_v13  ;;  %v17958_v11 = vld [vmem:[#allocation6 + $0x118] sm:$0xff]  ;;  %v17960_v13 = vld [vmem:[#allocation6 + $0x120] sm:$0xff] }
 0x642   : > { %8024 = vmatmul.mubr.bf16.gmra.mrb[176].mxu0 %v4609_v51  ;;  %v4573_v51 = vld [vmem:[#allocation5 + $0xa0] sm:$0xff] }
 0x643   : > { %8031 = vmatprep.mubr.bf16.mxu0 %v19407_v36  ;;  %8739 = vmatmul.mubr.bf16.gmra.mrb[248].mxu1 %v5190_v22  ;;  %v4574_v22 = vld [vmem:[#allocation5 + $0xa8] sm:$0xff]  ;;  %v19414_v36 = vld [vmem:[#allocation26_spill] sm:$0xff] }
 0x644   : > { %8746 = vmatprep.mubr.bf16.mxu1 %v5287_v1  ;;  %8904 = vmatpush1.bf16.msra.mxu1 %v15163_v27  ;;  %v5195_v1 = vpack.c.bf16 %v17925_v48, %v17923_v33  ;;  %v4614_v27 = vpack.c.bf16 %v4574_v22, %v4573_v51  ;;  %v19415_v47 = vpack.c.bf16 %v19413_v38, %v19414_v36  ;;  %v17966_v22 = vld [vmem:[#allocation6 + $0x128] sm:$0xff]  ;;  %v17968_v51 = vld [vmem:[#allocation6 + $0x130] sm:$0xff] }
 0x645   : > { %8905 = vmatprep.subr.bf16.mxu1 %v19403_v44  ;;  %v19426_v36 = vld [vmem:[#allocation37_spill] sm:$0xff] }
 0x648   : > { %8906 = vmatpush1.bf16.msra.mxu1 %v15164_v49  ;;  %v17936_v49 = vld [vmem:[#allocation6 + $0xf0] sm:$0xff] }
 0x649   : > { %9100 = vmatprep.subr.bf16.mxu1 %v19403_v44 }
 0x64a   : > { %8032 = vmatmul.mubr.bf16.gmra.mrb[180].mxu0 %v4610_v60  ;;  %v4615_v60 = vpack.c.bf16 %v4576_v4, %v4575_v20  ;;  %v17978_v4 = vld [vmem:[#allocation6 + $0x138] sm:$0xff] }
 0x64b   : > { %8039 = vmatprep.mubr.bf16.mxu0 %v19408_v52  ;;  %8747 = vmatmul.mubr.bf16.gmra.mrb[252].mxu1 %v5191_v26  ;;  %v5196_v26 = vpack.c.bf16 %v17936_v49, %v17934_v50  ;;  %v19417_v52 = vld [vmem:[#allocation30_spill] sm:$0xff] }
 0x64c   : > { %8754 = vmatprep.mubr.bf16.mxu1 %v5288_v19  ;;  %v19416_v19 = vld [vmem:[#allocation29_spill] sm:$0xff] }
 0x64d   : > { %v5293_v18 = vpack.c.bf16 %v19417_v52, %v19416_v19 }
 0x652   : > { %8040 = vmatmul.mubr.bf16.gmra.mrb[184].mxu0 %v4611_v17  ;;  %v19418_v17 = vld [vmem:[#allocation31_spill] sm:$0xff] }
 0x653   : > { %8047 = vmatprep.mubr.bf16.mxu0 %v19409_v56  ;;  %8755 = vmatmul.mubr.bf16.gmra.mrb[160].mxu1 %v5192_v58  ;;  %v5197_v58 = vpack.c.bf16 %v17944_v9, %v17942_v31 }
 0x654   : > { %8762 = vmatprep.mubr.bf16.mxu1 %v5289_v45  ;;  %v19419_v45 = vld [vmem:[#allocation32_spill] sm:$0xff] }
 0x655   : > { %v5294_v56 = vpack.c.bf16 %v19419_v45, %v19418_v17  ;;  %v19429_v17 = vld [vmem:[#allocation39_spill] sm:$0xff]  ;;  %v19430_v45 = vld [vmem:[#allocation40_spill] sm:$0xff] }
 0x65a   : > { %8048 = vmatmul.mubr.bf16.gmra.mrb[188].mxu0 %v4612_v42  ;;  %v19420_v42 = vld [vmem:[#allocation33_spill] sm:$0xff] }
 0x65b   : > { %8055 = vmatprep.mubr.bf16.mxu0 %v19410_v14  ;;  %8763 = vmatmul.mubr.bf16.gmra.mrb[164].mxu1 %v5193_v7  ;;  %v5198_v7 = vpack.c.bf16 %v17952_v41, %v17950_v10 }
 0x65c   : > { %8770 = vmatprep.mubr.bf16.mxu1 %v5290_v2  ;;  %v19421_v2 = vld [vmem:[#allocation34_spill] sm:$0xff] }
 0x65d   : > { %v5295_v14 = vpack.c.bf16 %v19421_v2, %v19420_v42  ;;  %v17990_v42 = vld [vmem:[#allocation6 + $0x150] sm:$0xff] }
 0x662   : > { %8056 = vmatmul.mubr.bf16.gmra.mrb[192].mxu0 %v4613_v32  ;;  %v19422_v32 = vld [vmem:[#allocation35_spill] sm:$0xff] }
 0x663   : > { %8063 = vmatprep.mubr.bf16.mxu0 %v19411_v16  ;;  %8771 = vmatmul.mubr.bf16.gmra.mrb[168].mxu1 %v5194_v28  ;;  %v5199_v28 = vpack.c.bf16 %v17960_v13, %v17958_v11 }
 0x664   : > { %8778 = vmatprep.mubr.bf16.mxu1 %v5291_v55  ;;  %v19423_v55 = vld [vmem:[#allocation36_spill] sm:$0xff] }
 0x665   : > { %v5296_v16 = vpack.c.bf16 %v19423_v55, %v19422_v32 }
 0x66a   : > { %8064 = vmatmul.mubr.bf16.gmra.mrb[196].mxu0 %v4614_v27 }
 0x66b   : > { %8071 = vmatprep.mubr.bf16.mxu0 %v19415_v47  ;;  %8779 = vmatmul.mubr.bf16.gmra.mrb[172].mxu1 %v5195_v1  ;;  %v19427_v47 = vld [vmem:[#allocation38_spill] sm:$0xff] }
 0x66c   : > { %8786 = vmatprep.mubr.bf16.mxu1 %v5292_v29  ;;  %v5200_v29 = vpack.c.bf16 %v17968_v51, %v17966_v22  ;;  %v5297_v20 = vpack.c.bf16 %v19427_v47, %v19426_v36 }
 0x672   : > { %8072 = vmatmul.mubr.bf16.gmra.mrb[200].mxu0 %v4615_v60 }
 0x673   : > { %8787 = vmatmul.mubr.bf16.gmra.mrb[176].mxu1 %v5196_v26  ;;  %v17980_v26 = vld [vmem:[#allocation6 + $0x140] sm:$0xff] }
 0x674   : > { %8794 = vmatprep.mubr.bf16.mxu1 %v5293_v18  ;;  %v5201_v18 = vpack.c.bf16 %v17980_v26, %v17978_v4 }
 0x67b   : > { %8795 = vmatmul.mubr.bf16.gmra.mrb[180].mxu1 %v5197_v58 }
 0x67c   : > { %8802 = vmatprep.mubr.bf16.mxu1 %v5294_v56  ;;  %v5298_v56 = vpack.c.bf16 %v19430_v45, %v19429_v17  ;;  %v5276_v45 = vld [vmem:[#allocation6 + $0x181] sm:$0xff] }
 0x683   : > { %8803 = vmatmul.mubr.bf16.gmra.mrb[184].mxu1 %v5198_v7  ;;  %v17988_v7 = vld [vmem:[#allocation6 + $0x148] sm:$0xff] }
 0x684   : > { %8810 = vmatprep.mubr.bf16.mxu1 %v5295_v14  ;;  %v5202_v32 = vpack.c.bf16 %v17990_v42, %v17988_v7 }
 0x68b   : > { %8811 = vmatmul.mubr.bf16.gmra.mrb[188].mxu1 %v5199_v28 }
 0x68c   : > { %8818 = vmatprep.mubr.bf16.mxu1 %v5296_v16  ;;  %v19432_v16 = vld [vmem:[#allocation41_spill] sm:$0xff] }
 0x68d   : > { %v17970_v1 = vpop.f32.mrb[204].mxu0 }
 0x68e   : > { %19424 = vst [vmem:[#allocation28_spill] sm:$0xff] %v17970_v1  ;;  %v7858_v27 = vpop.f32.mrb[205].mxu0  ;;  %v5520_v1 = vld [vmem:[#allocation6 + $0x39] sm:$0xff] }
 0x68f   : > { %v17972_v63 = vpop.f32.mrb[206].mxu0  ;;  %v5299_v27 = vpack.c.bf16 %v17732_v8, %v19432_v16  ;;  %v18010_v8 = vld [vmem:[#allocation6 + $0x168] sm:$0xff] }
 0x690   : > { %19425 = vst [vmem:[#allocation27_spill] sm:$0xff] %v17972_v63  ;;  %v7861_v38 = vpop.f32.mrb[207].mxu0 }
 0x691   : > { %v18000_v38 = vld [vmem:[#allocation6 + $0x160] sm:$0xff] }
 0x693   : > { %8819 = vmatmul.mubr.bf16.gmra.mrb[192].mxu1 %v5200_v29  ;;  %v17998_v29 = vld [vmem:[#allocation6 + $0x158] sm:$0xff] }
 0x694   : > { %8826 = vmatprep.mubr.bf16.mxu1 %v5297_v20 }
 0x695   : > { %v7864_v60 = vpop.f32.mrb[208].mxu0 }
 0x696   : > { %v7866_v19 = vpop.f32.mrb[209].mxu0  ;;  %v5203_v60 = vpack.c.bf16 %v18000_v38, %v17998_v29 }
 0x697   : > { %v17982_v52 = vpop.f32.mrb[210].mxu0 }
 0x698   : > { %19428 = vst [vmem:[#allocation26_spill] sm:$0xff] %v17982_v52  ;;  %v7869_v58 = vpop.f32.mrb[211].mxu0 }
 0x699   : > { %v18012_v58 = vld [vmem:[#allocation6 + $0x170] sm:$0xff] }
 0x69b   : > { %8827 = vmatmul.mubr.bf16.gmra.mrb[196].mxu1 %v5201_v18  ;;  %v5300_v18 = vpack.c.bf16 %v17738_v12, %v17734_v30  ;;  %v18019_v30 = vld [vmem:[#allocation6 + $0x178] sm:$0xff]  ;;  %v18021_v12 = vld [vmem:[#allocation6 + $0x180] sm:$0xff] }
 0x69c   : > { %8834 = vmatprep.mubr.bf16.mxu1 %v5298_v56 }
 0x69d   : > { %v17992_v2 = vpop.f32.mrb[212].mxu0 }
 0x69e   : > { %19431 = vst [vmem:[#allocation29_spill] sm:$0xff] %v17992_v2  ;;  %v7874_v14 = vpop.f32.mrb[213].mxu0 }
 0x69f   : > { %v7875_v28 = vpop.f32.mrb[214].mxu0 }
 0x6a0   : > { %v7877_v55 = vpop.f32.mrb[215].mxu0  ;;  %v5204_v28 = vpack.c.bf16 %v18012_v58, %v18010_v8 }
 0x6a1   : > { %v5301_v55 = vpack.c.bf16 %v5276_v45, %v17740_v53  ;;  %v18027_v53 = vld [vmem:[#allocation6 + $0x188] sm:$0xff]  ;;  %v18029_v45 = vld [vmem:[#allocation6 + $0x190] sm:$0xff] }
 0x6a3   : > { %8835 = vmatmul.mubr.bf16.gmra.mrb[200].mxu1 %v5202_v32 }
 0x6a4   : > { %8842 = vmatprep.mubr.bf16.mxu1 %v5299_v27  ;;  %v5277_v27 = vld [vmem:[#allocation6 + $0x189] sm:$0xff] }
 0x6a5   : > { %v18002_v36 = vpop.f32.mrb[216].mxu0 }
 0x6a6   : > { %19433 = vst [vmem:[#allocation30_spill] sm:$0xff] %v18002_v36  ;;  %v7882_v47 = vpop.f32.mrb[217].mxu0 }
 0x6a7   : > { %v18004_v20 = vpop.f32.mrb[218].mxu0  ;;  %v5278_v47 = vld [vmem:[#allocation6 + $0x191] sm:$0xff] }
 0x6a8   : > { %19434 = vst [vmem:[#allocation31_spill] sm:$0xff] %v18004_v20  ;;  %v7885_v19 = vpop.f32.mrb[219].mxu0 }
 0x6ab   : > { %8843 = vmatmul.mubr.bf16.gmra.mrb[204].mxu1 %v5203_v60 }
 0x6ac   : > { %8850 = vmatprep.mubr.bf16.mxu1 %v5300_v18  ;;  %v5205_v18 = vpack.c.bf16 %v18021_v12, %v18019_v30 }
 0x6ad   : > { %v7888_v17 = vpop.f32.mrb[220].mxu0 }
 0x6ae   : > { %v7890_v56 = vpop.f32.mrb[221].mxu0 }
 0x6af   : > { %v18014_v14 = vpop.f32.mrb[222].mxu0  ;;  %v5302_v56 = vpack.c.bf16 %v5278_v47, %v5277_v27  ;;  %v5327_v27 = vld [vmem:[#allocation6 + $0x1a] sm:$0xff]  ;;  %v5328_v47 = vld [vmem:[#allocation6 + $0x22] sm:$0xff] }
 0x6b0   : > { %19435 = vst [vmem:[#allocation32_spill] sm:$0xff] %v18014_v14  ;;  %v7893_v32 = vpop.f32.mrb[223].mxu0  ;;  %v5375_v14 = vpack.c.bf16 %v5328_v47, %v5327_v27 }
 0x6b3   : > { %8851 = vmatmul.mubr.bf16.gmra.mrb[208].mxu1 %v5204_v28 }
 0x6b4   : > { %8858 = vmatprep.mubr.bf16.mxu1 %v5301_v55 }
 0x6b5   : > { %v18023_v16 = vpop.f32.mrb[224].mxu0 }
 0x6b6   : > { %19436 = vst [vmem:[#allocation33_spill] sm:$0xff] %v18023_v16  ;;  %v7898_v60 = vpop.f32.mrb[225].mxu0  ;;  %v5471_v16 = vpack.c.bf16 %v17764_v54, %v17751_v57  ;;  %v5329_v57 = vld [vmem:[#allocation6 + $0x2a] sm:$0xff]  ;;  %v18046_v54 = vld [vmem:[#allocation6 + $0x32] sm:$0xff] }
 0x6b7   : > { %v7899_v19 = vpop.f32.mrb[226].mxu0  ;;  %v5206_v60 = vpack.c.bf16 %v18029_v45, %v18027_v53  ;;  %v5376_v47 = vpack.c.bf16 %v18046_v54, %v5329_v57 }
 0x6b8   : > { %v7901_v17 = vpop.f32.mrb[227].mxu0 }
 0x6bb   : > { %8859 = vmatmul.mubr.bf16.gmra.mrb[212].mxu1 %v5205_v18 }
 0x6bc   : > { %8866 = vmatprep.mubr.bf16.mxu1 %v5302_v56 }
 0x6bd   : > { %v18031_v28 = vpop.f32.mrb[228].mxu0 }
 0x6be   : > { %19437 = vst [vmem:[#allocation34_spill] sm:$0xff] %v18031_v28  ;;  %v7906_v32 = vpop.f32.mrb[229].mxu0 }
 0x6bf   : > { %v18033_v55 = vpop.f32.mrb[230].mxu0  ;;  %v15165_v32 = vld [vmem:[%s19347_s6 + $0x400] sm:$0xff]  }
 0x6c0   : > { %19438 = vst [vmem:[#allocation35_spill] sm:$0xff] %v18033_v55  ;;  %v7909_v19 = vpop.f32.mrb[231].mxu0 }
 0x6c1   : > { %v5472_v19 = vpack.c.bf16 %v17780_v37, %v17766_v35  ;;  %v5473_v35 = vpack.c.bf16 %v17796_v62, %v17782_v46  ;;  %v15167_v37 = vld [vmem:[%s19347_s6 + $0x410] sm:$0xff]  }
 0x6c3   : > { %8867 = vmatmul.mubr.bf16.gmra.mrb[216].mxu1 %v5206_v60 }
 0x6c4   : > { %8907 = vmatprep.mubr.bf16.mxu1 %v5471_v16  ;;  %v15166_v16 = vld [vmem:[%s19347_s6 + $0x408] sm:$0xff]  }
 0x6c5   : > { %v7912_v18 = vpop.f32.mrb[232].mxu0 }
 0x6c6   : > { %v7914_v17 = vpop.f32.mrb[233].mxu0 }
 0x6c7   : > { %v18039_v56 = vpop.f32.mrb[234].mxu0  ;;  %v18063_v17 = vld [vmem:[#allocation6 + $0x42] sm:$0xff] }
 0x6c8   : > { %19439 = vst [vmem:[#allocation36_spill] sm:$0xff] %v18039_v56  ;;  %v7917_v28 = vpop.f32.mrb[235].mxu0 }
 0x6cb   : > { %8908 = vmatmul.mubr.bf16.vlgmr.msra.gmra.mrb[220].mxu1 %v5375_v14  ;;  %v18061_v14 = vld [vmem:[#allocation6 + $0x3a] sm:$0xff] }
 0x6cc   : > { %9101 = vmatpush1.bf16.msra.mxu1 %v15165_v32  ;;  %8915 = vmatprep.mubr.bf16.mxu1 %v5472_v19  ;;  %v15168_v32 = vld [vmem:[%s19347_s6 + $0x418] sm:$0xff]   ;;  %v5377_v57 = vpack.c.bf16 %v18063_v17, %v18061_v14 }
 0x6cd   : > { %v18051_v60 = vpop.f32.mrb[236].mxu0  ;;  %9102 = vmatprep.subr.bf16.mxu1 %v19403_v44 }
 0x6ce   : > { %19440 = vst [vmem:[#allocation37_spill] sm:$0xff] %v18051_v60  ;;  %v7922_v28 = vpop.f32.mrb[237].mxu0 }
 0x6cf   : > { %v7923_v27 = vpop.f32.mrb[238].mxu0  ;;  %v5474_v28 = vpack.c.bf16 %v17815_v3, %v17798_v0 }
 0x6d0   : > { %v7925_v18 = vpop.f32.mrb[239].mxu0  ;;  %9103 = vmatpush1.bf16.msra.mxu1 %v15166_v16  ;;  %v15169_v27 = vld [vmem:[%s19347_s6 + $0x420] sm:$0xff]  }
 0x6d1   : > { %9104 = vmatprep.subr.bf16.mxu1 %v19403_v44  ;;  %v18083_v18 = vld [vmem:[#allocation6 + $0x52] sm:$0xff] }
 0x6d3   : > { %8916 = vmatmul.mubr.bf16.gmra.mrb[224].mxu1 %v5376_v47  ;;  %v18081_v47 = vld [vmem:[#allocation6 + $0x4a] sm:$0xff] }
 0x6d4   : > { %8923 = vmatprep.mubr.bf16.mxu1 %v5473_v35  ;;  %9105 = vmatpush1.bf16.msra.mxu1 %v15167_v37  ;;  %v15170_v35 = vld [vmem:[%s19347_s6 + $0x428] sm:$0xff]  }
 0x6d5   : > { %v18068_v19 = vpop.f32.mrb[240].mxu0  ;;  %9106 = vmatprep.subr.bf16.mxu1 %v19403_v44 }
 0x6d6   : > { %19441 = vst [vmem:[#allocation38_spill] sm:$0xff] %v18068_v19  ;;  %v7930_v46 = vpop.f32.mrb[241].mxu0 }
 0x6d7   : > { %v18071_v62 = vpop.f32.mrb[242].mxu0 }
 0x6d8   : > { %19442 = vst [vmem:[#allocation39_spill] sm:$0xff] %v18071_v62  ;;  %v7933_v16 = vpop.f32.mrb[243].mxu0  ;;  %9107 = vmatpush1.bf16.msra.mxu1 %v15168_v32  ;;  %v5378_v32 = vpack.c.bf16 %v18083_v18, %v18081_v47 }
 0x6d9   : > { %9108 = vmatprep.subr.bf16.mxu1 %v19403_v44  ;;  %v15171_v16 = vld [vmem:[%s19347_s6 + $0x430] sm:$0xff]  }
 0x6db   : > { %8924 = vmatmul.mubr.bf16.gmra.mrb[228].mxu1 %v5377_v57  ;;  %v5475_v57 = vpack.c.bf16 %v17834_v59, %v17817_v34 }
 0x6dc   : > { %8931 = vmatprep.mubr.bf16.mxu1 %v5474_v28  ;;  %9109 = vmatpush1.bf16.msra.mxu1 %v15169_v27  ;;  %v18099_v28 = vld [vmem:[#allocation6 + $0x5a] sm:$0xff]  ;;  %v18101_v27 = vld [vmem:[#allocation6 + $0x62] sm:$0xff] }
 0x6dd   : > { %v7936_v37 = vpop.f32.mrb[244].mxu0  ;;  %9110 = vmatprep.subr.bf16.mxu1 %v19403_v44 }
 0x6de   : > { %v7938_v0 = vpop.f32.mrb[245].mxu0  ;;  %v15172_v37 = vld [vmem:[%s19347_s6 + $0x438] sm:$0xff]  }
 0x6df   : > { %v18089_v3 = vpop.f32.mrb[246].mxu0 }
 0x6e0   : > { %19443 = vst [vmem:[#allocation40_spill] sm:$0xff] %v18089_v3  ;;  %v7941_v46 = vpop.f32.mrb[247].mxu0  ;;  %9111 = vmatpush1.bf16.msra.mxu1 %v15170_v35  ;;  %v5379_v35 = vpack.c.bf16 %v18101_v27, %v18099_v28 }
 0x6e1   : > { %9112 = vmatprep.subr.bf16.mxu1 %v19403_v44  ;;  %v5476_v46 = vpack.c.bf16 %v17853_v23, %v17836_v40 }
 0x6e3   : > { %8932 = vmatmul.mubr.bf16.gmra.mrb[232].mxu1 %v5378_v32 }
 0x6e4   : > { %8939 = vmatprep.mubr.bf16.mxu1 %v5475_v57  ;;  %9113 = vmatpush1.bf16.msra.mxu1 %v15171_v16  ;;  %v15173_v57 = vld [vmem:[%s19347_s6 + $0x440] sm:$0xff]   ;;  %v18117_v16 = vld [vmem:[#allocation6 + $0x6a] sm:$0xff] }
 0x6e5   : > { %v18106_v0 = vpop.f32.mrb[248].mxu0  ;;  %9114 = vmatprep.subr.bf16.mxu1 %v19403_v44 }
 0x6e6   : > { %19444 = vst [vmem:[#allocation41_spill] sm:$0xff] %v18106_v0  ;;  %v7946_v34 = vpop.f32.mrb[249].mxu0  ;;  %v18191_v0 = vld [vmem:[#allocation6 + $0xb2] sm:$0xff] }
 0x6e7   : > { %v7947_v59 = vpop.f32.mrb[250].mxu0  ;;  %v18119_v34 = vld [vmem:[#allocation6 + $0x72] sm:$0xff] }
 0x6e8   : > { %v7949_v32 = vpop.f32.mrb[251].mxu0  ;;  %9115 = vmatpush1.bf16.msra.mxu1 %v15172_v37  ;;  %v15174_v59 = vld [vmem:[%s19347_s6 + $0x448] sm:$0xff]   ;;  %v5380_v37 = vpack.c.bf16 %v18119_v34, %v18117_v16 }
 0x6e9   : > { %9116 = vmatprep.subr.bf16.mxu1 %v19403_v44 }
 0x6eb   : > { %8940 = vmatmul.mubr.bf16.gmra.mrb[236].mxu1 %v5379_v35 }
 0x6ec   : > { %8947 = vmatprep.mubr.bf16.mxu1 %v5476_v46  ;;  %9117 = vmatpush1.bf16.msra.mxu1 %v15173_v57  ;;  %v5477_v46 = vpack.c.bf16 %v17874_v5, %v17855_v43  ;;  %v15175_v57 = vld [vmem:[%s19347_s6 + $0x450] sm:$0xff]  }
 0x6ed   : > { %v18124_v32 = vpop.f32.mrb[252].mxu0  ;;  %9118 = vmatprep.subr.bf16.mxu1 %v19403_v44 }
 0x6ee   : > { %19445 = vst [vmem:[#allocation42_spill] sm:$0xff] %v18124_v32  ;;  %v7954_v40 = vpop.f32.mrb[253].mxu0  ;;  %v18137_v32 = vld [vmem:[#allocation6 + $0x7a] sm:$0xff] }
 0x6ef   : > { %v18127_v23 = vpop.f32.mrb[254].mxu0  ;;  %v18139_v40 = vld [vmem:[#allocation6 + $0x82] sm:$0xff] }
 0x6f0   : > { %19446 = vst [vmem:[#allocation43_spill] sm:$0xff] %v18127_v23  ;;  %v7957_v35 = vpop.f32.mrb[255].mxu0  ;;  %9119 = vmatpush1.bf16.msra.mxu1 %v15174_v59  ;;  %v5381_v59 = vpack.c.bf16 %v18139_v40, %v18137_v32 }
 0x6f1   : > { %9120 = vmatprep.subr.bf16.mxu1 %v19403_v44  ;;  %v15176_v35 = vld [vmem:[%s19347_s6 + $0x458] sm:$0xff]  }
 0x6f3   : > { %8948 = vmatmul.mubr.bf16.gmra.mrb[240].mxu1 %v5380_v37 }
 0x6f4   : > { %8955 = vmatprep.mubr.bf16.mxu1 %v5477_v46  ;;  %9121 = vmatpush1.bf16.msra.mxu1 %v15175_v57  ;;  %v5478_v46 = vpack.c.bf16 %v17890_v15, %v17876_v39  ;;  %v15177_v57 = vld [vmem:[%s19347_s6 + $0x460] sm:$0xff]  }
 0x6f5   : > { %v7960_v23 = vpop.f32.mrb[0].mxu0  ;;  %9122 = vmatprep.subr.bf16.mxu1 %v19403_v44 }
 0x6f6   : > { %v7962_v43 = vpop.f32.mrb[1].mxu0  ;;  %v18155_v23 = vld [vmem:[#allocation6 + $0x8a] sm:$0xff] }
 0x6f7   : > { %v18145_v5 = vpop.f32.mrb[2].mxu0  ;;  %v18157_v43 = vld [vmem:[#allocation6 + $0x92] sm:$0xff] }
 0x6f8   : > { %19447 = vst [vmem:[#allocation44_spill] sm:$0xff] %v18145_v5  ;;  %v7965_v37 = vpop.f32.mrb[3].mxu0  ;;  %9123 = vmatpush1.bf16.msra.mxu1 %v15176_v35  ;;  %v5382_v35 = vpack.c.bf16 %v18157_v43, %v18155_v23 }
 0x6f9   : > { %9124 = vmatprep.subr.bf16.mxu1 %v19403_v44  ;;  %v15178_v37 = vld [vmem:[%s19347_s6 + $0x468] sm:$0xff]  }
 0x6fb   : > { %8956 = vmatmul.mubr.bf16.gmra.mrb[244].mxu1 %v5381_v59 }
 0x6fc   : > { %8963 = vmatprep.mubr.bf16.mxu1 %v5478_v46  ;;  %9125 = vmatpush1.bf16.msra.mxu1 %v15177_v57  ;;  %v5479_v46 = vpack.c.bf16 %v17901_v6, %v17892_v21  ;;  %v15179_v57 = vld [vmem:[%s19347_s6 + $0x470] sm:$0xff]  }
 0x6fd   : > { %v18162_v5 = vpop.f32.mrb[4].mxu0  ;;  %9126 = vmatprep.subr.bf16.mxu1 %v19403_v44 }
 0x6fe   : > { %19448 = vst [vmem:[#allocation45_spill] sm:$0xff] %v18162_v5  ;;  %v7970_v39 = vpop.f32.mrb[5].mxu0  ;;  %v18173_v5 = vld [vmem:[#allocation6 + $0x9a] sm:$0xff] }
 0x6ff   : > { %v7971_v15 = vpop.f32.mrb[6].mxu0  ;;  %v18175_v39 = vld [vmem:[#allocation6 + $0xa2] sm:$0xff] }
 0x700   : > { %v7973_v59 = vpop.f32.mrb[7].mxu0  ;;  %9127 = vmatpush1.bf16.msra.mxu1 %v15178_v37  ;;  %v15180_v15 = vld [vmem:[%s19347_s6 + $0x478] sm:$0xff]   ;;  %v5383_v37 = vpack.c.bf16 %v18175_v39, %v18173_v5 }
 0x701   : > { %9128 = vmatprep.subr.bf16.mxu1 %v19403_v44 }
 0x703   : > { %8964 = vmatmul.mubr.bf16.gmra.mrb[248].mxu1 %v5382_v35 }
 0x704   : > { %8971 = vmatprep.mubr.bf16.mxu1 %v5479_v46  ;;  %9129 = vmatpush1.bf16.msra.mxu1 %v15179_v57  ;;  %v5480_v46 = vpack.c.bf16 %v17912_v24, %v17903_v25  ;;  %v18189_v57 = vld [vmem:[#allocation6 + $0xaa] sm:$0xff]  ;;  %v18199_v25 = vld [vmem:[#allocation6 + $0xba] sm:$0xff]  ;;  %v18201_v24 = vld [vmem:[#allocation6 + $0xc2] sm:$0xff] }
 0x705   : > { %v18180_v59 = vpop.f32.mrb[168].mxu0  ;;  %9130 = vmatprep.subr.bf16.mxu1 %v19403_v44 }
 0x706   : > { %v8011_v21 = vpop.f32.mrb[169].mxu0 }
 0x707   : > { %v18183_v6 = vpop.f32.mrb[170].mxu0  ;;  %v5384_v21 = vpack.c.bf16 %v18191_v0, %v18189_v57 }
 0x708   : > { %v8014_v35 = vpop.f32.mrb[171].mxu0  ;;  %9131 = vmatpush1.bf16.msra.mxu1 %v15180_v15 }
 0x709   : > { %v5481_v35 = vpack.c.bf16 %v17923_v33, %v17914_v61  ;;  %v18209_v61 = vld [vmem:[#allocation6 + $0xca] sm:$0xff]  ;;  %v18211_v33 = vld [vmem:[#allocation6 + $0xd2] sm:$0xff] }
 0x70b   : > { %8972 = vmatmul.mubr.bf16.gmra.mrb[252].mxu1 %v5383_v37 }
 0x70c   : > { %8979 = vmatprep.mubr.bf16.mxu1 %v5480_v46 }
 0x70d   : > { %v8017_v3 = vpop.f32.mrb[172].mxu0 }
 0x70e   : > { %v8019_v62 = vpop.f32.mrb[173].mxu0 }
 0x70f   : > { %v18193_v44 = vpop.f32.mrb[174].mxu0  ;;  %v5385_v62 = vpack.c.bf16 %v18201_v24, %v18199_v25 }
 0x710   : > { %v8022_v19 = vpop.f32.mrb[175].mxu0 }
 0x711   : > { %v5482_v19 = vpack.c.bf16 %v17934_v50, %v17925_v48  ;;  %v18221_v48 = vld [vmem:[#allocation6 + $0xda] sm:$0xff]  ;;  %v18223_v50 = vld [vmem:[#allocation6 + $0xe2] sm:$0xff] }
 0x713   : > { %8980 = vmatmul.mubr.bf16.gmra.mrb[160].mxu1 %v5384_v21 }
 0x714   : > { %8987 = vmatprep.mubr.bf16.mxu1 %v5481_v35 }
 0x715   : > { %v18203_v15 = vpop.f32.mrb[176].mxu0 }
 0x716   : > { %v8027_v37 = vpop.f32.mrb[177].mxu0 }
 0x717   : > { %v8028_v3 = vpop.f32.mrb[178].mxu0  ;;  %v5386_v37 = vpack.c.bf16 %v18211_v33, %v18209_v61 }
 0x718   : > { %v8030_v46 = vpop.f32.mrb[179].mxu0 }
 0x719   : > { %v5483_v46 = vpack.c.bf16 %v17942_v31, %v17936_v49  ;;  %v18231_v49 = vld [vmem:[#allocation6 + $0xea] sm:$0xff]  ;;  %v18233_v31 = vld [vmem:[#allocation6 + $0xf2] sm:$0xff] }
 0x71b   : > { %8988 = vmatmul.mubr.bf16.gmra.mrb[164].mxu1 %v5385_v62 }
 0x71c   : > { %8995 = vmatprep.mubr.bf16.mxu1 %v5482_v19 }
 0x71d   : > { %v18213_v21 = vpop.f32.mrb[180].mxu0 }
 0x71e   : > { %v8035_v35 = vpop.f32.mrb[181].mxu0 }
 0x71f   : > { %v18215_v60 = vpop.f32.mrb[182].mxu0  ;;  %v5387_v35 = vpack.c.bf16 %v18223_v50, %v18221_v48 }
 0x720   : > { %v8038_v3 = vpop.f32.mrb[183].mxu0 }
 0x721   : > { %v5484_v3 = vpack.c.bf16 %v17950_v10, %v17944_v9  ;;  %v18241_v9 = vld [vmem:[#allocation6 + $0xfa] sm:$0xff]  ;;  %v18243_v10 = vld [vmem:[#allocation6 + $0x102] sm:$0xff] }
 0x723   : > { %8996 = vmatmul.mubr.bf16.gmra.mrb[168].mxu1 %v5386_v37 }
 0x724   : > { %9003 = vmatprep.mubr.bf16.mxu1 %v5483_v46 }
 0x725   : > { %v8041_v62 = vpop.f32.mrb[184].mxu0 }
 0x726   : > { %v8043_v19 = vpop.f32.mrb[185].mxu0 }
 0x727   : > { %v18225_v56 = vpop.f32.mrb[186].mxu0  ;;  %v5388_v19 = vpack.c.bf16 %v18233_v31, %v18231_v49 }
 0x728   : > { %v8046_v55 = vpop.f32.mrb[187].mxu0 }
 0x729   : > { %v5485_v55 = vpack.c.bf16 %v17958_v11, %v17952_v41  ;;  %v18253_v41 = vld [vmem:[#allocation6 + $0x10a] sm:$0xff]  ;;  %v18255_v11 = vld [vmem:[#allocation6 + $0x112] sm:$0xff] }
 0x72b   : > { %9004 = vmatmul.mubr.bf16.gmra.mrb[172].mxu1 %v5387_v35 }
 0x72c   : > { %9011 = vmatprep.mubr.bf16.mxu1 %v5484_v3 }
 0x72d   : > { %v18235_v37 = vpop.f32.mrb[188].mxu0 }
 0x72e   : > { %19449 = vst [vmem:[#allocation46_spill] sm:$0xff] %v18235_v37  ;;  %v8051_v46 = vpop.f32.mrb[189].mxu0  ;;  %v5523_v37 = vld [vmem:[#allocation6 + $0x51] sm:$0xff] }
 0x72f   : > { %v8052_v62 = vpop.f32.mrb[190].mxu0  ;;  %v5389_v46 = vpack.c.bf16 %v18243_v10, %v18241_v9 }
 0x730   : > { %v8054_v20 = vpop.f32.mrb[191].mxu0 }
 0x731   : > { %v5486_v20 = vpack.c.bf16 %v17966_v22, %v17960_v13  ;;  %v18263_v13 = vld [vmem:[#allocation6 + $0x11a] sm:$0xff]  ;;  %v18265_v22 = vld [vmem:[#allocation6 + $0x122] sm:$0xff] }
 0x733   : > { %9012 = vmatmul.mubr.bf16.gmra.mrb[176].mxu1 %v5388_v19 }
 0x734   : > { %9019 = vmatprep.mubr.bf16.mxu1 %v5485_v55 }
 0x735   : > { %v18245_v35 = vpop.f32.mrb[192].mxu0 }
 0x736   : > { %19450 = vst [vmem:[#allocation47_spill] sm:$0xff] %v18245_v35  ;;  %v8059_v3 = vpop.f32.mrb[193].mxu0  ;;  %v5665_v35 = vpack.c.bf16 %v18099_v28, %v18083_v18  ;;  %v5528_v18 = vld [vmem:[#allocation6 + $0x79] sm:$0xff]  ;;  %v5668_v28 = vpack.c.bf16 %v18155_v23, %v18139_v40  ;;  %v5534_v40 = vld [vmem:[#allocation6 + $0xa9] sm:$0xff] }
 0x737   : > { %v18247_v36 = vpop.f32.mrb[194].mxu0  ;;  %v5390_v3 = vpack.c.bf16 %v18255_v11, %v18253_v41 }
 0x738   : > { %19451 = vst [vmem:[#allocation48_spill] sm:$0xff] %v18247_v36  ;;  %v8062_v62 = vpop.f32.mrb[195].mxu0 }
 0x739   : > { %v5487_v62 = vpack.c.bf16 %v17978_v4, %v17968_v51  ;;  %v18273_v51 = vld [vmem:[#allocation6 + $0x12a] sm:$0xff]  ;;  %v18275_v4 = vld [vmem:[#allocation6 + $0x132] sm:$0xff] }
 0x73b   : > { %9020 = vmatmul.mubr.bf16.gmra.mrb[180].mxu1 %v5389_v46 }
 0x73c   : > { %9027 = vmatprep.mubr.bf16.mxu1 %v5486_v20 }
 0x73d   : > { %v8065_v19 = vpop.f32.mrb[196].mxu0 }
 0x73e   : > { %v8067_v55 = vpop.f32.mrb[197].mxu0 }
 0x73f   : > { %v18257_v2 = vpop.f32.mrb[198].mxu0  ;;  %v5391_v55 = vpack.c.bf16 %v18265_v22, %v18263_v13 }
 0x740   : > { %19452 = vst [vmem:[#allocation49_spill] sm:$0xff] %v18257_v2  ;;  %v8070_v52 = vpop.f32.mrb[199].mxu0  ;;  %v5522_v2 = vld [vmem:[#allocation6 + $0x49] sm:$0xff] }
 0x741   : > { %v5488_v52 = vpack.c.bf16 %v17988_v7, %v17980_v26  ;;  %v5490_v7 = vpack.c.bf16 %v18010_v8, %v18000_v38  ;;  %v5492_v8 = vpack.c.bf16 %v18027_v53, %v18021_v12 }
 0x743   : > { %9028 = vmatmul.mubr.bf16.gmra.mrb[184].mxu1 %v5390_v3  ;;  %v5392_v3 = vpack.c.bf16 %v18275_v4, %v18273_v51 }
 0x744   : > { %9035 = vmatprep.mubr.bf16.mxu1 %v5487_v62  ;;  %v5489_v62 = vpack.c.bf16 %v17998_v29, %v17990_v42  ;;  %v5491_v29 = vpack.c.bf16 %v18019_v30, %v18012_v58  ;;  %v15361_v30 = vld [vmem:[#allocation2] sm:$0xff] }
 0x745   : > { %v18267_v46 = vpop.f32.mrb[200].mxu0  ;;  %v18318_v53 = vpack.c.bf16 %v15361_v30, %v15361_v30 }
 0x746   : > { %19453 = vst [vmem:[#allocation50_spill] sm:$0xff] %v18267_v46  ;;  %v8075_v20 = vpop.f32.mrb[201].mxu0 }
 0x747   : > { %v8076_v19 = vpop.f32.mrb[202].mxu0  ;;  %v18281_v20 = vld [vmem:[#allocation6 + $0x13a] sm:$0xff] }
 0x748   : > { %v8078_v63 = vpop.f32.mrb[203].mxu0  ;;  %v18289_v19 = vld [vmem:[#allocation6 + $0x14a] sm:$0xff] }
 0x749   : > { %v18283_v63 = vld [vmem:[#allocation6 + $0x142] sm:$0xff] }
 0x74a   : > { %v5393_v26 = vpack.c.bf16 %v18283_v63, %v18281_v20 }
 0x74b   : > { %9036 = vmatmul.mubr.bf16.gmra.mrb[188].mxu1 %v5391_v55  ;;  %v18291_v55 = vld [vmem:[#allocation6 + $0x152] sm:$0xff] }
 0x74c   : > { %9043 = vmatprep.mubr.bf16.mxu1 %v5488_v52  ;;  %v5394_v42 = vpack.c.bf16 %v18291_v55, %v18289_v19  ;;  %v18297_v52 = vld [vmem:[#allocation6 + $0x15a] sm:$0xff] }
 0x753   : > { %9044 = vmatmul.mubr.bf16.gmra.mrb[192].mxu1 %v5392_v3  ;;  %v18299_v3 = vld [vmem:[#allocation6 + $0x162] sm:$0xff] }
 0x754   : > { %9051 = vmatprep.mubr.bf16.mxu1 %v5489_v62  ;;  %v5395_v38 = vpack.c.bf16 %v18299_v3, %v18297_v52  ;;  %v18305_v62 = vld [vmem:[#allocation6 + $0x16a] sm:$0xff] }
 0x75b   : > { %9052 = vmatmul.mubr.bf16.gmra.mrb[196].mxu1 %v5393_v26  ;;  %v18307_v26 = vld [vmem:[#allocation6 + $0x172] sm:$0xff] }
 0x75c   : > { %9059 = vmatprep.mubr.bf16.mxu1 %v5490_v7  ;;  %v5396_v58 = vpack.c.bf16 %v18307_v26, %v18305_v62  ;;  %v5493_v7 = vpack.c.bf16 %v15361_v30, %v18029_v45  ;;  %v5664_v30 = vpack.c.bf16 %v18081_v47, %v18063_v17  ;;  %v5526_v17 = vld [vmem:[#allocation6 + $0x69] sm:$0xff] }
 0x763   : > { %9060 = vmatmul.mubr.bf16.gmra.mrb[200].mxu1 %v5394_v42  ;;  %v18312_v42 = vld [vmem:[#allocation6 + $0x17a] sm:$0xff] }
 0x764   : > { %9067 = vmatprep.mubr.bf16.mxu1 %v5491_v29  ;;  %v18314_v29 = vld [vmem:[#allocation6 + $0x182] sm:$0xff] }
 0x765   : > { %v5397_v12 = vpack.c.bf16 %v18314_v29, %v18312_v42 }
 0x76b   : > { %9068 = vmatmul.mubr.bf16.gmra.mrb[204].mxu1 %v5395_v38  ;;  %v18321_v38 = vld [vmem:[#allocation6 + $0x18a] sm:$0xff] }
 0x76c   : > { %9075 = vmatprep.mubr.bf16.mxu1 %v5492_v8  ;;  %v18323_v8 = vld [vmem:[#allocation6 + $0x192] sm:$0xff] }
 0x76d   : > { %v5398_v45 = vpack.c.bf16 %v18323_v8, %v18321_v38 }
 0x773   : > { %9076 = vmatmul.mubr.bf16.gmra.mrb[208].mxu1 %v5396_v58  ;;  %v5663_v58 = vpack.c.bf16 %v18061_v14, %v18046_v54  ;;  %v5524_v54 = vld [vmem:[#allocation6 + $0x59] sm:$0xff] }
 0x774   : > { %9083 = vmatprep.mubr.bf16.mxu1 %v5493_v7  ;;  %v5519_v7 = vld [vmem:[#allocation6 + $0x31] sm:$0xff]  ;;  %v5569_v14 = vpack.c.bf16 %v5524_v54, %v5523_v37  ;;  %v5529_v37 = vld [vmem:[#allocation6 + $0x81] sm:$0xff] }
 0x775   : > { %v5567_v46 = vpack.c.bf16 %v5520_v1, %v5519_v7  ;;  %v5525_v1 = vld [vmem:[#allocation6 + $0x61] sm:$0xff]  ;;  %v5670_v7 = vpack.c.bf16 %v18189_v57, %v18175_v39  ;;  %v5535_v54 = vld [vmem:[#allocation6 + $0xb1] sm:$0xff]  ;;  %v5538_v39 = vld [vmem:[#allocation6 + $0xc9] sm:$0xff] }
 0x776   : > { %v5570_v47 = vpack.c.bf16 %v5526_v17, %v5525_v1  ;;  %v5673_v1 = vpack.c.bf16 %v18221_v48, %v18211_v33  ;;  %v5539_v17 = vld [vmem:[#allocation6 + $0xd1] sm:$0xff]  ;;  %v5544_v33 = vld [vmem:[#allocation6 + $0xf9] sm:$0xff] }
 0x77b   : > { %9084 = vmatmul.mubr.bf16.gmra.mrb[212].mxu1 %v5397_v12  ;;  %v5521_v12 = vld [vmem:[#allocation6 + $0x41] sm:$0xff] }
 0x77c   : > { %9091 = vmatprep.mubr.bf16.mxu1 %v18318_v53  ;;  %v5568_v36 = vpack.c.bf16 %v5522_v2, %v5521_v12  ;;  %v5527_v2 = vld [vmem:[#allocation6 + $0x71] sm:$0xff]  ;;  %v5671_v12 = vpack.c.bf16 %v18199_v25, %v18191_v0  ;;  %v5540_v0 = vld [vmem:[#allocation6 + $0xd9] sm:$0xff] }
 0x77d   : > { %v5577_v25 = vpack.c.bf16 %v5540_v0, %v5539_v17  ;;  %v15195_v17 = vld [vmem:[%s19348_s7 + $0x78] sm:$0xff]   ;;  %v5553_v0 = vld [vmem:[#allocation6 + $0x141] sm:$0xff] }
 0x783   : > { %9092 = vmatmul.mubr.bf16.gmra.mrb[216].mxu1 %v5398_v45  ;;  %v5666_v45 = vpack.c.bf16 %v18117_v16, %v18101_v27  ;;  %v5530_v27 = vld [vmem:[#allocation6 + $0x89] sm:$0xff] }
 0x784   : > { %9132 = vmatprep.mubr.bf16.mxu1 %v5663_v58  ;;  %v5572_v16 = vpack.c.bf16 %v5530_v27, %v5529_v37  ;;  %v5531_v58 = vld [vmem:[#allocation6 + $0x91] sm:$0xff]  ;;  %v15185_v27 = vld [vmem:[%s19348_s7 + $0x50] sm:$0xff]  }
 0x78b   : > { %9133 = vmatmul.mubr.bf16.vlgmr.msra.gmra.mrb[220].mxu1 %v5567_v46  ;;  %v5667_v46 = vpack.c.bf16 %v18137_v32, %v18119_v34  ;;  %v5532_v34 = vld [vmem:[#allocation6 + $0x99] sm:$0xff] }
 0x78c   : > { %9140 = vmatprep.mubr.bf16.mxu1 %v5664_v30  ;;  %v5573_v32 = vpack.c.bf16 %v5532_v34, %v5531_v58  ;;  %v5533_v30 = vld [vmem:[#allocation6 + $0xa1] sm:$0xff] }
 0x78d   : > { %v5574_v23 = vpack.c.bf16 %v5534_v40, %v5533_v30  ;;  %v15186_v58 = vld [vmem:[%s19348_s7 + $0x10] sm:$0xff]   ;;  %v15187_v30 = vld [vmem:[%s19348_s7 + $0x58] sm:$0xff]  }
 0x78e   : > { %v5549_v34 = vld [vmem:[#allocation6 + $0x121] sm:$0xff]  ;;  %v15188_v40 = vld [vmem:[%s19348_s7 + $0x18] sm:$0xff]  }
 0x793   : > { %9141 = vmatmul.mubr.bf16.gmra.mrb[224].mxu1 %v5568_v36  ;;  %v5571_v36 = vpack.c.bf16 %v5528_v18, %v5527_v2  ;;  %v5675_v2 = vpack.c.bf16 %v18241_v9, %v18233_v31  ;;  %v5543_v18 = vld [vmem:[#allocation6 + $0xf1] sm:$0xff]  ;;  %v15183_v9 = vld [vmem:[%s19348_s7 + $0x48] sm:$0xff]  }
 0x794   : > { %9148 = vmatprep.mubr.bf16.mxu1 %v5665_v35  ;;  %v5669_v35 = vpack.c.bf16 %v18173_v5, %v18157_v43  ;;  %v5536_v5 = vld [vmem:[#allocation6 + $0xb9] sm:$0xff]  ;;  %v5579_v48 = vpack.c.bf16 %v5544_v33, %v5543_v18  ;;  %v5557_v18 = vld [vmem:[#allocation6 + $0x161] sm:$0xff]  ;;  %v5558_v33 = vld [vmem:[#allocation6 + $0x169] sm:$0xff] }
 0x795   : > { %v5575_v43 = vpack.c.bf16 %v5536_v5, %v5535_v54  ;;  %v15182_v31 = vld [vmem:[%s19348_s7] sm:$0xff]  }
 0x796   : > { %v5551_v54 = vld [vmem:[#allocation6 + $0x131] sm:$0xff]  ;;  %v5552_v5 = vld [vmem:[#allocation6 + $0x139] sm:$0xff] }
 0x79b   : > { %9149 = vmatmul.mubr.bf16.gmra.mrb[228].mxu1 %v5569_v14  ;;  %v5672_v14 = vpack.c.bf16 %v18209_v61, %v18201_v24  ;;  %v5542_v24 = vld [vmem:[#allocation6 + $0xe9] sm:$0xff] }
 0x79c   : > { %9156 = vmatprep.mubr.bf16.mxu1 %v5666_v45  ;;  %v5537_v45 = vld [vmem:[#allocation6 + $0xc1] sm:$0xff] }
 0x79d   : > { %v5576_v57 = vpack.c.bf16 %v5538_v39, %v5537_v45  ;;  %v15193_v45 = vld [vmem:[%s19348_s7 + $0x70] sm:$0xff]  }
 0x7a3   : > { %9157 = vmatmul.mubr.bf16.gmra.mrb[232].mxu1 %v5570_v47  ;;  %v5674_v47 = vpack.c.bf16 %v18231_v49, %v18223_v50  ;;  %v5546_v50 = vld [vmem:[#allocation6 + $0x109] sm:$0xff]  ;;  %v15181_v49 = vld [vmem:[%s19348_s7 + $0x40] sm:$0xff]  }
 0x7a4   : > { %9164 = vmatprep.mubr.bf16.mxu1 %v5667_v46  ;;  %v5541_v46 = vld [vmem:[#allocation6 + $0xe1] sm:$0xff]  ;;  %13513 = vmatprep.subr.bf16.mxu0 %v15181_v49 }
 0x7a5   : > { %v5578_v61 = vpack.c.bf16 %v5542_v24, %v5541_v46  ;;  %13514 = vmatpush3.bf16.msra.mxu0 %v15182_v31  ;;  %v5555_v46 = vld [vmem:[#allocation6 + $0x151] sm:$0xff]  ;;  %v5556_v24 = vld [vmem:[#allocation6 + $0x159] sm:$0xff] }
 0x7a6   : > { %13515 = vmatprep.subr.bf16.mxu0 %v15183_v9  ;;  %v5661_v9 = vld [vmem:[#allocation6 + $0x1a2] sm:$0xff] }
 0x7ab   : > { %9165 = vmatmul.mubr.bf16.gmra.mrb[236].mxu1 %v5571_v36  ;;  %v5676_v36 = vpack.c.bf16 %v18253_v41, %v18243_v10  ;;  %v5677_v10 = vpack.c.bf16 %v18263_v13, %v18255_v11  ;;  %v15184_v41 = vld [vmem:[%s19348_s7 + $0x8] sm:$0xff]   ;;  %v5678_v13 = vpack.c.bf16 %v18273_v51, %v18265_v22  ;;  %v5679_v22 = vpack.c.bf16 %v18281_v20, %v18275_v4  ;;  %v15190_v51 = vld [vmem:[%s19348_s7 + $0x20] sm:$0xff]  }
 0x7ac   : > { %9172 = vmatprep.mubr.bf16.mxu1 %v5668_v28  ;;  %v5545_v28 = vld [vmem:[#allocation6 + $0x101] sm:$0xff]  ;;  %13516 = vmatpush3.bf16.msra.mxu0 %v15184_v41  ;;  %v9616_v20 = vld [vmem:[#allocation9 + $0x1] sm:$0xff] }
 0x7ad   : > { %v5580_v37 = vpack.c.bf16 %v5546_v50, %v5545_v28  ;;  %13517 = vmatprep.subr.bf16.mxu0 %v15185_v27  ;;  %v15192_v4 = vld [vmem:[%s19348_s7 + $0x28] sm:$0xff]  }
 0x7ae   : > { %v5561_v50 = vld [vmem:[#allocation6 + $0x181] sm:$0xff] }
 0x7b0   : > { %13518 = vmatpush3.bf16.msra.mxu0 %v15186_v58 }
 0x7b1   : > { %13519 = vmatprep.subr.bf16.mxu0 %v15187_v30 }
 0x7b3   : > { %9173 = vmatmul.mubr.bf16.gmra.mrb[240].mxu1 %v5572_v16  ;;  %v5547_v16 = vld [vmem:[#allocation6 + $0x111] sm:$0xff] }
 0x7b4   : > { %9180 = vmatprep.mubr.bf16.mxu1 %v5669_v35  ;;  %v5548_v35 = vld [vmem:[#allocation6 + $0x119] sm:$0xff]  ;;  %13520 = vmatpush3.bf16.msra.mxu0 %v15188_v40 }
 0x7b5   : > { %v5581_v11 = vpack.c.bf16 %v5548_v35, %v5547_v16 }
 0x7bb   : > { %9181 = vmatmul.mubr.bf16.gmra.mrb[244].mxu1 %v5573_v32  ;;  %v5550_v32 = vld [vmem:[#allocation6 + $0x129] sm:$0xff] }
 0x7bc   : > { %9188 = vmatprep.mubr.bf16.mxu1 %v5670_v7  ;;  %v5582_v7 = vpack.c.bf16 %v5550_v32, %v5549_v34 }
 0x7c3   : > { %9189 = vmatmul.mubr.bf16.gmra.mrb[248].mxu1 %v5574_v23  ;;  %v15189_v23 = vld [vmem:[%s19348_s7 + $0x60] sm:$0xff]  }
 0x7c4   : > { %9196 = vmatprep.mubr.bf16.mxu1 %v5671_v12  ;;  %13521 = vmatprep.subr.bf16.mxu0 %v15189_v23  ;;  %v15191_v12 = vld [vmem:[%s19348_s7 + $0x68] sm:$0xff]  }
 0x7c5   : > { %13522 = vmatpush3.bf16.msra.mxu0 %v15190_v51 }
 0x7c6   : > { %13523 = vmatprep.subr.bf16.mxu0 %v15191_v12 }
 0x7c9   : > { %13524 = vmatpush3.bf16.msra.mxu0 %v15192_v4 }
 0x7ca   : > { %13525 = vmatprep.subr.bf16.mxu0 %v15193_v45 }
 0x7cb   : > { %9197 = vmatmul.mubr.bf16.gmra.mrb[252].mxu1 %v5575_v43  ;;  %v9617_v43 = vld [vmem:[#allocation9 + $0x9] sm:$0xff] }
 0x7cc   : > { %9204 = vmatprep.mubr.bf16.mxu1 %v5672_v14  ;;  %v5583_v14 = vpack.c.bf16 %v5552_v5, %v5551_v54  ;;  %v9632_v39 = vpack.c.bf16 %v9617_v43, %v9616_v20 }
 0x7ce   : > { %10557 = vmatprep.mubr.bf16.mxu0 %v9632_v39 }
 0x7d3   : > { %9205 = vmatmul.mubr.bf16.gmra.mrb[160].mxu1 %v5576_v57  ;;  %v5680_v57 = vpack.c.bf16 %v18289_v19, %v18283_v63  ;;  %v15196_v63 = vld [vmem:[%s19348_s7 + $0x38] sm:$0xff]  }
 0x7d4   : > { %9212 = vmatprep.mubr.bf16.mxu1 %v5673_v1  ;;  %v15194_v1 = vld [vmem:[%s19348_s7 + $0x30] sm:$0xff]  }
 0x7d5   : > { %13526 = vmatpush3.bf16.msra.mxu0 %v15194_v1 }
 0x7d6   : > { %13527 = vmatprep.subr.bf16.mxu0 %v15195_v17 }
 0x7d9   : > { %13528 = vmatpush3.bf16.msra.mxu0 %v15196_v63 }
 0x7db   : > { %9213 = vmatmul.mubr.bf16.gmra.mrb[164].mxu1 %v5577_v25  ;;  %v5554_v25 = vld [vmem:[#allocation6 + $0x149] sm:$0xff] }
 0x7dc   : > { %9220 = vmatprep.mubr.bf16.mxu1 %v5674_v47  ;;  %v5584_v19 = vpack.c.bf16 %v5554_v25, %v5553_v0  ;;  %v5681_v47 = vpack.c.bf16 %v18297_v52, %v18291_v55  ;;  %10558 = vmatmul.mubr.bf16.vlgmr.msra.gmra.mrb[8].mxu0 %v18318_v53  ;;  %v5559_v55 = vld [vmem:[#allocation6 + $0x171] sm:$0xff]  ;;  %v5560_v52 = vld [vmem:[#allocation6 + $0x179] sm:$0xff]  ;;  %v5684_v53 = vpack.c.bf16 %v18321_v38, %v18314_v29  ;;  %v5565_v29 = vld [vmem:[#allocation6 + $0x1a1] sm:$0xff] }
 0x7dd   : > { %v5587_v28 = vpack.c.bf16 %v5560_v52, %v5559_v55  ;;  %v5566_v38 = vld [vmem:[#allocation6 + $0x1a9] sm:$0xff]  ;;  %v15197_v0 = vld [vmem:[%s19348_s7 + $0xc0] sm:$0xff]  }
 0x7de   : > { %v5590_v27 = vpack.c.bf16 %v5566_v38, %v5565_v29  ;;  %v15198_v25 = vld [vmem:[%s19348_s7 + $0x80] sm:$0xff]   ;;  %13577 = vmatprep.subr.bf16.mxu0 %v15197_v0  ;;  %v15201_v52 = vld [vmem:[%s19348_s7 + $0xd0] sm:$0xff]  }
 0x7df   : > { %13578 = vmatpush3.bf16.msra.mxu0 %v15198_v25  ;;  %v15208_v25 = vld [vmem:[%s19348_s7 + $0xa8] sm:$0xff]  }
 0x7e3   : > { %9221 = vmatmul.mubr.bf16.gmra.mrb[168].mxu1 %v5578_v61  ;;  %v5585_v61 = vpack.c.bf16 %v5556_v24, %v5555_v46 }
 0x7e4   : > { %9228 = vmatprep.mubr.bf16.mxu1 %v5675_v2  ;;  %v5682_v2 = vpack.c.bf16 %v18305_v62, %v18299_v3  ;;  %v5562_v3 = vld [vmem:[#allocation6 + $0x189] sm:$0xff]  ;;  %v5660_v62 = vld [vmem:[#allocation6 + $0x19a] sm:$0xff] }
 0x7e5   : > { %v5588_v49 = vpack.c.bf16 %v5562_v3, %v5561_v50  ;;  %v5685_v31 = vpack.c.bf16 %v5660_v62, %v18323_v8  ;;  %v18427_v8 = vld [vmem:[%s19350_s9 + $0x1] ss:$0 sm:$0xff] }
 0x7e6   : > { %v14049_v16 = vadd.f32 %v18427_v8, %v18180_v59  ;;  %v14051_v58 = vadd.f32 %v18427_v8, %v18183_v6  ;;  %v14055_v40 = vadd.f32 %v18427_v8, %v18193_v44  ;;  %v14057_v5 = vadd.f32 %v18427_v8, %v18203_v15 }
 0x7e7   : > { %v14061_v44 = vadd.f32 %v18427_v8, %v18213_v21  ;;  %v14063_v15 = vadd.f32 %v18427_v8, %v18215_v60  ;;  %v15199_v21 = vld [vmem:[%s19348_s7 + $0xc8] sm:$0xff]   ;;  %v14067_v50 = vadd.f32 %v18427_v8, %v18225_v56 }
 0x7e8   : > { %13579 = vmatprep.subr.bf16.mxu0 %v15199_v21 }
 0x7eb   : > { %9229 = vmatmul.mubr.bf16.gmra.mrb[172].mxu1 %v5579_v48  ;;  %v5586_v48 = vpack.c.bf16 %v5558_v33, %v5557_v18  ;;  %v15200_v18 = vld [vmem:[%s19348_s7 + $0x88] sm:$0xff]  }
 0x7ec   : > { %9236 = vmatprep.mubr.bf16.mxu1 %v5676_v36  ;;  %v5683_v36 = vpack.c.bf16 %v18312_v42, %v18307_v26  ;;  %v5563_v26 = vld [vmem:[#allocation6 + $0x191] sm:$0xff]  ;;  %v5564_v42 = vld [vmem:[#allocation6 + $0x199] sm:$0xff]  ;;  %13580 = vmatpush3.bf16.msra.mxu0 %v15200_v18 }
 0x7ed   : > { %13581 = vmatprep.subr.bf16.mxu0 %v15201_v52 }
 0x7f3   : > { %9237 = vmatmul.mubr.bf16.gmra.mrb[176].mxu1 %v5580_v37  ;;  %v5662_v37 = vld [vmem:[#allocation6 + $0x1aa] sm:$0xff] }
 0x7f4   : > { %9244 = vmatprep.mubr.bf16.mxu1 %v5677_v10  ;;  %v5589_v10 = vpack.c.bf16 %v5564_v42, %v5563_v26  ;;  %v5686_v41 = vpack.c.bf16 %v5662_v37, %v5661_v9  ;;  %v9619_v42 = vld [vmem:[#allocation9 + $0x19] sm:$0xff] }
 0x7f5   : > { %v19454_v9 = vld [vmem:[#allocation46_spill] sm:$0xff] }
 0x7f6   : > { %v14069_v37 = vadd.f32 %v18427_v8, %v19454_v9 }
 0x7fb   : > { %9245 = vmatmul.mubr.bf16.gmra.mrb[180].mxu1 %v5581_v11 }
 0x7fc   : > { %9252 = vmatprep.mubr.bf16.mxu1 %v5678_v13 }
 0x803   : > { %9253 = vmatmul.mubr.bf16.gmra.mrb[184].mxu1 %v5582_v7 }
 0x804   : > { %9260 = vmatprep.mubr.bf16.mxu1 %v5679_v22 }
 0x80b   : > { %9261 = vmatmul.mubr.bf16.gmra.mrb[188].mxu1 %v5583_v14 }
 0x80c   : > { %9268 = vmatprep.mubr.bf16.mxu1 %v5680_v57 }
 0x813   : > { %9269 = vmatmul.mubr.bf16.gmra.mrb[192].mxu1 %v5584_v19 }
 0x814   : > { %9276 = vmatprep.mubr.bf16.mxu1 %v5681_v47 }
 0x81b   : > { %9277 = vmatmul.mubr.bf16.gmra.mrb[196].mxu1 %v5585_v61 }
 0x81c   : > { %9284 = vmatprep.mubr.bf16.mxu1 %v5682_v2 }
 0x823   : > { %9285 = vmatmul.mubr.bf16.gmra.mrb[200].mxu1 %v5586_v48 }
 0x824   : > { %9292 = vmatprep.mubr.bf16.mxu1 %v5683_v36 }
 0x82b   : > { %9293 = vmatmul.mubr.bf16.gmra.mrb[204].mxu1 %v5587_v28 }
 0x82c   : > { %9300 = vmatprep.mubr.bf16.mxu1 %v5684_v53  ;;  %v15202_v53 = vld [vmem:[%s19348_s7 + $0x90] sm:$0xff]  }
 0x82d   : > { %13582 = vmatpush3.bf16.msra.mxu0 %v15202_v53 }
 0x833   : > { %9301 = vmatmul.mubr.bf16.gmra.mrb[208].mxu1 %v5588_v49 }
 0x834   : > { %9308 = vmatprep.mubr.bf16.mxu1 %v5685_v31 }
 0x83b   : > { %9309 = vmatmul.mubr.bf16.gmra.mrb[212].mxu1 %v5589_v10 }
 0x83c   : > { %9316 = vmatprep.mubr.bf16.mxu1 %v5686_v41 }
 0x843   : > { %9317 = vmatmul.mubr.bf16.gmra.mrb[216].mxu1 %v5590_v27 }
 0x85e   : > { %v9134_v35 = vpop.f32.mrb[220].mxu1 }
 0x85f   : > { %v14050_v11 = vadd.f32 %v14049_v16, %v9134_v35  ;;  %v9136_v13 = vpop.f32.mrb[221].mxu1 }
 0x860   : > { %v9137_v34 = vpop.f32.mrb[222].mxu1 }
 0x861   : > { %v9325_v32 = vmax.f32 %v14050_v11, 0.0  ;;  %v14052_v7 = vadd.f32 %v14051_v58, %v9137_v34  ;;  %v9139_v30 = vpop.f32.mrb[223].mxu1  ;;  %v19455_v34 = vld [vmem:[#allocation47_spill] sm:$0xff] }
 0x862   : > { %v19456_v30 = vld [vmem:[#allocation48_spill] sm:$0xff] }
 0x863   : > { %9373 = vst.msk [vmem:[%s18434_s29] sm:$0xff] %vm627_vm1, %v9325_v32  ;;  %9420 = vst.msk [vmem:[#allocation8] sm:$0xff] %vm627_vm1, %v9325_v32  ;;  %v9326_v59 = vmax.f32 %v14052_v7, 0.0  ;;  %v14073_v32 = vadd.f32 %v18427_v8, %v19455_v34 }
 0x865   : > { %9374 = vst.msk [vmem:[%s18434_s29 + $0x8] sm:$0xff] %vm627_vm1, %v9326_v59  ;;  %9421 = vst.msk [vmem:[#allocation8 + $0x8] sm:$0xff] %vm627_vm1, %v9326_v59  ;;  %v14075_v59 = vadd.f32 %v18427_v8, %v19456_v30  ;;  %v15212_v30 = vld [vmem:[%s19348_s7 + $0xb8] sm:$0xff]  }
 0x866   : > { %v9142_v6 = vpop.f32.mrb[224].mxu1 }
 0x867   : > { %v9144_v23 = vpop.f32.mrb[225].mxu1 }
 0x868   : > { %v9145_v22 = vpop.f32.mrb[226].mxu1  ;;  %v15203_v23 = vld [vmem:[%s19348_s7 + $0xd8] sm:$0xff]  }
 0x869   : > { %v14056_v51 = vadd.f32 %v14055_v40, %v9145_v22  ;;  %v9147_v12 = vpop.f32.mrb[227].mxu1  ;;  %v15204_v22 = vld [vmem:[%s19348_s7 + $0x98] sm:$0xff]   ;;  %13583 = vmatprep.subr.bf16.mxu0 %v15203_v23  ;;  %v15213_v23 = vld [vmem:[%s19348_s7 + $0x140] sm:$0xff]  }
 0x86a   : > { %13584 = vmatpush3.bf16.msra.mxu0 %v15204_v22 }
 0x86b   : > { %v9328_v54 = vmax.f32 %v14056_v51, 0.0 }
 0x86c   : > { %v9489_v63 = vld [vmem:[#allocation8] ss:$2 sm:$0xff]  ;;  %v9491_v19 = vld [vmem:[#allocation8 + $0x1] ss:$2 sm:$0xff] }
 0x86d   : > { %12607 = vst.msk [vmem:[%s18434_s29 + $0x10] sm:$0xff] %vm627_vm1, %v9328_v54  ;;  %9423 = vst.msk [vmem:[#allocation8 + $0x18] sm:$0xff] %vm627_vm1, %v9328_v54  ;;  %v9496_v33 = vmax.f32 %v9489_v63, %v9491_v19  ;;  %v19457_v63 = vld [vmem:[#allocation49_spill] sm:$0xff] }
 0x86e   : > { %v9150_v4 = vpop.f32.mrb[228].mxu1  ;;  %v14079_v19 = vadd.f32 %v18427_v8, %v19457_v63 }
 0x86f   : > { %v14058_v20 = vadd.f32 %v14057_v5, %v9150_v4  ;;  %v9152_v43 = vpop.f32.mrb[229].mxu1  ;;  %v15205_v5 = vld [vmem:[%s19348_s7 + $0xe0] sm:$0xff]  }
 0x870   : > { %v9153_v14 = vpop.f32.mrb[230].mxu1  ;;  %13585 = vmatprep.subr.bf16.mxu0 %v15205_v5 }
 0x871   : > { %v9329_v45 = vmax.f32 %v14058_v20, 0.0  ;;  %v9155_v39 = vpop.f32.mrb[231].mxu1 }
 0x872   : > { %v15206_v39 = vld [vmem:[%s19348_s7 + $0xa0] sm:$0xff]  }
 0x873   : > { %12608 = vst.msk [vmem:[%s18434_s29 + $0x18] sm:$0xff] %vm627_vm1, %v9329_v45  ;;  %9424 = vst.msk [vmem:[#allocation8 + $0x20] sm:$0xff] %vm627_vm1, %v9329_v45  ;;  %13586 = vmatpush3.bf16.msra.mxu0 %v15206_v39  ;;  %v19462_v39 = vld [vmem:[#allocation29_spill] sm:$0xff] }
 0x876   : > { %v9158_v57 = vpop.f32.mrb[232].mxu1 }
 0x877   : > { %v14062_v1 = vadd.f32 %v14061_v44, %v9158_v57  ;;  %v9160_v17 = vpop.f32.mrb[233].mxu1 }
 0x878   : > { %v9161_v47 = vpop.f32.mrb[234].mxu1  ;;  %v15207_v17 = vld [vmem:[%s19348_s7 + $0xe8] sm:$0xff]  }
 0x879   : > { %v9331_v60 = vmax.f32 %v14062_v1, 0.0  ;;  %v14064_v46 = vadd.f32 %v14063_v15, %v9161_v47  ;;  %v9163_v24 = vpop.f32.mrb[235].mxu1  ;;  %13587 = vmatprep.subr.bf16.mxu0 %v15207_v17 }
 0x87a   : > { %v9493_v61 = vld [vmem:[#allocation8 + $0x18] ss:$2 sm:$0xff]  ;;  %v9495_v2 = vld [vmem:[#allocation8 + $0x19] ss:$2 sm:$0xff]  ;;  %13588 = vmatpush3.bf16.msra.mxu0 %v15208_v25 }
 0x87b   : > { %v9497_v48 = vmax.f32 %v9493_v61, %v9495_v2  ;;  %12609 = vst.msk [vmem:[%s18434_s29 + $0x20] sm:$0xff] %vm627_vm1, %v9331_v60  ;;  %9426 = vst.msk [vmem:[#allocation8 + $0x30] sm:$0xff] %vm627_vm1, %v9331_v60  ;;  %v9332_v36 = vmax.f32 %v14064_v46, 0.0  ;;  %v9621_v61 = vld [vmem:[#allocation9 + $0x29] sm:$0xff]  ;;  %v19458_v2 = vld [vmem:[#allocation50_spill] sm:$0xff] }
 0x87c   : > { %v14081_v18 = vadd.f32 %v18427_v8, %v19458_v2 }
 0x87d   : > { %v9498_v55 = vmax.f32 %v9496_v33, %v9497_v48  ;;  %12610 = vst.msk [vmem:[%s18434_s29 + $0x28] sm:$0xff] %vm627_vm1, %v9332_v36  ;;  %9427 = vst.msk [vmem:[#allocation8 + $0x38] sm:$0xff] %vm627_vm1, %v9332_v36 }
 0x87e   : > { %v9166_v28 = vpop.f32.mrb[236].mxu1 }
 0x87f   : > { %9499 = vst.msk [vmem:[#allocation9 + $0x11] sm:$0xff] %vm627_vm1, %v9498_v55  ;;  %v9168_v3 = vpop.f32.mrb[237].mxu1 }
 0x880   : > { %v9169_v62 = vpop.f32.mrb[238].mxu1 }
 0x881   : > { %v14068_v49 = vadd.f32 %v14067_v50, %v9169_v62  ;;  %v9171_v31 = vpop.f32.mrb[239].mxu1 }
 0x882   : > { %v19459_v31 = vld [vmem:[#allocation28_spill] sm:$0xff] }
 0x883   : > { %v9334_v26 = vmax.f32 %v14068_v49, 0.0 }
 0x884   : > { %v9501_v51 = vld [vmem:[#allocation8 + $0x30] ss:$2 sm:$0xff]  ;;  %v9503_v12 = vld [vmem:[#allocation8 + $0x31] ss:$2 sm:$0xff] }
 0x885   : > { %12611 = vst.msk [vmem:[%s18434_s29 + $0x30] sm:$0xff] %vm627_vm1, %v9334_v26  ;;  %9429 = vst.msk [vmem:[#allocation8 + $0x48] sm:$0xff] %vm627_vm1, %v9334_v26  ;;  %v9508_v44 = vmax.f32 %v9501_v51, %v9503_v12  ;;  %v14085_v26 = vadd.f32 %v18427_v8, %v19459_v31 }
 0x886   : > { %v9174_v10 = vpop.f32.mrb[240].mxu1  ;;  %v9618_v56 = vld [vmem:[#allocation9 + $0x11] sm:$0xff] }
 0x887   : > { %v9586_v41 = vld [vmem:[#allocation9 + $0x10] sm:$0xff]  ;;  %v9587_v29 = vld [vmem:[#allocation9 + $0x18] sm:$0xff]  ;;  %v14070_v38 = vadd.f32 %v14069_v37, %v9174_v10  ;;  %v9176_v27 = vpop.f32.mrb[241].mxu1  ;;  %v9633_v16 = vpack.c.bf16 %v9619_v42, %v9618_v56  ;;  %v19460_v10 = vld [vmem:[#allocation27_spill] sm:$0xff] }
 0x888   : > { %v18488_v35 = vpack.c.bf16 %v9587_v29, %v9586_v41  ;;  %v9177_v58 = vpop.f32.mrb[242].mxu1  ;;  %v14087_v56 = vadd.f32 %v18427_v8, %v19460_v10  ;;  %v15209_v41 = vld [vmem:[%s19348_s7 + $0xf0] sm:$0xff]  }
 0x889   : > { %v9335_v11 = vmax.f32 %v14070_v38, 0.0  ;;  %v9179_v13 = vpop.f32.mrb[243].mxu1  ;;  %10565 = vmatprep.mubr.bf16.mxu0 %v9633_v16  ;;  %v15210_v29 = vld [vmem:[%s19348_s7 + $0xb0] sm:$0xff]   ;;  %v15211_v58 = vld [vmem:[%s19348_s7 + $0xf8] sm:$0xff]   ;;  %13589 = vmatprep.subr.bf16.mxu0 %v15209_v41 }
 0x88a   : > { %10566 = vmatmul.mubr.bf16.gmra.mrb[12].mxu0 %v18488_v35  ;;  %v19465_v41 = vld [vmem:[#allocation32_spill] sm:$0xff] }
 0x88b   : > { %12612 = vst.msk [vmem:[%s18434_s29 + $0x38] sm:$0xff] %vm627_vm1, %v9335_v11  ;;  %9430 = vst.msk [vmem:[#allocation8 + $0x50] sm:$0xff] %vm627_vm1, %v9335_v11  ;;  %13590 = vmatpush3.bf16.msra.mxu0 %v15210_v29  ;;  %v14103_v29 = vadd.f32 %v18427_v8, %v19465_v41 }
 0x88c   : > { %13591 = vmatprep.subr.bf16.mxu0 %v15211_v58 }
 0x88e   : > { %v9182_v7 = vpop.f32.mrb[244].mxu1 }
 0x88f   : > { %v14074_v6 = vadd.f32 %v14073_v32, %v9182_v7  ;;  %v9184_v40 = vpop.f32.mrb[245].mxu1  ;;  %13592 = vmatpush3.bf16.msra.mxu0 %v15212_v30 }
 0x890   : > { %v9185_v54 = vpop.f32.mrb[246].mxu1  ;;  %13641 = vmatprep.subr.bf16.mxu0 %v15213_v23 }
 0x891   : > { %v9337_v4 = vmax.f32 %v14074_v6, 0.0  ;;  %v14076_v20 = vadd.f32 %v14075_v59, %v9185_v54  ;;  %v9187_v43 = vpop.f32.mrb[247].mxu1  ;;  %v19461_v54 = vld [vmem:[#allocation26_spill] sm:$0xff] }
 0x892   : > { %v9505_v14 = vld [vmem:[#allocation8 + $0x48] ss:$2 sm:$0xff]  ;;  %v9507_v45 = vld [vmem:[#allocation8 + $0x49] ss:$2 sm:$0xff]  ;;  %v14091_v5 = vadd.f32 %v18427_v8, %v19461_v54 }
 0x893   : > { %v9509_v57 = vmax.f32 %v9505_v14, %v9507_v45  ;;  %12613 = vst.msk [vmem:[%s18434_s29 + $0x40] sm:$0xff] %vm627_vm1, %v9337_v4  ;;  %9432 = vst.msk [vmem:[#allocation8 + $0x60] sm:$0xff] %vm627_vm1, %v9337_v4  ;;  %v9338_v15 = vmax.f32 %v14076_v20, 0.0  ;;  %v9623_v45 = vld [vmem:[#allocation9 + $0x39] sm:$0xff] }
 0x895   : > { %v9510_v1 = vmax.f32 %v9508_v44, %v9509_v57  ;;  %12614 = vst.msk [vmem:[%s18434_s29 + $0x48] sm:$0xff] %vm627_vm1, %v9338_v15  ;;  %9433 = vst.msk [vmem:[#allocation8 + $0x68] sm:$0xff] %vm627_vm1, %v9338_v15  ;;  %v14093_v44 = vadd.f32 %v18427_v8, %v19462_v39 }
 0x896   : > { %v9190_v0 = vpop.f32.mrb[248].mxu1 }
 0x897   : > { %9511 = vst.msk [vmem:[#allocation9 + $0x21] sm:$0xff] %vm627_vm1, %v9510_v1  ;;  %v9192_v47 = vpop.f32.mrb[249].mxu1 }
 0x898   : > { %v9193_v21 = vpop.f32.mrb[250].mxu1 }
 0x899   : > { %v14080_v60 = vadd.f32 %v14079_v19, %v9193_v21  ;;  %v9195_v46 = vpop.f32.mrb[251].mxu1 }
 0x89a   : > { %v19463_v46 = vld [vmem:[#allocation30_spill] sm:$0xff] }
 0x89b   : > { %v9340_v24 = vmax.f32 %v14080_v60, 0.0 }
 0x89c   : > { %v9513_v38 = vld [vmem:[#allocation8 + $0x60] ss:$2 sm:$0xff]  ;;  %v9515_v27 = vld [vmem:[#allocation8 + $0x61] ss:$2 sm:$0xff] }
 0x89d   : > { %12615 = vst.msk [vmem:[%s18434_s29 + $0x50] sm:$0xff] %vm627_vm1, %v9340_v24  ;;  %9435 = vst.msk [vmem:[#allocation8 + $0x78] sm:$0xff] %vm627_vm1, %v9340_v24  ;;  %v9520_v59 = vmax.f32 %v9513_v38, %v9515_v27  ;;  %v14097_v24 = vadd.f32 %v18427_v8, %v19463_v46 }
 0x89e   : > { %v9198_v33 = vpop.f32.mrb[252].mxu1  ;;  %v9620_v48 = vld [vmem:[#allocation9 + $0x21] sm:$0xff] }
 0x89f   : > { %v9588_v36 = vld [vmem:[#allocation9 + $0x20] sm:$0xff]  ;;  %v9589_v55 = vld [vmem:[#allocation9 + $0x28] sm:$0xff]  ;;  %v14082_v52 = vadd.f32 %v14081_v18, %v9198_v33  ;;  %v9200_v28 = vpop.f32.mrb[253].mxu1  ;;  %v18530_v53 = vpack.c.bf16 %v9621_v61, %v9620_v48 }
 0x8a0   : > { %v18532_v50 = vpack.c.bf16 %v9589_v55, %v9588_v36  ;;  %v9201_v3 = vpop.f32.mrb[254].mxu1  ;;  %v19464_v33 = vld [vmem:[#allocation31_spill] sm:$0xff] }
 0x8a1   : > { %v9341_v62 = vmax.f32 %v14082_v52, 0.0  ;;  %v9203_v49 = vpop.f32.mrb[255].mxu1  ;;  %10573 = vmatprep.mubr.bf16.mxu0 %v18530_v53  ;;  %v14099_v48 = vadd.f32 %v18427_v8, %v19464_v33 }
 0x8a2   : > { %10574 = vmatmul.mubr.bf16.gmra.mrb[16].mxu0 %v18532_v50 }
 0x8a3   : > { %12616 = vst.msk [vmem:[%s18434_s29 + $0x58] sm:$0xff] %vm627_vm1, %v9341_v62  ;;  %9436 = vst.msk [vmem:[#allocation8 + $0x80] sm:$0xff] %vm627_vm1, %v9341_v62 }
 0x8a6   : > { %v9206_v42 = vpop.f32.mrb[160].mxu1 }
 0x8a7   : > { %v14086_v9 = vadd.f32 %v14085_v26, %v9206_v42  ;;  %v9208_v37 = vpop.f32.mrb[161].mxu1 }
 0x8a8   : > { %v9209_v16 = vpop.f32.mrb[162].mxu1 }
 0x8a9   : > { %v9343_v11 = vmax.f32 %v14086_v9, 0.0  ;;  %v14088_v13 = vadd.f32 %v14087_v56, %v9209_v16  ;;  %v9211_v34 = vpop.f32.mrb[163].mxu1 }
 0x8aa   : > { %v9517_v32 = vld [vmem:[#allocation8 + $0x78] ss:$2 sm:$0xff]  ;;  %v9519_v7 = vld [vmem:[#allocation8 + $0x79] ss:$2 sm:$0xff] }
 0x8ab   : > { %v9521_v6 = vmax.f32 %v9517_v32, %v9519_v7  ;;  %12617 = vst.msk [vmem:[%s18434_s29 + $0x60] sm:$0xff] %vm627_vm1, %v9343_v11  ;;  %9438 = vst.msk [vmem:[#allocation8 + $0x90] sm:$0xff] %vm627_vm1, %v9343_v11  ;;  %v9344_v40 = vmax.f32 %v14088_v13, 0.0  ;;  %v9625_v11 = vld [vmem:[#allocation9 + $0x49] sm:$0xff]  ;;  %v19466_v13 = vld [vmem:[#allocation33_spill] sm:$0xff] }
 0x8ac   : > { %v14105_v34 = vadd.f32 %v18427_v8, %v19466_v13 }
 0x8ad   : > { %v9522_v22 = vmax.f32 %v9520_v59, %v9521_v6  ;;  %12618 = vst.msk [vmem:[%s18434_s29 + $0x68] sm:$0xff] %vm627_vm1, %v9344_v40  ;;  %9439 = vst.msk [vmem:[#allocation8 + $0x98] sm:$0xff] %vm627_vm1, %v9344_v40 }
 0x8ae   : > { %v9214_v51 = vpop.f32.mrb[164].mxu1 }
 0x8af   : > { %9523 = vst.msk [vmem:[#allocation9 + $0x31] sm:$0xff] %vm627_vm1, %v9522_v22  ;;  %v9216_v12 = vpop.f32.mrb[165].mxu1 }
 0x8b0   : > { %v9217_v4 = vpop.f32.mrb[166].mxu1 }
 0x8b1   : > { %v14092_v20 = vadd.f32 %v14091_v5, %v9217_v4  ;;  %v9219_v43 = vpop.f32.mrb[167].mxu1  ;;  %v19467_v5 = vld [vmem:[#allocation34_spill] sm:$0xff] }
 0x8b2   : > { %v14109_v4 = vadd.f32 %v18427_v8, %v19467_v5  ;;  %v19468_v43 = vld [vmem:[#allocation35_spill] sm:$0xff] }
 0x8b3   : > { %v9346_v14 = vmax.f32 %v14092_v20, 0.0 }
 0x8b4   : > { %v9525_v36 = vld [vmem:[#allocation8 + $0x90] ss:$2 sm:$0xff]  ;;  %v9527_v55 = vld [vmem:[#allocation8 + $0x91] ss:$2 sm:$0xff] }
 0x8b5   : > { %12619 = vst.msk [vmem:[%s18434_s29 + $0x70] sm:$0xff] %vm627_vm1, %v9346_v14  ;;  %9441 = vst.msk [vmem:[#allocation8 + $0xa8] sm:$0xff] %vm627_vm1, %v9346_v14  ;;  %v9532_v26 = vmax.f32 %v9525_v36, %v9527_v55  ;;  %v14111_v14 = vadd.f32 %v18427_v8, %v19468_v43 }
 0x8b6   : > { %v9222_v57 = vpop.f32.mrb[168].mxu1  ;;  %v9622_v15 = vld [vmem:[#allocation9 + $0x31] sm:$0xff] }
 0x8b7   : > { %v9590_v1 = vld [vmem:[#allocation9 + $0x30] sm:$0xff]  ;;  %v9591_v17 = vld [vmem:[#allocation9 + $0x38] sm:$0xff]  ;;  %v14094_v0 = vadd.f32 %v14093_v44, %v9222_v57  ;;  %v9224_v25 = vpop.f32.mrb[169].mxu1  ;;  %v18572_v63 = vpack.c.bf16 %v9623_v45, %v9622_v15 }
 0x8b8   : > { %v18574_v19 = vpack.c.bf16 %v9591_v17, %v9590_v1  ;;  %v9225_v47 = vpop.f32.mrb[170].mxu1 }
 0x8b9   : > { %v9347_v21 = vmax.f32 %v14094_v0, 0.0  ;;  %v9227_v60 = vpop.f32.mrb[171].mxu1  ;;  %10581 = vmatprep.mubr.bf16.mxu0 %v18572_v63 }
 0x8ba   : > { %10582 = vmatmul.mubr.bf16.gmra.mrb[20].mxu0 %v18574_v19 }
 0x8bb   : > { %12620 = vst.msk [vmem:[%s18434_s29 + $0x78] sm:$0xff] %vm627_vm1, %v9347_v21  ;;  %9442 = vst.msk [vmem:[#allocation8 + $0xb0] sm:$0xff] %vm627_vm1, %v9347_v21 }
 0x8be   : > { %v9230_v61 = vpop.f32.mrb[172].mxu1 }
 0x8bf   : > { %v14098_v2 = vadd.f32 %v14097_v24, %v9230_v61  ;;  %v9232_v18 = vpop.f32.mrb[173].mxu1 }
 0x8c0   : > { %v9233_v52 = vpop.f32.mrb[174].mxu1 }
 0x8c1   : > { %v9349_v28 = vmax.f32 %v14098_v2, 0.0  ;;  %v14100_v3 = vadd.f32 %v14099_v48, %v9233_v52  ;;  %v9235_v62 = vpop.f32.mrb[175].mxu1  ;;  %v19469_v2 = vld [vmem:[#allocation36_spill] sm:$0xff] }
 0x8c2   : > { %v9529_v49 = vld [vmem:[#allocation8 + $0xa8] ss:$2 sm:$0xff]  ;;  %v9531_v31 = vld [vmem:[#allocation8 + $0xa9] ss:$2 sm:$0xff]  ;;  %v14115_v18 = vadd.f32 %v18427_v8, %v19469_v2 }
 0x8c3   : > { %v9533_v42 = vmax.f32 %v9529_v49, %v9531_v31  ;;  %12621 = vst.msk [vmem:[%s18434_s29 + $0x80] sm:$0xff] %vm627_vm1, %v9349_v28  ;;  %9444 = vst.msk [vmem:[#allocation8 + $0xc0] sm:$0xff] %vm627_vm1, %v9349_v28  ;;  %v9350_v9 = vmax.f32 %v14100_v3, 0.0  ;;  %v9627_v28 = vld [vmem:[#allocation9 + $0x59] sm:$0xff] }
 0x8c4   : > { %v19470_v3 = vld [vmem:[#allocation37_spill] sm:$0xff] }
 0x8c5   : > { %v9534_v37 = vmax.f32 %v9532_v26, %v9533_v42  ;;  %12622 = vst.msk [vmem:[%s18434_s29 + $0x88] sm:$0xff] %vm627_vm1, %v9350_v9  ;;  %9445 = vst.msk [vmem:[#allocation8 + $0xc8] sm:$0xff] %vm627_vm1, %v9350_v9  ;;  %v14117_v62 = vadd.f32 %v18427_v8, %v19470_v3 }
 0x8c6   : > { %v9238_v10 = vpop.f32.mrb[176].mxu1 }
 0x8c7   : > { %9535 = vst.msk [vmem:[#allocation9 + $0x41] sm:$0xff] %vm627_vm1, %v9534_v37  ;;  %v9240_v56 = vpop.f32.mrb[177].mxu1 }
 0x8c8   : > { %v9241_v38 = vpop.f32.mrb[178].mxu1 }
 0x8c9   : > { %v14104_v27 = vadd.f32 %v14103_v29, %v9241_v38  ;;  %v9243_v16 = vpop.f32.mrb[179].mxu1  ;;  %v13529_v29 = vpop.f32.mrb[8].mxu0 }
 0x8ca   : > { %v13530_v16 = vpop.f32.mrb[9].mxu0 }
 0x8cb   : > { %v9352_v58 = vmax.f32 %v14104_v27, 0.0 }
 0x8cc   : > { %v9537_v44 = vld [vmem:[#allocation8 + $0xc0] ss:$2 sm:$0xff]  ;;  %v9539_v57 = vld [vmem:[#allocation8 + $0xc1] ss:$2 sm:$0xff] }
 0x8cd   : > { %12623 = vst.msk [vmem:[%s18434_s29 + $0x90] sm:$0xff] %vm627_vm1, %v9352_v58  ;;  %9447 = vst.msk [vmem:[#allocation8 + $0xd8] sm:$0xff] %vm627_vm1, %v9352_v58  ;;  %v9544_v21 = vmax.f32 %v9537_v44, %v9539_v57  ;;  %v18632_v58 = vadd.f32 %v13530_v16, %v13529_v29 }
 0x8ce   : > { %v9246_v32 = vpop.f32.mrb[180].mxu1  ;;  %v9624_v7 = vld [vmem:[#allocation9 + $0x41] sm:$0xff] }
 0x8cf   : > { %v9592_v30 = vld [vmem:[#allocation9 + $0x40] sm:$0xff]  ;;  %v9593_v59 = vld [vmem:[#allocation9 + $0x48] sm:$0xff]  ;;  %v14106_v6 = vadd.f32 %v14105_v34, %v9246_v32  ;;  %v9248_v40 = vpop.f32.mrb[181].mxu1  ;;  %v18599_v23 = vpack.c.bf16 %v9625_v11, %v9624_v7  ;;  %v13532_v11 = vpop.f32.mrb[10].mxu0 }
 0x8d0   : > { %v18601_v22 = vpack.c.bf16 %v9593_v59, %v9592_v30  ;;  %v9249_v51 = vpop.f32.mrb[182].mxu1  ;;  %v13533_v13 = vpop.f32.mrb[11].mxu0  ;;  %v19471_v34 = vld [vmem:[#allocation38_spill] sm:$0xff]  ;;  %v19472_v30 = vld [vmem:[#allocation39_spill] sm:$0xff] }
 0x8d1   : > { %v9353_v12 = vmax.f32 %v14106_v6, 0.0  ;;  %v9251_v54 = vpop.f32.mrb[183].mxu1  ;;  %10589 = vmatprep.mubr.bf16.mxu0 %v18599_v23  ;;  %v14121_v32 = vadd.f32 %v18427_v8, %v19471_v34  ;;  %v14123_v59 = vadd.f32 %v18427_v8, %v19472_v30 }
 0x8d2   : > { %10590 = vmatmul.mubr.bf16.gmra.mrb[24].mxu0 %v18601_v22 }
 0x8d3   : > { %12624 = vst.msk [vmem:[%s18434_s29 + $0x98] sm:$0xff] %vm627_vm1, %v9353_v12  ;;  %9448 = vst.msk [vmem:[#allocation8 + $0xe0] sm:$0xff] %vm627_vm1, %v9353_v12 }
 0x8d6   : > { %v9254_v20 = vpop.f32.mrb[184].mxu1 }
 0x8d7   : > { %v14110_v45 = vadd.f32 %v14109_v4, %v9254_v20  ;;  %v9256_v39 = vpop.f32.mrb[185].mxu1 }
 0x8d8   : > { %v9257_v15 = vpop.f32.mrb[186].mxu1 }
 0x8d9   : > { %v9355_v1 = vmax.f32 %v14110_v45, 0.0  ;;  %v14112_v17 = vadd.f32 %v14111_v14, %v9257_v15  ;;  %v9259_v0 = vpop.f32.mrb[187].mxu1 }
 0x8da   : > { %v9541_v25 = vld [vmem:[#allocation8 + $0xd8] ss:$2 sm:$0xff]  ;;  %v9543_v47 = vld [vmem:[#allocation8 + $0xd9] ss:$2 sm:$0xff] }
 0x8db   : > { %v9545_v60 = vmax.f32 %v9541_v25, %v9543_v47  ;;  %12625 = vst.msk [vmem:[%s18434_s29 + $0xa0] sm:$0xff] %vm627_vm1, %v9355_v1  ;;  %9450 = vst.msk [vmem:[#allocation8 + $0xf0] sm:$0xff] %vm627_vm1, %v9355_v1  ;;  %v9356_v46 = vmax.f32 %v14112_v17, 0.0  ;;  %v19473_v1 = vld [vmem:[#allocation40_spill] sm:$0xff] }
 0x8dc   : > { %v14127_v17 = vadd.f32 %v18427_v8, %v19473_v1 }
 0x8dd   : > { %v9546_v24 = vmax.f32 %v9544_v21, %v9545_v60  ;;  %12626 = vst.msk [vmem:[%s18434_s29 + $0xa8] sm:$0xff] %vm627_vm1, %v9356_v46  ;;  %9451 = vst.msk [vmem:[#allocation8 + $0xf8] sm:$0xff] %vm627_vm1, %v9356_v46  ;;  %v9629_v46 = vld [vmem:[#allocation9 + $0x69] sm:$0xff] }
 0x8de   : > { %v9262_v61 = vpop.f32.mrb[188].mxu1 }
 0x8df   : > { %9547 = vst.msk [vmem:[#allocation9 + $0x51] sm:$0xff] %vm627_vm1, %v9546_v24  ;;  %v9264_v33 = vpop.f32.mrb[189].mxu1  ;;  %v19474_v24 = vld [vmem:[#allocation41_spill] sm:$0xff] }
 0x8e0   : > { %v9265_v48 = vpop.f32.mrb[190].mxu1  ;;  %v14129_v61 = vadd.f32 %v18427_v8, %v19474_v24 }
 0x8e1   : > { %v14116_v36 = vadd.f32 %v14115_v18, %v9265_v48  ;;  %v9267_v55 = vpop.f32.mrb[191].mxu1 }
 0x8e3   : > { %v9358_v52 = vmax.f32 %v14116_v36, 0.0 }
 0x8e4   : > { %v9549_v51 = vld [vmem:[#allocation8 + $0xf0] ss:$2 sm:$0xff]  ;;  %v9551_v12 = vld [vmem:[#allocation8 + $0xf1] ss:$2 sm:$0xff] }
 0x8e5   : > { %12627 = vst.msk [vmem:[%s18434_s29 + $0xb0] sm:$0xff] %vm627_vm1, %v9358_v52  ;;  %9453 = vst.msk [vmem:[#allocation8 + $0x108] sm:$0xff] %vm627_vm1, %v9358_v52  ;;  %v9556_v45 = vmax.f32 %v9549_v51, %v9551_v12  ;;  %v19477_v12 = vld [vmem:[#allocation44_spill] sm:$0xff] }
 0x8e6   : > { %v9270_v49 = vpop.f32.mrb[192].mxu1  ;;  %v9626_v31 = vld [vmem:[#allocation9 + $0x51] sm:$0xff] }
 0x8e7   : > { %v9594_v26 = vld [vmem:[#allocation9 + $0x50] sm:$0xff]  ;;  %v9595_v42 = vld [vmem:[#allocation9 + $0x58] sm:$0xff]  ;;  %v14118_v9 = vadd.f32 %v14117_v62, %v9270_v49  ;;  %v9272_v37 = vpop.f32.mrb[193].mxu1  ;;  %v18626_v10 = vpack.c.bf16 %v9627_v28, %v9626_v31  ;;  %v19475_v31 = vld [vmem:[#allocation42_spill] sm:$0xff] }
 0x8e8   : > { %v18628_v56 = vpack.c.bf16 %v9595_v42, %v9594_v26  ;;  %v9273_v41 = vpop.f32.mrb[194].mxu1  ;;  %v14133_v26 = vadd.f32 %v18427_v8, %v19475_v31  ;;  %v15217_v31 = vld [vmem:[%s19348_s7 + $0x150] sm:$0xff]  }
 0x8e9   : > { %v9359_v38 = vmax.f32 %v14118_v9, 0.0  ;;  %v9275_v27 = vpop.f32.mrb[195].mxu1  ;;  %10597 = vmatprep.mubr.bf16.mxu0 %v18626_v10  ;;  %v19476_v9 = vld [vmem:[#allocation43_spill] sm:$0xff] }
 0x8ea   : > { %10598 = vmatmul.mubr.bf16.gmra.mrb[28].mxu0 %v18628_v56  ;;  %v14135_v37 = vadd.f32 %v18427_v8, %v19476_v9  ;;  %v9650_v9 = vld [vmem:[#allocation9 + $0x12] sm:$0xff] }
 0x8eb   : > { %12628 = vst.msk [vmem:[%s18434_s29 + $0xb8] sm:$0xff] %vm627_vm1, %v9359_v38  ;;  %9454 = vst.msk [vmem:[#allocation8 + $0x110] sm:$0xff] %vm627_vm1, %v9359_v38 }
 0x8ee   : > { %v9278_v7 = vpop.f32.mrb[196].mxu1 }
 0x8ef   : > { %v14122_v6 = vadd.f32 %v14121_v32, %v9278_v7  ;;  %v9280_v40 = vpop.f32.mrb[197].mxu1 }
 0x8f0   : > { %v9281_v54 = vpop.f32.mrb[198].mxu1 }
 0x8f1   : > { %v9361_v5 = vmax.f32 %v14122_v6, 0.0  ;;  %v14124_v4 = vadd.f32 %v14123_v59, %v9281_v54  ;;  %v9283_v20 = vpop.f32.mrb[199].mxu1  ;;  %v14139_v54 = vadd.f32 %v18427_v8, %v19477_v12  ;;  %v9657_v12 = vld [vmem:[#allocation9 + $0x4a] sm:$0xff] }
 0x8f2   : > { %v9553_v43 = vld [vmem:[#allocation8 + $0x108] ss:$2 sm:$0xff]  ;;  %v9555_v14 = vld [vmem:[#allocation8 + $0x109] ss:$2 sm:$0xff] }
 0x8f3   : > { %v9557_v39 = vmax.f32 %v9553_v43, %v9555_v14  ;;  %12629 = vst.msk [vmem:[%s18434_s29 + $0xc0] sm:$0xff] %vm627_vm1, %v9361_v5  ;;  %9456 = vst.msk [vmem:[#allocation8 + $0x120] sm:$0xff] %vm627_vm1, %v9361_v5  ;;  %v9362_v44 = vmax.f32 %v14124_v4, 0.0 }
 0x8f5   : > { %v9558_v57 = vmax.f32 %v9556_v45, %v9557_v39  ;;  %12630 = vst.msk [vmem:[%s18434_s29 + $0xc8] sm:$0xff] %vm627_vm1, %v9362_v44  ;;  %9457 = vst.msk [vmem:[#allocation8 + $0x128] sm:$0xff] %vm627_vm1, %v9362_v44  ;;  %v9631_v45 = vld [vmem:[#allocation9 + $0x79] sm:$0xff] }
 0x8f6   : > { %v9286_v15 = vpop.f32.mrb[200].mxu1  ;;  %v19478_v39 = vld [vmem:[#allocation45_spill] sm:$0xff] }
 0x8f7   : > { %9559 = vst.msk [vmem:[#allocation9 + $0x61] sm:$0xff] %vm627_vm1, %v9558_v57  ;;  %v9288_v0 = vpop.f32.mrb[201].mxu1  ;;  %v14141_v44 = vadd.f32 %v18427_v8, %v19478_v39  ;;  %v9648_v8 = vld [vmem:[#allocation9 + $0x2] sm:$0xff] }
 0x8f8   : > { %v9289_v25 = vpop.f32.mrb[202].mxu1 }
 0x8f9   : > { %v14128_v47 = vadd.f32 %v14127_v17, %v9289_v25  ;;  %v9291_v21 = vpop.f32.mrb[203].mxu1 }
 0x8fb   : > { %v9364_v60 = vmax.f32 %v14128_v47, 0.0 }
 0x8fc   : > { %v9561_v38 = vld [vmem:[#allocation8 + $0x120] ss:$2 sm:$0xff]  ;;  %v9563_v27 = vld [vmem:[#allocation8 + $0x121] ss:$2 sm:$0xff] }
 0x8fd   : > { %12631 = vst.msk [vmem:[%s18434_s29 + $0xd0] sm:$0xff] %vm627_vm1, %v9364_v60  ;;  %9459 = vst.msk [vmem:[#allocation8 + $0x138] sm:$0xff] %vm627_vm1, %v9364_v60  ;;  %v9568_v30 = vmax.f32 %v9561_v38, %v9563_v27  ;;  %v15221_v38 = vld [vmem:[%s19348_s7 + $0x160] sm:$0xff]   ;;  %v9653_v27 = vld [vmem:[#allocation9 + $0x2a] sm:$0xff] }
 0x8fe   : > { %v9294_v2 = vpop.f32.mrb[204].mxu1  ;;  %v9628_v18 = vld [vmem:[#allocation9 + $0x61] sm:$0xff] }
 0x8ff   : > { %v9596_v33 = vld [vmem:[#allocation9 + $0x60] sm:$0xff]  ;;  %v9597_v48 = vld [vmem:[#allocation9 + $0x68] sm:$0xff]  ;;  %v14130_v36 = vadd.f32 %v14129_v61, %v9294_v2  ;;  %v9296_v55 = vpop.f32.mrb[205].mxu1  ;;  %v18655_v52 = vpack.c.bf16 %v9629_v46, %v9628_v18 }
 0x900   : > { %v18657_v28 = vpack.c.bf16 %v9597_v48, %v9596_v33  ;;  %v9297_v3 = vpop.f32.mrb[206].mxu1  ;;  %v9649_v61 = vld [vmem:[#allocation9 + $0xa] sm:$0xff]  ;;  %v15214_v2 = vld [vmem:[%s19348_s7 + $0x100] sm:$0xff]  }
 0x901   : > { %v9365_v62 = vmax.f32 %v14130_v36, 0.0  ;;  %v9299_v49 = vpop.f32.mrb[207].mxu1  ;;  %10605 = vmatprep.mubr.bf16.mxu0 %v18655_v52  ;;  %v9664_v48 = vpack.c.bf16 %v9649_v61, %v9648_v8  ;;  %v15215_v36 = vld [vmem:[%s19348_s7 + $0x148] sm:$0xff]  }
 0x902   : > { %10606 = vmatmul.mubr.bf16.gmra.mrb[32].mxu0 %v18657_v28 }
 0x903   : > { %12632 = vst.msk [vmem:[%s18434_s29 + $0xd8] sm:$0xff] %vm627_vm1, %v9365_v62  ;;  %9460 = vst.msk [vmem:[#allocation8 + $0x140] sm:$0xff] %vm627_vm1, %v9365_v62 }
 0x906   : > { %v9302_v42 = vpop.f32.mrb[208].mxu1 }
 0x907   : > { %v14134_v41 = vadd.f32 %v14133_v26, %v9302_v42  ;;  %v9304_v29 = vpop.f32.mrb[209].mxu1  ;;  %v9651_v42 = vld [vmem:[#allocation9 + $0x1a] sm:$0xff] }
 0x908   : > { %v9305_v16 = vpop.f32.mrb[210].mxu1  ;;  %v15220_v29 = vld [vmem:[%s19348_s7 + $0x118] sm:$0xff]  }
 0x909   : > { %v9367_v11 = vmax.f32 %v14134_v41, 0.0  ;;  %v14136_v13 = vadd.f32 %v14135_v37, %v9305_v16  ;;  %v9307_v34 = vpop.f32.mrb[211].mxu1  ;;  %v9665_v37 = vpack.c.bf16 %v9651_v42, %v9650_v9  ;;  %v15219_v41 = vld [vmem:[%s19348_s7 + $0x158] sm:$0xff]   ;;  %v9652_v16 = vld [vmem:[#allocation9 + $0x22] sm:$0xff]  ;;  %v15241_v42 = vld [vmem:[%s19348_s7 + $0x1f0] sm:$0xff]  }
 0x90a   : > { %v9565_v32 = vld [vmem:[#allocation8 + $0x138] ss:$2 sm:$0xff]  ;;  %v9567_v7 = vld [vmem:[#allocation8 + $0x139] ss:$2 sm:$0xff]  ;;  %v15224_v34 = vld [vmem:[%s19348_s7 + $0x128] sm:$0xff]  }
 0x90b   : > { %v9569_v59 = vmax.f32 %v9565_v32, %v9567_v7  ;;  %12633 = vst.msk [vmem:[%s18434_s29 + $0xe0] sm:$0xff] %vm627_vm1, %v9367_v11  ;;  %9462 = vst.msk [vmem:[#allocation8 + $0x150] sm:$0xff] %vm627_vm1, %v9367_v11  ;;  %v9368_v6 = vmax.f32 %v14136_v13, 0.0  ;;  %v15222_v11 = vld [vmem:[%s19348_s7 + $0x120] sm:$0xff]   ;;  %v18722_v13 = vpack.c.bf16 %v9653_v27, %v9652_v16  ;;  %v15225_v32 = vld [vmem:[%s19348_s7 + $0x170] sm:$0xff]  }
 0x90c   : > { %v9655_v7 = vld [vmem:[#allocation9 + $0x3a] sm:$0xff] }
 0x90d   : > { %v9570_v40 = vmax.f32 %v9568_v30, %v9569_v59  ;;  %12634 = vst.msk [vmem:[%s18434_s29 + $0xe8] sm:$0xff] %vm627_vm1, %v9368_v6  ;;  %9463 = vst.msk [vmem:[#allocation8 + $0x158] sm:$0xff] %vm627_vm1, %v9368_v6  ;;  %v9654_v30 = vld [vmem:[#allocation9 + $0x32] sm:$0xff]  ;;  %v15245_v16 = vld [vmem:[%s19348_s7 + $0x200] sm:$0xff]  }
 0x90e   : > { %v9310_v51 = vpop.f32.mrb[212].mxu1  ;;  %v15226_v59 = vld [vmem:[%s19348_s7 + $0x130] sm:$0xff]   ;;  %v18738_v6 = vpack.c.bf16 %v9655_v7, %v9654_v30  ;;  %v15244_v27 = vld [vmem:[%s19348_s7 + $0x1b8] sm:$0xff]  }
 0x90f   : > { %9571 = vst.msk [vmem:[#allocation9 + $0x71] sm:$0xff] %vm627_vm1, %v9570_v40  ;;  %v9312_v5 = vpop.f32.mrb[213].mxu1  ;;  %v15228_v40 = vld [vmem:[%s19348_s7 + $0x138] sm:$0xff]   ;;  %v15229_v51 = vld [vmem:[%s19348_s7 + $0x1c0] sm:$0xff]  }
 0x910   : > { %v9313_v4 = vpop.f32.mrb[214].mxu1 }
 0x911   : > { %v14140_v20 = vadd.f32 %v14139_v54, %v9313_v4  ;;  %v9315_v43 = vpop.f32.mrb[215].mxu1  ;;  %v9656_v54 = vld [vmem:[#allocation9 + $0x42] sm:$0xff]  ;;  %v9659_v4 = vld [vmem:[#allocation9 + $0x5a] sm:$0xff] }
 0x912   : > { %v18751_v5 = vpack.c.bf16 %v9657_v12, %v9656_v54  ;;  %v9809_v12 = vld [vmem:[#allocation9 + $0x29] sm:$0xff] }
 0x913   : > { %v9370_v14 = vmax.f32 %v14140_v20, 0.0  ;;  %v9658_v20 = vld [vmem:[#allocation9 + $0x52] sm:$0xff] }
 0x914   : > { %v9573_v18 = vld [vmem:[#allocation8 + $0x150] ss:$2 sm:$0xff]  ;;  %v9575_v33 = vld [vmem:[#allocation8 + $0x151] ss:$2 sm:$0xff]  ;;  %v18755_v43 = vpack.c.bf16 %v9659_v4, %v9658_v20  ;;  %v9776_v20 = vld [vmem:[#allocation9 + $0x20] sm:$0xff] }
 0x915   : > { %12635 = vst.msk [vmem:[%s18434_s29 + $0xf0] sm:$0xff] %vm627_vm1, %v9370_v14  ;;  %9465 = vst.msk [vmem:[#allocation8 + $0x168] sm:$0xff] %vm627_vm1, %v9370_v14  ;;  %v9580_v62 = vmax.f32 %v9573_v18, %v9575_v33 }
 0x916   : > { %v9318_v57 = vpop.f32.mrb[216].mxu1  ;;  %v9630_v15 = vld [vmem:[#allocation9 + $0x71] sm:$0xff] }
 0x917   : > { %v9598_v1 = vld [vmem:[#allocation9 + $0x70] sm:$0xff]  ;;  %v9599_v17 = vld [vmem:[#allocation9 + $0x78] sm:$0xff]  ;;  %v14142_v0 = vadd.f32 %v14141_v44, %v9318_v57  ;;  %v9320_v25 = vpop.f32.mrb[217].mxu1  ;;  %v18682_v47 = vpack.c.bf16 %v9631_v45, %v9630_v15  ;;  %v9660_v44 = vld [vmem:[#allocation9 + $0x62] sm:$0xff] }
 0x918   : > { %v18684_v21 = vpack.c.bf16 %v9599_v17, %v9598_v1  ;;  %v9321_v60 = vpop.f32.mrb[218].mxu1  ;;  %v9661_v14 = vld [vmem:[#allocation9 + $0x6a] sm:$0xff]  ;;  %v9662_v17 = vld [vmem:[#allocation9 + $0x72] sm:$0xff] }
 0x919   : > { %v9371_v46 = vmax.f32 %v14142_v0, 0.0  ;;  %v9323_v24 = vpop.f32.mrb[219].mxu1  ;;  %10613 = vmatprep.mubr.bf16.mxu0 %v18682_v47  ;;  %v18759_v57 = vpack.c.bf16 %v9661_v14, %v9660_v44  ;;  %v9712_v60 = vld [vmem:[#allocation9 + $0x11] sm:$0xff]  ;;  %v9777_v14 = vld [vmem:[#allocation9 + $0x28] sm:$0xff] }
 0x91a   : > { %10614 = vmatmul.mubr.bf16.gmra.mrb[36].mxu0 %v18684_v21  ;;  %v9792_v44 = vpack.c.bf16 %v9777_v14, %v9776_v20 }
 0x91b   : > { %12636 = vst.msk [vmem:[%s18434_s29 + $0xf8] sm:$0xff] %vm627_vm1, %v9371_v46  ;;  %9466 = vst.msk [vmem:[#allocation8 + $0x170] sm:$0xff] %vm627_vm1, %v9371_v46  ;;  %10654 = vmatprep.mubr.bf16.mxu0 %v18488_v35  ;;  %v15216_v35 = vld [vmem:[%s19348_s7 + $0x108] sm:$0xff]   ;;  %v9713_v46 = vld [vmem:[#allocation9 + $0x19] sm:$0xff] }
 0x91c   : > { %v9728_v33 = vpack.c.bf16 %v9713_v46, %v9712_v60  ;;  %v9778_v46 = vld [vmem:[#allocation9 + $0x30] sm:$0xff] }
 0x922   : > { %v9577_v55 = vld [vmem:[#allocation8 + $0x168] ss:$2 sm:$0xff]  ;;  %v9579_v3 = vld [vmem:[#allocation8 + $0x169] ss:$2 sm:$0xff]  ;;  %10655 = vmatmul.mubr.bf16.vlgmr.msra.gmra.mrb[40].mxu0 %v9664_v48 }
 0x923   : > { %v9581_v49 = vmax.f32 %v9577_v55, %v9579_v3  ;;  %10662 = vmatprep.mubr.bf16.mxu0 %v18532_v50  ;;  %13642 = vmatpush3.bf16.msra.mxu0 %v15214_v2  ;;  %v15218_v50 = vld [vmem:[%s19348_s7 + $0x110] sm:$0xff]   ;;  %v15230_v2 = vld [vmem:[%s19348_s7 + $0x180] sm:$0xff]   ;;  %v15231_v48 = vld [vmem:[%s19348_s7 + $0x1c8] sm:$0xff]  }
 0x924   : > { %13643 = vmatprep.subr.bf16.mxu0 %v15215_v36  ;;  %v15232_v36 = vld [vmem:[%s19348_s7 + $0x188] sm:$0xff]   ;;  %v15233_v55 = vld [vmem:[%s19348_s7 + $0x1d0] sm:$0xff]  }
 0x925   : > { %v9582_v26 = vmax.f32 %v9580_v62, %v9581_v49  ;;  %v15234_v3 = vld [vmem:[%s19348_s7 + $0x190] sm:$0xff]   ;;  %v15235_v62 = vld [vmem:[%s19348_s7 + $0x1d8] sm:$0xff]  }
 0x926   : > { %v15236_v49 = vld [vmem:[%s19348_s7 + $0x198] sm:$0xff]  }
 0x927   : > { %9583 = vst.msk [vmem:[#allocation9 + $0x81] sm:$0xff] %vm627_vm1, %v9582_v26  ;;  %13644 = vmatpush3.bf16.msra.mxu0 %v15216_v35  ;;  %v15237_v35 = vld [vmem:[%s19348_s7 + $0x1e0] sm:$0xff]   ;;  %v15240_v26 = vld [vmem:[%s19348_s7 + $0x1a8] sm:$0xff]  }
 0x928   : > { %13645 = vmatprep.subr.bf16.mxu0 %v15217_v31  ;;  %v15238_v31 = vld [vmem:[%s19348_s7 + $0x1a0] sm:$0xff]  }
 0x92a   : > { %10663 = vmatmul.mubr.bf16.gmra.mrb[44].mxu0 %v9665_v37 }
 0x92b   : > { %10670 = vmatprep.mubr.bf16.mxu0 %v18574_v19  ;;  %13646 = vmatpush3.bf16.msra.mxu0 %v15218_v50  ;;  %v15223_v19 = vld [vmem:[%s19348_s7 + $0x168] sm:$0xff]  }
 0x92c   : > { %13647 = vmatprep.subr.bf16.mxu0 %v15219_v41 }
 0x92e   : > { %v9694_v45 = vld [vmem:[#allocation9 + $0x80] sm:$0xff]  ;;  %v9695_v39 = vld [vmem:[#allocation9 + $0x88] sm:$0xff] }
 0x92f   : > { %13648 = vmatpush3.bf16.msra.mxu0 %v15220_v29  ;;  %v18761_v15 = vpack.c.bf16 %v9695_v39, %v9694_v45  ;;  %v9663_v1 = vld [vmem:[#allocation9 + $0x7a] sm:$0xff]  ;;  %v9810_v45 = vld [vmem:[#allocation9 + $0x31] sm:$0xff] }
 0x930   : > { %13649 = vmatprep.subr.bf16.mxu0 %v15221_v38  ;;  %v18765_v0 = vpack.c.bf16 %v9663_v1, %v9662_v17  ;;  %v15243_v38 = vld [vmem:[%s19348_s7 + $0x1f8] sm:$0xff]   ;;  %v15246_v1 = vld [vmem:[%s19348_s7 + $0x208] sm:$0xff]  }
 0x931   : > { %v9811_v39 = vld [vmem:[#allocation9 + $0x39] sm:$0xff] }
 0x932   : > { %10671 = vmatmul.mubr.bf16.gmra.mrb[48].mxu0 %v18722_v13  ;;  %v9825_v17 = vpack.c.bf16 %v9811_v39, %v9810_v45 }
 0x933   : > { %10678 = vmatprep.mubr.bf16.mxu0 %v18601_v22  ;;  %13650 = vmatpush3.bf16.msra.mxu0 %v15222_v11  ;;  %v15227_v22 = vld [vmem:[%s19348_s7 + $0x178] sm:$0xff]  }
 0x934   : > { %13651 = vmatprep.subr.bf16.mxu0 %v15223_v19  ;;  %v9758_v19 = vld [vmem:[#allocation9 + $0x82] sm:$0xff] }
 0x937   : > { %13652 = vmatpush3.bf16.msra.mxu0 %v15224_v34  ;;  %v9759_v34 = vld [vmem:[#allocation9 + $0x8a] sm:$0xff] }
 0x938   : > { %13653 = vmatprep.subr.bf16.mxu0 %v15225_v32 }
 0x93a   : > { %10679 = vmatmul.mubr.bf16.gmra.mrb[52].mxu0 %v18738_v6 }
 0x93b   : > { %10686 = vmatprep.mubr.bf16.mxu0 %v18628_v56  ;;  %13654 = vmatpush3.bf16.msra.mxu0 %v15226_v59  ;;  %v18833_v59 = vpack.c.bf16 %v9759_v34, %v9758_v19 }
 0x93c   : > { %13655 = vmatprep.subr.bf16.mxu0 %v15227_v22  ;;  %v9726_v22 = vld [vmem:[#allocation9 + $0x81] sm:$0xff] }
 0x93f   : > { %13656 = vmatpush3.bf16.msra.mxu0 %v15228_v40  ;;  %v9727_v40 = vld [vmem:[#allocation9 + $0x89] sm:$0xff] }
 0x940   : > { %13705 = vmatprep.subr.bf16.mxu0 %v15229_v51  ;;  %v9808_v51 = vld [vmem:[#allocation9 + $0x21] sm:$0xff]  ;;  %v9735_v54 = vpack.c.bf16 %v9727_v40, %v9726_v22  ;;  %v9854_v22 = vld [vmem:[#allocation9 + $0x92] sm:$0xff] }
 0x941   : > { %v9824_v4 = vpack.c.bf16 %v9809_v12, %v9808_v51  ;;  %v9855_v40 = vld [vmem:[#allocation9 + $0x9a] sm:$0xff] }
 0x942   : > { %10687 = vmatmul.mubr.bf16.gmra.mrb[56].mxu0 %v18751_v5 }
 0x943   : > { %10694 = vmatprep.mubr.bf16.mxu0 %v18657_v28 }
 0x94a   : > { %10695 = vmatmul.mubr.bf16.gmra.mrb[60].mxu0 %v18755_v43 }
 0x94b   : > { %10702 = vmatprep.mubr.bf16.mxu0 %v18684_v21 }
 0x952   : > { %10703 = vmatmul.mubr.bf16.gmra.mrb[64].mxu0 %v18759_v57 }
 0x953   : > { %10710 = vmatprep.mubr.bf16.mxu0 %v18761_v15 }
 0x95a   : > { %10711 = vmatmul.mubr.bf16.gmra.mrb[68].mxu0 %v18765_v0 }
 0x95b   : > { %10751 = vmatprep.mubr.bf16.mxu0 %v9665_v37 }
 0x95d   : > { %v13535_v25 = vpop.f32.mrb[12].mxu0 }
 0x95e   : > { %v13536_v24 = vpop.f32.mrb[13].mxu0 }
 0x95f   : > { %v18768_v8 = vadd.f32 %v13536_v24, %v13535_v25  ;;  %v13538_v61 = vpop.f32.mrb[14].mxu0  ;;  %v15247_v25 = vld [vmem:[%s19348_s7 + $0x210] sm:$0xff]   ;;  %v9779_v24 = vld [vmem:[#allocation9 + $0x38] sm:$0xff] }
 0x960   : > { %v13539_v18 = vpop.f32.mrb[15].mxu0 }
 0x961   : > { %v9813_v18 = vld [vmem:[#allocation9 + $0x49] sm:$0xff] }
 0x962   : > { %10752 = vmatmul.mubr.bf16.vlgmr.msra.gmra.mrb[72].mxu0 %v9728_v33 }
 0x963   : > { %10759 = vmatprep.mubr.bf16.mxu0 %v18722_v13  ;;  %13706 = vmatpush3.bf16.msra.mxu0 %v15230_v2  ;;  %v9812_v2 = vld [vmem:[#allocation9 + $0x41] sm:$0xff] }
 0x964   : > { %13707 = vmatprep.subr.bf16.mxu0 %v15231_v48 }
 0x967   : > { %13708 = vmatpush3.bf16.msra.mxu0 %v15232_v36 }
 0x968   : > { %13709 = vmatprep.subr.bf16.mxu0 %v15233_v55  ;;  %v9793_v55 = vpack.c.bf16 %v9779_v24, %v9778_v46 }
 0x96a   : > { %10760 = vmatmul.mubr.bf16.gmra.mrb[76].mxu0 %v18530_v53  ;;  %v15239_v53 = vld [vmem:[%s19348_s7 + $0x1e8] sm:$0xff]  }
 0x96b   : > { %10767 = vmatprep.mubr.bf16.mxu0 %v18738_v6  ;;  %13710 = vmatpush3.bf16.msra.mxu0 %v15234_v3  ;;  %v15248_v3 = vld [vmem:[%s19348_s7 + $0x218] sm:$0xff]  }
 0x96c   : > { %13711 = vmatprep.subr.bf16.mxu0 %v15235_v62  ;;  %v9826_v62 = vpack.c.bf16 %v9813_v18, %v9812_v2 }
 0x96f   : > { %13712 = vmatpush3.bf16.msra.mxu0 %v15236_v49  ;;  %v15249_v49 = vld [vmem:[%s19348_s7 + $0x220] sm:$0xff]  }
 0x970   : > { %13713 = vmatprep.subr.bf16.mxu0 %v15237_v35  ;;  %v9780_v35 = vld [vmem:[#allocation9 + $0x40] sm:$0xff] }
 0x972   : > { %10768 = vmatmul.mubr.bf16.gmra.mrb[80].mxu0 %v18572_v63  ;;  %v15242_v63 = vld [vmem:[%s19348_s7 + $0x1b0] sm:$0xff]  }
 0x973   : > { %10775 = vmatprep.mubr.bf16.mxu0 %v18751_v5  ;;  %13714 = vmatpush3.bf16.msra.mxu0 %v15238_v31  ;;  %v9781_v31 = vld [vmem:[#allocation9 + $0x48] sm:$0xff] }
 0x974   : > { %13715 = vmatprep.subr.bf16.mxu0 %v15239_v53  ;;  %v9794_v53 = vpack.c.bf16 %v9781_v31, %v9780_v35 }
 0x975   : > { %v13541_v9 = vpop.f32.mrb[16].mxu0 }
 0x976   : > { %v13542_v50 = vpop.f32.mrb[17].mxu0 }
 0x977   : > { %v18811_v37 = vadd.f32 %v13542_v50, %v13541_v9  ;;  %v13544_v41 = vpop.f32.mrb[18].mxu0  ;;  %13716 = vmatpush3.bf16.msra.mxu0 %v15240_v26  ;;  %v15250_v26 = vld [vmem:[%s19348_s7 + $0x228] sm:$0xff]   ;;  %v15252_v9 = vld [vmem:[%s19348_s7 + $0x238] sm:$0xff]  }
 0x978   : > { %v13545_v29 = vpop.f32.mrb[19].mxu0  ;;  %13717 = vmatprep.subr.bf16.mxu0 %v15241_v42  ;;  %v15251_v42 = vld [vmem:[%s19348_s7 + $0x230] sm:$0xff]  }
 0x97a   : > { %10776 = vmatmul.mubr.bf16.gmra.mrb[84].mxu0 %v18599_v23 }
 0x97b   : > { %10783 = vmatprep.mubr.bf16.mxu0 %v18755_v43  ;;  %13718 = vmatpush3.bf16.msra.mxu0 %v15242_v63 }
 0x97c   : > { %13719 = vmatprep.subr.bf16.mxu0 %v15243_v38  ;;  %v9822_v38 = vld [vmem:[#allocation9 + $0x91] sm:$0xff] }
 0x97f   : > { %13720 = vmatpush3.bf16.msra.mxu0 %v15244_v27 }
 0x980   : > { %13965 = vmatprep.subr.bf16.mxu0 %v15245_v16 }
 0x982   : > { %10784 = vmatmul.mubr.bf16.gmra.mrb[88].mxu0 %v18626_v10 }
 0x983   : > { %10791 = vmatprep.mubr.bf16.mxu0 %v18759_v57 }
 0x98a   : > { %10792 = vmatmul.mubr.bf16.gmra.mrb[92].mxu0 %v18655_v52 }
 0x98b   : > { %10799 = vmatprep.mubr.bf16.mxu0 %v18765_v0 }
 0x98d   : > { %v13547_v23 = vpop.f32.mrb[20].mxu0 }
 0x98e   : > { %v13548_v11 = vpop.f32.mrb[21].mxu0 }
 0x98f   : > { %v18831_v32 = vadd.f32 %v13548_v11, %v13547_v23  ;;  %v13550_v7 = vpop.f32.mrb[22].mxu0  ;;  %v18869_v23 = vld [vmem:[#allocation2] sm:$0xff] }
 0x990   : > { %v13551_v30 = vpop.f32.mrb[23].mxu0  ;;  %v9799_v11 = vpack.c.bf16 %v18869_v23, %v18869_v23 }
 0x992   : > { %10800 = vmatmul.mubr.bf16.gmra.mrb[96].mxu0 %v18682_v47 }
 0x993   : > { %10807 = vmatprep.mubr.bf16.mxu0 %v18833_v59 }
 0x99a   : > { %10808 = vmatmul.mubr.bf16.gmra.mrb[100].mxu0 %v9735_v54 }
 0x99b   : > { %10848 = vmatprep.mubr.bf16.mxu0 %v9824_v4 }
 0x9a2   : > { %10849 = vmatmul.mubr.bf16.vlgmr.msra.gmra.mrb[104].mxu0 %v9792_v44 }
 0x9a3   : > { %10856 = vmatprep.mubr.bf16.mxu0 %v9825_v17  ;;  %13966 = vmatpush3.bf16.msra.mxu0 %v15245_v16 }
 0x9a4   : > { %13967 = vmatprep.subr.bf16.mxu0 %v15246_v1 }
 0x9a5   : > { %v13553_v60 = vpop.f32.mrb[24].mxu0 }
 0x9a6   : > { %v13554_v61 = vpop.f32.mrb[25].mxu0 }
 0x9a7   : > { %v18843_v33 = vadd.f32 %v13554_v61, %v13553_v60  ;;  %v13556_v48 = vpop.f32.mrb[26].mxu0  ;;  %13968 = vmatpush3.bf16.msra.mxu0 %v15246_v1 }
 0x9a8   : > { %v13557_v36 = vpop.f32.mrb[27].mxu0  ;;  %13969 = vmatprep.subr.bf16.mxu0 %v15247_v25 }
 0x9aa   : > { %10857 = vmatmul.mubr.bf16.gmra.mrb[108].mxu0 %v9793_v55 }
 0x9ab   : > { %10864 = vmatprep.mubr.bf16.mxu0 %v9826_v62  ;;  %13970 = vmatpush3.bf16.msra.mxu0 %v15247_v25 }
 0x9ac   : > { %13971 = vmatprep.subr.bf16.mxu0 %v15248_v3 }
 0x9af   : > { %13972 = vmatpush3.bf16.msra.mxu0 %v15248_v3 }
 0x9b0   : > { %13973 = vmatprep.subr.bf16.mxu0 %v15249_v49 }
 0x9b2   : > { %10865 = vmatmul.mubr.bf16.gmra.mrb[112].mxu0 %v9794_v53 }
 0x9b3   : > { %10872 = vmatprep.mubr.bf16.mxu0 %v18626_v10  ;;  %13974 = vmatpush3.bf16.msra.mxu0 %v15249_v49 }
 0x9b4   : > { %13975 = vmatprep.subr.bf16.mxu0 %v15250_v26 }
 0x9b7   : > { %13976 = vmatpush3.bf16.msra.mxu0 %v15250_v26 }
 0x9b8   : > { %13977 = vmatprep.subr.bf16.mxu0 %v15251_v42 }
 0x9ba   : > { %10873 = vmatmul.mubr.bf16.gmra.mrb[116].mxu0 %v18628_v56  ;;  %v9823_v56 = vld [vmem:[#allocation9 + $0x99] sm:$0xff] }
 0x9bb   : > { %10880 = vmatprep.mubr.bf16.mxu0 %v18655_v52  ;;  %13978 = vmatpush3.bf16.msra.mxu0 %v15251_v42  ;;  %v9831_v27 = vpack.c.bf16 %v9823_v56, %v9822_v38 }
 0x9bc   : > { %13979 = vmatprep.subr.bf16.mxu0 %v15252_v9 }
 0x9bd   : > { %v13559_v50 = vpop.f32.mrb[28].mxu0 }
 0x9be   : > { %v13560_v10 = vpop.f32.mrb[29].mxu0 }
 0x9bf   : > { %v18863_v41 = vadd.f32 %v13560_v10, %v13559_v50  ;;  %v13562_v63 = vpop.f32.mrb[30].mxu0  ;;  %13980 = vmatpush3.bf16.msra.mxu0 %v15252_v9 }
 0x9c0   : > { %v13563_v29 = vpop.f32.mrb[31].mxu0 }
 0x9c2   : > { %10881 = vmatmul.mubr.bf16.gmra.mrb[120].mxu0 %v18657_v28 }
 0x9c3   : > { %10888 = vmatprep.mubr.bf16.mxu0 %v18682_v47 }
 0x9ca   : > { %10889 = vmatmul.mubr.bf16.gmra.mrb[124].mxu0 %v18684_v21 }
 0x9cb   : > { %10896 = vmatprep.mubr.bf16.mxu0 %v9735_v54 }
 0x9d2   : > { %10897 = vmatmul.mubr.bf16.gmra.mrb[128].mxu0 %v18761_v15 }
 0x9d3   : > { %10904 = vmatprep.mubr.bf16.mxu0 %v9831_v27 }
 0x9d5   : > { %v13565_v52 = vpop.f32.mrb[32].mxu0 }
 0x9d6   : > { %v13566_v16 = vpop.f32.mrb[33].mxu0 }
 0x9d7   : > { %v18873_v19 = vadd.f32 %v13566_v16, %v13565_v52  ;;  %v13568_v28 = vpop.f32.mrb[34].mxu0 }
 0x9d8   : > { %v13569_v47 = vpop.f32.mrb[35].mxu0 }
 0x9da   : > { %10905 = vmatmul.mubr.bf16.gmra.mrb[132].mxu0 %v9799_v11 }
 0x9db   : > { %13981 = vmatprep.mubr.bf16.mxu0 %v18722_v13 }
 0x9e2   : > { %13982 = vmatmul.mubr.bf16.vlgmr.msra.gmra.mrb[136].mxu0 %v18738_v6  ;;  %v12637_v6 = vld [vmem:[%s19350_s9 + $0x2] ss:$0 sm:$0xff] }
 0x9e3   : > { %13985 = vmatprep.mubr.bf16.mxu0 %v18751_v5  ;;  %v10576_v25 = vadd.f32 %v18811_v37, %v12637_v6  ;;  %v10584_v18 = vadd.f32 %v18831_v32, %v12637_v6  ;;  %v10592_v49 = vadd.f32 %v18843_v33, %v12637_v6  ;;  %v10600_v9 = vadd.f32 %v18863_v41, %v12637_v6 }
 0x9e4   : > { %v10608_v56 = vadd.f32 %v18873_v19, %v12637_v6  ;;  %v15254_v19 = vld [vmem:[%s19349_s8] sm:$0xff]  }
 0x9ea   : > { %13986 = vmatmul.mubr.bf16.gmra.mrb[140].mxu0 %v18755_v43  ;;  %v9863_v43 = vpack.c.bf16 %v9855_v40, %v9854_v22 }
 0x9eb   : > { %13989 = vmatprep.mubr.bf16.mxu0 %v18759_v57  ;;  %v10560_v57 = vadd.f32 %v18632_v58, %v12637_v6 }
 0x9ed   : > { %v13571_v21 = vpop.f32.mrb[36].mxu0 }
 0x9ee   : > { %v13572_v15 = vpop.f32.mrb[37].mxu0 }
 0x9ef   : > { %v13573_v34 = vadd.f32 %v13572_v15, %v13571_v21  ;;  %v13574_v7 = vpop.f32.mrb[38].mxu0 }
 0x9f0   : > { %v13575_v30 = vpop.f32.mrb[39].mxu0 }
 0x9f1   : > { %v10616_v47 = vadd.f32 %v13573_v34, %v12637_v6  ;;  %v15253_v30 = vld [vmem:[%s19349_s8 + $0x40] sm:$0xff]  }
 0x9f2   : > { %13990 = vmatmul.mubr.bf16.gmra.mrb[144].mxu0 %v18765_v0  ;;  %13785 = vmatprep.subr.bf16.mxu0 %v15253_v30 }
 0x9f3   : > { %13993 = vmatprep.mubr.bf16.mxu0 %v18833_v59  ;;  %v10568_v59 = vadd.f32 %v18768_v8, %v12637_v6  ;;  %13786 = vmatpush3.bf16.msra.mxu0 %v15254_v19 }
 0x9f5   : > { %v13593_v13 = vpop.f32.mrb[40].mxu0 }
 0x9f6   : > { %v13594_v5 = vpop.f32.mrb[41].mxu0 }
 0x9f7   : > { %v13595_v51 = vadd.f32 %v13594_v5, %v13593_v13  ;;  %v13596_v12 = vpop.f32.mrb[42].mxu0 }
 0x9f8   : > { %v13597_v54 = vpop.f32.mrb[43].mxu0 }
 0x9f9   : > { %v10657_v4 = vadd.f32 %v13595_v51, %v10560_v57 }
 0x9fa   : > { %13994 = vmatmul.mubr.bf16.gmra.mrb[148].mxu0 %v9863_v43 }
 0x9fd   : > { %v13599_v20 = vpop.f32.mrb[44].mxu0 }
 0x9fe   : > { %v13600_v0 = vpop.f32.mrb[45].mxu0 }
 0x9ff   : > { %v13601_v14 = vadd.f32 %v13600_v0, %v13599_v20  ;;  %v13602_v45 = vpop.f32.mrb[46].mxu0  ;;  %v15255_v0 = vld [vmem:[%s19349_s8 + $0x48] sm:$0xff]  }
 0xa00   : > { %v13603_v39 = vpop.f32.mrb[47].mxu0  ;;  %13787 = vmatprep.subr.bf16.mxu0 %v15255_v0 }
 0xa01   : > { %v10665_v44 = vadd.f32 %v13601_v14, %v10568_v59  ;;  %v15256_v14 = vld [vmem:[%s19349_s8 + $0x8] sm:$0xff]  }
 0xa02   : > { %13788 = vmatpush3.bf16.msra.mxu0 %v15256_v14 }
 0xa05   : > { %v13605_v1 = vpop.f32.mrb[48].mxu0 }
 0xa06   : > { %v13606_v17 = vpop.f32.mrb[49].mxu0 }
 0xa07   : > { %v13607_v60 = vadd.f32 %v13606_v17, %v13605_v1  ;;  %v13608_v46 = vpop.f32.mrb[50].mxu0 }
 0xa08   : > { %v13609_v58 = vpop.f32.mrb[51].mxu0 }
 0xa09   : > { %v18888_v24 = vadd.f32 %v13607_v60, %v10576_v25  ;;  %v15259_v60 = vld [vmem:[%s19349_s8 + $0x58] sm:$0xff]  }
 0xa0d   : > { %v13611_v61 = vpop.f32.mrb[52].mxu0 }
 0xa0e   : > { %v13612_v2 = vpop.f32.mrb[53].mxu0 }
 0xa0f   : > { %v13613_v48 = vadd.f32 %v13612_v2, %v13611_v61  ;;  %v13614_v36 = vpop.f32.mrb[54].mxu0 }
 0xa10   : > { %v13615_v8 = vpop.f32.mrb[55].mxu0 }
 0xa11   : > { %v18891_v55 = vadd.f32 %v13613_v48, %v10584_v18  ;;  %v15260_v18 = vld [vmem:[%s19349_s8 + $0x18] sm:$0xff]   ;;  %v15261_v48 = vld [vmem:[%s19349_s8 + $0x60] sm:$0xff]  }
 0xa12   : > { %v15262_v8 = vld [vmem:[%s19349_s8 + $0x20] sm:$0xff]  }
 0xa15   : > { %v13617_v3 = vpop.f32.mrb[56].mxu0 }
 0xa16   : > { %v13618_v62 = vpop.f32.mrb[57].mxu0 }
 0xa17   : > { %v13619_v35 = vadd.f32 %v13618_v62, %v13617_v3  ;;  %v13620_v37 = vpop.f32.mrb[58].mxu0  ;;  %v15263_v3 = vld [vmem:[%s19349_s8 + $0x68] sm:$0xff]  }
 0xa18   : > { %v13621_v31 = vpop.f32.mrb[59].mxu0 }
 0xa19   : > { %v18894_v53 = vadd.f32 %v13619_v35, %v10592_v49  ;;  %v15264_v35 = vld [vmem:[%s19349_s8 + $0x28] sm:$0xff]  }
 0xa1d   : > { %v13623_v26 = vpop.f32.mrb[60].mxu0 }
 0xa1e   : > { %v13624_v42 = vpop.f32.mrb[61].mxu0 }
 0xa1f   : > { %v13625_v50 = vadd.f32 %v13624_v42, %v13623_v26  ;;  %v13626_v32 = vpop.f32.mrb[62].mxu0 }
 0xa20   : > { %v13627_v10 = vpop.f32.mrb[63].mxu0 }
 0xa21   : > { %v18897_v63 = vadd.f32 %v13625_v50, %v10600_v9  ;;  %v15266_v9 = vld [vmem:[%s19349_s8 + $0x30] sm:$0xff]   ;;  %v15267_v50 = vld [vmem:[%s19349_s8 + $0x78] sm:$0xff]  }
 0xa25   : > { %v13629_v29 = vpop.f32.mrb[64].mxu0 }
 0xa26   : > { %v13630_v38 = vpop.f32.mrb[65].mxu0 }
 0xa27   : > { %v13631_v27 = vadd.f32 %v13630_v38, %v13629_v29  ;;  %v13632_v33 = vpop.f32.mrb[66].mxu0  ;;  %v15268_v29 = vld [vmem:[%s19349_s8 + $0x38] sm:$0xff]  }
 0xa28   : > { %v13633_v52 = vpop.f32.mrb[67].mxu0 }
 0xa29   : > { %v18900_v16 = vadd.f32 %v13631_v27, %v10608_v56  ;;  %v15269_v27 = vld [vmem:[%s19349_s8 + $0xc0] sm:$0xff]  }
 0xa2d   : > { %v13635_v11 = vpop.f32.mrb[68].mxu0 }
 0xa2e   : > { %v13636_v28 = vpop.f32.mrb[69].mxu0 }
 0xa2f   : > { %v13637_v21 = vadd.f32 %v13636_v28, %v13635_v11  ;;  %v13638_v15 = vpop.f32.mrb[70].mxu0 }
 0xa30   : > { %v13639_v41 = vpop.f32.mrb[71].mxu0 }
 0xa31   : > { %v18902_v7 = vadd.f32 %v13637_v21, %v10616_v47 }
 0xa35   : > { %v13657_v22 = vpop.f32.mrb[72].mxu0 }
 0xa36   : > { %v13658_v40 = vpop.f32.mrb[73].mxu0 }
 0xa37   : > { %v13659_v13 = vadd.f32 %v13658_v40, %v13657_v22  ;;  %v13660_v5 = vpop.f32.mrb[74].mxu0 }
 0xa38   : > { %v13661_v34 = vpop.f32.mrb[75].mxu0 }
 0xa39   : > { %v18910_v6 = vadd.f32 %v13659_v13, %v10657_v4  ;;  %v15257_v4 = vld [vmem:[%s19349_s8 + $0x50] sm:$0xff]  }
 0xa3a   : > { %13789 = vmatprep.subr.bf16.mxu0 %v15257_v4 }
 0xa3d   : > { %v13663_v43 = vpop.f32.mrb[76].mxu0 }
 0xa3e   : > { %v13664_v57 = vpop.f32.mrb[77].mxu0 }
 0xa3f   : > { %v13665_v51 = vadd.f32 %v13664_v57, %v13663_v43  ;;  %v13666_v12 = vpop.f32.mrb[78].mxu0 }
 0xa40   : > { %v13667_v54 = vpop.f32.mrb[79].mxu0 }
 0xa41   : > { %v18912_v20 = vadd.f32 %v13665_v51, %v10665_v44  ;;  %v15258_v44 = vld [vmem:[%s19349_s8 + $0x10] sm:$0xff]  }
 0xa42   : > { %13790 = vmatpush3.bf16.msra.mxu0 %v15258_v44 }
 0xa43   : > { %13791 = vmatprep.subr.bf16.mxu0 %v15259_v60 }
 0xa45   : > { %v13669_v59 = vpop.f32.mrb[80].mxu0 }
 0xa46   : > { %v13670_v45 = vpop.f32.mrb[81].mxu0  ;;  %13792 = vmatpush3.bf16.msra.mxu0 %v15260_v18 }
 0xa47   : > { %v13671_v39 = vadd.f32 %v13670_v45, %v13669_v59  ;;  %v13672_v1 = vpop.f32.mrb[82].mxu0  ;;  %13793 = vmatprep.subr.bf16.mxu0 %v15261_v48 }
 0xa48   : > { %v13673_v17 = vpop.f32.mrb[83].mxu0 }
 0xa49   : > { %v18927_v25 = vadd.f32 %v13671_v39, %v18888_v24 }
 0xa4a   : > { %13794 = vmatpush3.bf16.msra.mxu0 %v15262_v8 }
 0xa4b   : > { %13795 = vmatprep.subr.bf16.mxu0 %v15263_v3 }
 0xa4d   : > { %v13675_v46 = vpop.f32.mrb[84].mxu0 }
 0xa4e   : > { %v13676_v58 = vpop.f32.mrb[85].mxu0  ;;  %13796 = vmatpush3.bf16.msra.mxu0 %v15264_v35 }
 0xa4f   : > { %v13677_v61 = vadd.f32 %v13676_v58, %v13675_v46  ;;  %v13678_v2 = vpop.f32.mrb[86].mxu0 }
 0xa50   : > { %v13679_v24 = vpop.f32.mrb[87].mxu0 }
 0xa51   : > { %v18939_v36 = vadd.f32 %v13677_v61, %v18891_v55  ;;  %v15265_v55 = vld [vmem:[%s19349_s8 + $0x70] sm:$0xff]  }
 0xa52   : > { %13797 = vmatprep.subr.bf16.mxu0 %v15265_v55 }
 0xa53   : > { %13798 = vmatpush3.bf16.msra.mxu0 %v15266_v9 }
 0xa54   : > { %13799 = vmatprep.subr.bf16.mxu0 %v15267_v50 }
 0xa55   : > { %v13681_v62 = vpop.f32.mrb[88].mxu0 }
 0xa56   : > { %v13682_v49 = vpop.f32.mrb[89].mxu0 }
 0xa57   : > { %v13683_v37 = vadd.f32 %v13682_v49, %v13681_v62  ;;  %v13684_v31 = vpop.f32.mrb[90].mxu0  ;;  %13800 = vmatpush3.bf16.msra.mxu0 %v15268_v29 }
 0xa58   : > { %v13685_v26 = vpop.f32.mrb[91].mxu0  ;;  %13813 = vmatprep.subr.bf16.mxu0 %v15269_v27 }
 0xa59   : > { %v10786_v42 = vadd.f32 %v13683_v37, %v18894_v53 }
 0xa5d   : > { %v13687_v32 = vpop.f32.mrb[92].mxu0 }
 0xa5e   : > { %v13688_v10 = vpop.f32.mrb[93].mxu0 }
 0xa5f   : > { %v13689_v38 = vadd.f32 %v13688_v10, %v13687_v32  ;;  %v13690_v53 = vpop.f32.mrb[94].mxu0 }
 0xa60   : > { %v13691_v56 = vpop.f32.mrb[95].mxu0 }
 0xa61   : > { %v10794_v33 = vadd.f32 %v13689_v38, %v18897_v63 }
 0xa65   : > { %v13693_v52 = vpop.f32.mrb[96].mxu0 }
 0xa66   : > { %v13694_v11 = vpop.f32.mrb[97].mxu0 }
 0xa67   : > { %v13695_v28 = vadd.f32 %v13694_v11, %v13693_v52  ;;  %v13696_v47 = vpop.f32.mrb[98].mxu0 }
 0xa68   : > { %v13697_v21 = vpop.f32.mrb[99].mxu0 }
 0xa69   : > { %v10802_v15 = vadd.f32 %v13695_v28, %v18900_v16 }
 0xa6d   : > { %v13699_v41 = vpop.f32.mrb[100].mxu0 }
 0xa6e   : > { %v13700_v30 = vpop.f32.mrb[101].mxu0 }
 0xa6f   : > { %v13701_v19 = vadd.f32 %v13700_v30, %v13699_v41  ;;  %v13702_v22 = vpop.f32.mrb[102].mxu0 }
 0xa70   : > { %v13703_v40 = vpop.f32.mrb[103].mxu0 }
 0xa71   : > { %v10810_v13 = vadd.f32 %v13701_v19, %v18902_v7 }
 0xa75   : > { %v13721_v5 = vpop.f32.mrb[104].mxu0 }
 0xa76   : > { %v13722_v34 = vpop.f32.mrb[105].mxu0 }
 0xa77   : > { %v13723_v43 = vadd.f32 %v13722_v34, %v13721_v5  ;;  %v13724_v63 = vpop.f32.mrb[106].mxu0 }
 0xa78   : > { %v13725_v57 = vpop.f32.mrb[107].mxu0 }
 0xa79   : > { %v10851_v51 = vadd.f32 %v13723_v43, %v18910_v6 }
 0xa7d   : > { %v13727_v12 = vpop.f32.mrb[108].mxu0 }
 0xa7e   : > { %v13728_v54 = vpop.f32.mrb[109].mxu0 }
 0xa7f   : > { %v13729_v0 = vadd.f32 %v13728_v54, %v13727_v12  ;;  %v13730_v59 = vpop.f32.mrb[110].mxu0 }
 0xa80   : > { %v13731_v14 = vpop.f32.mrb[111].mxu0 }
 0xa81   : > { %v10859_v16 = vadd.f32 %v13729_v0, %v18912_v20 }
 0xa85   : > { %v13733_v4 = vpop.f32.mrb[112].mxu0 }
 0xa86   : > { %v13734_v45 = vpop.f32.mrb[113].mxu0 }
 0xa87   : > { %v13735_v39 = vadd.f32 %v13734_v45, %v13733_v4  ;;  %v13736_v1 = vpop.f32.mrb[114].mxu0 }
 0xa88   : > { %v13737_v44 = vpop.f32.mrb[115].mxu0 }
 0xa89   : > { %v10867_v7 = vadd.f32 %v13735_v39, %v18927_v25 }
 0xa8d   : > { %v13739_v17 = vpop.f32.mrb[116].mxu0 }
 0xa8e   : > { %v13740_v60 = vpop.f32.mrb[117].mxu0 }
 0xa8f   : > { %v13741_v46 = vadd.f32 %v13740_v60, %v13739_v17  ;;  %v13742_v58 = vpop.f32.mrb[118].mxu0  ;;  %v11120_v60 = vld [vmem:[#allocation12 + $0x1] sm:$0xff] }
 0xa90   : > { %v13743_v61 = vpop.f32.mrb[119].mxu0 }
 0xa91   : > { %v10875_v6 = vadd.f32 %v13741_v46, %v18939_v36 }
 0xa95   : > { %v13745_v2 = vpop.f32.mrb[120].mxu0 }
 0xa96   : > { %v13746_v18 = vpop.f32.mrb[121].mxu0 }
 0xa97   : > { %v13747_v48 = vadd.f32 %v13746_v18, %v13745_v2  ;;  %v13748_v24 = vpop.f32.mrb[122].mxu0 }
 0xa98   : > { %v13749_v8 = vpop.f32.mrb[123].mxu0 }
 0xa99   : > { %v10883_v20 = vadd.f32 %v13747_v48, %v10786_v42 }
 0xa9d   : > { %v13751_v3 = vpop.f32.mrb[124].mxu0 }
 0xa9e   : > { %v13752_v62 = vpop.f32.mrb[125].mxu0 }
 0xa9f   : > { %v13753_v49 = vadd.f32 %v13752_v62, %v13751_v3  ;;  %v13754_v35 = vpop.f32.mrb[126].mxu0 }
 0xaa0   : > { %v13755_v55 = vpop.f32.mrb[127].mxu0  ;;  %v15270_v35 = vld [vmem:[%s19349_s8 + $0x80] sm:$0xff]  }
 0xaa1   : > { %v10891_v25 = vadd.f32 %v13753_v49, %v10794_v33 }
 0xaa5   : > { %v13757_v37 = vpop.f32.mrb[128].mxu0 }
 0xaa6   : > { %v13758_v31 = vpop.f32.mrb[129].mxu0 }
 0xaa7   : > { %v13759_v26 = vadd.f32 %v13758_v31, %v13757_v37  ;;  %v13760_v9 = vpop.f32.mrb[130].mxu0  ;;  %v15271_v37 = vld [vmem:[%s19349_s8 + $0xc8] sm:$0xff]  }
 0xaa8   : > { %v13761_v50 = vpop.f32.mrb[131].mxu0 }
 0xaa9   : > { %v18973_v32 = vadd.f32 %v13759_v26, %v10802_v15  ;;  %v15272_v50 = vld [vmem:[%s19349_s8 + $0x88] sm:$0xff]  }
 0xaad   : > { %v13763_v36 = vpop.f32.mrb[132].mxu0 }
 0xaae   : > { %v13764_v10 = vpop.f32.mrb[133].mxu0 }
 0xaaf   : > { %v13765_v29 = vadd.f32 %v13764_v10, %v13763_v36  ;;  %v13766_v38 = vpop.f32.mrb[134].mxu0 }
 0xab0   : > { %v13767_v53 = vpop.f32.mrb[135].mxu0 }
 0xab1   : > { %v10907_v42 = vadd.f32 %v13765_v29, %v10810_v13  ;;  %v15273_v29 = vld [vmem:[%s19349_s8 + $0xd0] sm:$0xff]  }
 0xab2   : > { %v15274_v53 = vld [vmem:[%s19349_s8 + $0x90] sm:$0xff]  }
 0xab5   : > { %v13983_v56 = vpop.f32.mrb[136].mxu0 }
 0xab6   : > { %v10956_v27 = vadd.f32 %v13983_v56, %v10859_v16  ;;  %v10947_v52 = vpop.f32.mrb[137].mxu0 }
 0xab7   : > { %v10948_v11 = vadd.f32 %v10947_v52, %v10851_v51  ;;  %v13984_v28 = vpop.f32.mrb[138].mxu0 }
 0xab8   : > { %v11012_v33 = vmax.f32 %v10956_v27, 0.0  ;;  %v10950_v47 = vpop.f32.mrb[139].mxu0 }
 0xab9   : > { %v11010_v21 = vmax.f32 %v10948_v11, 0.0  ;;  %v15276_v11 = vld [vmem:[%s19349_s8 + $0x98] sm:$0xff]  }
 0xaba   : > { %12710 = vst.msk [vmem:[%s18976_s30 + $0x8] sm:$0xff] %vm627_vm1, %v11012_v33  ;;  %11043 = vst.msk [vmem:[#allocation11 + $0x10] sm:$0xff] %vm627_vm1, %v11012_v33 }
 0xabb   : > { %11026 = vst.msk [vmem:[%s18976_s30] sm:$0xff] %vm627_vm1, %v11010_v21  ;;  %11041 = vst.msk [vmem:[#allocation11] sm:$0xff] %vm627_vm1, %v11010_v21  ;;  %v15277_v21 = vld [vmem:[%s19349_s8 + $0xe0] sm:$0xff]  }
 0xabd   : > { %v13987_v15 = vpop.f32.mrb[140].mxu0 }
 0xabe   : > { %v10972_v41 = vadd.f32 %v13987_v15, %v10875_v6  ;;  %v10963_v30 = vpop.f32.mrb[141].mxu0 }
 0xabf   : > { %v10964_v19 = vadd.f32 %v10963_v30, %v10867_v7  ;;  %v13988_v22 = vpop.f32.mrb[142].mxu0 }
 0xac0   : > { %v11016_v40 = vmax.f32 %v10972_v41, 0.0  ;;  %v10966_v13 = vpop.f32.mrb[143].mxu0 }
 0xac1   : > { %v11068_v5 = vld [vmem:[#allocation11 + $0x10] ss:$2 sm:$0xf]  ;;  %v11070_v34 = vld [vmem:[#allocation11 + $0x11] ss:$2 sm:$0xf] }
 0xac2   : > { %v11072_v43 = vmax.f32 %v11068_v5, %v11070_v34  ;;  %v11064_v63 = vld [vmem:[#allocation11] ss:$2 sm:$0xf]  ;;  %v11066_v57 = vld [vmem:[#allocation11 + $0x1] ss:$2 sm:$0xf] }
 0xac3   : > { %12712 = vst.msk [vmem:[%s18976_s30 + $0x18] sm:$0xff] %vm627_vm1, %v11016_v40  ;;  %11047 = vst.msk [vmem:[#allocation11 + $0x30] sm:$0xff] %vm627_vm1, %v11016_v40  ;;  %v11071_v51 = vmax.f32 %v11064_v63, %v11066_v57  ;;  %v11014_v12 = vmax.f32 %v10964_v19, 0.0  ;;  %v15278_v5 = vld [vmem:[%s19349_s8 + $0xa0] sm:$0xff]   ;;  %v15279_v34 = vld [vmem:[%s19349_s8 + $0xe8] sm:$0xff]  }
 0xac4   : > { %v15280_v63 = vld [vmem:[%s19349_s8 + $0xa8] sm:$0xff]   ;;  %v15281_v57 = vld [vmem:[%s19349_s8 + $0xf0] sm:$0xff]  }
 0xac5   : > { %v11073_v54 = vmax.f32 %v11071_v51, %v11072_v43  ;;  %12711 = vst.msk [vmem:[%s18976_s30 + $0x10] sm:$0xff] %vm627_vm1, %v11014_v12  ;;  %11045 = vst.msk [vmem:[#allocation11 + $0x20] sm:$0xff] %vm627_vm1, %v11014_v12  ;;  %v13991_v0 = vpop.f32.mrb[144].mxu0  ;;  %v15282_v51 = vld [vmem:[%s19349_s8 + $0xb0] sm:$0xff]   ;;  %v15283_v12 = vld [vmem:[%s19349_s8 + $0xf8] sm:$0xff]  }
 0xac6   : > { %v10988_v59 = vadd.f32 %v13991_v0, %v10891_v25  ;;  %v10979_v14 = vpop.f32.mrb[145].mxu0  ;;  %v15285_v0 = vld [vmem:[%s19349_s8 + $0x140] sm:$0xff]  }
 0xac7   : > { %v10980_v16 = vadd.f32 %v10979_v14, %v10883_v20  ;;  %v13992_v4 = vpop.f32.mrb[146].mxu0  ;;  %11075 = vst.msk [vmem:[#allocation12 + $0x9] sm:$0xf] %vm11074_vm2, %v11073_v54  ;;  %v15284_v54 = vld [vmem:[%s19349_s8 + $0xb8] sm:$0xff]  }
 0xac8   : > { %v11020_v45 = vmax.f32 %v10988_v59, 0.0  ;;  %v10982_v39 = vpop.f32.mrb[147].mxu0  ;;  %v15286_v4 = vld [vmem:[%s19349_s8 + $0x100] sm:$0xff]  }
 0xac9   : > { %v11018_v7 = vmax.f32 %v10980_v16, 0.0  ;;  %v15287_v39 = vld [vmem:[%s19349_s8 + $0x148] sm:$0xff]  }
 0xaca   : > { %v11081_v1 = vld [vmem:[#allocation11 + $0x30] ss:$2 sm:$0xf]  ;;  %v11083_v44 = vld [vmem:[#allocation11 + $0x31] ss:$2 sm:$0xf] }
 0xacb   : > { %12714 = vst.msk [vmem:[%s18976_s30 + $0x28] sm:$0xff] %vm627_vm1, %v11020_v45  ;;  %11051 = vst.msk [vmem:[#allocation11 + $0x50] sm:$0xff] %vm627_vm1, %v11020_v45  ;;  %v11085_v17 = vmax.f32 %v11081_v1, %v11083_v44  ;;  %v15288_v44 = vld [vmem:[%s19349_s8 + $0x108] sm:$0xff]  }
 0xacc   : > { %v11077_v46 = vld [vmem:[#allocation11 + $0x20] ss:$2 sm:$0xf]  ;;  %v11079_v58 = vld [vmem:[#allocation11 + $0x21] ss:$2 sm:$0xf] }
 0xacd   : > { %12713 = vst.msk [vmem:[%s18976_s30 + $0x20] sm:$0xff] %vm627_vm1, %v11018_v7  ;;  %11049 = vst.msk [vmem:[#allocation11 + $0x40] sm:$0xff] %vm627_vm1, %v11018_v7  ;;  %v11084_v61 = vmax.f32 %v11077_v46, %v11079_v58  ;;  %v13995_v6 = vpop.f32.mrb[148].mxu0  ;;  %v15289_v7 = vld [vmem:[%s19349_s8 + $0x150] sm:$0xff]  }
 0xace   : > { %v11004_v2 = vadd.f32 %v13995_v6, %v10907_v42  ;;  %v10995_v18 = vpop.f32.mrb[149].mxu0  ;;  %v18997_v48 = vld [vmem:[#allocation12 + $0x9] sm:$0xff] }
 0xacf   : > { %v11113_v24 = vld [vmem:[#allocation12 + $0x8] sm:$0xff]  ;;  %v11086_v8 = vmax.f32 %v11084_v61, %v11085_v17  ;;  %v10996_v20 = vadd.f32 %v10995_v18, %v18973_v32  ;;  %v13996_v3 = vpop.f32.mrb[150].mxu0  ;;  %v11124_v62 = vpack.c.bf16 %v18997_v48, %v11120_v60  ;;  %v15275_v42 = vld [vmem:[%s19349_s8 + $0xd8] sm:$0xff]   ;;  %v15293_v18 = vld [vmem:[%s19349_s8 + $0x160] sm:$0xff]  }
 0xad0   : > { %v11116_v49 = vpack.c.bf16 %v11113_v24, %v18869_v23  ;;  %v11024_v55 = vmax.f32 %v11004_v2, 0.0  ;;  %v10998_v25 = vpop.f32.mrb[151].mxu0  ;;  %v11128_v16 = vld [vmem:[#allocation12 + $0x2] sm:$0xff]  ;;  %v15291_v61 = vld [vmem:[%s19349_s8 + $0x158] sm:$0xff]  }
 0xad1   : > { %11815 = vmatprep.mubr.bf16.mxu0 %v11124_v62  ;;  %11087 = vst.msk [vmem:[#allocation12 + $0x11] sm:$0xf] %vm11074_vm2, %v11086_v8  ;;  %v11022_v23 = vmax.f32 %v10996_v20, 0.0  ;;  %v15290_v46 = vld [vmem:[%s19349_s8 + $0x110] sm:$0xff]   ;;  %v15292_v2 = vld [vmem:[%s19349_s8 + $0x118] sm:$0xff]   ;;  %v15295_v8 = vld [vmem:[%s19349_s8 + $0x168] sm:$0xff]  }
 0xad2   : > { %v11093_v31 = vld [vmem:[#allocation11 + $0x50] ss:$2 sm:$0xf]  ;;  %v11095_v26 = vld [vmem:[#allocation11 + $0x51] ss:$2 sm:$0xf]  ;;  %11816 = vmatmul.mubr.bf16.vlgmr.msra.gmra.mrb[152].mxu0 %v11116_v49 }
 0xad3   : > { %v11097_v9 = vmax.f32 %v11093_v31, %v11095_v26  ;;  %12716 = vst.msk [vmem:[%s18976_s30 + $0x38] sm:$0xff] %vm627_vm1, %v11024_v55  ;;  %11055 = vst.msk [vmem:[#allocation11 + $0x70] sm:$0xff] %vm627_vm1, %v11024_v55  ;;  %13814 = vmatpush3.bf16.msra.mxu0 %v15270_v35  ;;  %v15296_v20 = vld [vmem:[%s19349_s8 + $0x128] sm:$0xff]   ;;  %v15297_v3 = vld [vmem:[%s19349_s8 + $0x170] sm:$0xff]  }
 0xad4   : > { %v11089_v32 = vld [vmem:[#allocation11 + $0x40] ss:$2 sm:$0xf]  ;;  %v11091_v36 = vld [vmem:[#allocation11 + $0x41] ss:$2 sm:$0xf]  ;;  %13815 = vmatprep.subr.bf16.mxu0 %v15271_v37 }
 0xad5   : > { %v11096_v10 = vmax.f32 %v11089_v32, %v11091_v36  ;;  %12715 = vst.msk [vmem:[%s18976_s30 + $0x30] sm:$0xff] %vm627_vm1, %v11022_v23  ;;  %11053 = vst.msk [vmem:[#allocation11 + $0x60] sm:$0xff] %vm627_vm1, %v11022_v23  ;;  %v15298_v62 = vld [vmem:[%s19349_s8 + $0x130] sm:$0xff]   ;;  %v15299_v49 = vld [vmem:[%s19349_s8 + $0x178] sm:$0xff]   ;;  %s15370_s30 = scalar_lea.vmem %s15369_s20, 2048 }
 0xad6   : > { %v15300_v35 = vld [vmem:[%s19349_s8 + $0x138] sm:$0xff]   ;;  %v15301_v55 = vld [vmem:[%s19349_s8 + $0x1c0] sm:$0xff]   ;;  %v15303_v26 = vld [vmem:[%s19349_s8 + $0x1c8] sm:$0xff]   ;;  %p15372_p1 = scmp.lt.s32.totalorder %s15370_s30, %s15364_s16 }
 0xad7   : > { %v11098_v38 = vmax.f32 %v11096_v10, %v11097_v9  ;;  %13816 = vmatpush3.bf16.msra.mxu0 %v15272_v50  ;;  %v15302_v37 = vld [vmem:[%s19349_s8 + $0x180] sm:$0xff]   ;;  %v15304_v23 = vld [vmem:[%s19349_s8 + $0x188] sm:$0xff]   ;;  %v15305_v50 = vld [vmem:[%s19349_s8 + $0x1d0] sm:$0xff]  }
 0xad8   : > { %13817 = vmatprep.subr.bf16.mxu0 %v15273_v29  ;;  %v19034_v41 = vld [vmem:[#allocation12 + $0x11] sm:$0xff]  ;;  %v15306_v32 = vld [vmem:[%s19349_s8 + $0x190] sm:$0xff]   ;;  %p15373_p2 = por %p15372_p1, %p15371_p0 }
 0xad9   : > { %11099 = vst.msk [vmem:[#allocation12 + $0x19] sm:$0xf] %vm11074_vm2, %v11098_v38  ;;  %v11114_v19 = vld [vmem:[#allocation12 + $0x10] sm:$0xff]  ;;  %v11148_v31 = vpack.c.bf16 %v19034_v41, %v18997_v48  ;;  %v15309_v38 = vld [vmem:[%s19349_s8 + $0x1e0] sm:$0xff]  }
 0xada   : > { %v11105_v56 = vld [vmem:[#allocation11 + $0x70] ss:$2 sm:$0xf]  ;;  %v11107_v27 = vld [vmem:[#allocation11 + $0x71] ss:$2 sm:$0xf]  ;;  %v11140_v43 = vpack.c.bf16 %v11114_v19, %v11113_v24  ;;  %p15374_p3 = pnand %p15373_p2, %p15367_p13 }
 0xadb   : > { %v11109_v52 = vmax.f32 %v11105_v56, %v11107_v27  ;;  %13818 = vmatpush3.bf16.msra.mxu0 %v15274_v53  ;;  %v11129_v59 = vld [vmem:[#allocation12 + $0xa] sm:$0xff]  ;;  %v15294_v24 = vld [vmem:[%s19349_s8 + $0x120] sm:$0xff]   ;;  %v15312_v56 = vld [vmem:[%s19349_s8 + $0x1a8] sm:$0xff]  }
 0xadc   : > { %v11101_v28 = vld [vmem:[#allocation11 + $0x60] ss:$2 sm:$0xf]  ;;  %v11103_v33 = vld [vmem:[#allocation11 + $0x61] ss:$2 sm:$0xf]  ;;  %13819 = vmatprep.subr.bf16.mxu0 %v15275_v42  ;;  %v11132_v45 = vpack.c.bf16 %v11129_v59, %v11128_v16 }
 0xadd   : > { %v11108_v47 = vmax.f32 %v11101_v28, %v11103_v33  ;;  %v15307_v10 = vld [vmem:[%s19349_s8 + $0x1d8] sm:$0xff]   ;;  %v15310_v53 = vld [vmem:[%s19349_s8 + $0x1a0] sm:$0xff]   ;;  %v15311_v42 = vld [vmem:[%s19349_s8 + $0x1e8] sm:$0xff]  }
 0xade   : > { %v15308_v29 = vld [vmem:[%s19349_s8 + $0x198] sm:$0xff]   ;;  %v15313_v27 = vld [vmem:[%s19349_s8 + $0x1f0] sm:$0xff]   ;;  %v15317_v33 = vld [vmem:[%s19349_s8 + $0x200] sm:$0xff]  }
 0xadf   : > { %v11110_v15 = vmax.f32 %v11108_v47, %v11109_v52  ;;  %13820 = vmatpush3.bf16.msra.mxu0 %v15276_v11  ;;  %v15314_v52 = vld [vmem:[%s19349_s8 + $0x1b0] sm:$0xff]   ;;  %v15315_v11 = vld [vmem:[%s19349_s8 + $0x1f8] sm:$0xff]  }
 0xae0   : > { %v19036_v30 = vld [vmem:[#allocation12 + $0x19] sm:$0xff]  ;;  %13821 = vmatprep.subr.bf16.mxu0 %v15277_v21  ;;  %v15316_v28 = vld [vmem:[%s19349_s8 + $0x1b8] sm:$0xff]  }
 0xae1   : > { %v11115_v22 = vld [vmem:[#allocation12 + $0x18] sm:$0xff]  ;;  %11111 = vst.msk [vmem:[#allocation12 + $0x21] sm:$0xf] %vm11074_vm2, %v11110_v15  ;;  %v19041_v40 = vpack.c.bf16 %v19036_v30, %v19034_v41  ;;  %v11171_v47 = vld [vmem:[#allocation12 + $0x29] sm:$0xff]  ;;  %v15318_v21 = vld [vmem:[%s19349_s8 + $0x208] sm:$0xff]  }
 0xae2   : > { %v19043_v13 = vpack.c.bf16 %v11115_v22, %v11114_v19  ;;  %v11130_v60 = vld [vmem:[#allocation12 + $0x12] sm:$0xff]  ;;  %v15319_v41 = vld [vmem:[%s19349_s8 + $0x210] sm:$0xff]  }
 0xae3   : > { %11823 = vmatprep.mubr.bf16.mxu0 %v19041_v40  ;;  %13822 = vmatpush3.bf16.msra.mxu0 %v15278_v5  ;;  %v11156_v6 = vpack.c.bf16 %v11130_v60, %v11129_v59  ;;  %v15323_v5 = vld [vmem:[%s19349_s8 + $0x230] sm:$0xff]  }
 0xae4   : > { %11824 = vmatmul.mubr.bf16.gmra.mrb[156].mxu0 %v19043_v13  ;;  %13823 = vmatprep.subr.bf16.mxu0 %v15279_v34  ;;  %v15324_v34 = vld [vmem:[%s19349_s8 + $0x238] sm:$0xff]  }
 0xae5   : > { %11864 = vmatprep.mubr.bf16.mxu0 %v11140_v43  ;;  %v11179_v43 = vld [vmem:[#allocation12 + $0x2a] sm:$0xff] }
 0xae7   : > { %13824 = vmatpush3.bf16.msra.mxu0 %v15280_v63 }
 0xae8   : > { %13825 = vmatprep.subr.bf16.mxu0 %v15281_v57  ;;  %v19071_v14 = vld [vmem:[#allocation12 + $0x20] sm:$0xff] }
 0xae9   : > { %v11141_v1 = vpack.c.bf16 %v19071_v14, %v11115_v22  ;;  %v11131_v17 = vld [vmem:[#allocation12 + $0x1a] sm:$0xff]  ;;  %v19125_v25 = vld [vmem:[#allocation12 + $0x22] sm:$0xff]  ;;  %v15320_v22 = vld [vmem:[%s19349_s8 + $0x218] sm:$0xff]  }
 0xaea   : > { %v19089_v58 = vpack.c.bf16 %v11131_v17, %v11130_v60  ;;  %v11157_v9 = vpack.c.bf16 %v19125_v25, %v11131_v17  ;;  %v11147_v48 = vld [vmem:[#allocation12 + $0x21] sm:$0xff]  ;;  %v11181_v63 = vpack.c.bf16 %v11179_v43, %v19125_v25 }
 0xaeb   : > { %13826 = vmatpush3.bf16.msra.mxu0 %v15282_v51  ;;  %v11149_v36 = vpack.c.bf16 %v11147_v48, %v19036_v30  ;;  %v11173_v15 = vpack.c.bf16 %v11171_v47, %v11147_v48  ;;  %v15363_v30 = vld [vmem:[#allocation2] sm:$0xff] }
 0xaec   : > { %13827 = vmatprep.subr.bf16.mxu0 %v15283_v12  ;;  %v11165_v19 = vpack.c.bf16 %v15363_v30, %v19071_v14 }
 0xaef   : > { %13828 = vmatpush3.bf16.msra.mxu0 %v15284_v54 }
 0xaf0   : > { %13841 = vmatprep.subr.bf16.mxu0 %v15285_v0 }
 0xaf2   : > { %11865 = vmatmul.mubr.bf16.vlgmr.msra.gmra.mrb[160].mxu0 %v11132_v45 }
 0xaf3   : > { %11872 = vmatprep.mubr.bf16.mxu0 %v11141_v1  ;;  %13842 = vmatpush3.bf16.msra.mxu0 %v15286_v4 }
 0xaf4   : > { %13843 = vmatprep.subr.bf16.mxu0 %v15287_v39 }
 0xaf7   : > { %13844 = vmatpush3.bf16.msra.mxu0 %v15288_v44 }
 0xaf8   : > { %13845 = vmatprep.subr.bf16.mxu0 %v15289_v7 }
 0xafa   : > { %11873 = vmatmul.mubr.bf16.gmra.mrb[164].mxu0 %v19089_v58 }
 0xafb   : > { %13846 = vmatpush3.bf16.msra.mxu0 %v15290_v46  ;;  %11913 = vmatprep.mubr.bf16.mxu0 %v11156_v6 }
 0xafc   : > { %13847 = vmatprep.subr.bf16.mxu0 %v15291_v61 }
 0xaff   : > { %13848 = vmatpush3.bf16.msra.mxu0 %v15292_v2 }
 0xb00   : > { %13849 = vmatprep.subr.bf16.mxu0 %v15293_v18 }
 0xb03   : > { %13850 = vmatpush3.bf16.msra.mxu0 %v15294_v24 }
 0xb04   : > { %13851 = vmatprep.subr.bf16.mxu0 %v15295_v8 }
 0xb07   : > { %13852 = vmatpush3.bf16.msra.mxu0 %v15296_v20 }
 0xb08   : > { %13853 = vmatprep.subr.bf16.mxu0 %v15297_v3 }
 0xb0b   : > { %13854 = vmatpush3.bf16.msra.mxu0 %v15298_v62 }
 0xb0c   : > { %13855 = vmatprep.subr.bf16.mxu0 %v15299_v49 }
 0xb0f   : > { %13856 = vmatpush3.bf16.msra.mxu0 %v15300_v35 }
 0xb10   : > { %13869 = vmatprep.subr.bf16.mxu0 %v15301_v55 }
 0xb12   : > { %11914 = vmatmul.mubr.bf16.vlgmr.msra.gmra.mrb[204].mxu0 %v11148_v31 }
 0xb13   : > { %11921 = vmatprep.mubr.bf16.mxu0 %v11157_v9  ;;  %13870 = vmatpush3.bf16.msra.mxu0 %v15302_v37 }
 0xb14   : > { %13871 = vmatprep.subr.bf16.mxu0 %v15303_v26 }
 0xb17   : > { %13872 = vmatpush3.bf16.msra.mxu0 %v15304_v23 }
 0xb18   : > { %13873 = vmatprep.subr.bf16.mxu0 %v15305_v50 }
 0xb1a   : > { %11922 = vmatmul.mubr.bf16.gmra.mrb[208].mxu0 %v11149_v36 }
 0xb1b   : > { %13874 = vmatpush3.bf16.msra.mxu0 %v15306_v32  ;;  %11962 = vmatprep.mubr.bf16.mxu0 %v19041_v40  ;;  %v15321_v40 = vld [vmem:[%s19349_s8 + $0x220] sm:$0xff]  }
 0xb1c   : > { %13875 = vmatprep.subr.bf16.mxu0 %v15307_v10 }
 0xb1f   : > { %13876 = vmatpush3.bf16.msra.mxu0 %v15308_v29 }
 0xb20   : > { %13877 = vmatprep.subr.bf16.mxu0 %v15309_v38 }
 0xb23   : > { %13878 = vmatpush3.bf16.msra.mxu0 %v15310_v53 }
 0xb24   : > { %13879 = vmatprep.subr.bf16.mxu0 %v15311_v42 }
 0xb27   : > { %13880 = vmatpush3.bf16.msra.mxu0 %v15312_v56 }
 0xb28   : > { %13881 = vmatprep.subr.bf16.mxu0 %v15313_v27 }
 0xb2b   : > { %13882 = vmatpush3.bf16.msra.mxu0 %v15314_v52 }
 0xb2c   : > { %13883 = vmatprep.subr.bf16.mxu0 %v15315_v11 }
 0xb2f   : > { %13884 = vmatpush3.bf16.msra.mxu0 %v15316_v28 }
 0xb30   : > { %13997 = vmatprep.subr.bf16.mxu0 %v15317_v33 }
 0xb32   : > { %11963 = vmatmul.mubr.bf16.vlgmr.msra.gmra.mrb[212].mxu0 %v19043_v13  ;;  %v15322_v13 = vld [vmem:[%s19349_s8 + $0x228] sm:$0xff]  }
 0xb33   : > { %11970 = vmatprep.mubr.bf16.mxu0 %v11173_v15  ;;  %13998 = vmatpush3.bf16.msra.mxu0 %v15317_v33 }
 0xb34   : > { %13999 = vmatprep.subr.bf16.mxu0 %v15318_v21 }
 0xb37   : > { %14000 = vmatpush3.bf16.msra.mxu0 %v15318_v21 }
 0xb38   : > { %14001 = vmatprep.subr.bf16.mxu0 %v15319_v41 }
 0xb3a   : > { %11971 = vmatmul.mubr.bf16.gmra.mrb[216].mxu0 %v11165_v19 }
 0xb3b   : > { %14002 = vmatpush3.bf16.msra.mxu0 %v15319_v41  ;;  %14013 = vmatprep.mubr.bf16.mxu0 %v19089_v58 }
 0xb3c   : > { %14003 = vmatprep.subr.bf16.mxu0 %v15320_v22 }
 0xb3f   : > { %14004 = vmatpush3.bf16.msra.mxu0 %v15320_v22 }
 0xb40   : > { %14005 = vmatprep.subr.bf16.mxu0 %v15321_v40 }
 0xb43   : > { %14006 = vmatpush3.bf16.msra.mxu0 %v15321_v40 }
 0xb44   : > { %14007 = vmatprep.subr.bf16.mxu0 %v15322_v13 }
 0xb47   : > { %14008 = vmatpush3.bf16.msra.mxu0 %v15322_v13 }
 0xb48   : > { %14009 = vmatprep.subr.bf16.mxu0 %v15323_v5 }
 0xb4b   : > { %14010 = vmatpush3.bf16.msra.mxu0 %v15323_v5 }
 0xb4c   : > { %14011 = vmatprep.subr.bf16.mxu0 %v15324_v34 }
 0xb4f   : > { %14012 = vmatpush3.bf16.msra.mxu0 %v15324_v34 }
 0xb52   : > { %14014 = vmatmul.mubr.bf16.vlgmr.msra.gmra.mrb[220].mxu0 %v11181_v63 }
 0xba5   : > { %v13801_v57 = vpop.f32.mrb[152].mxu0 }
 0xba6   : > { %v13802_v51 = vpop.f32.mrb[153].mxu0 }
 0xba7   : > { %v19205_v12 = vadd.f32 %v13802_v51, %v13801_v57  ;;  %v13804_v54 = vpop.f32.mrb[154].mxu0 }
 0xba8   : > { %v13805_v0 = vpop.f32.mrb[155].mxu0 }
 0xba9   : > { %v19207_v59 = vadd.f32 %v13805_v0, %v13804_v54 }
 0xbaa   : > { %15377 = shalt.err (!%p15374_p3)
}
 0xbab   : > { %s15378_s26 = scalar_lea.hbm %s19215_s28, 1024  ;;  %s15382_s18 = scalar_lea.hbm %s19352_s11, 2048 }
 0xbac   : > { %p15379_p4 = scmp.ne.s32.totalorder %s19215_s28, %s15378_s26  ;;  %p15383_p9 = scmp.lt.u32.totalorder %s19215_s28, %s19352_s11 }
 0xbad   : > { %p15384_p10 = scmp.lt.u32.totalorder %s15382_s18, %s15378_s26  ;;  %p15386_p12 = scmp.lt.u32.totalorder %s15378_s26, %s19215_s28 }
 0xbae   : > { %p15380_p7 = pnand %p15379_p4, %p15603_p5 }
 0xbaf   : > { %p15385_p11 = por %p15384_p10, %p15383_p9 }
 0xbb0   : > { %p15381_p8 = pneg %p15380_p7 }
 0xbb1   : > { %p15387_p13 = por %p15386_p12, %p15385_p11 }
 0xbb3   : > { %p15388_p0 = pnand %p15387_p13, %p15381_p8 }
 0xbb5   : > { %15391 = shalt.err (!%p15388_p0)
}
 0xbb6   : > { %s15492_s16 = smov 128   ;;  %s15493_s20 = smov 8  }
 0xbb7   : > { %14818 = dma.vmem_to_hbm [thread:$0]  (%p15603_p5), %s19217_s21, 1024, %s19215_s28, %s19219_s15, %s15492_s16, %s15492_s16, %s15493_s20  }
 0xbb8   : > { %s12807_s30 = sshll.u32 %s15584_s25, 12  ;;  %s12063_s26 = sshll.u32 %s18434_s29, 4  ;;  %s19253_s26 = int_to_ptr.vmem [resolvable:$true] %s12063_s26 }
 0xbb9   : > { %s19251_s18 = scalar_lea.hbm %s19351_s10, %s12807_s30  ;;  %s12040_s19 = scalar_lea.sflag [#allocation15], %s18422_s23 }
 0xbba   : > { %s15392_s17 = scalar_lea.vmem %s19253_s26, 4096  ;;  %s15494_s0 = smov [#allocation14]  }
 0xbbb   : > { %p15393_p1 = scmp.ne.s32.totalorder %s19253_s26, %s15392_s17  ;;  %s15396_s21 = sshll.u32 %s15494_s0, 4  ;;  %s15397_s21 = int_to_ptr.vmem [resolvable:$false] %s15396_s21 }
 0xbbc   : > { %s15398_s29 = scalar_lea.vmem %s15397_s21, 8192  ;;  %p15399_p4 = scmp.lt.s32.totalorder %s19253_s26, %s15397_s21 }
 0xbbd   : > { %p15394_p2 = pnand %p15393_p1, %p15603_p5  ;;  %p15400_p7 = scmp.lt.s32.totalorder %s15398_s29, %s15392_s17 }
 0xbbf   : > { %p15395_p3 = pneg %p15394_p2  ;;  %p15401_p8 = por %p15400_p7, %p15399_p4 }
 0xbc1   : > { %p15402_p9 = pnand %p15401_p8, %p15395_p3 }
 0xbc3   : > { %15405 = shalt.err (!%p15402_p9)
}
 0xbc4   : > { %s15406_s28 = scalar_lea.hbm %s19251_s18, 4096  ;;  %s15410_s0 = scalar_lea.hbm %s19351_s10, 8192 }
 0xbc5   : > { %p15407_p10 = scmp.ne.s32.totalorder %s19251_s18, %s15406_s28  ;;  %p15411_p13 = scmp.lt.u32.totalorder %s19251_s18, %s19351_s10 }
 0xbc6   : > { %p15412_p0 = scmp.lt.u32.totalorder %s15410_s0, %s15406_s28  ;;  %p15414_p2 = scmp.lt.u32.totalorder %s15406_s28, %s19251_s18 }
 0xbc7   : > { %p15408_p11 = pnand %p15407_p10, %p15603_p5 }
 0xbc8   : > { %p15413_p1 = por %p15412_p0, %p15411_p13 }
 0xbc9   : > { %p15409_p12 = pneg %p15408_p11 }
 0xbca   : > { %p15415_p3 = por %p15414_p2, %p15413_p1 }
 0xbcc   : > { %p15416_p4 = pnand %p15415_p3, %p15409_p12 }
 0xbce   : > { %15419 = shalt.err (!%p15416_p4)
}
 0xbcf   : > { %14817 = dma.vmem_to_hbm [thread:$0]  (%p15603_p5), %s19253_s26, 4096, %s19251_s18, %s12040_s19, %s15492_s16, %s15492_s16, %s15493_s20   ;;  %v13807_v14 = vpop.f32.mrb[156].mxu0 }
 0xbd0   : > { %v13808_v16 = vpop.f32.mrb[157].mxu0  ;;  %v12717_v44 = vld [vmem:[%s19350_s9 + $0x3] ss:$0 sm:$0xff]  ;;  %s12248_s16 = sshll.u32 %s18422_s23, 4  ;;  %s12809_s18 = sshll.u32 %s15584_s25, 8 }
 0xbd1   : > { %v13809_v4 = vadd.f32 %v13808_v16, %v13807_v14  ;;  %v13810_v45 = vpop.f32.mrb[158].mxu0  ;;  %v11818_v60 = vadd.f32 %v19205_v12, %v12717_v44  ;;  %v11821_v6 = vadd.f32 %v19207_v59, %v12717_v44  ;;  %s454_s20 = scalar_lea.vmem [#allocation18], %s12248_s16  ;;  %s19296_s28 = scalar_lea.hbm %s19353_s12, %s12809_s18 }
 0xbd2   : > { %v13811_v39 = vpop.f32.mrb[159].mxu0  ;;  %s12095_s26 = sshll.u32 %s454_s20, 4  ;;  %s15495_s30 = smov [#allocation18]   ;;  %s19290_s26 = int_to_ptr.vmem [resolvable:$true] %s12095_s26 }
 0xbd3   : > { %v13812_v1 = vadd.f32 %v13811_v39, %v13810_v45  ;;  %v13829_v7 = vpop.f32.mrb[160].mxu0  ;;  %v11826_v3 = vadd.f32 %v13809_v4, %v12717_v44  ;;  %s15420_s25 = scalar_lea.vmem %s19290_s26, 256  ;;  %s15424_s27 = sshll.u32 %s15495_s30, 4  ;;  %s15425_s27 = int_to_ptr.vmem [resolvable:$false] %s15424_s27 }
 0xbd4   : > { %v13830_v17 = vpop.f32.mrb[161].mxu0  ;;  %p15421_p7 = scmp.ne.s32.totalorder %s19290_s26, %s15420_s25  ;;  %s15426_s0 = scalar_lea.vmem %s15425_s27, 512 }
 0xbd5   : > { %v13831_v46 = vadd.f32 %v13830_v17, %v13829_v7  ;;  %v13832_v58 = vpop.f32.mrb[162].mxu0  ;;  %v11829_v55 = vadd.f32 %v13812_v1, %v12717_v44  ;;  %p15427_p10 = scmp.lt.s32.totalorder %s19290_s26, %s15425_s27  ;;  %p15428_p11 = scmp.lt.s32.totalorder %s15426_s0, %s15420_s25 }
 0xbd6   : > { %v13833_v61 = vpop.f32.mrb[163].mxu0  ;;  %p15422_p8 = pnand %p15421_p7, %p15603_p5 }
 0xbd7   : > { %v11867_v2 = vadd.f32 %v13831_v46, %v11818_v60  ;;  %v13834_v18 = vadd.f32 %v13833_v61, %v13832_v58  ;;  %v13835_v8 = vpop.f32.mrb[164].mxu0  ;;  %p15429_p12 = por %p15428_p11, %p15427_p10 }
 0xbd8   : > { %v13836_v20 = vpop.f32.mrb[165].mxu0  ;;  %p15423_p9 = pneg %p15422_p8 }
 0xbd9   : > { %v11870_v24 = vadd.f32 %v13834_v18, %v11821_v6  ;;  %v13837_v62 = vadd.f32 %v13836_v20, %v13835_v8  ;;  %v13838_v49 = vpop.f32.mrb[166].mxu0 }
 0xbda   : > { %v13839_v35 = vpop.f32.mrb[167].mxu0  ;;  %p15430_p13 = pnand %p15429_p12, %p15423_p9 }
 0xbdb   : > { %v11875_v25 = vadd.f32 %v13837_v62, %v11826_v3  ;;  %v13840_v37 = vadd.f32 %v13839_v35, %v13838_v49 }
 0xbdd   : > { %v11878_v31 = vadd.f32 %v13840_v37, %v11829_v55 }
 0xbe5   : > { %v13857_v26 = vpop.f32.mrb[204].mxu0 }
 0xbe6   : > { %v13858_v9 = vpop.f32.mrb[205].mxu0 }
 0xbe7   : > { %v13859_v23 = vadd.f32 %v13858_v9, %v13857_v26  ;;  %v13860_v50 = vpop.f32.mrb[206].mxu0 }
 0xbe8   : > { %v13861_v48 = vpop.f32.mrb[207].mxu0 }
 0xbe9   : > { %v11916_v32 = vadd.f32 %v13859_v23, %v11867_v2  ;;  %v13862_v36 = vadd.f32 %v13861_v48, %v13860_v50 }
 0xbeb   : > { %v11919_v10 = vadd.f32 %v13862_v36, %v11870_v24 }
 0xbed   : > { %v13863_v29 = vpop.f32.mrb[208].mxu0 }
 0xbee   : > { %v13864_v38 = vpop.f32.mrb[209].mxu0 }
 0xbef   : > { %v13865_v53 = vadd.f32 %v13864_v38, %v13863_v29  ;;  %v13866_v42 = vpop.f32.mrb[210].mxu0 }
 0xbf0   : > { %v13867_v56 = vpop.f32.mrb[211].mxu0 }
 0xbf1   : > { %v11924_v27 = vadd.f32 %v13865_v53, %v11875_v25  ;;  %v13868_v52 = vadd.f32 %v13867_v56, %v13866_v42 }
 0xbf3   : > { %v11927_v11 = vadd.f32 %v13868_v52, %v11878_v31 }
 0xc05   : > { %v13885_v28 = vpop.f32.mrb[212].mxu0 }
 0xc06   : > { %v13886_v33 = vpop.f32.mrb[213].mxu0 }
 0xc07   : > { %v13887_v47 = vadd.f32 %v13886_v33, %v13885_v28  ;;  %v13888_v21 = vpop.f32.mrb[214].mxu0 }
 0xc08   : > { %v13889_v15 = vpop.f32.mrb[215].mxu0 }
 0xc09   : > { %v13890_v41 = vadd.f32 %v13889_v15, %v13888_v21  ;;  %v11965_v30 = vadd.f32 %v13887_v47, %v11916_v32 }
 0xc0b   : > { %v11968_v19 = vadd.f32 %v13890_v41, %v11919_v10 }
 0xc0d   : > { %v13891_v22 = vpop.f32.mrb[216].mxu0 }
 0xc0e   : > { %v13892_v40 = vpop.f32.mrb[217].mxu0 }
 0xc0f   : > { %v13893_v13 = vadd.f32 %v13892_v40, %v13891_v22  ;;  %v13894_v5 = vpop.f32.mrb[218].mxu0 }
 0xc10   : > { %v13895_v34 = vpop.f32.mrb[219].mxu0 }
 0xc11   : > { %v13896_v43 = vadd.f32 %v13895_v34, %v13894_v5  ;;  %v11973_v63 = vadd.f32 %v13893_v13, %v11924_v27 }
 0xc13   : > { %v11976_v57 = vadd.f32 %v13896_v43, %v11927_v11 }
 0xc25   : > { %v14015_v51 = vpop.f32.mrb[220].mxu0 }
 0xc26   : > { %v12022_v12 = vadd.f32 %v14015_v51, %v11973_v63  ;;  %v12013_v54 = vpop.f32.mrb[221].mxu0 }
 0xc27   : > { %v12014_v0 = vadd.f32 %v12013_v54, %v11965_v30  ;;  %v14016_v59 = vpop.f32.mrb[222].mxu0 }
 0xc28   : > { %v12030_v14 = vmax.f32 %v12022_v12, 0.0  ;;  %v12025_v16 = vadd.f32 %v14016_v59, %v11976_v57  ;;  %v12016_v4 = vpop.f32.mrb[223].mxu0 }
 0xc29   : > { %v12028_v45 = vmax.f32 %v12014_v0, 0.0  ;;  %v12017_v39 = vadd.f32 %v12016_v4, %v11968_v19 }
 0xc2a   : > { %12791 = vst.msk [vmem:[%s454_s20 + $0x8] sm:$0xf] %vm11074_vm2, %v12030_v14  ;;  %v12031_v1 = vmax.f32 %v12025_v16, 0.0 }
 0xc2b   : > { %12032 = vst.msk [vmem:[%s454_s20] sm:$0xf] %vm11074_vm2, %v12028_v45  ;;  %v12029_v44 = vmax.f32 %v12017_v39, 0.0 }
 0xc2c   : > { %12792 = vst.msk [vmem:[%s454_s20 + $0xc] sm:$0xf] %vm11074_vm2, %v12031_v1 }
 0xc2d   : > { %12790 = vst.msk [vmem:[%s454_s20 + $0x4] sm:$0xf] %vm11074_vm2, %v12029_v44 }
 0xc2e   : > { %15433 = shalt.err (!%p15430_p13)
}
 0xc2f   : > { %s15434_s14 = scalar_lea.hbm %s19296_s28, 256  ;;  %s15438_s29 = scalar_lea.hbm %s19353_s12, 512 }
 0xc30   : > { %p15435_p0 = scmp.ne.s32.totalorder %s19296_s28, %s15434_s14  ;;  %p15439_p3 = scmp.lt.u32.totalorder %s19296_s28, %s19353_s12 }
 0xc31   : > { %p15440_p4 = scmp.lt.u32.totalorder %s15438_s29, %s15434_s14  ;;  %p15442_p8 = scmp.lt.u32.totalorder %s15434_s14, %s19296_s28 }
 0xc32   : > { %p15436_p1 = pnand %p15435_p0, %p15603_p5 }
 0xc33   : > { %p15441_p7 = por %p15440_p4, %p15439_p3 }
 0xc34   : > { %p15437_p2 = pneg %p15436_p1 }
 0xc35   : > { %p15443_p9 = por %p15442_p8, %p15441_p7 }
 0xc37   : > { %p15444_p10 = pnand %p15443_p9, %p15437_p2 }
 0xc39   : > { %15447 = shalt.err (!%p15444_p10)
}
 0xc3a   : > { %s15496_s18 = smov 64   ;;  %s15497_s23 = smov 4  }
 0xc3b   : > { %14819 = dma.vmem_to_hbm [thread:$0]  (%p15603_p5), %s19290_s26, 256, %s19296_s28, %s19219_s15, %s15496_s18, %s15496_s18, %s15497_s23  }
 0xc3c PF: > { %s19479_s19 = sld [smem:[#allocation21_spill]]  ;;  %p14833_p11 = scmp.ge.s32.totalorder %s15486_s24, 2 }
 0xc3e   : > { %p14824_p12 = pnand %p14833_p11, %p15607_p6 }
 0xc42   : > { %s12110_s30 = sand.u32 1, %s19479_s19  }
 0xc43   : > { %s12111_s27 = scalar_lea.sflag [#allocation15], %s12110_s30 }
 0xc44   : > { %15465 = dma.done.wait (!%p14824_p12), %s12111_s27, 4096  }
 0xc45   : > { %15467 = vsyncadd (!%p14824_p12), %s12111_s27, 4294963200  ;;  %s19481_s0 = sadd.s32 4294967294, %s15486_s24  }
 0xc46   : > { %s12119_s14 = sand.u32 1, %s19481_s0  }
 0xc47   : > { %s12120_s21 = scalar_lea.sflag [#allocation17], %s12119_s14 }
 0xc48   : > { %15469 = dma.done.wait (!%p14824_p12), %s12120_s21, 1280  }
 0xc49   : > { %15471 = vsyncadd (!%p14824_p12), %s12120_s21, 4294966016  ;;  %s19482_s24 = sld [smem:[#allocation23_spill]]  ;;  %s19483_s13 = sld [smem:[#allocation22_spill]] }
 0xc4a   : > { %s19484_s23 = sld [smem:[#allocation24_spill]]  ;;  %s19485_s21 = smov %s15478_s22 }
 0xc4f   : > { %p26_p5 = scmp.ge.s32.totalorder %s19482_s24, 4   ;;  %s19486_s22 = smov %s19483_s13 }
 0xc51   :  { %28 = sbr.rel (!%p26_p5) target bundleno = 7 (0x7), region = 226 }
 0xc58   :  { %12134 = vsyncpa [#allocation15], 1 }
 0xc59   :  { %12136 = vsyncpa [#allocation15 + $0x1], 1 }
 0xc5a   :  { %12137 = vsyncpa [#allocation17], 1 }
 0xc5b   :  { %12139 = vsyncpa [#allocation17 + $0x1], 1 }

</bundles_post_ra>
